<compile_context>
chip_gen: v6e
topology: v6e:2x2x1
jax: 0.10.0
libtpu: 0.0.40
codegen_flags: <defaults>
</compile_context>

<pallas_src>
import jax
import jax.numpy as jnp
from jax.experimental import pallas as pl
from jax.experimental.pallas import tpu as pltpu

EPS = 1e-5
K = 4  # conv kernel size used throughout the module


# ---------------------------------------------------------------------------
# Pallas kernel: fused LeakyReLU -> Conv(4,2,1) -> ReLU -> ConvT(4,2,1) + BN sums
# ---------------------------------------------------------------------------
def _fused_down_up_kernel(xs_ref, wd_ref, wu_ref, y_ref, st_ref, hp_ref):
    """One grid step processes B_TILE images; h never leaves VMEM.

    xs_ref : (bt, 4, Hh+2, Wh+2, Cin)  f32  zero-padded, 2x2 pixel-unshuffled input
    wd_ref : (4, 4*Cin, inner)         bf16 down-conv weight grouped by input phase
    wu_ref : (4, 4*inner, outer)       bf16 per-output-phase ConvT 2x2 sub-kernels
    y_ref  : (4, bt, Hh*Wh, outer)     bf16 un-normalised ConvT output (phase-major)
    st_ref : (1, 2, outer)             f32  per-tile [sum, sum_sq] per channel
    hp_ref : (bt, Hh+2, Wh+2, inner)   bf16 scratch: ReLU(conv) with zero halo
    """
    bt = xs_ref.shape[0]
    hp2, wp2, c_in = xs_ref.shape[2], xs_ref.shape[3], xs_ref.shape[4]
    hh, wh = hp2 - 2, wp2 - 2
    inner = wd_ref.shape[2]
    outer = y_ref.shape[3]
    m = bt * hh * wh

    # ---- down path: LeakyReLU(0.2) in f32, one bf16 cast of the whole slab,
    # then 4 accumulating matmuls (one per input-parity phase, 4 taps each).
    x = xs_ref[...]
    x = jnp.where(x >= 0, x, 0.2 * x).astype(jnp.bfloat16)
    h = None
    for py in range(2):
        for px in range(2):
            slab = x[:, 2 * py + px]                       # (bt, Hh+2, Wh+2, Cin)
            taps = [slab[:, da:da + hh, db:db + wh, :]
                    for da in range(2) for db in range(2)]
            op = jnp.concatenate(taps, axis=-1).reshape(m, 4 * c_in)
            d = jnp.dot(op, wd_ref[2 * py + px],
                        preferred_element_type=jnp.float32)
            h = d if h is None else h + d
    h = jnp.maximum(h, 0.0).astype(jnp.bfloat16)           # uprelu, staged in bf16

    # ---- stage h in VMEM with a zero halo ring for the transposed conv.
    # Only the ring is rewritten each step; the interior is fully overwritten.
    hp_ref[:, 0:1, :, :] = jnp.zeros((bt, 1, wp2, inner), jnp.bfloat16)
    hp_ref[:, hh + 1:hh + 2, :, :] = jnp.zeros((bt, 1, wp2, inner), jnp.bfloat16)
    hp_ref[:, :, 0:1, :] = jnp.zeros((bt, hp2, 1, inner), jnp.bfloat16)
    hp_ref[:, :, wh + 1:wh + 2, :] = jnp.zeros((bt, hp2, 1, inner), jnp.bfloat16)
    hp_ref[:, 1:hh + 1, 1:wh + 1, :] = h.reshape(bt, hh, wh, inner)

    # ---- up path: ConvT(k=4,s=2,p=1) as 4 dense output-phase matmuls,
    # operands built directly in bf16 from the bf16 scratch; BN sums in f32.
    s_sum = jnp.zeros((1, outer), jnp.float32)
    s_sq = jnp.zeros((1, outer), jnp.float32)
    for dy in range(2):
        for dx in range(2):
            taps2 = [hp_ref[:, ta + dy:ta + dy + hh, tb + dx:tb + dx + wh, :]
                     for ta in range(2) for tb in range(2)]
            pp = jnp.concatenate(taps2, axis=-1).reshape(m, 4 * inner)
            yph = jnp.dot(pp, wu_ref[2 * dy + dx],
                          preferred_element_type=jnp.float32)       # (m, outer) f32
            s_sum = s_sum + jnp.sum(yph, axis=0, keepdims=True)
            s_sq = s_sq + jnp.sum(yph * yph, axis=0, keepdims=True)
            y_ref[2 * dy + dx] = (
                yph.reshape(bt, hh * wh, outer).astype(jnp.bfloat16))

    st_ref[0, 0:1, :] = s_sum
    st_ref[0, 1:2, :] = s_sq


# ---------------------------------------------------------------------------
# Batch-tile selection + VMEM budget
# ---------------------------------------------------------------------------
def _pick_batch_tile(n, hh, wh, c_in, inner, outer, budget_bytes=40 * 2 ** 20):
    hp2, wp2 = hh + 2, wh + 2

    def est(bt):
        xs = 2 * bt * 4 * hp2 * wp2 * c_in * 4           # f32 input, double-buffered
        y = 2 * 4 * bt * hh * wh * outer * 2             # bf16 output, double-buffered
        wts = 2 * (4 * 4 * c_in * inner + 4 * 4 * inner * outer) * 2
        hp = bt * hp2 * wp2 * inner * 2                  # bf16 scratch
        tmp = (bt * hh * wh * (4 * c_in + 4 * inner) * 2
               + bt * hh * wh * (inner + outer) * 4)     # matmul operands / acc
        return xs + y + wts + hp + tmp

    bt = 1
    for cand in range(1, n + 1):
        if n % cand == 0 and est(cand) <= budget_bytes:
            bt = cand
    return bt, est(bt)


# ---------------------------------------------------------------------------
# Forward pass of the innermost UnetSkipConnectionBlock
# ---------------------------------------------------------------------------
def unet_innermost_forward(x_nchw, w_down, w_up, gamma, beta):
    n, c_in, h, w = x_nchw.shape
    inner_nc = w_down.shape[0]
    outer_nc = w_up.shape[1]
    assert h % 2 == 0 and w % 2 == 0
    hh, wh = h // 2, w // 2
    hp2, wp2 = hh + 2, wh + 2

    # Host prep: one NCHW->NHWC transpose, zero-pad, 2x2 pixel-unshuffle.
    # Pure relayout, no duplication.
    x_nhwc = jnp.transpose(x_nchw, (0, 2, 3, 1))
    xpad = jnp.pad(x_nhwc, ((0, 0), (1, 3), (1, 3), (0, 0)))     # (N, H+4, W+4, C)
    xs = xpad.reshape(n, hp2, 2, wp2, 2, c_in)
    xs = jnp.transpose(xs, (0, 2, 4, 1, 3, 5)).reshape(n, 4, hp2, wp2, c_in)

    # Down-conv weight grouped by input-parity phase (py,px): taps (da,db) use
    # kernel index (2*da+py, 2*db+px); rows ordered (da, db, cin).
    wd_phases = []
    for py in range(2):
        for px in range(2):
            blocks = [w_down[:, :, 2 * da + py, 2 * db + px].T
                      for da in range(2) for db in range(2)]      # each (cin, inner)
            wd_phases.append(jnp.concatenate(blocks, axis=0))     # (4*cin, inner)
    wd = jnp.stack(wd_phases, axis=0).astype(jnp.bfloat16)        # (4, 4*cin, inner)

    # ConvT weight -> per output phase (dy,dx): 2x2 sub-kernel, rows (ta,tb,cin_h).
    def _ktap(d, t):  # kernel index contributing to output phase d from tap t
        return (3, 1)[t] if d == 0 else (2, 0)[t]

    wu_phases = []
    for dy in range(2):
        for dx in range(2):
            blocks = [w_up[:, :, _ktap(dy, ta), _ktap(dx, tb)]
                      for ta in range(2) for tb in range(2)]      # each (inner, outer)
            wu_phases.append(jnp.concatenate(blocks, axis=0))     # (4*inner, outer)
    wu = jnp.stack(wu_phases, axis=0).astype(jnp.bfloat16)        # (4, 4*inner, outer)

    b_tile, est_bytes = _pick_batch_tile(n, hh, wh, c_in, inner_nc, outer_nc)
    n_blocks = n // b_tile
    vmem_limit = int(min(max(2 * est_bytes, 16 * 2 ** 20), 64 * 2 ** 20))

    # ---- single fused Pallas pass: down+up per image tile + BN partial sums
    y_raw, stats = pl.pallas_call(
        _fused_down_up_kernel,
        grid=(n_blocks,),
        in_specs=[
            pl.BlockSpec((b_tile, 4, hp2, wp2, c_in), lambda i: (i, 0, 0, 0, 0)),
            pl.BlockSpec((4, 4 * c_in, inner_nc), lambda i: (0, 0, 0)),
            pl.BlockSpec((4, 4 * inner_nc, outer_nc), lambda i: (0, 0, 0)),
        ],
        out_specs=[
            pl.BlockSpec((4, b_tile, hh * wh, outer_nc), lambda i: (0, i, 0, 0)),
            pl.BlockSpec((1, 2, outer_nc), lambda i: (i, 0, 0)),
        ],
        out_shape=[
            jax.ShapeDtypeStruct((4, n, hh * wh, outer_nc), jnp.bfloat16),
            jax.ShapeDtypeStruct((n_blocks, 2, outer_nc), jnp.float32),
        ],
        scratch_shapes=[pltpu.VMEM((b_tile, hp2, wp2, inner_nc), jnp.bfloat16)],
        compiler_params=pltpu.CompilerParams(
            dimension_semantics=("parallel",),
            vmem_limit_bytes=vmem_limit),
    )(xs, wd, wu)

    # ---- batch statistics: tiny per-channel reduction in plain JAX ----------
    count = n * h * w
    mean = jnp.sum(stats[:, 0, :], axis=0) / count
    var = jnp.sum(stats[:, 1, :], axis=0) / count - mean * mean   # biased (BN fwd)
    var = jnp.maximum(var, 0.0)   # guard E[y^2]-E[y]^2 cancellation
    scale = gamma.reshape(-1) * jax.lax.rsqrt(var + EPS)
    shift = beta.reshape(-1) - mean * scale

    # ---- epilogue: BN affine + phase interleave + NCHW + skip concat, fused
    # by XLA in one pass (no extra Pallas kernel / HBM round trip).
    y = (y_raw.astype(jnp.float32) * scale.reshape(1, 1, 1, -1)
         + shift.reshape(1, 1, 1, -1))
    y = y.reshape(2, 2, n, hh, wh, outer_nc)                      # (dy,dx,n,Y,X,c)
    y_nchw = jnp.transpose(y, (2, 5, 3, 0, 4, 1)).reshape(n, outer_nc, h, w)
    return jnp.concatenate([x_nchw, y_nchw], axis=1)


# ---------------------------------------------------------------------------
# Pure-JAX reference (for correctness checking only, f32 HIGHEST precision)
# ---------------------------------------------------------------------------
def _reference(x, w_down, w_up, gamma, beta):
    xl = jnp.where(x >= 0, x, 0.2 * x)
    h = jax.lax.conv_general_dilated(
        xl, w_down, (2, 2), ((1, 1), (1, 1)),
        dimension_numbers=("NCHW", "OIHW", "NCHW"),
        precision=jax.lax.Precision.HIGHEST)
    h = jnp.maximum(h, 0.0)
    w_up_conv = jnp.transpose(jnp.flip(w_up, axis=(2, 3)), (1, 0, 2, 3))
    y = jax.lax.conv_general_dilated(
        h, w_up_conv, (1, 1), ((2, 2), (2, 2)), lhs_dilation=(2, 2),
        dimension_numbers=("NCHW", "OIHW", "NCHW"),
        precision=jax.lax.Precision.HIGHEST)
    mean = jnp.mean(y, axis=(0, 2, 3), keepdims=True)
    var = jnp.mean((y - mean) ** 2, axis=(0, 2, 3), keepdims=True)
    yn = (y - mean) * jax.lax.rsqrt(var + EPS)
    yn = yn * gamma.reshape(1, -1, 1, 1) + beta.reshape(1, -1, 1, 1)
    return jnp.concatenate([x, yn], axis=1)


# ---------------------------------------------------------------------------
if __name__ == "__main__":
    # Small shapes: batch=2, outer_nc=input_nc=4, inner_nc=8, spatial=16x16
    batch, outer_nc, inner_nc, spatial = 2, 4, 8, 16
    input_nc = outer_nc  # PyTorch: input_nc=None -> input_nc = outer_nc

    key = jax.random.PRNGKey(0)
    kx, kd, ku = jax.random.split(key, 3)
    x = jax.random.normal(kx, (batch, input_nc, spatial, spatial), jnp.float32)
    # Conv2d weight (out, in, kH, kW); ConvTranspose2d weight (in, out, kH, kW)
    w_down = 0.1 * jax.random.normal(kd, (inner_nc, input_nc, K, K), jnp.float32)
    w_up = 0.1 * jax.random.normal(ku, (inner_nc, outer_nc, K, K), jnp.float32)
    # BatchNorm2d affine params, PyTorch default init (weight=1, bias=0)
    gamma = jnp.ones((outer_nc,), jnp.float32)
    beta = jnp.zeros((outer_nc,), jnp.float32)

    fwd = jax.jit(unet_innermost_forward)
    out = jax.block_until_ready(fwd(x, w_down, w_up, gamma, beta))
    ref = jax.block_until_ready(_reference(x, w_down, w_up, gamma, beta))

    assert out.shape == (batch, 2 * outer_nc, spatial, spatial), out.shape
    # bf16 matmul operands + bf16 staging/storage of y (f32 accumulation) ->
    # compare with bf16-aware tolerance.
    max_err = float(jnp.max(jnp.abs(out - ref)))
    assert jnp.allclose(out, ref, atol=6e-2, rtol=6e-2), max_err

    print("KERNEL_OK")
</pallas_src>

<mosaic_0001>
module attributes {stable_mosaic.version = 11 : i64} {
  func.func @_fused_down_up_kernel(%arg0: i32, %arg1: memref<2x4x10x10x4xf32, #tpu.memory_space<vmem>>, %arg2: memref<4x16x8xbf16, #tpu.memory_space<vmem>>, %arg3: memref<4x32x4xbf16, #tpu.memory_space<vmem>>, %arg4: memref<4x2x64x4xbf16, #tpu.memory_space<vmem>>, %arg5: memref<1x2x4xf32, #tpu.memory_space<vmem>>, %arg6: memref<2x10x10x8xbf16, #tpu.memory_space<vmem>>) attributes {dimension_semantics = [#tpu.dimension_semantics<parallel>], iteration_bounds = array<i64: 1>, scalar_prefetch = 0 : i64, scratch_operands = 1 : i64, tpu.core_type = #tpu.core_type<tc>, window_params = [{transform_indices = @transform_0, window_bounds = array<i64: 2, 4, 10, 10, 4>}, {pipeline_mode = #tpu.pipeline_mode<synchronous>, transform_indices = @transform_1, window_bounds = array<i64: 4, 16, 8>}, {pipeline_mode = #tpu.pipeline_mode<synchronous>, transform_indices = @transform_2, window_bounds = array<i64: 4, 32, 4>}, {transform_indices = @transform_3, window_bounds = array<i64: 4, 2, 64, 4>}, {transform_indices = @transform_4, window_bounds = array<i64: 1, 2, 4>}]} {
    %c0 = arith.constant 0 : index
    %c0_0 = arith.constant 0 : index
    %c0_1 = arith.constant 0 : index
    %c0_2 = arith.constant 0 : index
    %c0_3 = arith.constant 0 : index
    %0 = vector.load %arg1[%c0, %c0_0, %c0_1, %c0_2, %c0_3] : memref<2x4x10x10x4xf32, #tpu.memory_space<vmem>>, vector<2x4x10x10x4xf32>
    %cst = arith.constant 0.000000e+00 : f32
    %1 = vector.broadcast %cst : f32 to vector<2x4x10x10x4xf32>
    %2 = arith.cmpf oge, %0, %1 : vector<2x4x10x10x4xf32>
    %cst_4 = arith.constant 2.000000e-01 : f32
    %3 = vector.broadcast %cst_4 : f32 to vector<2x4x10x10x4xf32>
    %4 = arith.mulf %3, %0 : vector<2x4x10x10x4xf32>
    %5 = arith.select %2, %0, %4 : vector<2x4x10x10x4xi1>, vector<2x4x10x10x4xf32>
    %6 = arith.truncf %5 : vector<2x4x10x10x4xf32> to vector<2x4x10x10x4xbf16>
    %7 = vector.extract_strided_slice %6 {offsets = [0, 0, 0, 0, 0], sizes = [2, 1, 10, 10, 4], strides = [1, 1, 1, 1, 1]} : vector<2x4x10x10x4xbf16> to vector<2x1x10x10x4xbf16>
    %8 = vector.shape_cast %7 : vector<2x1x10x10x4xbf16> to vector<2x10x10x4xbf16>
    %9 = vector.extract_strided_slice %8 {offsets = [0, 0, 0, 0], sizes = [2, 8, 8, 4], strides = [1, 1, 1, 1]} : vector<2x10x10x4xbf16> to vector<2x8x8x4xbf16>
    %10 = vector.extract_strided_slice %8 {offsets = [0, 0, 1, 0], sizes = [2, 8, 8, 4], strides = [1, 1, 1, 1]} : vector<2x10x10x4xbf16> to vector<2x8x8x4xbf16>
    %11 = vector.extract_strided_slice %8 {offsets = [0, 1, 0, 0], sizes = [2, 8, 8, 4], strides = [1, 1, 1, 1]} : vector<2x10x10x4xbf16> to vector<2x8x8x4xbf16>
    %12 = vector.extract_strided_slice %8 {offsets = [0, 1, 1, 0], sizes = [2, 8, 8, 4], strides = [1, 1, 1, 1]} : vector<2x10x10x4xbf16> to vector<2x8x8x4xbf16>
    %13 = tpu.concatenate %9, %10, %11, %12 in 3 : vector<2x8x8x4xbf16>, vector<2x8x8x4xbf16>, vector<2x8x8x4xbf16>, vector<2x8x8x4xbf16> -> vector<2x8x8x16xbf16>
    %14 = vector.shape_cast %13 : vector<2x8x8x16xbf16> to vector<128x16xbf16>
    %c0_5 = arith.constant 0 : index
    %c0_6 = arith.constant 0 : index
    %c0_7 = arith.constant 0 : index
    %15 = vector.load %arg2[%c0_5, %c0_6, %c0_7] : memref<4x16x8xbf16, #tpu.memory_space<vmem>>, vector<1x16x8xbf16>
    %16 = vector.shape_cast %15 : vector<1x16x8xbf16> to vector<16x8xbf16>
    %cst_8 = arith.constant dense<0.000000e+00> : vector<128x8xf32>
    %17 = tpu.matmul %14, %16, %cst_8 {dimension_numbers = #tpu.dot_dimension_numbers<[1], [0], [0], [1], [0, 0, 1, 1], [], []>} : vector<128x16xbf16>, vector<16x8xbf16>, vector<128x8xf32> -> vector<128x8xf32>
    %18 = vector.extract_strided_slice %6 {offsets = [0, 1, 0, 0, 0], sizes = [2, 1, 10, 10, 4], strides = [1, 1, 1, 1, 1]} : vector<2x4x10x10x4xbf16> to vector<2x1x10x10x4xbf16>
    %19 = vector.shape_cast %18 : vector<2x1x10x10x4xbf16> to vector<2x10x10x4xbf16>
    %20 = vector.extract_strided_slice %19 {offsets = [0, 0, 0, 0], sizes = [2, 8, 8, 4], strides = [1, 1, 1, 1]} : vector<2x10x10x4xbf16> to vector<2x8x8x4xbf16>
    %21 = vector.extract_strided_slice %19 {offsets = [0, 0, 1, 0], sizes = [2, 8, 8, 4], strides = [1, 1, 1, 1]} : vector<2x10x10x4xbf16> to vector<2x8x8x4xbf16>
    %22 = vector.extract_strided_slice %19 {offsets = [0, 1, 0, 0], sizes = [2, 8, 8, 4], strides = [1, 1, 1, 1]} : vector<2x10x10x4xbf16> to vector<2x8x8x4xbf16>
    %23 = vector.extract_strided_slice %19 {offsets = [0, 1, 1, 0], sizes = [2, 8, 8, 4], strides = [1, 1, 1, 1]} : vector<2x10x10x4xbf16> to vector<2x8x8x4xbf16>
    %24 = tpu.concatenate %20, %21, %22, %23 in 3 : vector<2x8x8x4xbf16>, vector<2x8x8x4xbf16>, vector<2x8x8x4xbf16>, vector<2x8x8x4xbf16> -> vector<2x8x8x16xbf16>
    %25 = vector.shape_cast %24 : vector<2x8x8x16xbf16> to vector<128x16xbf16>
    %c1 = arith.constant 1 : index
    %c0_9 = arith.constant 0 : index
    %c0_10 = arith.constant 0 : index
    %26 = vector.load %arg2[%c1, %c0_9, %c0_10] : memref<4x16x8xbf16, #tpu.memory_space<vmem>>, vector<1x16x8xbf16>
    %27 = vector.shape_cast %26 : vector<1x16x8xbf16> to vector<16x8xbf16>
    %cst_11 = arith.constant dense<0.000000e+00> : vector<128x8xf32>
    %28 = tpu.matmul %25, %27, %cst_11 {dimension_numbers = #tpu.dot_dimension_numbers<[1], [0], [0], [1], [0, 0, 1, 1], [], []>} : vector<128x16xbf16>, vector<16x8xbf16>, vector<128x8xf32> -> vector<128x8xf32>
    %29 = arith.addf %17, %28 : vector<128x8xf32>
    %30 = vector.extract_strided_slice %6 {offsets = [0, 2, 0, 0, 0], sizes = [2, 1, 10, 10, 4], strides = [1, 1, 1, 1, 1]} : vector<2x4x10x10x4xbf16> to vector<2x1x10x10x4xbf16>
    %31 = vector.shape_cast %30 : vector<2x1x10x10x4xbf16> to vector<2x10x10x4xbf16>
    %32 = vector.extract_strided_slice %31 {offsets = [0, 0, 0, 0], sizes = [2, 8, 8, 4], strides = [1, 1, 1, 1]} : vector<2x10x10x4xbf16> to vector<2x8x8x4xbf16>
    %33 = vector.extract_strided_slice %31 {offsets = [0, 0, 1, 0], sizes = [2, 8, 8, 4], strides = [1, 1, 1, 1]} : vector<2x10x10x4xbf16> to vector<2x8x8x4xbf16>
    %34 = vector.extract_strided_slice %31 {offsets = [0, 1, 0, 0], sizes = [2, 8, 8, 4], strides = [1, 1, 1, 1]} : vector<2x10x10x4xbf16> to vector<2x8x8x4xbf16>
    %35 = vector.extract_strided_slice %31 {offsets = [0, 1, 1, 0], sizes = [2, 8, 8, 4], strides = [1, 1, 1, 1]} : vector<2x10x10x4xbf16> to vector<2x8x8x4xbf16>
    %36 = tpu.concatenate %32, %33, %34, %35 in 3 : vector<2x8x8x4xbf16>, vector<2x8x8x4xbf16>, vector<2x8x8x4xbf16>, vector<2x8x8x4xbf16> -> vector<2x8x8x16xbf16>
    %37 = vector.shape_cast %36 : vector<2x8x8x16xbf16> to vector<128x16xbf16>
    %c2 = arith.constant 2 : index
    %c0_12 = arith.constant 0 : index
    %c0_13 = arith.constant 0 : index
    %38 = vector.load %arg2[%c2, %c0_12, %c0_13] : memref<4x16x8xbf16, #tpu.memory_space<vmem>>, vector<1x16x8xbf16>
    %39 = vector.shape_cast %38 : vector<1x16x8xbf16> to vector<16x8xbf16>
    %cst_14 = arith.constant dense<0.000000e+00> : vector<128x8xf32>
    %40 = tpu.matmul %37, %39, %cst_14 {dimension_numbers = #tpu.dot_dimension_numbers<[1], [0], [0], [1], [0, 0, 1, 1], [], []>} : vector<128x16xbf16>, vector<16x8xbf16>, vector<128x8xf32> -> vector<128x8xf32>
    %41 = arith.addf %29, %40 : vector<128x8xf32>
    %42 = vector.extract_strided_slice %6 {offsets = [0, 3, 0, 0, 0], sizes = [2, 1, 10, 10, 4], strides = [1, 1, 1, 1, 1]} : vector<2x4x10x10x4xbf16> to vector<2x1x10x10x4xbf16>
    %43 = vector.shape_cast %42 : vector<2x1x10x10x4xbf16> to vector<2x10x10x4xbf16>
    %44 = vector.extract_strided_slice %43 {offsets = [0, 0, 0, 0], sizes = [2, 8, 8, 4], strides = [1, 1, 1, 1]} : vector<2x10x10x4xbf16> to vector<2x8x8x4xbf16>
    %45 = vector.extract_strided_slice %43 {offsets = [0, 0, 1, 0], sizes = [2, 8, 8, 4], strides = [1, 1, 1, 1]} : vector<2x10x10x4xbf16> to vector<2x8x8x4xbf16>
    %46 = vector.extract_strided_slice %43 {offsets = [0, 1, 0, 0], sizes = [2, 8, 8, 4], strides = [1, 1, 1, 1]} : vector<2x10x10x4xbf16> to vector<2x8x8x4xbf16>
    %47 = vector.extract_strided_slice %43 {offsets = [0, 1, 1, 0], sizes = [2, 8, 8, 4], strides = [1, 1, 1, 1]} : vector<2x10x10x4xbf16> to vector<2x8x8x4xbf16>
    %48 = tpu.concatenate %44, %45, %46, %47 in 3 : vector<2x8x8x4xbf16>, vector<2x8x8x4xbf16>, vector<2x8x8x4xbf16>, vector<2x8x8x4xbf16> -> vector<2x8x8x16xbf16>
    %49 = vector.shape_cast %48 : vector<2x8x8x16xbf16> to vector<128x16xbf16>
    %c3 = arith.constant 3 : index
    %c0_15 = arith.constant 0 : index
    %c0_16 = arith.constant 0 : index
    %50 = vector.load %arg2[%c3, %c0_15, %c0_16] : memref<4x16x8xbf16, #tpu.memory_space<vmem>>, vector<1x16x8xbf16>
    %51 = vector.shape_cast %50 : vector<1x16x8xbf16> to vector<16x8xbf16>
    %cst_17 = arith.constant dense<0.000000e+00> : vector<128x8xf32>
    %52 = tpu.matmul %49, %51, %cst_17 {dimension_numbers = #tpu.dot_dimension_numbers<[1], [0], [0], [1], [0, 0, 1, 1], [], []>} : vector<128x16xbf16>, vector<16x8xbf16>, vector<128x8xf32> -> vector<128x8xf32>
    %53 = arith.addf %41, %52 : vector<128x8xf32>
    %cst_18 = arith.constant 0.000000e+00 : f32
    %54 = vector.broadcast %cst_18 : f32 to vector<128x8xf32>
    %55 = arith.maximumf %53, %54 : vector<128x8xf32>
    %56 = arith.truncf %55 : vector<128x8xf32> to vector<128x8xbf16>
    %cst_19 = arith.constant 0.000000e+00 : bf16
    %57 = vector.broadcast %cst_19 : bf16 to vector<2x1x10x8xbf16>
    %c0_20 = arith.constant 0 : index
    %c0_21 = arith.constant 0 : index
    %c0_22 = arith.constant 0 : index
    %c0_23 = arith.constant 0 : index
    %58 = vector.load %arg6[%c0_20, %c0_21, %c0_22, %c0_23] : memref<2x10x10x8xbf16, #tpu.memory_space<vmem>>, vector<2x1x10x8xbf16>
    tpu.vector_store %arg6[%c0_20, %c0_21, %c0_22, %c0_23], %57 {strides = array<i32>} : memref<2x10x10x8xbf16, #tpu.memory_space<vmem>>, vector<2x1x10x8xbf16>,
    %cst_24 = arith.constant 0.000000e+00 : bf16
    %59 = vector.broadcast %cst_24 : bf16 to vector<2x1x10x8xbf16>
    %c0_25 = arith.constant 0 : index
    %c9 = arith.constant 9 : index
    %c0_26 = arith.constant 0 : index
    %c0_27 = arith.constant 0 : index
    %60 = vector.load %arg6[%c0_25, %c9, %c0_26, %c0_27] : memref<2x10x10x8xbf16, #tpu.memory_space<vmem>>, vector<2x1x10x8xbf16>
    tpu.vector_store %arg6[%c0_25, %c9, %c0_26, %c0_27], %59 {strides = array<i32>} : memref<2x10x10x8xbf16, #tpu.memory_space<vmem>>, vector<2x1x10x8xbf16>,
    %cst_28 = arith.constant 0.000000e+00 : bf16
    %61 = vector.broadcast %cst_28 : bf16 to vector<2x10x1x8xbf16>
    %c0_29 = arith.constant 0 : index
    %c0_30 = arith.constant 0 : index
    %c0_31 = arith.constant 0 : index
    %c0_32 = arith.constant 0 : index
    %62 = vector.load %arg6[%c0_29, %c0_30, %c0_31, %c0_32] : memref<2x10x10x8xbf16, #tpu.memory_space<vmem>>, vector<2x10x1x8xbf16>
    tpu.vector_store %arg6[%c0_29, %c0_30, %c0_31, %c0_32], %61 {strides = array<i32>} : memref<2x10x10x8xbf16, #tpu.memory_space<vmem>>, vector<2x10x1x8xbf16>,
    %cst_33 = arith.constant 0.000000e+00 : bf16
    %63 = vector.broadcast %cst_33 : bf16 to vector<2x10x1x8xbf16>
    %c0_34 = arith.constant 0 : index
    %c0_35 = arith.constant 0 : index
    %c9_36 = arith.constant 9 : index
    %c0_37 = arith.constant 0 : index
    %64 = vector.load %arg6[%c0_34, %c0_35, %c9_36, %c0_37] : memref<2x10x10x8xbf16, #tpu.memory_space<vmem>>, vector<2x10x1x8xbf16>
    tpu.vector_store %arg6[%c0_34, %c0_35, %c9_36, %c0_37], %63 {strides = array<i32>} : memref<2x10x10x8xbf16, #tpu.memory_space<vmem>>, vector<2x10x1x8xbf16>,
    %65 = vector.shape_cast %56 : vector<128x8xbf16> to vector<2x8x8x8xbf16>
    %c0_38 = arith.constant 0 : index
    %c1_39 = arith.constant 1 : index
    %c1_40 = arith.constant 1 : index
    %c0_41 = arith.constant 0 : index
    %66 = vector.load %arg6[%c0_38, %c1_39, %c1_40, %c0_41] : memref<2x10x10x8xbf16, #tpu.memory_space<vmem>>, vector<2x8x8x8xbf16>
    tpu.vector_store %arg6[%c0_38, %c1_39, %c1_40, %c0_41], %65 {strides = array<i32>} : memref<2x10x10x8xbf16, #tpu.memory_space<vmem>>, vector<2x8x8x8xbf16>,
    %cst_42 = arith.constant 0.000000e+00 : f32
    %67 = vector.broadcast %cst_42 : f32 to vector<1x4xf32>
    %cst_43 = arith.constant 0.000000e+00 : f32
    %68 = vector.broadcast %cst_43 : f32 to vector<1x4xf32>
    %c0_44 = arith.constant 0 : index
    %c0_45 = arith.constant 0 : index
    %c0_46 = arith.constant 0 : index
    %c0_47 = arith.constant 0 : index
    %69 = vector.load %arg6[%c0_44, %c0_45, %c0_46, %c0_47] : memref<2x10x10x8xbf16, #tpu.memory_space<vmem>>, vector<2x8x8x8xbf16>
    %c0_48 = arith.constant 0 : index
    %c0_49 = arith.constant 0 : index
    %c1_50 = arith.constant 1 : index
    %c0_51 = arith.constant 0 : index
    %70 = vector.load %arg6[%c0_48, %c0_49, %c1_50, %c0_51] : memref<2x10x10x8xbf16, #tpu.memory_space<vmem>>, vector<2x8x8x8xbf16>
    %c0_52 = arith.constant 0 : index
    %c1_53 = arith.constant 1 : index
    %c0_54 = arith.constant 0 : index
    %c0_55 = arith.constant 0 : index
    %71 = vector.load %arg6[%c0_52, %c1_53, %c0_54, %c0_55] : memref<2x10x10x8xbf16, #tpu.memory_space<vmem>>, vector<2x8x8x8xbf16>
    %c0_56 = arith.constant 0 : index
    %c1_57 = arith.constant 1 : index
    %c1_58 = arith.constant 1 : index
    %c0_59 = arith.constant 0 : index
    %72 = vector.load %arg6[%c0_56, %c1_57, %c1_58, %c0_59] : memref<2x10x10x8xbf16, #tpu.memory_space<vmem>>, vector<2x8x8x8xbf16>
    %73 = tpu.concatenate %69, %70, %71, %72 in 3 : vector<2x8x8x8xbf16>, vector<2x8x8x8xbf16>, vector<2x8x8x8xbf16>, vector<2x8x8x8xbf16> -> vector<2x8x8x32xbf16>
    %74 = vector.shape_cast %73 : vector<2x8x8x32xbf16> to vector<128x32xbf16>
    %c0_60 = arith.constant 0 : index
    %c0_61 = arith.constant 0 : index
    %c0_62 = arith.constant 0 : index
    %75 = vector.load %arg3[%c0_60, %c0_61, %c0_62] : memref<4x32x4xbf16, #tpu.memory_space<vmem>>, vector<1x32x4xbf16>
    %76 = vector.shape_cast %75 : vector<1x32x4xbf16> to vector<32x4xbf16>
    %cst_63 = arith.constant dense<0.000000e+00> : vector<128x4xf32>
    %77 = tpu.matmul %74, %76, %cst_63 {dimension_numbers = #tpu.dot_dimension_numbers<[1], [0], [0], [1], [0, 0, 1, 1], [], []>} : vector<128x32xbf16>, vector<32x4xbf16>, vector<128x4xf32> -> vector<128x4xf32>
    %cst_64 = arith.constant dense<0.000000e+00> : vector<4xf32>
    %78 = vector.multi_reduction <add>, %77, %cst_64 [0] : vector<128x4xf32> to vector<4xf32>
    %79 = vector.shape_cast %78 : vector<4xf32> to vector<1x4xf32>
    %80 = arith.addf %67, %79 : vector<1x4xf32>
    %81 = arith.mulf %77, %77 : vector<128x4xf32>
    %cst_65 = arith.constant dense<0.000000e+00> : vector<4xf32>
    %82 = vector.multi_reduction <add>, %81, %cst_65 [0] : vector<128x4xf32> to vector<4xf32>
    %83 = vector.shape_cast %82 : vector<4xf32> to vector<1x4xf32>
    %84 = arith.addf %68, %83 : vector<1x4xf32>
    %85 = vector.shape_cast %77 : vector<128x4xf32> to vector<2x64x4xf32>
    %86 = arith.truncf %85 : vector<2x64x4xf32> to vector<2x64x4xbf16>
    %c0_66 = arith.constant 0 : index
    %c0_67 = arith.constant 0 : index
    %c0_68 = arith.constant 0 : index
    %c0_69 = arith.constant 0 : index
    %87 = vector.load %arg4[%c0_66, %c0_67, %c0_68, %c0_69] : memref<4x2x64x4xbf16, #tpu.memory_space<vmem>>, vector<1x2x64x4xbf16>
    %88 = vector.shape_cast %87 : vector<1x2x64x4xbf16> to vector<2x64x4xbf16>
    %89 = vector.shape_cast %86 : vector<2x64x4xbf16> to vector<1x2x64x4xbf16>
    tpu.vector_store %arg4[%c0_66, %c0_67, %c0_68, %c0_69], %89 {strides = array<i32>} : memref<4x2x64x4xbf16, #tpu.memory_space<vmem>>, vector<1x2x64x4xbf16>,
    %c0_70 = arith.constant 0 : index
    %c0_71 = arith.constant 0 : index
    %c1_72 = arith.constant 1 : index
    %c0_73 = arith.constant 0 : index
    %90 = vector.load %arg6[%c0_70, %c0_71, %c1_72, %c0_73] : memref<2x10x10x8xbf16, #tpu.memory_space<vmem>>, vector<2x8x8x8xbf16>
    %c0_74 = arith.constant 0 : index
    %c0_75 = arith.constant 0 : index
    %c2_76 = arith.constant 2 : index
    %c0_77 = arith.constant 0 : index
    %91 = vector.load %arg6[%c0_74, %c0_75, %c2_76, %c0_77] : memref<2x10x10x8xbf16, #tpu.memory_space<vmem>>, vector<2x8x8x8xbf16>
    %c0_78 = arith.constant 0 : index
    %c1_79 = arith.constant 1 : index
    %c1_80 = arith.constant 1 : index
    %c0_81 = arith.constant 0 : index
    %92 = vector.load %arg6[%c0_78, %c1_79, %c1_80, %c0_81] : memref<2x10x10x8xbf16, #tpu.memory_space<vmem>>, vector<2x8x8x8xbf16>
    %c0_82 = arith.constant 0 : index
    %c1_83 = arith.constant 1 : index
    %c2_84 = arith.constant 2 : index
    %c0_85 = arith.constant 0 : index
    %93 = vector.load %arg6[%c0_82, %c1_83, %c2_84, %c0_85] : memref<2x10x10x8xbf16, #tpu.memory_space<vmem>>, vector<2x8x8x8xbf16>
    %94 = tpu.concatenate %90, %91, %92, %93 in 3 : vector<2x8x8x8xbf16>, vector<2x8x8x8xbf16>, vector<2x8x8x8xbf16>, vector<2x8x8x8xbf16> -> vector<2x8x8x32xbf16>
    %95 = vector.shape_cast %94 : vector<2x8x8x32xbf16> to vector<128x32xbf16>
    %c1_86 = arith.constant 1 : index
    %c0_87 = arith.constant 0 : index
    %c0_88 = arith.constant 0 : index
    %96 = vector.load %arg3[%c1_86, %c0_87, %c0_88] : memref<4x32x4xbf16, #tpu.memory_space<vmem>>, vector<1x32x4xbf16>
    %97 = vector.shape_cast %96 : vector<1x32x4xbf16> to vector<32x4xbf16>
    %cst_89 = arith.constant dense<0.000000e+00> : vector<128x4xf32>
    %98 = tpu.matmul %95, %97, %cst_89 {dimension_numbers = #tpu.dot_dimension_numbers<[1], [0], [0], [1], [0, 0, 1, 1], [], []>} : vector<128x32xbf16>, vector<32x4xbf16>, vector<128x4xf32> -> vector<128x4xf32>
    %cst_90 = arith.constant dense<0.000000e+00> : vector<4xf32>
    %99 = vector.multi_reduction <add>, %98, %cst_90 [0] : vector<128x4xf32> to vector<4xf32>
    %100 = vector.shape_cast %99 : vector<4xf32> to vector<1x4xf32>
    %101 = arith.addf %80, %100 : vector<1x4xf32>
    %102 = arith.mulf %98, %98 : vector<128x4xf32>
    %cst_91 = arith.constant dense<0.000000e+00> : vector<4xf32>
    %103 = vector.multi_reduction <add>, %102, %cst_91 [0] : vector<128x4xf32> to vector<4xf32>
    %104 = vector.shape_cast %103 : vector<4xf32> to vector<1x4xf32>
    %105 = arith.addf %84, %104 : vector<1x4xf32>
    %106 = vector.shape_cast %98 : vector<128x4xf32> to vector<2x64x4xf32>
    %107 = arith.truncf %106 : vector<2x64x4xf32> to vector<2x64x4xbf16>
    %c1_92 = arith.constant 1 : index
    %c0_93 = arith.constant 0 : index
    %c0_94 = arith.constant 0 : index
    %c0_95 = arith.constant 0 : index
    %108 = vector.load %arg4[%c1_92, %c0_93, %c0_94, %c0_95] : memref<4x2x64x4xbf16, #tpu.memory_space<vmem>>, vector<1x2x64x4xbf16>
    %109 = vector.shape_cast %108 : vector<1x2x64x4xbf16> to vector<2x64x4xbf16>
    %110 = vector.shape_cast %107 : vector<2x64x4xbf16> to vector<1x2x64x4xbf16>
    tpu.vector_store %arg4[%c1_92, %c0_93, %c0_94, %c0_95], %110 {strides = array<i32>} : memref<4x2x64x4xbf16, #tpu.memory_space<vmem>>, vector<1x2x64x4xbf16>,
    %c0_96 = arith.constant 0 : index
    %c1_97 = arith.constant 1 : index
    %c0_98 = arith.constant 0 : index
    %c0_99 = arith.constant 0 : index
    %111 = vector.load %arg6[%c0_96, %c1_97, %c0_98, %c0_99] : memref<2x10x10x8xbf16, #tpu.memory_space<vmem>>, vector<2x8x8x8xbf16>
    %c0_100 = arith.constant 0 : index
    %c1_101 = arith.constant 1 : index
    %c1_102 = arith.constant 1 : index
    %c0_103 = arith.constant 0 : index
    %112 = vector.load %arg6[%c0_100, %c1_101, %c1_102, %c0_103] : memref<2x10x10x8xbf16, #tpu.memory_space<vmem>>, vector<2x8x8x8xbf16>
    %c0_104 = arith.constant 0 : index
    %c2_105 = arith.constant 2 : index
    %c0_106 = arith.constant 0 : index
    %c0_107 = arith.constant 0 : index
    %113 = vector.load %arg6[%c0_104, %c2_105, %c0_106, %c0_107] : memref<2x10x10x8xbf16, #tpu.memory_space<vmem>>, vector<2x8x8x8xbf16>
    %c0_108 = arith.constant 0 : index
    %c2_109 = arith.constant 2 : index
    %c1_110 = arith.constant 1 : index
    %c0_111 = arith.constant 0 : index
    %114 = vector.load %arg6[%c0_108, %c2_109, %c1_110, %c0_111] : memref<2x10x10x8xbf16, #tpu.memory_space<vmem>>, vector<2x8x8x8xbf16>
    %115 = tpu.concatenate %111, %112, %113, %114 in 3 : vector<2x8x8x8xbf16>, vector<2x8x8x8xbf16>, vector<2x8x8x8xbf16>, vector<2x8x8x8xbf16> -> vector<2x8x8x32xbf16>
    %116 = vector.shape_cast %115 : vector<2x8x8x32xbf16> to vector<128x32xbf16>
    %c2_112 = arith.constant 2 : index
    %c0_113 = arith.constant 0 : index
    %c0_114 = arith.constant 0 : index
    %117 = vector.load %arg3[%c2_112, %c0_113, %c0_114] : memref<4x32x4xbf16, #tpu.memory_space<vmem>>, vector<1x32x4xbf16>
    %118 = vector.shape_cast %117 : vector<1x32x4xbf16> to vector<32x4xbf16>
    %cst_115 = arith.constant dense<0.000000e+00> : vector<128x4xf32>
    %119 = tpu.matmul %116, %118, %cst_115 {dimension_numbers = #tpu.dot_dimension_numbers<[1], [0], [0], [1], [0, 0, 1, 1], [], []>} : vector<128x32xbf16>, vector<32x4xbf16>, vector<128x4xf32> -> vector<128x4xf32>
    %cst_116 = arith.constant dense<0.000000e+00> : vector<4xf32>
    %120 = vector.multi_reduction <add>, %119, %cst_116 [0] : vector<128x4xf32> to vector<4xf32>
    %121 = vector.shape_cast %120 : vector<4xf32> to vector<1x4xf32>
    %122 = arith.addf %101, %121 : vector<1x4xf32>
    %123 = arith.mulf %119, %119 : vector<128x4xf32>
    %cst_117 = arith.constant dense<0.000000e+00> : vector<4xf32>
    %124 = vector.multi_reduction <add>, %123, %cst_117 [0] : vector<128x4xf32> to vector<4xf32>
    %125 = vector.shape_cast %124 : vector<4xf32> to vector<1x4xf32>
    %126 = arith.addf %105, %125 : vector<1x4xf32>
    %127 = vector.shape_cast %119 : vector<128x4xf32> to vector<2x64x4xf32>
    %128 = arith.truncf %127 : vector<2x64x4xf32> to vector<2x64x4xbf16>
    %c2_118 = arith.constant 2 : index
    %c0_119 = arith.constant 0 : index
    %c0_120 = arith.constant 0 : index
    %c0_121 = arith.constant 0 : index
    %129 = vector.load %arg4[%c2_118, %c0_119, %c0_120, %c0_121] : memref<4x2x64x4xbf16, #tpu.memory_space<vmem>>, vector<1x2x64x4xbf16>
    %130 = vector.shape_cast %129 : vector<1x2x64x4xbf16> to vector<2x64x4xbf16>
    %131 = vector.shape_cast %128 : vector<2x64x4xbf16> to vector<1x2x64x4xbf16>
    tpu.vector_store %arg4[%c2_118, %c0_119, %c0_120, %c0_121], %131 {strides = array<i32>} : memref<4x2x64x4xbf16, #tpu.memory_space<vmem>>, vector<1x2x64x4xbf16>,
    %c0_122 = arith.constant 0 : index
    %c1_123 = arith.constant 1 : index
    %c1_124 = arith.constant 1 : index
    %c0_125 = arith.constant 0 : index
    %132 = vector.load %arg6[%c0_122, %c1_123, %c1_124, %c0_125] : memref<2x10x10x8xbf16, #tpu.memory_space<vmem>>, vector<2x8x8x8xbf16>
    %c0_126 = arith.constant 0 : index
    %c1_127 = arith.constant 1 : index
    %c2_128 = arith.constant 2 : index
    %c0_129 = arith.constant 0 : index
    %133 = vector.load %arg6[%c0_126, %c1_127, %c2_128, %c0_129] : memref<2x10x10x8xbf16, #tpu.memory_space<vmem>>, vector<2x8x8x8xbf16>
    %c0_130 = arith.constant 0 : index
    %c2_131 = arith.constant 2 : index
    %c1_132 = arith.constant 1 : index
    %c0_133 = arith.constant 0 : index
    %134 = vector.load %arg6[%c0_130, %c2_131, %c1_132, %c0_133] : memref<2x10x10x8xbf16, #tpu.memory_space<vmem>>, vector<2x8x8x8xbf16>
    %c0_134 = arith.constant 0 : index
    %c2_135 = arith.constant 2 : index
    %c2_136 = arith.constant 2 : index
    %c0_137 = arith.constant 0 : index
    %135 = vector.load %arg6[%c0_134, %c2_135, %c2_136, %c0_137] : memref<2x10x10x8xbf16, #tpu.memory_space<vmem>>, vector<2x8x8x8xbf16>
    %136 = tpu.concatenate %132, %133, %134, %135 in 3 : vector<2x8x8x8xbf16>, vector<2x8x8x8xbf16>, vector<2x8x8x8xbf16>, vector<2x8x8x8xbf16> -> vector<2x8x8x32xbf16>
    %137 = vector.shape_cast %136 : vector<2x8x8x32xbf16> to vector<128x32xbf16>
    %c3_138 = arith.constant 3 : index
    %c0_139 = arith.constant 0 : index
    %c0_140 = arith.constant 0 : index
    %138 = vector.load %arg3[%c3_138, %c0_139, %c0_140] : memref<4x32x4xbf16, #tpu.memory_space<vmem>>, vector<1x32x4xbf16>
    %139 = vector.shape_cast %138 : vector<1x32x4xbf16> to vector<32x4xbf16>
    %cst_141 = arith.constant dense<0.000000e+00> : vector<128x4xf32>
    %140 = tpu.matmul %137, %139, %cst_141 {dimension_numbers = #tpu.dot_dimension_numbers<[1], [0], [0], [1], [0, 0, 1, 1], [], []>} : vector<128x32xbf16>, vector<32x4xbf16>, vector<128x4xf32> -> vector<128x4xf32>
    %cst_142 = arith.constant dense<0.000000e+00> : vector<4xf32>
    %141 = vector.multi_reduction <add>, %140, %cst_142 [0] : vector<128x4xf32> to vector<4xf32>
    %142 = vector.shape_cast %141 : vector<4xf32> to vector<1x4xf32>
    %143 = arith.addf %122, %142 : vector<1x4xf32>
    %144 = arith.mulf %140, %140 : vector<128x4xf32>
    %cst_143 = arith.constant dense<0.000000e+00> : vector<4xf32>
    %145 = vector.multi_reduction <add>, %144, %cst_143 [0] : vector<128x4xf32> to vector<4xf32>
    %146 = vector.shape_cast %145 : vector<4xf32> to vector<1x4xf32>
    %147 = arith.addf %126, %146 : vector<1x4xf32>
    %148 = vector.shape_cast %140 : vector<128x4xf32> to vector<2x64x4xf32>
    %149 = arith.truncf %148 : vector<2x64x4xf32> to vector<2x64x4xbf16>
    %c3_144 = arith.constant 3 : index
    %c0_145 = arith.constant 0 : index
    %c0_146 = arith.constant 0 : index
    %c0_147 = arith.constant 0 : index
    %150 = vector.load %arg4[%c3_144, %c0_145, %c0_146, %c0_147] : memref<4x2x64x4xbf16, #tpu.memory_space<vmem>>, vector<1x2x64x4xbf16>
    %151 = vector.shape_cast %150 : vector<1x2x64x4xbf16> to vector<2x64x4xbf16>
    %152 = vector.shape_cast %149 : vector<2x64x4xbf16> to vector<1x2x64x4xbf16>
    tpu.vector_store %arg4[%c3_144, %c0_145, %c0_146, %c0_147], %152 {strides = array<i32>} : memref<4x2x64x4xbf16, #tpu.memory_space<vmem>>, vector<1x2x64x4xbf16>,
    %c0_148 = arith.constant 0 : index
    %c0_149 = arith.constant 0 : index
    %c0_150 = arith.constant 0 : index
    %153 = vector.load %arg5[%c0_148, %c0_149, %c0_150] : memref<1x2x4xf32, #tpu.memory_space<vmem>>, vector<1x1x4xf32>
    %154 = vector.shape_cast %153 : vector<1x1x4xf32> to vector<1x4xf32>
    %155 = vector.shape_cast %143 : vector<1x4xf32> to vector<1x1x4xf32>
    tpu.vector_store %arg5[%c0_148, %c0_149, %c0_150], %155 {strides = array<i32>} : memref<1x2x4xf32, #tpu.memory_space<vmem>>, vector<1x1x4xf32>,
    %c0_151 = arith.constant 0 : index
    %c1_152 = arith.constant 1 : index
    %c0_153 = arith.constant 0 : index
    %156 = vector.load %arg5[%c0_151, %c1_152, %c0_153] : memref<1x2x4xf32, #tpu.memory_space<vmem>>, vector<1x1x4xf32>
    %157 = vector.shape_cast %156 : vector<1x1x4xf32> to vector<1x4xf32>
    %158 = vector.shape_cast %147 : vector<1x4xf32> to vector<1x1x4xf32>
    tpu.vector_store %arg5[%c0_151, %c1_152, %c0_153], %158 {strides = array<i32>} : memref<1x2x4xf32, #tpu.memory_space<vmem>>, vector<1x1x4xf32>,
    return
  }
  func.func @transform_0(%arg0: i32) -> (i32, i32, i32, i32, i32) {
    %c0_i32 = arith.constant 0 : i32
    %c0_i32_0 = arith.constant 0 : i32
    %c0_i32_1 = arith.constant 0 : i32
    %c0_i32_2 = arith.constant 0 : i32
    %c0_i32_3 = arith.constant 0 : i32
    return %arg0, %c0_i32, %c0_i32_0, %c0_i32_1, %c0_i32_2 : i32, i32, i32, i32, i32
  }
  func.func @transform_1(%arg0: i32) -> (i32, i32, i32) {
    %c0_i32 = arith.constant 0 : i32
    %c0_i32_0 = arith.constant 0 : i32
    %c0_i32_1 = arith.constant 0 : i32
    %c0_i32_2 = arith.constant 0 : i32
    return %c0_i32, %c0_i32_0, %c0_i32_1 : i32, i32, i32
  }
  func.func @transform_2(%arg0: i32) -> (i32, i32, i32) {
    %c0_i32 = arith.constant 0 : i32
    %c0_i32_0 = arith.constant 0 : i32
    %c0_i32_1 = arith.constant 0 : i32
    %c0_i32_2 = arith.constant 0 : i32
    return %c0_i32, %c0_i32_0, %c0_i32_1 : i32, i32, i32
  }
  func.func @transform_3(%arg0: i32) -> (i32, i32, i32, i32) {
    %c0_i32 = arith.constant 0 : i32
    %c0_i32_0 = arith.constant 0 : i32
    %c0_i32_1 = arith.constant 0 : i32
    %c0_i32_2 = arith.constant 0 : i32
    return %c0_i32, %arg0, %c0_i32_0, %c0_i32_1 : i32, i32, i32, i32
  }
  func.func @transform_4(%arg0: i32) -> (i32, i32, i32) {
    %c0_i32 = arith.constant 0 : i32
    %c0_i32_0 = arith.constant 0 : i32
    %c0_i32_1 = arith.constant 0 : i32
    return %arg0, %c0_i32, %c0_i32_0 : i32, i32, i32
  }
}

</mosaic_0001>

<bundles_post_ra>
// kernel: unet_innermost_forward.1
= control target key start
LH: loop header
LB: loop body
LE: loop exit
PB: predicated region body
PF: predicated region fallthrough
CT: control target
= control target key end

     0   :  { %s9262_s15 = smov 4   ;;  %s9263_s7 = smov 8   ;;  %s13038_s0 = inlined_call_operand.vmem [shape: f32[2,4,10,10,4], index: 0, kind: input, shape index: {}]   ;;  %s13039_s1 = inlined_call_operand.vmem [shape: bf16[4,16,8], index: 1, kind: input, shape index: {}]   ;;  %s13040_s2 = inlined_call_operand.vmem [shape: bf16[4,32,4], index: 2, kind: input, shape index: {}]   ;;  %s13041_s3 = inlined_call_operand.vmem [shape: bf16[4,2,64,4], index: 3, kind: output, shape index: {0}]   ;;  %s13042_s4 = inlined_call_operand.vmem [shape: f32[1,2,4], index: 4, kind: output, shape index: {1}]  }
   0x1   :  { %v21_v0 = vld [vmem:[%s13038_s0 + $0x20] sm:$0xff]  ;;  %v22_v1 = vld [vmem:[%s13038_s0 + $0x28] sm:$0x3]  ;;  %v23_v7 = vld [vmem:[%s13038_s0 + $0x30] sm:$0xff]  ;;  %s9264_s19 = smov 12  }
   0x2   :  { %v17_v2 = vld [vmem:[%s13038_s0] sm:$0xff]  ;;  %vm165_vm0 = vcmp.ge.f32.partialorder %v21_v0, 0.0  ;;  %vm166_vm1 = vcmp.ge.f32.partialorder %v22_v1, 0.0  ;;  %v309_v3 = vmul.f32 0.2, %v21_v0  ;;  %v19_v12 = vld [vmem:[%s13038_s0 + $0x10] sm:$0xff] }
   0x3   :  { %v310_v4 = vmul.f32 0.2, %v22_v1  ;;  %v18_v5 = vld [vmem:[%s13038_s0 + $0x8] sm:$0x3]  ;;  %vm161_vm2 = vcmp.ge.f32.partialorder %v17_v2, 0.0  ;;  %vm167_vm4 = vcmp.ge.f32.partialorder %v23_v7, 0.0 }
   0x4   :  { %v305_v6 = vmul.f32 0.2, %v17_v2  ;;  %v453_v8 = vsel %vm165_vm0, %v21_v0, %v309_v3  ;;  %vm162_vm3 = vcmp.ge.f32.partialorder %v18_v5, 0.0  ;;  %v306_v10 = vmul.f32 0.2, %v18_v5  ;;  %v27_v22 = vld [vmem:[%s13038_s0 + $0x50] sm:$0xff] }
   0x5   :  { %v454_v9 = vsel %vm166_vm1, %v22_v1, %v310_v4  ;;  %v24_v11 = vld [vmem:[%s13038_s0 + $0x38] sm:$0x3]  ;;  %v311_v17 = vmul.f32 0.2, %v23_v7  ;;  %vm163_vm6 = vcmp.ge.f32.partialorder %v19_v12, 0.0  ;;  %v25_v32 = vld [vmem:[%s13038_s0 + $0x40] sm:$0xff] }
   0x6   :  { %v9314_v13 = vpack.c.bf16 %v454_v9, %v453_v8  ;;  %v449_v14 = vsel %vm161_vm2, %v17_v2, %v305_v6  ;;  %vm168_vm5 = vcmp.ge.f32.partialorder %v24_v11, 0.0  ;;  %v20_v15 = vld [vmem:[%s13038_s0 + $0x18] sm:$0x3]  ;;  %v450_v16 = vsel %vm162_vm3, %v18_v5, %v306_v10  ;;  %v26_v35 = vld [vmem:[%s13038_s0 + $0x48] sm:$0x3]  ;;  %v31_v43 = vld [vmem:[%s13038_s0 + $0x70] sm:$0xff] }
   0x7   :  { %v312_v18 = vmul.f32 0.2, %v24_v11  ;;  %v9321_v21 = vpack.c.bf16 %v450_v16, %v449_v14  ;;  %vm164_vm7 = vcmp.ge.f32.partialorder %v20_v15, 0.0  ;;  %v28_v23 = vld [vmem:[%s13038_s0 + $0x58] sm:$0x3]  ;;  %v455_v24 = vsel %vm167_vm4, %v23_v7, %v311_v17  ;;  %v29_v56 = vld [vmem:[%s13038_s0 + $0x60] sm:$0xff] }
   0x8   :  { %v680_v19 = vshrl.u32 %v9314_v13, 16  ;;  %v682_v20 = vshll.u32 %v9314_v13, 16  ;;  %v307_v26 = vmul.f32 0.2, %v19_v12  ;;  %v308_v27 = vmul.f32 0.2, %v20_v15 }
   0x9   :  { %v456_v25 = vsel %vm168_vm5, %v24_v11, %v312_v18  ;;  %v666_v29 = vshrl.u32 %v9321_v21, 16  ;;  %v668_v30 = vshll.u32 %v9321_v21, 16  ;;  %vm171_vm8 = vcmp.ge.f32.partialorder %v27_v22, 0.0  ;;  %v32_v47 = vld [vmem:[%s13038_s0 + $0x78] sm:$0x3]  ;;  %v91_v3 = vld [vmem:[%s13038_s0 + $0x290] sm:$0xff] }
   0xa   :  { %v684_v28 = vrot.slane %v682_v20, 1  ;;  %v9331_v31 = vpack.c.bf16 %v456_v25, %v455_v24  ;;  %v451_v33 = vsel %vm163_vm6, %v19_v12, %v307_v26  ;;  %v452_v34 = vsel %vm164_vm7, %v20_v15, %v308_v27  ;;  %v30_v57 = vld [vmem:[%s13038_s0 + $0x68] sm:$0x3]  ;;  %v92_v4 = vld [vmem:[%s13038_s0 + $0x298] sm:$0x3]  ;;  %v89_v12 = vld [vmem:[%s13038_s0 + $0x280] sm:$0xff] }
   0xb   :  { %vm172_vm9 = vcmp.ge.f32.partialorder %v28_v23, 0.0  ;;  %v670_v37 = vrot.slane %v668_v30, 1  ;;  %v9344_v40 = vpack.c.bf16 %v452_v34, %v451_v33  ;;  %v315_v41 = vmul.f32 0.2, %v27_v22  ;;  %v90_v16 = vld [vmem:[%s13038_s0 + $0x288] sm:$0x3] }
   0xc   :  { %v9340_v36 = vor.u32 %v684_v28, %v680_v19  ;;  %v687_v38 = vshrl.u32 %v9331_v31, 16  ;;  %v689_v39 = vshll.u32 %v9331_v31, 16  ;;  %v316_v42 = vmul.f32 0.2, %v28_v23  ;;  %v95_v25 = vld [vmem:[%s13038_s0 + $0x2b0] sm:$0xff] }
   0xd   :  { %vm169_vm10 = vcmp.ge.f32.partialorder %v25_v32, 0.0  ;;  %v671_v44 = vor.u32 %v670_v37, %v666_v29  ;;  %vm170_vm11 = vcmp.ge.f32.partialorder %v26_v35, 0.0  ;;  %v313_v46 = vmul.f32 0.2, %v25_v32  ;;  %v96_v29 = vld [vmem:[%s13038_s0 + $0x2b8] sm:$0x3] }
   0xe   :  { %781 = vrot.lane.b32.xlu1 %v9340_v36, %s9262_s15  ;;  %v691_v45 = vrot.slane %v689_v39, 1  ;;  %v673_v48 = vshrl.u32 %v9344_v40, 16  ;;  %v675_v49 = vshll.u32 %v9344_v40, 16  ;;  %v459_v50 = vsel %vm171_vm8, %v27_v22, %v315_v41  ;;  %v93_v41 = vld [vmem:[%s13038_s0 + $0x2a0] sm:$0xff] }
   0xf   :  { %v460_v51 = vsel %vm172_vm9, %v28_v23, %v316_v42  ;;  %777 = vrot.lane.b32.xlu0 %v671_v44, %s9262_s15  ;;  %v314_v54 = vmul.f32 0.2, %v26_v35  ;;  %v457_v55 = vsel %vm169_vm10, %v25_v32, %v313_v46  ;;  %vm175_vm12 = vcmp.ge.f32.partialorder %v31_v43, 0.0  ;;  %v94_v42 = vld [vmem:[%s13038_s0 + $0x2a8] sm:$0x3] }
  0x10   :  { %v9359_v52 = vor.u32 %v691_v45, %v687_v38  ;;  %v9361_v53 = vpack.c.bf16 %v460_v51, %v459_v50  ;;  %v677_v58 = vrot.slane %v675_v49, 1  ;;  %vm176_vm13 = vcmp.ge.f32.partialorder %v32_v47, 0.0 }
  0x11   :  { %v319_v59 = vmul.f32 0.2, %v31_v43  ;;  %v458_v62 = vsel %vm170_vm11, %v26_v35, %v314_v54  ;;  %v320_v63 = vmul.f32 0.2, %v32_v47  ;;  %vm173_vm14 = vcmp.ge.f32.partialorder %v29_v56, 0.0  ;;  %v99_v54 = vld [vmem:[%s13038_s0 + $0x2d0] sm:$0xff] }
  0x12   :  { %783 = vrot.lane.b32.xlu1 %v9359_v52, %s9262_s15  ;;  %v701_v60 = vshrl.u32 %v9361_v53, 16  ;;  %v703_v61 = vshll.u32 %v9361_v53, 16  ;;  %v9375_v0 = vor.u32 %v677_v58, %v673_v48  ;;  %v9377_v1 = vpack.c.bf16 %v458_v62, %v457_v55  ;;  %v100_v55 = vld [vmem:[%s13038_s0 + $0x2d8] sm:$0x3] }
  0x13   :  { %v463_v2 = vsel %vm175_vm12, %v31_v43, %v319_v59  ;;  %v464_v6 = vsel %vm176_vm13, %v32_v47, %v320_v63  ;;  %vm174_vm15 = vcmp.ge.f32.partialorder %v30_v57, 0.0  ;;  %v317_v7 = vmul.f32 0.2, %v29_v56  ;;  %v97_v63 = vld [vmem:[%s13038_s0 + $0x2c0] sm:$0xff] }
  0x14   :  { %v705_v5 = vrot.slane %v703_v61, 1  ;;  %779 = vrot.lane.b32.xlu0 %v9375_v0, %s9262_s15  ;;  %v694_v8 = vshrl.u32 %v9377_v1, 16  ;;  %v696_v9 = vshll.u32 %v9377_v1, 16  ;;  %v9389_v10 = vpack.c.bf16 %v464_v6, %v463_v2 }
  0x15   :  { %v318_v11 = vmul.f32 0.2, %v30_v57  ;;  %v461_v15 = vsel %vm173_vm14, %v29_v56, %v317_v7  ;;  %vm235_vm0 = vcmp.ge.f32.partialorder %v91_v3, 0.0  ;;  %vm236_vm1 = vcmp.ge.f32.partialorder %v92_v4, 0.0 }
  0x16   :  { %v9394_v14 = vor.u32 %v705_v5, %v701_v60  ;;  %v698_v17 = vrot.slane %v696_v9, 1  ;;  %v715_v18 = vshrl.u32 %v9389_v10, 16  ;;  %v717_v19 = vshll.u32 %v9389_v10, 16 }
  0x17   :  { %v462_v20 = vsel %vm174_vm15, %v30_v57, %v318_v11  ;;  %v379_v23 = vmul.f32 0.2, %v91_v3  ;;  %v380_v24 = vmul.f32 0.2, %v92_v4  ;;  %vm233_vm2 = vcmp.ge.f32.partialorder %v89_v12, 0.0 }
  0x18   :  { %787 = vrot.lane.b32.xlu1 %v9394_v14, %s9262_s15  ;;  %v9404_v22 = vpack.c.bf16 %v462_v20, %v461_v15  ;;  %v9409_v26 = vor.u32 %v698_v17, %v694_v8  ;;  %v719_v27 = vrot.slane %v717_v19, 1  ;;  %vm234_vm3 = vcmp.ge.f32.partialorder %v90_v16, 0.0  ;;  %v103_v15 = vld [vmem:[%s13038_s0 + $0x2f0] sm:$0xff]  ;;  %v104_v19 = vld [vmem:[%s13038_s0 + $0x2f8] sm:$0x3] }
  0x19   :  { %v377_v28 = vmul.f32 0.2, %v89_v12  ;;  %v523_v33 = vsel %vm235_vm0, %v91_v3, %v379_v23  ;;  %v524_v34 = vsel %vm236_vm1, %v92_v4, %v380_v24  ;;  %v378_v38 = vmul.f32 0.2, %v90_v16  ;;  %v98_v4 = vld [vmem:[%s13038_s0 + $0x2c8] sm:$0x3] }
  0x1a   :  { %v708_v30 = vshrl.u32 %v9404_v22, 16  ;;  %v710_v32 = vshll.u32 %v9404_v22, 16  ;;  %785 = vrot.lane.b32.xlu0 %v9409_v26, %s9262_s15  ;;  %v9420_v35 = vor.u32 %v719_v27, %v715_v18  ;;  %v9422_v37 = vpack.c.bf16 %v524_v34, %v523_v33  ;;  %v102_v33 = vld [vmem:[%s13038_s0 + $0x2e8] sm:$0x3] }
  0x1b   :  { %v521_v39 = vsel %vm233_vm2, %v89_v12, %v377_v28  ;;  %vm239_vm4 = vcmp.ge.f32.partialorder %v95_v25, 0.0  ;;  %vm240_vm5 = vcmp.ge.f32.partialorder %v96_v29, 0.0  ;;  %v383_v44 = vmul.f32 0.2, %v95_v25 }
  0x1c   :  { %v712_v43 = vrot.slane %v710_v32, 1  ;;  %791 = vrot.lane.b32.xlu1 %v9420_v35, %s9262_s15  ;;  %v729_v45 = vshrl.u32 %v9422_v37, 16  ;;  %v731_v46 = vshll.u32 %v9422_v37, 16  ;;  %v522_v47 = vsel %vm234_vm3, %v90_v16, %v378_v38  ;;  %v101_v32 = vld [vmem:[%s13038_s0 + $0x2e0] sm:$0xff] }
  0x1d   :  { %v384_v48 = vmul.f32 0.2, %v96_v29  ;;  %v9437_v50 = vpack.c.bf16 %v522_v47, %v521_v39  ;;  %v527_v51 = vsel %vm239_vm4, %v95_v25, %v383_v44  ;;  %vm237_vm6 = vcmp.ge.f32.partialorder %v93_v41, 0.0 }
  0x1e   :  { %v9435_v49 = vor.u32 %v712_v43, %v708_v30  ;;  %v733_v56 = vrot.slane %v731_v46, 1  ;;  %vm238_vm7 = vcmp.ge.f32.partialorder %v94_v42, 0.0  ;;  %v381_v58 = vmul.f32 0.2, %v93_v41 }
  0x1f   :  { %v528_v57 = vsel %vm240_vm5, %v96_v29, %v384_v48  ;;  %v722_v59 = vshrl.u32 %v9437_v50, 16  ;;  %v724_v60 = vshll.u32 %v9437_v50, 16  ;;  %v382_v62 = vmul.f32 0.2, %v94_v42 }
  0x20   :  { %789 = vrot.lane.b32.xlu0 %v9435_v49, %s9262_s15  ;;  %v9449_v61 = vpack.c.bf16 %v528_v57, %v527_v51  ;;  %v9454_v2 = vor.u32 %v733_v56, %v729_v45  ;;  %v525_v3 = vsel %vm237_vm6, %v93_v41, %v381_v58  ;;  %vm243_vm8 = vcmp.ge.f32.partialorder %v99_v54, 0.0 }
  0x21   :  { %vm244_vm9 = vcmp.ge.f32.partialorder %v100_v55, 0.0  ;;  %v726_v5 = vrot.slane %v724_v60, 1  ;;  %v526_v8 = vsel %vm238_vm7, %v94_v42, %v382_v62  ;;  %v387_v11 = vmul.f32 0.2, %v99_v54 }
  0x22   :  { %v743_v6 = vshrl.u32 %v9449_v61, 16  ;;  %v745_v7 = vshll.u32 %v9449_v61, 16  ;;  %795 = vrot.lane.b32.xlu1 %v9454_v2, %s9262_s15  ;;  %v9464_v9 = vpack.c.bf16 %v526_v8, %v525_v3  ;;  %v388_v12 = vmul.f32 0.2, %v100_v55 }
  0x23   :  { %vm241_vm10 = vcmp.ge.f32.partialorder %v97_v63, 0.0  ;;  %v727_v16 = vor.u32 %v726_v5, %v722_v59  ;;  %vm242_vm11 = vcmp.ge.f32.partialorder %v98_v4, 0.0  ;;  %v385_v18 = vmul.f32 0.2, %v97_v63 }
  0x24   :  { %13063 = vst [vmem:[#allocation3_spill] sm:$0xff] %v9464_v9  ;;  %v747_v17 = vrot.slane %v745_v7, 1  ;;  %v736_v20 = vshrl.u32 %v9464_v9, 16  ;;  %v738_v23 = vshll.u32 %v9464_v9, 16  ;;  %v531_v24 = vsel %vm243_vm8, %v99_v54, %v387_v11 }
  0x25   :  { %v532_v25 = vsel %vm244_vm9, %v100_v55, %v388_v12  ;;  %793 = vrot.lane.b32.xlu0 %v727_v16, %s9262_s15  ;;  %v386_v29 = vmul.f32 0.2, %v98_v4  ;;  %v529_v30 = vsel %vm241_vm10, %v97_v63, %v385_v18  ;;  %vm247_vm12 = vcmp.ge.f32.partialorder %v103_v15, 0.0  ;;  %v33_v16 = vld [vmem:[%s13038_s0 + $0x80] sm:$0xff] }
  0x26   :  { %v9477_v27 = vor.u32 %v747_v17, %v743_v6  ;;  %v9479_v28 = vpack.c.bf16 %v532_v25, %v531_v24  ;;  %v740_v34 = vrot.slane %v738_v23, 1  ;;  %vm248_vm13 = vcmp.ge.f32.partialorder %v104_v19, 0.0  ;;  %v34_v17 = vld [vmem:[%s13038_s0 + $0x88] sm:$0x3]  ;;  %v105_v25 = vld [vmem:[%s13038_s0 + $0x300] sm:$0xff] }
  0x27   :  { %v391_v38 = vmul.f32 0.2, %v103_v15  ;;  %v530_v42 = vsel %vm242_vm11, %v98_v4, %v386_v29  ;;  %v392_v43 = vmul.f32 0.2, %v104_v19  ;;  %vm245_vm14 = vcmp.ge.f32.partialorder %v101_v32, 0.0 }
  0x28   :  { %13064 = vst [vmem:[#allocation4_spill] sm:$0xff] %v9479_v28  ;;  %799 = vrot.lane.b32.xlu1 %v9477_v27, %s9262_s15  ;;  %v757_v39 = vshrl.u32 %v9479_v28, 16  ;;  %v759_v41 = vshll.u32 %v9479_v28, 16  ;;  %v9492_v44 = vor.u32 %v740_v34, %v736_v20  ;;  %v9494_v45 = vpack.c.bf16 %v530_v42, %v529_v30  ;;  %v106_v29 = vld [vmem:[%s13038_s0 + $0x308] sm:$0x3] }
  0x29   :  { %v535_v46 = vsel %vm247_vm12, %v103_v15, %v391_v38  ;;  %v536_v48 = vsel %vm248_vm13, %v104_v19, %v392_v43  ;;  %vm246_vm15 = vcmp.ge.f32.partialorder %v102_v33, 0.0  ;;  %v389_v51 = vmul.f32 0.2, %v101_v32  ;;  %v36_v42 = vld [vmem:[%s13038_s0 + $0xa8] sm:$0x3] }
  0x2a   :  { %13065 = vst [vmem:[#allocation5_spill] sm:$0xff] %v9494_v45  ;;  %v761_v47 = vrot.slane %v759_v41, 1  ;;  %797 = vrot.lane.b32.xlu0 %v9492_v44, %s9262_s15  ;;  %v750_v54 = vshrl.u32 %v9494_v45, 16  ;;  %v752_v55 = vshll.u32 %v9494_v45, 16  ;;  %v9500_v56 = vpack.c.bf16 %v536_v48, %v535_v46  ;;  %v35_v41 = vld [vmem:[%s13038_s0 + $0xa0] sm:$0xff] }
  0x2b   :  { %v390_v57 = vmul.f32 0.2, %v102_v33  ;;  %v533_v59 = vsel %vm245_vm14, %v101_v32, %v389_v51  ;;  %v321_v18 = vmul.f32 0.2, %v33_v16  ;;  %v322_v19 = vmul.f32 0.2, %v34_v17 }
  0x2c   :  { %13066 = vst [vmem:[#allocation6_spill] sm:$0xff] %v9500_v56  ;;  %v9502_v58 = vor.u32 %v761_v47, %v757_v39  ;;  %v754_v60 = vrot.slane %v752_v55, 1  ;;  %v771_v62 = vshrl.u32 %v9500_v56, 16  ;;  %v773_v63 = vshll.u32 %v9500_v56, 16  ;;  %v8971_v39 = vld [vmem:[%s13039_s1] sm:$0xff]  }
  0x2d   :  { %v534_v3 = vsel %vm246_vm15, %v102_v33, %v390_v57  ;;  %vm177_vm0 = vcmp.ge.f32.partialorder %v33_v16, 0.0  ;;  %vm178_vm1 = vcmp.ge.f32.partialorder %v34_v17, 0.0  ;;  %v393_v30 = vmul.f32 0.2, %v105_v25  ;;  %8831 = vmatprep.subr.bf16.mxu1 %v8971_v39  ;;  %v39_v48 = vld [vmem:[%s13038_s0 + $0xc0] sm:$0xff] }
  0x2e   :  { %803 = vrot.lane.b32.xlu1 %v9502_v58, %s9262_s15  ;;  %v9508_v4 = vpack.c.bf16 %v534_v3, %v533_v59  ;;  %v9510_v5 = vor.u32 %v754_v60, %v750_v54  ;;  %v775_v6 = vrot.slane %v773_v63, 1  ;;  %v465_v20 = vsel %vm177_vm0, %v33_v16, %v321_v18  ;;  %8832 = vmatpush3.bf16.msra.mxu1 %v8971_v39  ;;  %v40_v51 = vld [vmem:[%s13038_s0 + $0xc8] sm:$0x3]  ;;  %v38_v63 = vld [vmem:[%s13038_s0 + $0xb8] sm:$0x3] }
  0x2f   :  { %v466_v23 = vsel %vm178_vm1, %v34_v17, %v322_v19  ;;  %v394_v32 = vmul.f32 0.2, %v106_v29  ;;  %vm249_vm2 = vcmp.ge.f32.partialorder %v105_v25, 0.0  ;;  %vm250_vm3 = vcmp.ge.f32.partialorder %v106_v29, 0.0 }
  0x30   :  { %13067 = vst [vmem:[#allocation7_spill] sm:$0xff] %v9508_v4  ;;  %v764_v7 = vshrl.u32 %v9508_v4, 16  ;;  %v766_v8 = vshll.u32 %v9508_v4, 16  ;;  %801 = vrot.lane.b32.xlu0 %v9510_v5, %s9262_s15  ;;  %v9516_v11 = vor.u32 %v775_v6, %v771_v62  ;;  %v601_v24 = vpack.c.bf16 %v466_v23, %v465_v20  ;;  %v37_v62 = vld [vmem:[%s13038_s0 + $0xb0] sm:$0xff] }
  0x31   :  { %v537_v33 = vsel %vm249_vm2, %v105_v25, %v393_v30  ;;  %v538_v34 = vsel %vm250_vm3, %v106_v29, %v394_v32  ;;  %v323_v46 = vmul.f32 0.2, %v35_v41  ;;  %v324_v47 = vmul.f32 0.2, %v36_v42 }
  0x32   :  { %v768_v12 = vrot.slane %v766_v8, 1  ;;  %807 = vrot.lane.b32.xlu1 %v9516_v11, %s9262_s15  ;;  %v9561_v38 = vpack.c.bf16 %v538_v34, %v537_v33  ;;  %v860_v43 = vshll.u32 %v601_v24, 16  ;;  %vm179_vm4 = vcmp.ge.f32.partialorder %v35_v41, 0.0 }
  0x33   :  { %vm180_vm5 = vcmp.ge.f32.partialorder %v36_v42, 0.0  ;;  %v858_v54 = vshrl.u32 %v601_v24, 16  ;;  %v327_v59 = vmul.f32 0.2, %v39_v48  ;;  %v328_v60 = vmul.f32 0.2, %v40_v51 }
  0x34   :  { %v9520_v15 = vor.u32 %v768_v12, %v764_v7  ;;  %v862_v55 = vrot.slane %v860_v43, 1  ;;  %v468_v57 = vsel %vm180_vm5, %v36_v42, %v324_v47  ;;  %vm183_vm6 = vcmp.ge.f32.partialorder %v39_v48, 0.0  ;;  %v41_v12 = vld [vmem:[%s13038_s0 + $0xd0] sm:$0xff] }
  0x35   :  { %vm184_vm7 = vcmp.ge.f32.partialorder %v40_v51, 0.0  ;;  %v325_v7 = vmul.f32 0.2, %v37_v62  ;;  %v326_v8 = vmul.f32 0.2, %v38_v63  ;;  %vm181_vm8 = vcmp.ge.f32.partialorder %v37_v62, 0.0 }
  0x36   :  { %805 = vrot.lane.b32.xlu0 %v9520_v15, %s9262_s15  ;;  %827 = vrot.lane.b32.xlu1 %v9314_v13, %s9263_s7  ;;  %v472_v6 = vsel %vm184_vm7, %v40_v51, %v328_v60  ;;  %vm182_vm9 = vcmp.ge.f32.partialorder %v38_v63, 0.0  ;;  %v329_v19 = vmul.f32 0.2, %v41_v12  ;;  %vm185_vm10 = vcmp.ge.f32.partialorder %v41_v12, 0.0 }
  0x37   :  { %v469_v17 = vsel %vm181_vm8, %v37_v62, %v325_v7  ;;  %v470_v18 = vsel %vm182_vm9, %v38_v63, %v326_v8 }
  0x38   :  { %v473_v29 = vsel %vm185_vm10, %v41_v12, %v329_v19  ;;  %v49_v12 = vld [vmem:[%s13038_s0 + $0x110] sm:$0xff] }
  0x39   :  { %vm193_vm2 = vcmp.ge.f32.partialorder %v49_v12, 0.0 }
  0x3a   :  { %825 = vrot.lane.b32.xlu0 %v9344_v40, %s9263_s7  ;;  %831 = vrot.lane.b32.xlu1 %v9377_v1, %s9263_s7 }
  0x3e   :  { %829 = vrot.lane.b32.xlu0 %v9331_v31, %s9263_s7  ;;  %835 = vrot.lane.b32.xlu1 %v9404_v22, %s9263_s7 }
  0x42   :  { %833 = vrot.lane.b32.xlu0 %v9361_v53, %s9263_s7  ;;  %839 = vrot.lane.b32.xlu1 %v601_v24, %s9263_s7  ;;  %v9617_v24 = vpack.c.bf16 %v470_v18, %v469_v17  ;;  %v8972_v18 = vld [vmem:[%s13039_s1 + $0x8] sm:$0xff]  }
  0x43   :  { %8813 = vmatprep.subr.bf16.mxu0 %v8972_v18 }
  0x44   :  { %13070 = vst [vmem:[#allocation10_spill] sm:$0xff] %v9617_v24  ;;  %v1014_v32 = vshll.u32 %v9617_v24, 16  ;;  %8814 = vmatpush3.bf16.msra.mxu0 %v8972_v18 }
  0x46   :  { %837 = vrot.lane.b32.xlu0 %v9389_v10, %s9263_s7  ;;  %843 = vrot.lane.b32.xlu1 %v9464_v9, %s9263_s7 }
  0x4a   :  { %841 = vrot.lane.b32.xlu0 %v9422_v37, %s9263_s7  ;;  %847 = vrot.lane.b32.xlu1 %v9494_v45, %s9263_s7 }
  0x4e   :  { %845 = vrot.lane.b32.xlu0 %v9449_v61, %s9263_s7  ;;  %851 = vrot.lane.b32.xlu1 %v9508_v4, %s9263_s7 }
  0x52   :  { %849 = vrot.lane.b32.xlu0 %v9479_v28, %s9263_s7  ;;  %855 = vrot.lane.b32.xlu1 %v9561_v38, %s9263_s7 }
  0x56   :  { %853 = vrot.lane.b32.xlu0 %v9500_v56, %s9263_s7  ;;  %873 = vrot.lane.b32.xlu1 %v9340_v36, %s9264_s19  ;;  %v467_v36 = vsel %vm179_vm4, %v35_v41, %v323_v46  ;;  %v1016_v41 = vrot.slane %v1014_v32, 1  ;;  %v48_v46 = vld [vmem:[%s13038_s0 + $0x108] sm:$0x3] }
  0x57   :  { %v9598_v3 = vpack.c.bf16 %v468_v57, %v467_v36  ;;  %v336_v57 = vmul.f32 0.2, %v48_v46  ;;  %vm192_vm15 = vcmp.ge.f32.partialorder %v48_v46, 0.0 }
  0x59   :  { %13068 = vst [vmem:[#allocation8_spill] sm:$0xff] %v9598_v3  ;;  %v1007_v16 = vshll.u32 %v9598_v3, 16  ;;  %v1005_v23 = vshrl.u32 %v9598_v3, 16 }
  0x5a   :  { %871 = vrot.lane.b32.xlu0 %v9375_v0, %s9264_s19  ;;  %877 = vrot.lane.b32.xlu1 %v9409_v26, %s9264_s19  ;;  %v863_v0 = vor.u32 %v862_v55, %v858_v54  ;;  %v471_v26 = vsel %vm183_vm6, %v39_v48, %v327_v59  ;;  %v45_v59 = vld [vmem:[%s13038_s0 + $0xf0] sm:$0xff] }
  0x5b   :  { %vm189_vm0 = vcmp.ge.f32.partialorder %v45_v59, 0.0 }
  0x5e   :  { %875 = vrot.lane.b32.xlu0 %v9359_v52, %s9264_s19  ;;  %881 = vrot.lane.b32.xlu1 %v9435_v49, %s9264_s19  ;;  %v42_v52 = vld [vmem:[%s13038_s0 + $0xd8] sm:$0x3]  ;;  %v9611_v49 = vpack.c.bf16 %v472_v6, %v471_v26  ;;  %v480_v26 = vsel %vm192_vm15, %v48_v46, %v336_v57  ;;  %v333_v6 = vmul.f32 0.2, %v45_v59 }
  0x5f   :  { %v330_v20 = vmul.f32 0.2, %v42_v52  ;;  %vm186_vm11 = vcmp.ge.f32.partialorder %v42_v52, 0.0 }
  0x60   :  { %13069 = vst [vmem:[#allocation9_spill] sm:$0xff] %v9611_v49  ;;  %v1021_v25 = vshll.u32 %v9611_v49, 16  ;;  %v1019_v34 = vshrl.u32 %v9611_v49, 16  ;;  %v477_v19 = vsel %vm189_vm0, %v45_v59, %v333_v6  ;;  %v51_v6 = vld [vmem:[%s13038_s0 + $0x120] sm:$0xff] }
  0x61   :  { %v474_v30 = vsel %vm186_vm11, %v42_v52, %v330_v20  ;;  %v50_v52 = vld [vmem:[%s13038_s0 + $0x118] sm:$0x3]  ;;  %vm195_vm8 = vcmp.ge.f32.partialorder %v51_v6, 0.0 }
  0x62   :  { %879 = vrot.lane.b32.xlu0 %v9394_v14, %s9264_s19  ;;  %885 = vrot.lane.b32.xlu1 %v863_v0, %s9264_s19  ;;  %v1009_v14 = vrot.slane %v1007_v16, 1  ;;  %v9625_v33 = vpack.c.bf16 %v474_v30, %v473_v29  ;;  %v1023_v39 = vrot.slane %v1021_v25, 1  ;;  %vm194_vm3 = vcmp.ge.f32.partialorder %v50_v52, 0.0 }
  0x64   :  { %13071 = vst [vmem:[#allocation11_spill] sm:$0xff] %v9625_v33  ;;  %v1028_v42 = vshll.u32 %v9625_v33, 16  ;;  %v9641_v43 = vor.u32 %v1023_v39, %v1019_v34  ;;  %v1026_v54 = vshrl.u32 %v9625_v33, 16 }
  0x66   :  { %883 = vrot.lane.b32.xlu0 %v9420_v35, %s9264_s19  ;;  %889 = vrot.lane.b32.xlu1 %v9492_v44, %s9264_s19  ;;  %v1010_v35 = vor.u32 %v1009_v14, %v1005_v23  ;;  %v1012_v44 = vshrl.u32 %v9617_v24, 16  ;;  %v1030_v55 = vrot.slane %v1028_v42, 1  ;;  %v337_v23 = vmul.f32 0.2, %v49_v12 }
  0x67   :  { %v338_v14 = vmul.f32 0.2, %v50_v52 }
  0x68   :  { %v1017_v51 = vor.u32 %v1016_v41, %v1012_v44  ;;  %v1031_v63 = vor.u32 %v1030_v55, %v1026_v54 }
  0x69   :  { %v482_v34 = vsel %vm194_vm3, %v50_v52, %v338_v14  ;;  %v339_v14 = vmul.f32 0.2, %v51_v6 }
  0x6a   :  { %887 = vrot.lane.b32.xlu0 %v9454_v2, %s9264_s19  ;;  %893 = vrot.lane.b32.xlu1 %v9510_v5, %s9264_s19  ;;  %v43_v2 = vld [vmem:[%s13038_s0 + $0xe0] sm:$0xff]  ;;  %v44_v5 = vld [vmem:[%s13038_s0 + $0xe8] sm:$0x3] }
  0x6b   :  { %vm187_vm12 = vcmp.ge.f32.partialorder %v43_v2, 0.0  ;;  %v331_v47 = vmul.f32 0.2, %v43_v2  ;;  %v332_v48 = vmul.f32 0.2, %v44_v5  ;;  %vm188_vm13 = vcmp.ge.f32.partialorder %v44_v5, 0.0 }
  0x6d   :  { %v475_v60 = vsel %vm187_vm12, %v43_v2, %v331_v47  ;;  %v476_v62 = vsel %vm188_vm13, %v44_v5, %v332_v48  ;;  %v107_v47 = vld [vmem:[%s13038_s0 + $0x320] sm:$0xff]  ;;  %v108_v48 = vld [vmem:[%s13038_s0 + $0x328] sm:$0x3] }
  0x6e   :  { %891 = vrot.lane.b32.xlu0 %v9477_v27, %s9264_s19  ;;  %1116 = vrot.lane.b32.xlu1 %v1010_v35, %s9262_s15  ;;  %v47_v27 = vld [vmem:[%s13038_s0 + $0x100] sm:$0xff]  ;;  %v9663_v8 = vpack.c.bf16 %v476_v62, %v475_v60  ;;  %v481_v35 = vsel %vm193_vm2, %v49_v12, %v337_v23  ;;  %v395_v59 = vmul.f32 0.2, %v107_v47  ;;  %vm251_vm4 = vcmp.ge.f32.partialorder %v107_v47, 0.0 }
  0x6f   :  { %v335_v36 = vmul.f32 0.2, %v47_v27  ;;  %vm191_vm14 = vcmp.ge.f32.partialorder %v47_v27, 0.0  ;;  %v9694_v42 = vpack.c.bf16 %v482_v34, %v481_v35  ;;  %vm252_vm5 = vcmp.ge.f32.partialorder %v108_v48, 0.0  ;;  %v111_v60 = vld [vmem:[%s13038_s0 + $0x340] sm:$0xff] }
  0x70   :  { %13072 = vst [vmem:[#allocation12_spill] sm:$0xff] %v9663_v8  ;;  %v1035_v16 = vshll.u32 %v9663_v8, 16  ;;  %v1033_v25 = vshrl.u32 %v9663_v8, 16  ;;  %v539_v12 = vsel %vm251_vm4, %v107_v47, %v395_v59  ;;  %vm255_vm6 = vcmp.ge.f32.partialorder %v111_v60, 0.0  ;;  %v114_v47 = vld [vmem:[%s13038_s0 + $0x358] sm:$0x3] }
  0x71   :  { %v479_v0 = vsel %vm191_vm14, %v47_v27, %v335_v36  ;;  %13075 = vst [vmem:[#allocation15_spill] sm:$0xff] %v9694_v42  ;;  %v1056_v55 = vshll.u32 %v9694_v42, 16  ;;  %vm258_vm13 = vcmp.ge.f32.partialorder %v114_v47, 0.0 }
  0x72   :  { %895 = vrot.lane.b32.xlu0 %v9502_v58, %s9264_s19  ;;  %1120 = vrot.lane.b32.xlu1 %v9641_v43, %s9262_s15  ;;  %v46_v58 = vld [vmem:[%s13038_s0 + $0xf8] sm:$0x3]  ;;  %v9673_v17 = vpack.c.bf16 %v480_v26, %v479_v0  ;;  %v1037_v30 = vrot.slane %v1035_v16, 1  ;;  %v399_v16 = vmul.f32 0.2, %v111_v60 }
  0x73   :  { %v334_v7 = vmul.f32 0.2, %v46_v58  ;;  %vm190_vm1 = vcmp.ge.f32.partialorder %v46_v58, 0.0  ;;  %v1058_v0 = vrot.slane %v1056_v55, 1 }
  0x74   :  { %13073 = vst [vmem:[#allocation13_spill] sm:$0xff] %v9673_v17  ;;  %v1049_v32 = vshll.u32 %v9673_v17, 16  ;;  %v1038_v2 = vor.u32 %v1037_v30, %v1033_v25  ;;  %v1047_v5 = vshrl.u32 %v9673_v17, 16  ;;  %v543_v34 = vsel %vm255_vm6, %v111_v60, %v399_v16 }
  0x75   :  { %v478_v20 = vsel %vm190_vm1, %v46_v58, %v334_v7  ;;  %v396_v58 = vmul.f32 0.2, %v108_v48  ;;  %v52_v7 = vld [vmem:[%s13038_s0 + $0x128] sm:$0x3] }
  0x76   :  { %1118 = vrot.lane.b32.xlu0 %v1017_v51, %s9262_s15  ;;  %1164 = vrot.lane.b32.xlu1 %v9617_v24, %s9263_s7  ;;  %v9683_v29 = vpack.c.bf16 %v478_v20, %v477_v19  ;;  %v1051_v27 = vrot.slane %v1049_v32, 1  ;;  %v109_v19 = vld [vmem:[%s13038_s0 + $0x330] sm:$0xff]  ;;  %v110_v20 = vld [vmem:[%s13038_s0 + $0x338] sm:$0x3]  ;;  %v340_v25 = vmul.f32 0.2, %v52_v7 }
  0x77   :  { %v540_v52 = vsel %vm252_vm5, %v108_v48, %v396_v58  ;;  %vm196_vm9 = vcmp.ge.f32.partialorder %v52_v7, 0.0  ;;  %vm253_vm10 = vcmp.ge.f32.partialorder %v109_v19, 0.0  ;;  %vm254_vm11 = vcmp.ge.f32.partialorder %v110_v20, 0.0 }
  0x78   :  { %13074 = vst [vmem:[#allocation14_spill] sm:$0xff] %v9683_v29  ;;  %v1042_v41 = vshll.u32 %v9683_v29, 16  ;;  %v9711_v36 = vor.u32 %v1051_v27, %v1047_v5  ;;  %v9742_v32 = vpack.c.bf16 %v540_v52, %v539_v12  ;;  %v398_v5 = vmul.f32 0.2, %v110_v20  ;;  %v113_v27 = vld [vmem:[%s13038_s0 + $0x350] sm:$0xff] }
  0x79   :  { %v483_v48 = vsel %vm195_vm8, %v51_v6, %v339_v14  ;;  %vm257_vm12 = vcmp.ge.f32.partialorder %v113_v27, 0.0 }
  0x7a   :  { %1122 = vrot.lane.b32.xlu0 %v1031_v63, %s9262_s15  ;;  %1168 = vrot.lane.b32.xlu1 %v9625_v33, %s9263_s7  ;;  %v1044_v54 = vrot.slane %v1042_v41, 1  ;;  %13076 = vst [vmem:[#allocation16_spill] sm:$0xff] %v9742_v32  ;;  %v1063_v55 = vshll.u32 %v9742_v32, 16  ;;  %v542_v60 = vsel %vm254_vm11, %v110_v20, %v398_v5 }
  0x7c   :  { %v1065_v16 = vrot.slane %v1063_v55, 1 }
  0x7e   :  { %1166 = vrot.lane.b32.xlu0 %v9611_v49, %s9263_s7  ;;  %1210 = vrot.lane.b32.xlu1 %v1017_v51, %s9264_s19  ;;  %v1040_v51 = vshrl.u32 %v9683_v29, 16 }
  0x80   :  { %v9687_v39 = vpop.permute.xlu1 %781  ;;  %v1045_v62 = vor.u32 %v1044_v54, %v1040_v51  ;;  %v484_v51 = vsel %vm196_vm9, %v52_v7, %v340_v25  ;;  %v1061_v7 = vshrl.u32 %v9742_v32, 16 }
  0x81   :  { %v9691_v44 = vpop.permute.xlu0 %777 }
  0x82   :  { %1170 = vrot.lane.b32.xlu0 %v9663_v8, %s9263_s7  ;;  %1214 = vrot.lane.b32.xlu1 %v1031_v63, %s9264_s19  ;;  %v1054_v63 = vshrl.u32 %v9694_v42, 16 }
  0x84   :  { %v9698_v46 = vpop.permute.xlu1 %783  ;;  %v1059_v30 = vor.u32 %v1058_v0, %v1054_v63  ;;  %v402_v63 = vmul.f32 0.2, %v114_v47  ;;  %v610_v0 = vpack.c.bf16 %v484_v51, %v483_v48 }
  0x86   :  { %1212 = vrot.lane.b32.xlu0 %v9641_v43, %s9264_s19  ;;  %1124 = vrot.lane.b32.xlu1 %v1038_v2, %s9262_s15  ;;  %v9713_v57 = vpop.permute.xlu0 %779  ;;  %v112_v43 = vld [vmem:[%s13038_s0 + $0x348] sm:$0x3]  ;;  %v1199_v12 = vshll.u32 %v610_v0, 16  ;;  %v546_v20 = vsel %vm258_vm13, %v114_v47, %v402_v63 }
  0x87   :  { %v400_v18 = vmul.f32 0.2, %v112_v43  ;;  %vm256_vm7 = vcmp.ge.f32.partialorder %v112_v43, 0.0 }
  0x89   :  { %v544_v41 = vsel %vm256_vm7, %v112_v43, %v400_v18  ;;  %v401_v43 = vmul.f32 0.2, %v113_v27 }
  0x8a   :  { %1216 = vrot.lane.b32.xlu0 %v1038_v2, %s9264_s19  ;;  %v9723_v26 = vpop.permute.xlu1 %787  ;;  %1128 = vrot.lane.b32.xlu1 %v9711_v36, %s9262_s15  ;;  %v397_v2 = vmul.f32 0.2, %v109_v19  ;;  %v9758_v59 = vpack.c.bf16 %v544_v41, %v543_v34  ;;  %v1197_v34 = vshrl.u32 %v610_v0, 16  ;;  %v1201_v41 = vrot.slane %v1199_v12, 1 }
  0x8c   :  { %v9739_v23 = vpop.permute.xlu0 %785  ;;  %13077 = vst [vmem:[#allocation17_spill] sm:$0xff] %v9758_v59  ;;  %v541_v58 = vsel %vm253_vm10, %v109_v19, %v397_v2  ;;  %v1077_v18 = vshll.u32 %v9758_v59, 16  ;;  %v545_v19 = vsel %vm257_vm12, %v113_v27, %v401_v43  ;;  %v1075_v48 = vshrl.u32 %v9758_v59, 16  ;;  %v115_v43 = vld [vmem:[%s13038_s0 + $0x360] sm:$0xff] }
  0x8d   :  { %v9767_v52 = vpack.c.bf16 %v542_v60, %v541_v58  ;;  %v9777_v5 = vpack.c.bf16 %v546_v20, %v545_v19  ;;  %v1202_v47 = vor.u32 %v1201_v41, %v1197_v34  ;;  %vm259_vm14 = vcmp.ge.f32.partialorder %v115_v43, 0.0 }
  0x8e   :  { %1126 = vrot.lane.b32.xlu0 %v1045_v62, %s9262_s15  ;;  %1172 = vrot.lane.b32.xlu1 %v9683_v29, %s9263_s7  ;;  %v9746_v35 = vpop.permute.xlu1 %791  ;;  %v1079_v51 = vrot.slane %v1077_v18, 1  ;;  %v403_v12 = vmul.f32 0.2, %v115_v43 }
  0x8f   :  { %13078 = vst [vmem:[#allocation18_spill] sm:$0xff] %v9767_v52  ;;  %v1070_v2 = vshll.u32 %v9767_v52, 16  ;;  %13079 = vst [vmem:[#allocation19_spill] sm:$0xff] %v9777_v5  ;;  %v1068_v55 = vshrl.u32 %v9767_v52, 16  ;;  %v1084_v60 = vshll.u32 %v9777_v5, 16  ;;  %v1082_v19 = vshrl.u32 %v9777_v5, 16 }
  0x90   :  { %v9794_v63 = vor.u32 %v1079_v51, %v1075_v48  ;;  %v118_v48 = vld [vmem:[%s13038_s0 + $0x378] sm:$0x3] }
  0x91   :  { %v1072_v58 = vrot.slane %v1070_v2, 1  ;;  %v1086_v20 = vrot.slane %v1084_v60, 1  ;;  %v406_v45 = vmul.f32 0.2, %v118_v48  ;;  %vm262_vm3 = vcmp.ge.f32.partialorder %v118_v48, 0.0 }
  0x92   :  { %1130 = vrot.lane.b32.xlu0 %v1059_v30, %s9262_s15  ;;  %v9755_v54 = vpop.permute.xlu0 %789  ;;  %1176 = vrot.lane.b32.xlu1 %v9694_v42, %s9263_s7 }
  0x93   :  { %v1073_v18 = vor.u32 %v1072_v58, %v1068_v55  ;;  %v1087_v58 = vor.u32 %v1086_v20, %v1082_v19  ;;  %v550_v19 = vsel %vm262_vm3, %v118_v48, %v406_v45  ;;  %vm1387_vm3 = vcmask 130048  }
  0x94   :  { %v9762_v6 = vpop.permute.xlu1 %795 }
  0x96   :  { %1174 = vrot.lane.b32.xlu0 %v9673_v17, %s9263_s7  ;;  %1218 = vrot.lane.b32.xlu1 %v1045_v62, %s9264_s19  ;;  %v1066_v62 = vor.u32 %v1065_v16, %v1061_v7  ;;  %v120_v7 = vld [vmem:[%s13038_s0 + $0x388] sm:$0x3]  ;;  %v60_v17 = vld [vmem:[%s13038_s0 + $0x178] sm:$0x3] }
  0x97   :  { %v9771_v14 = vpop.permute.xlu0 %793  ;;  %v408_v2 = vmul.f32 0.2, %v120_v7  ;;  %vm264_vm1 = vcmp.ge.f32.partialorder %v120_v7, 0.0  ;;  %vm204_vm13 = vcmp.ge.f32.partialorder %v60_v17, 0.0 }
  0x99   :  { %v552_v4 = vsel %vm264_vm1, %v120_v7, %v408_v2 }
  0x9a   :  { %1178 = vrot.lane.b32.xlu0 %v610_v0, %s9263_s7  ;;  %v9774_v25 = vpop.permute.xlu1 %799  ;;  %1222 = vrot.lane.b32.xlu1 %v1059_v30, %s9264_s19  ;;  %v116_v30 = vld [vmem:[%s13038_s0 + $0x368] sm:$0x3] }
  0x9b   :  { %v404_v16 = vmul.f32 0.2, %v116_v30  ;;  %vm260_vm15 = vcmp.ge.f32.partialorder %v116_v30, 0.0 }
  0x9c   :  { %v9781_v27 = vpop.permute.xlu0 %797 }
  0x9d   :  { %13080 = vst [vmem:[#allocation20_spill] sm:$0xff] %v9781_v27  ;;  %v548_v55 = vsel %vm260_vm15, %v116_v30, %v404_v16  ;;  %v122_v30 = vld [vmem:[%s13038_s0 + $0x398] sm:$0x3]  ;;  %v348_v27 = vmul.f32 0.2, %v60_v17  ;;  %vm936_vm15 = vcmask 64512  }
  0x9e   :  { %1220 = vrot.lane.b32.xlu0 %v9711_v36, %s9264_s19  ;;  %1132 = vrot.lane.b32.xlu1 %v1066_v62, %s9262_s15  ;;  %v119_v36 = vld [vmem:[%s13038_s0 + $0x380] sm:$0xff]  ;;  %v117_v62 = vld [vmem:[%s13038_s0 + $0x370] sm:$0xff]  ;;  %vm266_vm5 = vcmp.ge.f32.partialorder %v122_v30, 0.0 }
  0x9f   :  { %v407_v41 = vmul.f32 0.2, %v119_v36  ;;  %vm263_vm0 = vcmp.ge.f32.partialorder %v119_v36, 0.0  ;;  %v405_v56 = vmul.f32 0.2, %v117_v62  ;;  %vm261_vm2 = vcmp.ge.f32.partialorder %v117_v62, 0.0 }
  0xa0   :  { %v9796_v0 = vpop.permute.xlu1 %803 }
  0xa1   :  { %13081 = vst [vmem:[#allocation21_spill] sm:$0xff] %v9796_v0  ;;  %v551_v60 = vsel %vm263_vm0, %v119_v36, %v407_v41  ;;  %v549_v16 = vsel %vm261_vm2, %v117_v62, %v405_v56  ;;  %v410_v41 = vmul.f32 0.2, %v122_v30  ;;  %vm969_vm0 = vcmask 97280  }
  0xa2   :  { %1224 = vrot.lane.b32.xlu0 %v1202_v47, %s9264_s19  ;;  %v9806_v34 = vpop.permute.xlu0 %801  ;;  %1136 = vrot.lane.b32.xlu1 %v9794_v63, %s9262_s15  ;;  %v547_v47 = vsel %vm259_vm14, %v115_v43, %v403_v12  ;;  %v121_v43 = vld [vmem:[%s13038_s0 + $0x390] sm:$0xff]  ;;  %v9836_v7 = vpack.c.bf16 %v552_v4, %v551_v60  ;;  %v9847_v4 = vpack.c.bf16 %v550_v19, %v549_v16  ;;  %vm903_vm14 = vcmask 31744  }
  0xa3   :  { %13082 = vst [vmem:[#allocation22_spill] sm:$0xff] %v9806_v34  ;;  %v9824_v28 = vpack.c.bf16 %v548_v55, %v547_v47  ;;  %v409_v20 = vmul.f32 0.2, %v121_v43  ;;  %vm265_vm4 = vcmp.ge.f32.partialorder %v121_v43, 0.0  ;;  %v554_v62 = vsel %vm266_vm5, %v122_v30, %v410_v41 }
  0xa4   :  { %v9816_v51 = vpop.permute.xlu1 %807  ;;  %13086 = vst [vmem:[#allocation26_spill] sm:$0xff] %v9847_v4  ;;  %v1105_v45 = vshll.u32 %v9836_v7, 16  ;;  %v1096_v30 = vshrl.u32 %v9847_v4, 16 }
  0xa5   :  { %13083 = vst [vmem:[#allocation23_spill] sm:$0xff] %v9816_v51  ;;  %13085 = vst [vmem:[#allocation25_spill] sm:$0xff] %v9824_v28  ;;  %v1091_v36 = vshll.u32 %v9824_v28, 16  ;;  %v1089_v55 = vshrl.u32 %v9824_v28, 16  ;;  %v553_v56 = vsel %vm265_vm4, %v121_v43, %v409_v20  ;;  %v1098_v51 = vshll.u32 %v9847_v4, 16 }
  0xa6   :  { %1134 = vrot.lane.b32.xlu0 %v1073_v18, %s9262_s15  ;;  %1180 = vrot.lane.b32.xlu1 %v9767_v52, %s9263_s7  ;;  %v9858_v0 = vpack.c.bf16 %v554_v62, %v553_v56 }
  0xa7   :  { %v1093_v60 = vrot.slane %v1091_v36, 1  ;;  %v1107_v36 = vrot.slane %v1105_v45, 1  ;;  %v1100_v20 = vrot.slane %v1098_v51, 1  ;;  %v55_v51 = vld [vmem:[%s13038_s0 + $0x150] sm:$0xff]  ;;  %v56_v45 = vld [vmem:[%s13038_s0 + $0x158] sm:$0x3] }
  0xa8   :  { %v9822_v34 = vpop.permute.xlu0 %805  ;;  %v9832_v12 = vpop.permute.xlu1 %827  ;;  %13087 = vst [vmem:[#allocation27_spill] sm:$0xff] %v9858_v0  ;;  %v1112_v41 = vshll.u32 %v9858_v0, 16  ;;  %v343_v52 = vmul.f32 0.2, %v55_v51  ;;  %v344_v32 = vmul.f32 0.2, %v56_v45 }
  0xa9   :  { %13084 = vst [vmem:[#allocation24_spill] sm:$0xff] %v9822_v34  ;;  %v1094_v16 = vor.u32 %v1093_v60, %v1089_v55  ;;  %v123_v55 = vld [vmem:[%s13038_s0 + $0x3a0] sm:$0xff]  ;;  %v124_v60 = vld [vmem:[%s13038_s0 + $0x3a8] sm:$0x3]  ;;  %v1101_v62 = vor.u32 %v1100_v20, %v1096_v30  ;;  %vm199_vm8 = vcmp.ge.f32.partialorder %v55_v51, 0.0  ;;  %vm200_vm9 = vcmp.ge.f32.partialorder %v56_v45, 0.0 }
  0xaa   :  { %1138 = vrot.lane.b32.xlu0 %v1087_v58, %s9262_s15  ;;  %1184 = vrot.lane.b32.xlu1 %v9777_v5, %s9263_s7  ;;  %v412_v5 = vmul.f32 0.2, %v124_v60  ;;  %vm267_vm6 = vcmp.ge.f32.partialorder %v123_v55, 0.0  ;;  %vm268_vm7 = vcmp.ge.f32.partialorder %v124_v60, 0.0  ;;  %v54_v30 = vld [vmem:[%s13038_s0 + $0x148] sm:$0x3]  ;;  %v487_v49 = vsel %vm199_vm8, %v55_v51, %v343_v52 }
  0xab   :  { %v488_v24 = vsel %vm200_vm9, %v56_v45, %v344_v32  ;;  %v342_v9 = vmul.f32 0.2, %v54_v30  ;;  %vm198_vm11 = vcmp.ge.f32.partialorder %v54_v30, 0.0  ;;  %v57_v32 = vld [vmem:[%s13038_s0 + $0x160] sm:$0xff]  ;;  %v58_v52 = vld [vmem:[%s13038_s0 + $0x168] sm:$0x3] }
  0xac   :  { %v9840_v2 = vpop.permute.xlu0 %825  ;;  %v9842_v47 = vpop.permute.xlu1 %831  ;;  %v556_v8 = vsel %vm268_vm7, %v124_v60, %v412_v5  ;;  %v865_v45 = vshrl.u32 %v9561_v38, 16  ;;  %vm201_vm1 = vcmp.ge.f32.partialorder %v57_v32, 0.0  ;;  %vm202_vm2 = vcmp.ge.f32.partialorder %v58_v52, 0.0 }
  0xad   :  { %v486_v60 = vsel %vm198_vm11, %v54_v30, %v342_v9 }
  0xae   :  { %1182 = vrot.lane.b32.xlu0 %v9758_v59, %s9263_s7  ;;  %1226 = vrot.lane.b32.xlu1 %v1073_v18, %s9264_s19  ;;  %v1103_v18 = vshrl.u32 %v9836_v7, 16 }
  0xb0   :  { %v9851_v48 = vpop.permute.xlu0 %829  ;;  %v9853_v34 = vpop.permute.xlu1 %835  ;;  %v9871_v56 = vor.u32 %v1107_v36, %v1103_v18  ;;  %v1110_v18 = vshrl.u32 %v9858_v0, 16  ;;  %v1114_v36 = vrot.slane %v1112_v41, 1  ;;  %v59_v41 = vld [vmem:[%s13038_s0 + $0x170] sm:$0xff] }
  0xb1   :  { %vm203_vm12 = vcmp.ge.f32.partialorder %v59_v41, 0.0 }
  0xb2   :  { %1186 = vrot.lane.b32.xlu0 %v9824_v28, %s9263_s7  ;;  %1230 = vrot.lane.b32.xlu1 %v1087_v58, %s9264_s19  ;;  %v411_v28 = vmul.f32 0.2, %v123_v55  ;;  %v1115_v20 = vor.u32 %v1114_v36, %v1110_v18  ;;  %v347_v36 = vmul.f32 0.2, %v59_v41 }
  0xb4   :  { %v9862_v19 = vpop.permute.xlu0 %833  ;;  %v9864_v43 = vpop.permute.xlu1 %839  ;;  %v555_v29 = vsel %vm267_vm6, %v123_v55, %v411_v28  ;;  %v9919_v28 = vpack.c.bf16 %v488_v24, %v487_v49  ;;  %v491_v49 = vsel %vm203_vm12, %v59_v41, %v347_v36  ;;  %v492_v24 = vsel %vm204_vm13, %v60_v17, %v348_v27 }
  0xb5   :  { %v9941_v30 = vpack.c.bf16 %v492_v24, %v491_v49 }
  0xb6   :  { %1228 = vrot.lane.b32.xlu0 %v9794_v63, %s9264_s19  ;;  %1140 = vrot.lane.b32.xlu1 %v1094_v16, %s9262_s15  ;;  %v1684_v36 = vshrl.u32 %v9919_v28, 16 }
  0xb8   :  { %v9873_v58 = vpop.permute.xlu0 %837  ;;  %v9881_v63 = vpop.permute.xlu1 %843 }
  0xba   :  { %1232 = vrot.lane.b32.xlu0 %v1094_v16, %s9264_s19  ;;  %1144 = vrot.lane.b32.xlu1 %v9871_v56, %s9262_s15  ;;  %v53_v16 = vld [vmem:[%s13038_s0 + $0x140] sm:$0xff] }
  0xbb   :  { %v341_v3 = vmul.f32 0.2, %v53_v16  ;;  %vm197_vm10 = vcmp.ge.f32.partialorder %v53_v16, 0.0 }
  0xbc   :  { %v9893_v59 = vpop.permute.xlu0 %841  ;;  %v9895_v42 = vpop.permute.xlu1 %847 }
  0xbd   :  { %13088 = vst [vmem:[#allocation28_spill] sm:$0xff] %v9895_v42  ;;  %v646_v42 = vpack.c.bf16 %v556_v8, %v555_v29  ;;  %v867_v8 = vshll.u32 %v9561_v38, 16  ;;  %v485_v29 = vsel %vm197_vm10, %v53_v16, %v341_v3  ;;  %v907_v38 = vsel %vm903_vm14, %v9344_v40, %v9713_v57 }
  0xbe   :  { %1142 = vrot.lane.b32.xlu0 %v1101_v62, %s9262_s15  ;;  %1188 = vrot.lane.b32.xlu1 %v9847_v4, %s9263_s7  ;;  %v346_v4 = vmul.f32 0.2, %v58_v52  ;;  %v9937_v3 = vpack.c.bf16 %v486_v60, %v485_v29 }
  0xbf   :  { %v1206_v55 = vshll.u32 %v646_v42, 16  ;;  %v1204_v16 = vshrl.u32 %v646_v42, 16  ;;  %v869_v27 = vrot.slane %v867_v8, 1 }
  0xc0   :  { %v9912_v33 = vpop.permute.xlu0 %845  ;;  %v9914_v18 = vpop.permute.xlu1 %851  ;;  %v490_v60 = vsel %vm202_vm2, %v58_v52, %v346_v4  ;;  %v1679_v57 = vshll.u32 %v9937_v3, 16  ;;  %v1677_v49 = vshrl.u32 %v9937_v3, 16 }
  0xc1   :  { %v1208_v17 = vrot.slane %v1206_v55, 1  ;;  %v905_v55 = vsel %vm903_vm14, %v9321_v21, %v9691_v44  ;;  %v870_v4 = vor.u32 %v869_v27, %v865_v45 }
  0xc2   :  { %1146 = vrot.lane.b32.xlu0 %v1115_v20, %s9262_s15  ;;  %1192 = vrot.lane.b32.xlu1 %v9858_v0, %s9263_s7  ;;  %v345_v0 = vmul.f32 0.2, %v57_v32  ;;  %v938_v21 = vsel %vm936_vm15, %v905_v55, %v9840_v2 }
  0xc4   :  { %v9927_v5 = vpop.permute.xlu0 %849  ;;  %v9930_v51 = vpop.permute.xlu1 %855  ;;  %v489_v29 = vsel %vm201_vm1, %v57_v32, %v345_v0  ;;  %v1209_v0 = vor.u32 %v1208_v17, %v1204_v16  ;;  %v911_v32 = vsel %vm903_vm14, %v9331_v31, %v9698_v46  ;;  %v73_v31 = vld [vmem:[%s13038_s0 + $0x1f0] sm:$0xff]  ;;  %v909_v46 = vsel %vm903_vm14, %v9314_v13, %v9687_v39  ;;  %v74_v16 = vld [vmem:[%s13038_s0 + $0x1f8] sm:$0x3] }
  0xc5   :  { %13089 = vst [vmem:[#allocation29_spill] sm:$0xff] %v9927_v5  ;;  %v1686_v5 = vshll.u32 %v9919_v28, 16  ;;  %v9974_v24 = vpack.c.bf16 %v490_v60, %v489_v29  ;;  %v942_v17 = vsel %vm936_vm15, %v909_v46, %v9851_v48  ;;  %v1698_v13 = vshrl.u32 %v9941_v30, 16 }
  0xc6   :  { %1190 = vrot.lane.b32.xlu0 %v9836_v7, %s9263_s7  ;;  %1234 = vrot.lane.b32.xlu1 %v1101_v62, %s9264_s19  ;;  %v940_v62 = vsel %vm936_vm15, %v907_v38, %v9832_v12  ;;  %v9959_v12 = vld [vmem:[%s13038_s0 + $0x180] sm:$0xff]  ;;  %v944_v38 = vsel %vm936_vm15, %v911_v32, %v9842_v47  ;;  %v361_v60 = vmul.f32 0.2, %v73_v31  ;;  %vm217_vm6 = vcmp.ge.f32.partialorder %v73_v31, 0.0 }
  0xc7   :  { %v1688_v40 = vrot.slane %v1686_v5, 1  ;;  %vm205_vm4 = vcmp.ge.f32.partialorder %v9959_v12, 0.0  ;;  %v1693_v29 = vshll.u32 %v9974_v24, 16  ;;  %vm218_vm7 = vcmp.ge.f32.partialorder %v74_v16, 0.0 }
  0xc8   :  { %v9939_v9 = vpop.permute.xlu0 %853  ;;  %v874_v41 = vpop.permute.xlu1 %873 }
  0xc9   :  { %v973_v8 = vsel %vm969_vm0, %v940_v62, %v874_v41  ;;  %v9991_v47 = vor.u32 %v1688_v40, %v1684_v36  ;;  %v349_v41 = vmul.f32 0.2, %v9959_v12  ;;  %v913_v40 = vsel %vm903_vm14, %v9377_v1, %v9739_v23  ;;  %v72_v23 = vld [vmem:[%s13038_s0 + $0x1e8] sm:$0x3] }
  0xca   :  { %1194 = vrot.lane.b32.xlu0 %v646_v42, %s9263_s7  ;;  %1238 = vrot.lane.b32.xlu1 %v1115_v20, %s9264_s19  ;;  %v9964_v42 = vld [vmem:[%s13038_s0 + $0x188] sm:$0x3]  ;;  %v1700_v20 = vshll.u32 %v9941_v30, 16  ;;  %v1691_v1 = vshrl.u32 %v9974_v24, 16  ;;  %vm216_vm9 = vcmp.ge.f32.partialorder %v72_v23, 0.0 }
  0xcb   :  { %vm206_vm5 = vcmp.ge.f32.partialorder %v9964_v42, 0.0 }
  0xcc   :  { %v872_v44 = vpop.permute.xlu0 %871  ;;  %v878_v5 = vpop.permute.xlu1 %877  ;;  %v1702_v39 = vrot.slane %v1700_v20, 1 }
  0xcd   :  { %v971_v52 = vsel %vm969_vm0, %v938_v21, %v872_v44  ;;  %v977_v45 = vsel %vm969_vm0, %v944_v38, %v878_v5 }
  0xce   :  { %1236 = vrot.lane.b32.xlu0 %v9871_v56, %s9264_s19  ;;  %v8102_v2 = vcombine.low %v971_v52, %v973_v8  ;;  %897 = vrot.lane.b32.xlu1 %v9520_v15, %s9264_s19  ;;  %v1681_v56 = vrot.slane %v1679_v57, 1  ;;  %v915_v15 = vsel %vm903_vm14, %v9361_v53, %v9723_v26  ;;  %v362_v8 = vmul.f32 0.2, %v74_v16 }
  0xcf   :  { %v948_v48 = vsel %vm936_vm15, %v915_v15, %v9853_v34  ;;  %v350_v26 = vmul.f32 0.2, %v9964_v42  ;;  %v71_v34 = vld [vmem:[%s13038_s0 + $0x1e0] sm:$0xff]  ;;  %v946_v57 = vsel %vm936_vm15, %v913_v40, %v9862_v19  ;;  %v1695_v19 = vrot.slane %v1693_v29, 1 }
  0xd0   :  { %8833 = vmatprep.mubr.msk.bf16.mxu1 %vm1387_vm3, %v8102_v2  ;;  %v876_v27 = vpop.permute.xlu0 %875  ;;  %v882_v36 = vpop.permute.xlu1 %881  ;;  %v1682_v44 = vor.u32 %v1681_v56, %v1677_v49  ;;  %v505_v52 = vsel %vm217_vm6, %v73_v31, %v361_v60  ;;  %v506_v38 = vsel %vm218_vm7, %v74_v16, %v362_v8  ;;  %v359_v2 = vmul.f32 0.2, %v71_v34 }
  0xd1   :  { %v975_v62 = vsel %vm969_vm0, %v942_v17, %v876_v27  ;;  %v981_v53 = vsel %vm969_vm0, %v948_v48, %v882_v36  ;;  %vm215_vm8 = vcmp.ge.f32.partialorder %v71_v34, 0.0  ;;  %v360_v31 = vmul.f32 0.2, %v72_v23  ;;  %v78_v27 = vld [vmem:[%s13038_s0 + $0x218] sm:$0x3] }
  0xd2   :  { %v8103_v55 = vcombine.low %v975_v62, %v977_v45  ;;  %1240 = vrot.lane.b32.xlu0 %v1209_v0, %s9264_s19  ;;  %901 = vrot.lane.b32.xlu1 %v870_v4, %s9264_s19  ;;  %v10021_v0 = vor.u32 %v1702_v39, %v1698_v13  ;;  %v919_v4 = vsel %vm903_vm14, %v9389_v10, %v9746_v35  ;;  %v366_v36 = vmul.f32 0.2, %v78_v27 }
  0xd3   :  { %v952_v5 = vsel %vm936_vm15, %v919_v4, %v9864_v43  ;;  %v917_v10 = vsel %vm903_vm14, %v9404_v22, %v9755_v54  ;;  %v77_v43 = vld [vmem:[%s13038_s0 + $0x210] sm:$0xff]  ;;  %v493_v22 = vsel %vm205_vm4, %v9959_v12, %v349_v41  ;;  %v494_v54 = vsel %vm206_vm5, %v9964_v42, %v350_v26 }
  0xd4   :  { %8834 = vmatmul.mubr.msk.bf16.vlgmr.msra.gmra.mxu1 %vm1387_vm3, %v8103_v55  ;;  %v880_v21 = vpop.permute.xlu0 %879  ;;  %v886_v32 = vpop.permute.xlu1 %885  ;;  %v923_v45 = vsel %vm903_vm14, %v9422_v37, %v9762_v6  ;;  %v10059_v17 = vpack.c.bf16 %v506_v38, %v505_v52  ;;  %v503_v42 = vsel %vm215_vm8, %v71_v34, %v359_v2  ;;  %v365_v39 = vmul.f32 0.2, %v77_v43  ;;  %v13090_v55 = vld [vmem:[#allocation28_spill] sm:$0xff] }
  0xd5   :  { %v979_v20 = vsel %vm969_vm0, %v946_v57, %v880_v21  ;;  %v985_v35 = vsel %vm969_vm0, %v952_v5, %v886_v32  ;;  %v956_v12 = vsel %vm936_vm15, %v923_v45, %v9881_v63  ;;  %v921_v37 = vsel %vm903_vm14, %v9437_v50, %v9771_v14  ;;  %v75_v50 = vld [vmem:[%s13038_s0 + $0x200] sm:$0xff]  ;;  %v76_v14 = vld [vmem:[%s13038_s0 + $0x208] sm:$0x3] }
  0xd6   :  { %v8104_v49 = vcombine.low %v979_v20, %v981_v53  ;;  %899 = vrot.lane.b32.xlu0 %v9516_v11, %s9264_s19  ;;  %1790 = vrot.lane.b32.xlu1 %v9991_v47, %s9262_s15  ;;  %v950_v11 = vsel %vm936_vm15, %v917_v10, %v9873_v58  ;;  %v1696_v58 = vor.u32 %v1695_v19, %v1691_v1  ;;  %vm221_vm10 = vcmp.ge.f32.partialorder %v77_v43, 0.0  ;;  %v13091_v34 = vld [vmem:[#allocation20_spill] sm:$0xff]  ;;  %v13092_v57 = vld [vmem:[#allocation3_spill] sm:$0xff] }
  0xd7   :  { %v504_v41 = vsel %vm216_vm9, %v72_v23, %v360_v31  ;;  %v954_v63 = vsel %vm936_vm15, %v921_v37, %v9893_v59  ;;  %v10077_v62 = vpack.c.bf16 %v494_v54, %v493_v22  ;;  %v927_v29 = vsel %vm903_vm14, %v9449_v61, %v9774_v25 }
  0xd8   :  { %8837 = vmatprep.mubr.msk.bf16.mxu1 %vm1387_vm3, %v8104_v49  ;;  %v884_v46 = vpop.permute.xlu0 %883  ;;  %v890_v16 = vpop.permute.xlu1 %889  ;;  %v2206_v48 = vshll.u32 %v10059_v17, 16  ;;  %vm222_vm11 = vcmp.ge.f32.partialorder %v78_v27, 0.0  ;;  %v960_v8 = vsel %vm936_vm15, %v927_v29, %v13090_v55  ;;  %v10093_v53 = vpack.c.bf16 %v504_v41, %v503_v42  ;;  %v10116_v49 = vld [vmem:[%s13039_s1 + $0x10] sm:$0xff]  }
  0xd9   :  { %v983_v56 = vsel %vm969_vm0, %v950_v11, %v884_v46  ;;  %v989_v6 = vsel %vm969_vm0, %v956_v12, %v890_v16  ;;  %v509_v26 = vsel %vm221_vm10, %v77_v43, %v365_v39  ;;  %v925_v61 = vsel %vm903_vm14, %v13092_v57, %v13091_v34  ;;  %8849 = vmatprep.subr.bf16.mxu0 %v10116_v49  ;;  %v79_v39 = vld [vmem:[%s13038_s0 + $0x220] sm:$0xff] }
  0xda   :  { %v8105_v13 = vcombine.low %v983_v56, %v985_v35  ;;  %1788 = vrot.lane.b32.xlu0 %v1682_v44, %s9262_s15  ;;  %1794 = vrot.lane.b32.xlu1 %v10021_v0, %s9262_s15  ;;  %v363_v21 = vmul.f32 0.2, %v75_v50  ;;  %v364_v44 = vmul.f32 0.2, %v76_v14  ;;  %v958_v1 = vsel %vm936_vm15, %v925_v61, %v9912_v33 }
  0xdb   :  { %v510_v4 = vsel %vm222_vm11, %v78_v27, %v366_v36  ;;  %vm219_vm12 = vcmp.ge.f32.partialorder %v75_v50, 0.0  ;;  %vm220_vm13 = vcmp.ge.f32.partialorder %v76_v14, 0.0  ;;  %v2204_v52 = vshrl.u32 %v10059_v17, 16 }
  0xdc   :  { %8838 = vmatmul.mubr.msk.bf16.gmra.mxu1 %vm1387_vm3, %v8105_v13  ;;  %v888_v15 = vpop.permute.xlu0 %887  ;;  %v894_v60 = vpop.permute.xlu1 %893  ;;  %v2199_v5 = vshll.u32 %v10093_v53, 16  ;;  %v1707_v33 = vshll.u32 %v10077_v62, 16  ;;  %v2208_v38 = vrot.slane %v2206_v48, 1  ;;  %v10120_v2 = vpack.c.bf16 %v510_v4, %v509_v26 }
  0xdd   :  { %v987_v59 = vsel %vm969_vm0, %v954_v63, %v888_v15  ;;  %v993_v25 = vsel %vm969_vm0, %v960_v8, %v894_v60  ;;  %v507_v10 = vsel %vm219_vm12, %v75_v50, %v363_v21  ;;  %v508_v35 = vsel %vm220_vm13, %v76_v14, %v364_v44  ;;  %v64_v15 = vld [vmem:[%s13038_s0 + $0x198] sm:$0x3]  ;;  %v67_v8 = vld [vmem:[%s13038_s0 + $0x1b0] sm:$0xff] }
  0xde   :  { %v8106_v40 = vcombine.low %v987_v59, %v989_v6  ;;  %1792 = vrot.lane.b32.xlu0 %v1696_v58, %s9262_s15  ;;  %1838 = vrot.lane.b32.xlu1 %v9974_v24, %s9263_s7  ;;  %v2197_v11 = vshrl.u32 %v10093_v53, 16  ;;  %v2201_v46 = vrot.slane %v2199_v5, 1  ;;  %v10131_v22 = vpack.c.bf16 %v508_v35, %v507_v10  ;;  %v8974_v35 = vld [vmem:[%s13039_s1 + $0x18] sm:$0xff]  }
  0xdf   :  { %v10134_v54 = vor.u32 %v2208_v38, %v2204_v52  ;;  %v1705_v45 = vshrl.u32 %v10077_v62, 16  ;;  %v1709_v56 = vrot.slane %v1707_v33, 1  ;;  %v2220_v16 = vshll.u32 %v10120_v2, 16  ;;  %8867 = vmatprep.subr.bf16.mxu1 %v8974_v35 }
  0xe0   :  { %8841 = vmatprep.mubr.msk.bf16.mxu1 %vm1387_vm3, %v8106_v40  ;;  %v892_v23 = vpop.permute.xlu0 %891  ;;  %v10106_v32 = vpop.permute.xlu1 %1116  ;;  %v2202_v13 = vor.u32 %v2201_v46, %v2197_v11  ;;  %v2213_v42 = vshll.u32 %v10131_v22, 16  ;;  %v2218_v6 = vshrl.u32 %v10120_v2, 16  ;;  %vm223_vm1 = vcmp.ge.f32.partialorder %v79_v39, 0.0  ;;  %v68_v40 = vld [vmem:[%s13038_s0 + $0x1b8] sm:$0x3]  ;;  %v13093_v11 = vld [vmem:[#allocation8_spill] sm:$0xff]  ;;  %8868 = vmatpush3.bf16.msra.mxu1 %v8974_v35 }
  0xe1   :  { %v991_v20 = vsel %vm969_vm0, %v958_v1, %v892_v23  ;;  %v10149_v37 = vor.u32 %v1709_v56, %v1705_v45  ;;  %v2222_v41 = vrot.slane %v2220_v16, 1  ;;  %v367_v50 = vmul.f32 0.2, %v79_v39  ;;  %v13094_v45 = vld [vmem:[#allocation10_spill] sm:$0xff] }
  0xe2   :  { %v8107_v19 = vcombine.low %v991_v20, %v993_v25  ;;  %1836 = vrot.lane.b32.xlu0 %v9919_v28, %s9263_s7  ;;  %1842 = vrot.lane.b32.xlu1 %v10077_v62, %s9263_s7  ;;  %v2211_v29 = vshrl.u32 %v10131_v22, 16  ;;  %v2215_v59 = vrot.slane %v2213_v42, 1  ;;  %v352_v55 = vmul.f32 0.2, %v64_v15 }
  0xe3   :  { %v10166_v48 = vor.u32 %v2222_v41, %v2218_v6  ;;  %vm208_vm5 = vcmp.ge.f32.partialorder %v64_v15, 0.0  ;;  %v511_v57 = vsel %vm223_vm1, %v79_v39, %v367_v50  ;;  %v355_v21 = vmul.f32 0.2, %v67_v8 }
  0xe4   :  { %8842 = vmatmul.mubr.msk.bf16.gmra.mxu1 %vm1387_vm3, %v8107_v19  ;;  %v10123_v31 = vpop.permute.xlu0 %895  ;;  %v10126_v43 = vpop.permute.xlu1 %1120  ;;  %v2216_v25 = vor.u32 %v2215_v59, %v2211_v29  ;;  %v356_v44 = vmul.f32 0.2, %v68_v40  ;;  %v496_v23 = vsel %vm208_vm5, %v64_v15, %v352_v55  ;;  %vm211_vm6 = vcmp.ge.f32.partialorder %v67_v8, 0.0  ;;  %v65_v19 = vld [vmem:[%s13038_s0 + $0x1a0] sm:$0xff] }
  0xe5   :  { %vm212_vm7 = vcmp.ge.f32.partialorder %v68_v40, 0.0  ;;  %v499_v38 = vsel %vm211_vm6, %v67_v8, %v355_v21  ;;  %v1243_v46 = vsel %vm903_vm14, %v13093_v11, %v10106_v32  ;;  %v353_v16 = vmul.f32 0.2, %v65_v19  ;;  %v13096_v59 = vld [vmem:[#allocation11_spill] sm:$0xff] }
  0xe6   :  { %1840 = vrot.lane.b32.xlu0 %v9941_v30, %s9263_s7  ;;  %1884 = vrot.lane.b32.xlu1 %v1696_v58, %s9264_s19  ;;  %v80_v58 = vld [vmem:[%s13038_s0 + $0x228] sm:$0x3]  ;;  %v500_v10 = vsel %vm212_vm7, %v68_v40, %v356_v44  ;;  %vm209_vm8 = vcmp.ge.f32.partialorder %v65_v19, 0.0 }
  0xe7   :  { %v368_v14 = vmul.f32 0.2, %v80_v58  ;;  %vm224_vm2 = vcmp.ge.f32.partialorder %v80_v58, 0.0  ;;  %v10211_v50 = vpack.c.bf16 %v500_v10, %v499_v38  ;;  %v497_v55 = vsel %vm209_vm8, %v65_v19, %v353_v16  ;;  %v81_v19 = vld [vmem:[%s13038_s0 + $0x230] sm:$0xff] }
  0xe8   :  { %v1119_v27 = vpop.permute.xlu0 %1118  ;;  %v1165_v12 = vpop.permute.xlu1 %1164  ;;  %v369_v35 = vmul.f32 0.2, %v81_v19  ;;  %vm225_vm10 = vcmp.ge.f32.partialorder %v81_v19, 0.0 }
  0xe9   :  { %v512_v61 = vsel %vm224_vm2, %v80_v58, %v368_v14  ;;  %v1245_v56 = vsel %vm903_vm14, %v13094_v45, %v1119_v27  ;;  %v1275_v42 = vsel %vm936_vm15, %v1243_v46, %v1165_v12  ;;  %v13095_v14 = vld [vmem:[#allocation9_spill] sm:$0xff]  ;;  %v1728_v21 = vshll.u32 %v10211_v50, 16 }
  0xea   :  { %1882 = vrot.lane.b32.xlu0 %v9991_v47, %s9264_s19  ;;  %2310 = vrot.lane.b32.xlu1 %v10134_v54, %s9262_s15  ;;  %v63_v47 = vld [vmem:[%s13038_s0 + $0x190] sm:$0xff]  ;;  %v10179_v20 = vpack.c.bf16 %v512_v61, %v511_v57  ;;  %v1247_v29 = vsel %vm903_vm14, %v13095_v14, %v10126_v43 }
  0xeb   :  { %v351_v60 = vmul.f32 0.2, %v63_v47  ;;  %vm207_vm4 = vcmp.ge.f32.partialorder %v63_v47, 0.0 }
  0xec   :  { %v10155_v63 = vpop.permute.xlu0 %1122  ;;  %v10160_v36 = vpop.permute.xlu1 %1168  ;;  %v2227_v5 = vshll.u32 %v10179_v20, 16  ;;  %v2225_v27 = vshrl.u32 %v10179_v20, 16 }
  0xed   :  { %v495_v1 = vsel %vm207_vm4, %v63_v47, %v351_v60  ;;  %v1249_v60 = vsel %vm903_vm14, %v13096_v59, %v10155_v63  ;;  %v1279_v40 = vsel %vm936_vm15, %v1247_v29, %v10160_v36  ;;  %v83_v59 = vld [vmem:[%s13038_s0 + $0x240] sm:$0xff] }
  0xee   :  { %2308 = vrot.lane.b32.xlu0 %v2202_v13, %s9262_s15  ;;  %1888 = vrot.lane.b32.xlu1 %v10149_v37, %s9264_s19  ;;  %v10189_v33 = vpack.c.bf16 %v496_v23, %v495_v1  ;;  %v2229_v12 = vrot.slane %v2227_v5, 1  ;;  %v1730_v5 = vrot.slane %v1728_v21, 1  ;;  %vm227_vm4 = vcmp.ge.f32.partialorder %v83_v59, 0.0 }
  0xf0   :  { %v1167_v26 = vpop.permute.xlu0 %1166  ;;  %v1211_v34 = vpop.permute.xlu1 %1210  ;;  %v1714_v15 = vshll.u32 %v10189_v33, 16  ;;  %v10237_v36 = vor.u32 %v2229_v12, %v2225_v27  ;;  %v1712_v1 = vshrl.u32 %v10189_v33, 16 }
  0xf1   :  { %v1277_v39 = vsel %vm936_vm15, %v1245_v56, %v1167_v26  ;;  %v1307_v6 = vsel %vm969_vm0, %v1275_v42, %v1211_v34 }
  0xf2   :  { %1886 = vrot.lane.b32.xlu0 %v10021_v0, %s9264_s19  ;;  %2314 = vrot.lane.b32.xlu1 %v10166_v48, %s9262_s15  ;;  %v66_v0 = vld [vmem:[%s13038_s0 + $0x1a8] sm:$0x3]  ;;  %v1716_v23 = vrot.slane %v1714_v15, 1 }
  0xf3   :  { %v354_v13 = vmul.f32 0.2, %v66_v0  ;;  %vm210_vm9 = vcmp.ge.f32.partialorder %v66_v0, 0.0 }
  0xf4   :  { %v1171_v4 = vpop.permute.xlu0 %1170  ;;  %v1215_v52 = vpop.permute.xlu1 %1214  ;;  %v10254_v10 = vor.u32 %v1716_v23, %v1712_v1  ;;  %v13098_v1 = vld [vmem:[#allocation14_spill] sm:$0xff] }
  0xf5   :  { %v498_v8 = vsel %vm210_vm9, %v66_v0, %v354_v13  ;;  %v1281_v26 = vsel %vm936_vm15, %v1249_v60, %v1171_v4  ;;  %v1311_v43 = vsel %vm969_vm0, %v1279_v40, %v1215_v52  ;;  %v82_v0 = vld [vmem:[%s13038_s0 + $0x238] sm:$0x3]  ;;  %v84_v60 = vld [vmem:[%s13038_s0 + $0x248] sm:$0x3] }
  0xf6   :  { %2312 = vrot.lane.b32.xlu0 %v2216_v25, %s9262_s15  ;;  %2358 = vrot.lane.b32.xlu1 %v10131_v22, %s9263_s7  ;;  %v10234_v44 = vpack.c.bf16 %v498_v8, %v497_v55  ;;  %v370_v11 = vmul.f32 0.2, %v82_v0  ;;  %vm226_vm11 = vcmp.ge.f32.partialorder %v82_v0, 0.0  ;;  %vm228_vm5 = vcmp.ge.f32.partialorder %v84_v60, 0.0 }
  0xf8   :  { %v1213_v58 = vpop.permute.xlu0 %1212  ;;  %v10205_v41 = vpop.permute.xlu1 %1124  ;;  %v1721_v38 = vshll.u32 %v10234_v44, 16  ;;  %v1719_v16 = vshrl.u32 %v10234_v44, 16 }
  0xf9   :  { %v1309_v32 = vsel %vm969_vm0, %v1277_v39, %v1213_v58  ;;  %v513_v58 = vsel %vm225_vm10, %v81_v19, %v369_v35 }
  0xfa   :  { %2356 = vrot.lane.b32.xlu0 %v10059_v17, %s9263_s7  ;;  %v8085_v47 = vcombine.low %v1307_v6, %v1309_v32  ;;  %2362 = vrot.lane.b32.xlu1 %v10179_v20, %s9263_s7  ;;  %v1723_v13 = vrot.slane %v1721_v38, 1  ;;  %v514_v6 = vsel %vm226_vm11, %v82_v0, %v370_v11 }
  0xfb   :  { %v10277_v15 = vpack.c.bf16 %v514_v6, %v513_v58 }
  0xfc   :  { %8815 = vmatprep.mubr.msk.bf16.mxu0 %vm1387_vm3, %v8085_v47  ;;  %v1217_v34 = vpop.permute.xlu0 %1216  ;;  %v10229_v63 = vpop.permute.xlu1 %1128  ;;  %v86_v47 = vld [vmem:[%s13038_s0 + $0x258] sm:$0x3]  ;;  %v1724_v12 = vor.u32 %v1723_v13, %v1719_v16  ;;  %v13099_v13 = vld [vmem:[#allocation13_spill] sm:$0xff] }
  0xfd   :  { %v1313_v57 = vsel %vm969_vm0, %v1281_v26, %v1217_v34  ;;  %v374_v40 = vmul.f32 0.2, %v86_v47  ;;  %vm230_vm2 = vcmp.ge.f32.partialorder %v86_v47, 0.0  ;;  %v2234_v34 = vshll.u32 %v10277_v15, 16 }
  0xfe   :  { %v8086_v61 = vcombine.low %v1311_v43, %v1313_v57  ;;  %2360 = vrot.lane.b32.xlu0 %v10120_v2, %s9263_s7  ;;  %2404 = vrot.lane.b32.xlu1 %v2216_v25, %s9264_s19  ;;  %v1726_v25 = vshrl.u32 %v10211_v50, 16  ;;  %v371_v43 = vmul.f32 0.2, %v83_v59  ;;  %v372_v57 = vmul.f32 0.2, %v84_v60 }
  0xff   :  { %v518_v38 = vsel %vm230_vm2, %v86_v47, %v374_v40 }
 0x100   :  { %8816 = vmatmul.mubr.msk.bf16.vlgmr.msra.gmra.mxu0 %vm1387_vm3, %v8086_v61  ;;  %v1127_v4 = vpop.permute.xlu0 %1126  ;;  %v1173_v52 = vpop.permute.xlu1 %1172  ;;  %v10264_v56 = vor.u32 %v1730_v5, %v1726_v25  ;;  %v13097_v61 = vld [vmem:[#allocation12_spill] sm:$0xff]  ;;  %v515_v16 = vsel %vm227_vm4, %v83_v59, %v371_v43 }
 0x101   :  { %8850 = vmatpush3.bf16.msra.mxu0 %v10116_v49  ;;  %v69_v49 = vld [vmem:[%s13038_s0 + $0x1c0] sm:$0xff]  ;;  %v1251_v21 = vsel %vm903_vm14, %v13097_v61, %v10205_v41  ;;  %v1253_v23 = vsel %vm903_vm14, %v13098_v1, %v1127_v4  ;;  %v2232_v4 = vshrl.u32 %v10277_v15, 16 }
 0x102   :  { %2402 = vrot.lane.b32.xlu0 %v10134_v54, %s9264_s19  ;;  %2408 = vrot.lane.b32.xlu1 %v10237_v36, %s9264_s19  ;;  %v70_v54 = vld [vmem:[%s13038_s0 + $0x1c8] sm:$0x3]  ;;  %v357_v42 = vmul.f32 0.2, %v69_v49  ;;  %vm213_vm12 = vcmp.ge.f32.partialorder %v69_v49, 0.0  ;;  %v1283_v19 = vsel %vm936_vm15, %v1251_v21, %v1173_v52  ;;  %v516_v52 = vsel %vm228_vm5, %v84_v60, %v372_v57 }
 0x103   :  { %v358_v39 = vmul.f32 0.2, %v70_v54  ;;  %vm214_vm13 = vcmp.ge.f32.partialorder %v70_v54, 0.0  ;;  %v10320_v59 = vpack.c.bf16 %v516_v52, %v515_v16  ;;  %v131_v16 = vld [vmem:[%s13038_s0 + $0x3f0] sm:$0xff] }
 0x104   :  { %v1131_v46 = vpop.permute.xlu0 %1130  ;;  %v1177_v45 = vpop.permute.xlu1 %1176  ;;  %v501_v14 = vsel %vm213_vm12, %v69_v49, %v357_v42  ;;  %v1255_v42 = vsel %vm903_vm14, %v13099_v13, %v10229_v63  ;;  %vm275_vm12 = vcmp.ge.f32.partialorder %v131_v16, 0.0 }
 0x105   :  { %v502_v29 = vsel %vm214_vm13, %v70_v54, %v358_v39  ;;  %v2236_v54 = vrot.slane %v2234_v34, 1  ;;  %v13100_v39 = vld [vmem:[#allocation15_spill] sm:$0xff]  ;;  %v2241_v57 = vshll.u32 %v10320_v59, 16 }
 0x106   :  { %2406 = vrot.lane.b32.xlu0 %v10166_v48, %s9264_s19  ;;  %1798 = vrot.lane.b32.xlu1 %v10254_v10, %s9262_s15  ;;  %v85_v48 = vld [vmem:[%s13038_s0 + $0x250] sm:$0xff]  ;;  %v619_v26 = vpack.c.bf16 %v502_v29, %v501_v14  ;;  %v1257_v58 = vsel %vm903_vm14, %v13100_v39, %v1131_v46  ;;  %v132_v39 = vld [vmem:[%s13038_s0 + $0x3f8] sm:$0x3] }
 0x107   :  { %v373_v8 = vmul.f32 0.2, %v85_v48  ;;  %vm229_vm1 = vcmp.ge.f32.partialorder %v85_v48, 0.0  ;;  %v10328_v60 = vor.u32 %v2236_v54, %v2232_v4  ;;  %vm276_vm13 = vcmp.ge.f32.partialorder %v132_v39, 0.0 }
 0x108   :  { %v1175_v32 = vpop.permute.xlu0 %1174  ;;  %v1219_v27 = vpop.permute.xlu1 %1218  ;;  %v1871_v6 = vshll.u32 %v619_v26, 16 }
 0x109   :  { %v1285_v0 = vsel %vm936_vm15, %v1253_v23, %v1175_v32  ;;  %v517_v5 = vsel %vm229_vm1, %v85_v48, %v373_v8  ;;  %v1315_v35 = vsel %vm969_vm0, %v1283_v19, %v1219_v27  ;;  %v1287_v27 = vsel %vm936_vm15, %v1255_v42, %v1177_v45  ;;  %v87_v45 = vld [vmem:[%s13038_s0 + $0x260] sm:$0xff]  ;;  %v128_v19 = vld [vmem:[%s13038_s0 + $0x3d8] sm:$0x3] }
 0x10a   :  { %1796 = vrot.lane.b32.xlu0 %v10149_v37, %s9262_s15  ;;  %1802 = vrot.lane.b32.xlu1 %v10264_v56, %s9262_s15  ;;  %v10311_v32 = vpack.c.bf16 %v518_v38, %v517_v5  ;;  %v1873_v8 = vrot.slane %v1871_v6, 1  ;;  %v375_v61 = vmul.f32 0.2, %v87_v45  ;;  %vm231_vm6 = vcmp.ge.f32.partialorder %v87_v45, 0.0 }
 0x10b   :  { %v2239_v38 = vshrl.u32 %v10320_v59, 16  ;;  %vm272_vm9 = vcmp.ge.f32.partialorder %v128_v19, 0.0  ;;  %v416_v54 = vmul.f32 0.2, %v128_v19 }
 0x10c   :  { %v1179_v55 = vpop.permute.xlu0 %1178  ;;  %v1223_v37 = vpop.permute.xlu1 %1222  ;;  %v2248_v40 = vshll.u32 %v10311_v32, 16  ;;  %v2246_v1 = vshrl.u32 %v10311_v32, 16 }
 0x10d   :  { %v1289_v48 = vsel %vm936_vm15, %v1257_v58, %v1179_v55  ;;  %v1319_v14 = vsel %vm969_vm0, %v1287_v27, %v1223_v37  ;;  %v1869_v55 = vshrl.u32 %v619_v26, 16  ;;  %v88_v37 = vld [vmem:[%s13038_s0 + $0x268] sm:$0x3] }
 0x10e   :  { %1800 = vrot.lane.b32.xlu0 %v1724_v12, %s9262_s15  ;;  %1846 = vrot.lane.b32.xlu1 %v10234_v44, %s9263_s7  ;;  %v2250_v23 = vrot.slane %v2248_v40, 1  ;;  %vm232_vm7 = vcmp.ge.f32.partialorder %v88_v37, 0.0 }
 0x10f   :  { %v1874_v21 = vor.u32 %v1873_v8, %v1869_v55  ;;  %v129_v8 = vld [vmem:[%s13038_s0 + $0x3e0] sm:$0xff] }
 0x110   :  { %v1221_v25 = vpop.permute.xlu0 %1220  ;;  %v10300_v41 = vpop.permute.xlu1 %1132  ;;  %v10366_v52 = vor.u32 %v2250_v23, %v2246_v1  ;;  %v13102_v23 = vld [vmem:[#allocation18_spill] sm:$0xff]  ;;  %vm273_vm1 = vcmp.ge.f32.partialorder %v129_v8, 0.0 }
 0x111   :  { %v1317_v11 = vsel %vm969_vm0, %v1285_v0, %v1221_v25  ;;  %v126_v25 = vld [vmem:[%s13038_s0 + $0x3c8] sm:$0x3] }
 0x112   :  { %v8087_v49 = vcombine.low %v1315_v35, %v1317_v11  ;;  %1844 = vrot.lane.b32.xlu0 %v10189_v33, %s9263_s7  ;;  %1850 = vrot.lane.b32.xlu1 %v619_v26, %s9263_s7  ;;  %v127_v26 = vld [vmem:[%s13038_s0 + $0x3d0] sm:$0xff]  ;;  %v2243_v35 = vrot.slane %v2241_v57, 1  ;;  %v519_v11 = vsel %vm231_vm6, %v87_v45, %v375_v61  ;;  %v414_v42 = vmul.f32 0.2, %v126_v25 }
 0x113   :  { %v415_v4 = vmul.f32 0.2, %v127_v26  ;;  %vm271_vm8 = vcmp.ge.f32.partialorder %v127_v26, 0.0  ;;  %vm270_vm11 = vcmp.ge.f32.partialorder %v126_v25, 0.0 }
 0x114   :  { %8819 = vmatprep.mubr.msk.bf16.mxu0 %vm1387_vm3, %v8087_v49  ;;  %v1225_v47 = vpop.permute.xlu0 %1224  ;;  %v10318_v63 = vpop.permute.xlu1 %1136  ;;  %v2244_v6 = vor.u32 %v2243_v35, %v2239_v38  ;;  %v558_v45 = vsel %vm270_vm11, %v126_v25, %v414_v42  ;;  %v13103_v42 = vld [vmem:[#allocation17_spill] sm:$0xff] }
 0x115   :  { %v1321_v29 = vsel %vm969_vm0, %v1289_v48, %v1225_v47  ;;  %v559_v48 = vsel %vm271_vm8, %v127_v26, %v415_v4  ;;  %v560_v47 = vsel %vm272_vm9, %v128_v19, %v416_v54 }
 0x116   :  { %v8088_v46 = vcombine.low %v1319_v14, %v1321_v29  ;;  %1848 = vrot.lane.b32.xlu0 %v10211_v50, %s9263_s7  ;;  %1892 = vrot.lane.b32.xlu1 %v1724_v12, %s9264_s19  ;;  %v376_v12 = vmul.f32 0.2, %v88_v37  ;;  %v419_v14 = vmul.f32 0.2, %v131_v16  ;;  %v420_v29 = vmul.f32 0.2, %v132_v39 }
 0x117   :  { %v10384_v57 = vpack.c.bf16 %v560_v47, %v559_v48 }
 0x118   :  { %8820 = vmatmul.mubr.msk.bf16.gmra.mxu0 %vm1387_vm3, %v8088_v46  ;;  %v1135_v34 = vpop.permute.xlu0 %1134  ;;  %v10335_v43 = vpop.permute.xlu1 %1180  ;;  %v520_v49 = vsel %vm232_vm7, %v88_v37, %v376_v12  ;;  %v563_v12 = vsel %vm275_vm12, %v131_v16, %v419_v14  ;;  %v564_v26 = vsel %vm276_vm13, %v132_v39, %v420_v29  ;;  %v1263_v39 = vsel %vm903_vm14, %v13103_v42, %v10318_v63  ;;  %v145_v63 = vld [vmem:[%s13038_s0 + $0x470] sm:$0xff] }
 0x119   :  { %v628_v27 = vpack.c.bf16 %v520_v49, %v519_v11  ;;  %v1261_v19 = vsel %vm903_vm14, %v13102_v23, %v1135_v34  ;;  %vm289_vm4 = vcmp.ge.f32.partialorder %v145_v63, 0.0 }
 0x11a   :  { %1890 = vrot.lane.b32.xlu0 %v10254_v10, %s9264_s19  ;;  %2318 = vrot.lane.b32.xlu1 %v10328_v60, %s9262_s15  ;;  %v125_v10 = vld [vmem:[%s13038_s0 + $0x3c0] sm:$0xff] }
 0x11b   :  { %v413_v13 = vmul.f32 0.2, %v125_v10  ;;  %vm269_vm10 = vcmp.ge.f32.partialorder %v125_v10, 0.0  ;;  %v2391_v37 = vshll.u32 %v628_v27, 16  ;;  %v2389_v34 = vshrl.u32 %v628_v27, 16 }
 0x11c   :  { %v10349_v0 = vpop.permute.xlu0 %1138  ;;  %v10357_v5 = vpop.permute.xlu1 %1184 }
 0x11d   :  { %v557_v46 = vsel %vm269_vm10, %v125_v10, %v413_v13  ;;  %v417_v10 = vmul.f32 0.2, %v129_v8  ;;  %v2393_v16 = vrot.slane %v2391_v37, 1  ;;  %v1742_v13 = vshll.u32 %v10384_v57, 16 }
 0x11e   :  { %2316 = vrot.lane.b32.xlu0 %v10237_v36, %s9262_s15  ;;  %1896 = vrot.lane.b32.xlu1 %v1874_v21, %s9264_s19  ;;  %v10386_v61 = vpack.c.bf16 %v558_v45, %v557_v46  ;;  %v13101_v21 = vld [vmem:[#allocation16_spill] sm:$0xff]  ;;  %v1295_v14 = vsel %vm936_vm15, %v1263_v39, %v10357_v5 }
 0x11f   :  { %v1259_v1 = vsel %vm903_vm14, %v13101_v21, %v10300_v41  ;;  %v561_v48 = vsel %vm273_vm1, %v129_v8, %v417_v10  ;;  %v1744_v37 = vrot.slane %v1742_v13, 1 }
 0x120   :  { %v1183_v58 = vpop.permute.xlu0 %1182  ;;  %v1227_v36 = vpop.permute.xlu1 %1226  ;;  %v1291_v38 = vsel %vm936_vm15, %v1259_v1, %v10335_v43  ;;  %v10405_v43 = vpack.c.bf16 %v564_v26, %v563_v12  ;;  %v1735_v45 = vshll.u32 %v10386_v61, 16  ;;  %v2394_v26 = vor.u32 %v2393_v16, %v2389_v34 }
 0x121   :  { %v1293_v35 = vsel %vm936_vm15, %v1261_v19, %v1183_v58  ;;  %v1323_v4 = vsel %vm969_vm0, %v1291_v38, %v1227_v36  ;;  %v13104_v58 = vld [vmem:[#allocation19_spill] sm:$0xff]  ;;  %v433_v1 = vmul.f32 0.2, %v145_v63  ;;  %v1733_v19 = vshrl.u32 %v10386_v61, 16  ;;  %v144_v38 = vld [vmem:[%s13038_s0 + $0x468] sm:$0x3] }
 0x122   :  { %1894 = vrot.lane.b32.xlu0 %v10264_v56, %s9264_s19  ;;  %2322 = vrot.lane.b32.xlu1 %v10366_v52, %s9262_s15  ;;  %v130_v56 = vld [vmem:[%s13038_s0 + $0x3e8] sm:$0x3]  ;;  %v1265_v36 = vsel %vm903_vm14, %v13104_v58, %v10349_v0  ;;  %v146_v0 = vld [vmem:[%s13038_s0 + $0x478] sm:$0x3]  ;;  %v1756_v21 = vshll.u32 %v10405_v43, 16  ;;  %v1737_v10 = vrot.slane %v1735_v45, 1 }
 0x123   :  { %v418_v25 = vmul.f32 0.2, %v130_v56  ;;  %vm274_vm2 = vcmp.ge.f32.partialorder %v130_v56, 0.0  ;;  %vm290_vm5 = vcmp.ge.f32.partialorder %v146_v0, 0.0  ;;  %v1754_v34 = vshrl.u32 %v10405_v43, 16 }
 0x124   :  { %v1187_v55 = vpop.permute.xlu0 %1186  ;;  %v1231_v40 = vpop.permute.xlu1 %1230  ;;  %v577_v16 = vsel %vm289_vm4, %v145_v63, %v433_v1  ;;  %v1738_v42 = vor.u32 %v1737_v10, %v1733_v19  ;;  %vm288_vm7 = vcmp.ge.f32.partialorder %v144_v38, 0.0  ;;  %v147_v1 = vld [vmem:[%s13038_s0 + $0x480] sm:$0xff]  ;;  %v13106_v19 = vld [vmem:[#allocation4_spill] sm:$0xff] }
 0x125   :  { %v562_v47 = vsel %vm274_vm2, %v130_v56, %v418_v25  ;;  %v1297_v29 = vsel %vm936_vm15, %v1265_v36, %v1187_v55  ;;  %v1740_v56 = vshrl.u32 %v10384_v57, 16  ;;  %v432_v36 = vmul.f32 0.2, %v144_v38 }
 0x126   :  { %2320 = vrot.lane.b32.xlu0 %v2244_v6, %s9262_s15  ;;  %2366 = vrot.lane.b32.xlu1 %v10320_v59, %s9263_s7  ;;  %v10432_v12 = vpack.c.bf16 %v562_v47, %v561_v48  ;;  %vm291_vm12 = vcmp.ge.f32.partialorder %v147_v1, 0.0 }
 0x128   :  { %v1229_v11 = vpop.permute.xlu0 %1228  ;;  %v10400_v49 = vpop.permute.xlu1 %1140  ;;  %v1747_v39 = vshrl.u32 %v10432_v12, 16 }
 0x129   :  { %v1325_v41 = vsel %vm969_vm0, %v1293_v35, %v1229_v11  ;;  %v10450_v35 = vor.u32 %v1744_v37, %v1740_v56  ;;  %v1749_v11 = vshll.u32 %v10432_v12, 16  ;;  %v150_v37 = vld [vmem:[%s13038_s0 + $0x498] sm:$0x3] }
 0x12a   :  { %v8089_v54 = vcombine.low %v1323_v4, %v1325_v41  ;;  %2364 = vrot.lane.b32.xlu0 %v10277_v15, %s9263_s7  ;;  %2370 = vrot.lane.b32.xlu1 %v628_v27, %s9263_s7  ;;  %v1327_v27 = vsel %vm969_vm0, %v1295_v14, %v1231_v40  ;;  %v434_v40 = vmul.f32 0.2, %v146_v0  ;;  %v133_v4 = vld [vmem:[%s13038_s0 + $0x400] sm:$0xff]  ;;  %v134_v41 = vld [vmem:[%s13038_s0 + $0x408] sm:$0x3]  ;;  %vm294_vm11 = vcmp.ge.f32.partialorder %v150_v37, 0.0 }
 0x12b   :  { %v421_v47 = vmul.f32 0.2, %v133_v4  ;;  %v422_v14 = vmul.f32 0.2, %v134_v41  ;;  %vm277_vm8 = vcmp.ge.f32.partialorder %v133_v4, 0.0  ;;  %vm278_vm9 = vcmp.ge.f32.partialorder %v134_v41, 0.0 }
 0x12c   :  { %8823 = vmatprep.mubr.msk.bf16.mxu0 %vm1387_vm3, %v8089_v54  ;;  %v1233_v46 = vpop.permute.xlu0 %1232  ;;  %v10427_v5 = vpop.permute.xlu1 %1144  ;;  %v1758_v54 = vrot.slane %v1756_v21, 1  ;;  %v578_v13 = vsel %vm290_vm5, %v146_v0, %v434_v40  ;;  %v13105_v40 = vld [vmem:[#allocation21_spill] sm:$0xff] }
 0x12d   :  { %v1329_v8 = vsel %vm969_vm0, %v1297_v29, %v1233_v46  ;;  %v1751_v29 = vrot.slane %v1749_v11, 1  ;;  %v10468_v46 = vpack.c.bf16 %v578_v13, %v577_v16  ;;  %v566_v56 = vsel %vm278_vm9, %v134_v41, %v422_v14  ;;  %v148_v41 = vld [vmem:[%s13038_s0 + $0x488] sm:$0x3] }
 0x12e   :  { %v8090_v55 = vcombine.low %v1327_v27, %v1329_v8  ;;  %2368 = vrot.lane.b32.xlu0 %v10311_v32, %s9263_s7  ;;  %2412 = vrot.lane.b32.xlu1 %v2244_v6, %s9264_s19  ;;  %v143_v6 = vld [vmem:[%s13038_s0 + $0x460] sm:$0xff]  ;;  %v10472_v45 = vor.u32 %v1758_v54, %v1754_v34  ;;  %v576_v27 = vsel %vm288_vm7, %v144_v38, %v432_v36  ;;  %v13108_v38 = vld [vmem:[#allocation5_spill] sm:$0xff]  ;;  %vm292_vm13 = vcmp.ge.f32.partialorder %v148_v41, 0.0 }
 0x12f   :  { %v431_v58 = vmul.f32 0.2, %v143_v6  ;;  %vm287_vm6 = vcmp.ge.f32.partialorder %v143_v6, 0.0  ;;  %v2262_v21 = vshll.u32 %v10468_v46, 16  ;;  %v931_v10 = vsel %vm903_vm14, %v13106_v19, %v13105_v40 }
 0x130   :  { %8824 = vmatmul.mubr.msk.bf16.gmra.mxu0 %vm1387_vm3, %v8090_v55  ;;  %v10437_v23 = vpop.permute.xlu0 %1142  ;;  %v10440_v25 = vpop.permute.xlu1 %1188  ;;  %v565_v55 = vsel %vm277_vm8, %v133_v4, %v421_v47  ;;  %v964_v34 = vsel %vm936_vm15, %v931_v10, %v9914_v18  ;;  %v435_v47 = vmul.f32 0.2, %v147_v1  ;;  %v2260_v14 = vshrl.u32 %v10468_v46, 16 }
 0x131   :  { %v575_v0 = vsel %vm287_vm6, %v143_v6, %v431_v58  ;;  %v13107_v6 = vld [vmem:[#allocation22_spill] sm:$0xff]  ;;  %v10502_v16 = vpack.c.bf16 %v566_v56, %v565_v55  ;;  %v436_v18 = vmul.f32 0.2, %v148_v41 }
 0x132   :  { %2410 = vrot.lane.b32.xlu0 %v10328_v60, %s9264_s19  ;;  %2416 = vrot.lane.b32.xlu1 %v2394_v26, %s9264_s19  ;;  %v10481_v26 = vor.u32 %v1751_v29, %v1747_v39  ;;  %v929_v11 = vsel %vm903_vm14, %v13108_v38, %v13107_v6  ;;  %v10495_v4 = vpack.c.bf16 %v576_v27, %v575_v0  ;;  %v13109_v39 = vld [vmem:[#allocation29_spill] sm:$0xff]  ;;  %v2264_v29 = vrot.slane %v2262_v21, 1  ;;  %v13111_v55 = vld [vmem:[#allocation26_spill] sm:$0xff] }
 0x133   :  { %v962_v58 = vsel %vm936_vm15, %v929_v11, %v13109_v39  ;;  %v13110_v0 = vld [vmem:[#allocation25_spill] sm:$0xff]  ;;  %v1269_v56 = vsel %vm903_vm14, %v13111_v55, %v10437_v23  ;;  %v1763_v39 = vshll.u32 %v10502_v16, 16 }
 0x134   :  { %v10461_v60 = vpop.permute.xlu0 %1146  ;;  %v10464_v48 = vpop.permute.xlu1 %1192  ;;  %v1267_v27 = vsel %vm903_vm14, %v13110_v0, %v10400_v49  ;;  %v2255_v40 = vshll.u32 %v10495_v4, 16  ;;  %v579_v0 = vsel %vm291_vm12, %v147_v1, %v435_v47  ;;  %v995_v55 = vsel %vm969_vm0, %v962_v58, %v10123_v31  ;;  %v13113_v1 = vld [vmem:[#allocation23_spill] sm:$0xff]  ;;  %v13114_v58 = vld [vmem:[#allocation6_spill] sm:$0xff] }
 0x135   :  { %v1299_v19 = vsel %vm936_vm15, %v1267_v27, %v10440_v25  ;;  %v935_v47 = vsel %vm903_vm14, %v13114_v58, %v13113_v1 }
 0x136   :  { %2414 = vrot.lane.b32.xlu0 %v10366_v52, %s9264_s19  ;;  %1806 = vrot.lane.b32.xlu1 %v10450_v35, %s9262_s15  ;;  %v149_v52 = vld [vmem:[%s13038_s0 + $0x490] sm:$0xff]  ;;  %v968_v27 = vsel %vm936_vm15, %v935_v47, %v9930_v51 }
 0x137   :  { %v437_v13 = vmul.f32 0.2, %v149_v52  ;;  %vm293_vm10 = vcmp.ge.f32.partialorder %v149_v52, 0.0 }
 0x138   :  { %v1191_v63 = vpop.permute.xlu0 %1190  ;;  %v1235_v8 = vpop.permute.xlu1 %1234 }
 0x139   :  { %v1301_v21 = vsel %vm936_vm15, %v1269_v56, %v1191_v63  ;;  %v581_v6 = vsel %vm293_vm10, %v149_v52, %v437_v13  ;;  %v1331_v38 = vsel %vm969_vm0, %v1299_v19, %v1235_v8  ;;  %v580_v52 = vsel %vm292_vm13, %v148_v41, %v436_v18  ;;  %v13116_v41 = vld [vmem:[#allocation7_spill] sm:$0xff] }
 0x13a   :  { %1804 = vrot.lane.b32.xlu0 %v1738_v42, %s9262_s15  ;;  %1810 = vrot.lane.b32.xlu1 %v10472_v45, %s9262_s15  ;;  %v438_v42 = vmul.f32 0.2, %v150_v37  ;;  %v1271_v8 = vsel %vm903_vm14, %v9836_v7, %v10427_v5 }
 0x13b   :  { %v1303_v7 = vsel %vm936_vm15, %v1271_v8, %v10464_v48  ;;  %v10561_v48 = vor.u32 %v2264_v29, %v2260_v14  ;;  %v136_v8 = vld [vmem:[%s13038_s0 + $0x418] sm:$0x3] }
 0x13c   :  { %v1195_v54 = vpop.permute.xlu0 %1194  ;;  %v1239_v36 = vpop.permute.xlu1 %1238  ;;  %v582_v49 = vsel %vm294_vm11, %v150_v37, %v438_v42  ;;  %v13112_v37 = vld [vmem:[#allocation27_spill] sm:$0xff]  ;;  %vm280_vm5 = vcmp.ge.f32.partialorder %v136_v8, 0.0 }
 0x13d   :  { %v1273_v13 = vsel %vm903_vm14, %v13112_v37, %v10461_v60  ;;  %v10540_v31 = vpack.c.bf16 %v582_v49, %v581_v6  ;;  %v1335_v56 = vsel %vm969_vm0, %v1303_v7, %v1239_v36  ;;  %v2257_v49 = vrot.slane %v2255_v40, 1  ;;  %v139_v7 = vld [vmem:[%s13038_s0 + $0x430] sm:$0xff] }
 0x13e   :  { %1808 = vrot.lane.b32.xlu0 %v10481_v26, %s9262_s15  ;;  %1854 = vrot.lane.b32.xlu1 %v10432_v12, %s9263_s7  ;;  %v1305_v5 = vsel %vm936_vm15, %v1273_v13, %v1195_v54  ;;  %v2253_v54 = vshrl.u32 %v10495_v4, 16  ;;  %v1761_v36 = vshrl.u32 %v10502_v16, 16  ;;  %vm283_vm6 = vcmp.ge.f32.partialorder %v139_v7, 0.0 }
 0x140   :  { %v1237_v10 = vpop.permute.xlu0 %1236  ;;  %v898_v11 = vpop.permute.xlu1 %897 }
 0x141   :  { %v1333_v23 = vsel %vm969_vm0, %v1301_v21, %v1237_v10  ;;  %v997_v63 = vsel %vm969_vm0, %v964_v34, %v898_v11  ;;  %v13115_v34 = vld [vmem:[#allocation24_spill] sm:$0xff]  ;;  %v10557_v10 = vpack.c.bf16 %v580_v52, %v579_v0 }
 0x142   :  { %v8091_v25 = vcombine.low %v1331_v38, %v1333_v23  ;;  %1852 = vrot.lane.b32.xlu0 %v10384_v57, %s9263_s7  ;;  %v8108_v42 = vcombine.low %v995_v55, %v997_v63  ;;  %1858 = vrot.lane.b32.xlu1 %v10502_v16, %s9263_s7  ;;  %v933_v18 = vsel %vm903_vm14, %v13116_v41, %v13115_v34  ;;  %v1765_v38 = vrot.slane %v1763_v39, 1  ;;  %v151_v39 = vld [vmem:[%s13038_s0 + $0x4a0] sm:$0xff] }
 0x143   :  { %v2276_v23 = vshll.u32 %v10540_v31, 16  ;;  %v966_v11 = vsel %vm936_vm15, %v933_v18, %v9939_v9  ;;  %v2269_v40 = vshll.u32 %v10557_v10, 16  ;;  %v152_v9 = vld [vmem:[%s13038_s0 + $0x4a8] sm:$0x3]  ;;  %v2274_v63 = vshrl.u32 %v10540_v31, 16 }
 0x144   :  { %8827 = vmatprep.mubr.msk.bf16.mxu0 %vm1387_vm3, %v8091_v25  ;;  %v1241_v60 = vpop.permute.xlu0 %1240  ;;  %v902_v21 = vpop.permute.xlu1 %901  ;;  %8845 = vmatprep.mubr.msk.bf16.mxu1 %vm1387_vm3, %v8108_v42  ;;  %v10584_v25 = vor.u32 %v1765_v38, %v1761_v36  ;;  %v2267_v42 = vshrl.u32 %v10557_v10, 16  ;;  %v439_v58 = vmul.f32 0.2, %v151_v39  ;;  %v440_v47 = vmul.f32 0.2, %v152_v9 }
 0x145   :  { %v1337_v19 = vsel %vm969_vm0, %v1305_v5, %v1241_v60  ;;  %v1001_v51 = vsel %vm969_vm0, %v968_v27, %v902_v21  ;;  %v2278_v52 = vrot.slane %v2276_v23, 1  ;;  %v2271_v1 = vrot.slane %v2269_v40, 1  ;;  %v140_v5 = vld [vmem:[%s13038_s0 + $0x438] sm:$0x3]  ;;  %v137_v23 = vld [vmem:[%s13038_s0 + $0x420] sm:$0xff] }
 0x146   :  { %v8092_v6 = vcombine.low %v1335_v56, %v1337_v19  ;;  %1856 = vrot.lane.b32.xlu0 %v10405_v43, %s9263_s7  ;;  %1900 = vrot.lane.b32.xlu1 %v10481_v26, %s9264_s19  ;;  %v2258_v26 = vor.u32 %v2257_v49, %v2253_v54  ;;  %vm295_vm1 = vcmp.ge.f32.partialorder %v151_v39, 0.0  ;;  %vm296_vm2 = vcmp.ge.f32.partialorder %v152_v9, 0.0 }
 0x147   :  { %v424_v41 = vmul.f32 0.2, %v136_v8  ;;  %v10600_v18 = vor.u32 %v2278_v52, %v2274_v63  ;;  %v2272_v56 = vor.u32 %v2271_v1, %v2267_v42  ;;  %v583_v19 = vsel %vm295_vm1, %v151_v39, %v439_v58 }
 0x148   :  { %8828 = vmatmul.mubr.msk.bf16.gmra.mxu0 %vm1387_vm3, %v8092_v6  ;;  %v900_v14 = vpop.permute.xlu0 %899  ;;  %v1791_v0 = vpop.permute.xlu1 %1790  ;;  %v584_v21 = vsel %vm296_vm2, %v152_v9, %v440_v47  ;;  %v427_v49 = vmul.f32 0.2, %v139_v7  ;;  %vm284_vm7 = vcmp.ge.f32.partialorder %v140_v5, 0.0  ;;  %vm281_vm8 = vcmp.ge.f32.partialorder %v137_v23, 0.0 }
 0x149   :  { %v999_v29 = vsel %vm969_vm0, %v966_v11, %v900_v14  ;;  %v568_v54 = vsel %vm280_vm5, %v136_v8, %v424_v41  ;;  %v10614_v38 = vpack.c.bf16 %v584_v21, %v583_v19  ;;  %v1917_v63 = vsel %vm903_vm14, %v9919_v28, %v1791_v0 }
 0x14a   :  { %v8109_v55 = vcombine.low %v999_v29, %v1001_v51  ;;  %1898 = vrot.lane.b32.xlu0 %v10450_v35, %s9264_s19  ;;  %2326 = vrot.lane.b32.xlu1 %v10561_v48, %s9262_s15  ;;  %v135_v35 = vld [vmem:[%s13038_s0 + $0x410] sm:$0xff]  ;;  %v428_v51 = vmul.f32 0.2, %v140_v5  ;;  %v571_v40 = vsel %vm283_vm6, %v139_v7, %v427_v49 }
 0x14b   :  { %v423_v34 = vmul.f32 0.2, %v135_v35  ;;  %vm279_vm4 = vcmp.ge.f32.partialorder %v135_v35, 0.0  ;;  %v2283_v29 = vshll.u32 %v10614_v38, 16  ;;  %v2281_v1 = vshrl.u32 %v10614_v38, 16  ;;  %v153_v49 = vld [vmem:[%s13038_s0 + $0x4b0] sm:$0xff] }
 0x14c   :  { %8846 = vmatmul.mubr.msk.bf16.gmra.mxu1 %vm1387_vm3, %v8109_v55  ;;  %v1789_v37 = vpop.permute.xlu0 %1788  ;;  %v10594_v13 = vpop.permute.xlu1 %1794  ;;  %v572_v55 = vsel %vm284_vm7, %v140_v5, %v428_v51  ;;  %v154_v51 = vld [vmem:[%s13038_s0 + $0x4b8] sm:$0x3]  ;;  %vm297_vm10 = vcmp.ge.f32.partialorder %v153_v49, 0.0 }
 0x14d   :  { %v567_v6 = vsel %vm279_vm4, %v135_v35, %v423_v34  ;;  %v10631_v8 = vpack.c.bf16 %v572_v55, %v571_v40  ;;  %v2285_v58 = vrot.slane %v2283_v29, 1  ;;  %v1915_v47 = vsel %vm903_vm14, %v9937_v3, %v1789_v37 }
 0x14e   :  { %2324 = vrot.lane.b32.xlu0 %v2258_v26, %s9262_s15  ;;  %1904 = vrot.lane.b32.xlu1 %v10584_v25, %s9264_s19  ;;  %v10622_v14 = vpack.c.bf16 %v568_v54, %v567_v6  ;;  %v425_v26 = vmul.f32 0.2, %v137_v23  ;;  %vm298_vm11 = vcmp.ge.f32.partialorder %v154_v51, 0.0 }
 0x14f   :  { %v1784_v6 = vshll.u32 %v10631_v8, 16  ;;  %v10653_v54 = vor.u32 %v2285_v58, %v2281_v1  ;;  %v1782_v29 = vshrl.u32 %v10631_v8, 16 }
 0x150   :  { %v10608_v60 = vpop.permute.xlu0 %1792  ;;  %v1839_v27 = vpop.permute.xlu1 %1838  ;;  %v1770_v35 = vshll.u32 %v10622_v14, 16  ;;  %v569_v28 = vsel %vm281_vm8, %v137_v23, %v425_v26  ;;  %v1768_v19 = vshrl.u32 %v10622_v14, 16  ;;  %v1921_v23 = vsel %vm903_vm14, %v9941_v30, %v10594_v13 }
 0x151   :  { %v1949_v42 = vsel %vm936_vm15, %v1917_v63, %v1839_v27  ;;  %v1786_v40 = vrot.slane %v1784_v6, 1  ;;  %v442_v63 = vmul.f32 0.2, %v154_v51  ;;  %vm2740_vm8 = vcmask 60416  }
 0x152   :  { %1902 = vrot.lane.b32.xlu0 %v10472_v45, %s9264_s19  ;;  %2330 = vrot.lane.b32.xlu1 %v10600_v18, %s9262_s15  ;;  %v138_v45 = vld [vmem:[%s13038_s0 + $0x428] sm:$0x3]  ;;  %v1772_v21 = vrot.slane %v1770_v35, 1 }
 0x153   :  { %v426_v39 = vmul.f32 0.2, %v138_v45  ;;  %vm282_vm9 = vcmp.ge.f32.partialorder %v138_v45, 0.0  ;;  %v142_v35 = vld [vmem:[%s13038_s0 + $0x448] sm:$0x3] }
 0x154   :  { %v1837_v36 = vpop.permute.xlu0 %1836  ;;  %v1843_v11 = vpop.permute.xlu1 %1842  ;;  %vm286_vm13 = vcmp.ge.f32.partialorder %v142_v35, 0.0 }
 0x155   :  { %v570_v0 = vsel %vm282_vm9, %v138_v45, %v426_v39  ;;  %v1947_v41 = vsel %vm936_vm15, %v1915_v47, %v1837_v36  ;;  %v1953_v55 = vsel %vm936_vm15, %v1921_v23, %v1843_v11  ;;  %v441_v39 = vmul.f32 0.2, %v153_v49 }
 0x156   :  { %2328 = vrot.lane.b32.xlu0 %v2272_v56, %s9262_s15  ;;  %2374 = vrot.lane.b32.xlu1 %v10557_v10, %s9263_s7  ;;  %v10650_v37 = vpack.c.bf16 %v570_v0, %v569_v28  ;;  %v586_v47 = vsel %vm298_vm11, %v154_v51, %v442_v63  ;;  %v430_v0 = vmul.f32 0.2, %v142_v35  ;;  %vm2742_vm9 = vcmask 57344  }
 0x157   :  { %vm2814_vm11 = vsmask.f32 7938 }
 0x158   :  { %v1841_v9 = vpop.permute.xlu0 %1840  ;;  %v1885_v52 = vpop.permute.xlu1 %1884  ;;  %v1777_v26 = vshll.u32 %v10650_v37, 16 }
 0x159   :  { %v1981_v34 = vsel %vm969_vm0, %v1949_v42, %v1885_v52  ;;  %v1919_v52 = vsel %vm903_vm14, %v9974_v24, %v10608_v60  ;;  %v1775_v42 = vshrl.u32 %v10650_v37, 16 }
 0x15a   :  { %2372 = vrot.lane.b32.xlu0 %v10468_v46, %s9263_s7  ;;  %2378 = vrot.lane.b32.xlu1 %v10614_v38, %s9263_s7  ;;  %v1951_v13 = vsel %vm936_vm15, %v1919_v52, %v1841_v9  ;;  %v1779_v58 = vrot.slane %v1777_v26, 1  ;;  %v585_v9 = vsel %vm297_vm10, %v153_v49, %v441_v39  ;;  %vm2752_vm10 = vsmask.f32 256 }
 0x15c   :  { %v1883_v7 = vpop.permute.xlu0 %1882  ;;  %v10644_v27 = vpop.permute.xlu1 %2310 }
 0x15d   :  { %v1979_v5 = vsel %vm969_vm0, %v1947_v41, %v1883_v7  ;;  %v157_v7 = vld [vmem:[%s13038_s0 + $0x4d0] sm:$0xff] }
 0x15e   :  { %v8121_v3 = vcombine.low %v1979_v5, %v1981_v34  ;;  %2376 = vrot.lane.b32.xlu0 %v10540_v31, %s9263_s7  ;;  %2420 = vrot.lane.b32.xlu1 %v2272_v56, %s9264_s19  ;;  %v10667_v56 = vor.u32 %v1772_v21, %v1768_v19  ;;  %v10693_v34 = vor.u32 %v1786_v40, %v1782_v29  ;;  %v445_v49 = vmul.f32 0.2, %v157_v7  ;;  %v156_v29 = vld [vmem:[%s13038_s0 + $0x4c8] sm:$0x3] }
 0x15f   :  { %v10702_v19 = vpack.c.bf16 %v586_v47, %v585_v9  ;;  %v1780_v21 = vor.u32 %v1779_v58, %v1775_v42  ;;  %vm301_vm1 = vcmp.ge.f32.partialorder %v157_v7, 0.0  ;;  %v444_v52 = vmul.f32 0.2, %v156_v29 }
 0x160   :  { %8851 = vmatprep.mubr.msk.bf16.mxu0 %vm1387_vm3, %v8121_v3  ;;  %v10662_v36 = vpop.permute.xlu0 %2308  ;;  %v1889_v45 = vpop.permute.xlu1 %1888  ;;  %v574_v3 = vsel %vm286_vm13, %v142_v35, %v430_v0  ;;  %v589_v26 = vsel %vm301_vm1, %v157_v7, %v445_v49  ;;  %vm300_vm5 = vcmp.ge.f32.partialorder %v156_v29, 0.0  ;;  %vm10850_vm13 = vmand %vm2742_vm9, %vm2814_vm11 }
 0x161   :  { %v1985_v30 = vsel %vm969_vm0, %v1953_v55, %v1889_v45  ;;  %v155_v45 = vld [vmem:[%s13038_s0 + $0x4c0] sm:$0xff]  ;;  %v2290_v40 = vshll.u32 %v10702_v19, 16  ;;  %v2435_v58 = vsel %vm903_vm14, %v10093_v53, %v10662_v36  ;;  %vm10882_vm1 = vmand %vm2740_vm8, %vm2814_vm11 }
 0x162   :  { %2418 = vrot.lane.b32.xlu0 %v10561_v48, %s9264_s19  ;;  %2424 = vrot.lane.b32.xlu1 %v10653_v54, %s9264_s19  ;;  %v141_v48 = vld [vmem:[%s13038_s0 + $0x440] sm:$0xff]  ;;  %v443_v63 = vmul.f32 0.2, %v155_v45  ;;  %vm299_vm4 = vcmp.ge.f32.partialorder %v155_v45, 0.0 }
 0x163   :  { %v429_v28 = vmul.f32 0.2, %v141_v48  ;;  %vm285_vm12 = vcmp.ge.f32.partialorder %v141_v48, 0.0  ;;  %v2292_v35 = vrot.slane %v2290_v40, 1 }
 0x164   :  { %v1887_v11 = vpop.permute.xlu0 %1886  ;;  %v2315_v60 = vpop.permute.xlu1 %2314 }
 0x165   :  { %v1983_v24 = vsel %vm969_vm0, %v1951_v13, %v1887_v11  ;;  %v573_v6 = vsel %vm285_vm12, %v141_v48, %v429_v28  ;;  %v2437_v13 = vsel %vm903_vm14, %v10059_v17, %v10644_v27  ;;  %v2288_v48 = vshrl.u32 %v10702_v19, 16  ;;  %vm10839_vm12 = vmand %vm2742_vm9, %vm2752_vm10 }
 0x166   :  { %v8122_v1 = vcombine.low %v1983_v24, %v1985_v30  ;;  %2422 = vrot.lane.b32.xlu0 %v10600_v18, %s9264_s19  ;;  %1814 = vrot.lane.b32.xlu1 %v10667_v56, %s9262_s15  ;;  %v158_v18 = vld [vmem:[%s13038_s0 + $0x4d8] sm:$0x3]  ;;  %v655_v55 = vpack.c.bf16 %v574_v3, %v573_v6  ;;  %v587_v17 = vsel %vm299_vm4, %v155_v45, %v443_v63  ;;  %vm5064_vm4 = vsmask.f32 7440 }
 0x167   :  { %v446_v51 = vmul.f32 0.2, %v158_v18  ;;  %vm302_vm2 = vcmp.ge.f32.partialorder %v158_v18, 0.0  ;;  %v588_v27 = vsel %vm300_vm5, %v156_v29, %v444_v52  ;;  %v2441_v0 = vsel %vm903_vm14, %v10120_v2, %v2315_v60 }
 0x168   :  { %8852 = vmatmul.mubr.msk.bf16.vlgmr.msra.gmra.mxu0 %vm1387_vm3, %v8122_v1  ;;  %v2313_v41 = vpop.permute.xlu0 %2312  ;;  %v2359_v5 = vpop.permute.xlu1 %2358  ;;  %v1878_v42 = vshll.u32 %v655_v55, 16  ;;  %v1876_v36 = vshrl.u32 %v655_v55, 16  ;;  %v10741_v3 = vpack.c.bf16 %v588_v27, %v587_v17 }
 0x169   :  { %v590_v39 = vsel %vm302_vm2, %v158_v18, %v446_v51  ;;  %v2469_v24 = vsel %vm936_vm15, %v2437_v13, %v2359_v5  ;;  %v10736_v5 = vor.u32 %v2292_v35, %v2288_v48  ;;  %v2439_v49 = vsel %vm903_vm14, %v10131_v22, %v2313_v41 }
 0x16a   :  { %1812 = vrot.lane.b32.xlu0 %v10584_v25, %s9262_s15  ;;  %1818 = vrot.lane.b32.xlu1 %v10693_v34, %s9262_s15  ;;  %v10725_v1 = vpack.c.bf16 %v590_v39, %v589_v26  ;;  %v1880_v2 = vrot.slane %v1878_v42, 1  ;;  %v2297_v22 = vshll.u32 %v10741_v3, 16  ;;  %v159_v26 = vld [vmem:[%s13038_s0 + $0x4e0] sm:$0xff]  ;;  %v160_v39 = vld [vmem:[%s13038_s0 + $0x4e8] sm:$0x3]  ;;  %v2295_v52 = vshrl.u32 %v10741_v3, 16 }
 0x16b   :  { %v447_v13 = vmul.f32 0.2, %v159_v26  ;;  %vm303_vm6 = vcmp.ge.f32.partialorder %v159_v26, 0.0  ;;  %vm304_vm7 = vcmp.ge.f32.partialorder %v160_v39, 0.0  ;;  %s9266_s0 = smov 16  }
 0x16c   :  { %v2357_v23 = vpop.permute.xlu0 %2356  ;;  %v2363_v25 = vpop.permute.xlu1 %2362  ;;  %v2304_v60 = vshll.u32 %v10725_v1, 16  ;;  %v1881_v41 = vor.u32 %v1880_v2, %v1876_v36  ;;  %vm5063_vm2 = vsmask.f32 3328 }
 0x16d   :  { %v2467_v47 = vsel %vm936_vm15, %v2435_v58, %v2357_v23  ;;  %v2473_v6 = vsel %vm936_vm15, %v2441_v0, %v2363_v25  ;;  %v591_v58 = vsel %vm303_vm6, %v159_v26, %v447_v13  ;;  %vm11389_vm5 = vmor %vm5063_vm2, %vm5064_vm4  ;;  %vm3904_vm6 = vcmask 261120  }
 0x16e   :  { %1816 = vrot.lane.b32.xlu0 %v1780_v21, %s9262_s15  ;;  %1862 = vrot.lane.b32.xlu1 %v10650_v37, %s9263_s7 }
 0x170   :  { %v2361_v30 = vpop.permute.xlu0 %2360  ;;  %v2405_v11 = vpop.permute.xlu1 %2404 }
 0x171   :  { %v2501_v9 = vsel %vm969_vm0, %v2469_v24, %v2405_v11  ;;  %v2471_v23 = vsel %vm936_vm15, %v2439_v49, %v2361_v30  ;;  %v2299_v30 = vrot.slane %v2297_v22, 1  ;;  %v448_v11 = vmul.f32 0.2, %v160_v39 }
 0x172   :  { %1860 = vrot.lane.b32.xlu0 %v10622_v14, %s9263_s7  ;;  %1866 = vrot.lane.b32.xlu1 %v655_v55, %s9263_s7  ;;  %v2306_v55 = vrot.slane %v2304_v60, 1 }
 0x173   :  { %v2300_v42 = vor.u32 %v2299_v30, %v2295_v52 }
 0x174   :  { %v2403_v28 = vpop.permute.xlu0 %2402  ;;  %v2409_v18 = vpop.permute.xlu1 %2408 }
 0x175   :  { %v2499_v7 = vsel %vm969_vm0, %v2467_v47, %v2403_v28  ;;  %v2505_v51 = vsel %vm969_vm0, %v2473_v6, %v2409_v18 }
 0x176   :  { %v8140_v53 = vcombine.low %v2499_v7, %v2501_v9  ;;  %1864 = vrot.lane.b32.xlu0 %v10631_v8, %s9263_s7  ;;  %1908 = vrot.lane.b32.xlu1 %v1780_v21, %s9264_s19  ;;  %v2302_v21 = vshrl.u32 %v10725_v1, 16  ;;  %v592_v9 = vsel %vm304_vm7, %v160_v39, %v448_v11  ;;  %vm4182_vm7 = vcmask 27648  }
 0x177   :  { %v664_v27 = vpack.c.bf16 %v592_v9, %v591_v58 }
 0x178   :  { %8869 = vmatprep.mubr.msk.bf16.mxu1 %vm1387_vm3, %v8140_v53  ;;  %v2407_v45 = vpop.permute.xlu0 %2406  ;;  %v1799_v25 = vpop.permute.xlu1 %1798  ;;  %v2307_v48 = vor.u32 %v2306_v55, %v2302_v21 }
 0x179   :  { %v2503_v29 = vsel %vm969_vm0, %v2471_v23, %v2407_v45  ;;  %v2398_v47 = vshll.u32 %v664_v27, 16  ;;  %v1925_v0 = vsel %vm903_vm14, %v10189_v33, %v1799_v25  ;;  %v2396_v53 = vshrl.u32 %v664_v27, 16 }
 0x17a   :  { %v8141_v40 = vcombine.low %v2503_v29, %v2505_v51  ;;  %1906 = vrot.lane.b32.xlu0 %v10667_v56, %s9264_s19  ;;  %2334 = vrot.lane.b32.xlu1 %v10736_v5, %s9262_s15 }
 0x17b   :  { %v2400_v36 = vrot.slane %v2398_v47, 1 }
 0x17c   :  { %8870 = vmatmul.mubr.msk.bf16.vlgmr.msra.gmra.mxu1 %vm1387_vm3, %v8141_v40  ;;  %v1797_v56 = vpop.permute.xlu0 %1796  ;;  %v1803_v63 = vpop.permute.xlu1 %1802 }
 0x17d   :  { %v1923_v18 = vsel %vm903_vm14, %v10077_v62, %v1797_v56  ;;  %v2401_v23 = vor.u32 %v2400_v36, %v2396_v53  ;;  %v1929_v45 = vsel %vm903_vm14, %v10211_v50, %v1803_v63 }
 0x17e   :  { %2332 = vrot.lane.b32.xlu0 %v10653_v54, %s9262_s15  ;;  %1912 = vrot.lane.b32.xlu1 %v1881_v41, %s9264_s19 }
 0x180   :  { %v1801_v35 = vpop.permute.xlu0 %1800  ;;  %v1847_v24 = vpop.permute.xlu1 %1846 }
 0x181   :  { %v1927_v40 = vsel %vm903_vm14, %v10234_v44, %v1801_v35 }
 0x182   :  { %1910 = vrot.lane.b32.xlu0 %v10693_v34, %s9264_s19  ;;  %2338 = vrot.lane.b32.xlu1 %v2307_v48, %s9262_s15  ;;  %v1957_v34 = vsel %vm936_vm15, %v1925_v0, %v1847_v24 }
 0x184   :  { %v1845_v54 = vpop.permute.xlu0 %1844  ;;  %v1851_v17 = vpop.permute.xlu1 %1850 }
 0x185   :  { %v1955_v49 = vsel %vm936_vm15, %v1923_v18, %v1845_v54  ;;  %v1961_v25 = vsel %vm936_vm15, %v1929_v45, %v1851_v17 }
 0x186   :  { %2336 = vrot.lane.b32.xlu0 %v2300_v42, %s9262_s15  ;;  %2382 = vrot.lane.b32.xlu1 %v10741_v3, %s9263_s7  ;;  %s9267_s15 = smov 24  }
 0x188   :  { %v1849_v28 = vpop.permute.xlu0 %1848  ;;  %v1893_v7 = vpop.permute.xlu1 %1892 }
 0x189   :  { %v1989_v6 = vsel %vm969_vm0, %v1957_v34, %v1893_v7  ;;  %v1959_v41 = vsel %vm936_vm15, %v1927_v40, %v1849_v28  ;;  %v2763_v40 = vld [vmem:[#allocation2 + $0x18] sm:$0x1] }
 0x18a   :  { %2380 = vrot.lane.b32.xlu0 %v10702_v19, %s9263_s7  ;;  %2386 = vrot.lane.b32.xlu1 %v664_v27, %s9263_s7 }
 0x18c   :  { %v1891_v51 = vpop.permute.xlu0 %1890  ;;  %v2319_v2 = vpop.permute.xlu1 %2318 }
 0x18d   :  { %v1987_v33 = vsel %vm969_vm0, %v1955_v49, %v1891_v51  ;;  %v2445_v52 = vsel %vm903_vm14, %v10277_v15, %v2319_v2 }
 0x18e   :  { %v8123_v60 = vcombine.low %v1987_v33, %v1989_v6  ;;  %2384 = vrot.lane.b32.xlu0 %v10725_v1, %s9263_s7  ;;  %2428 = vrot.lane.b32.xlu1 %v2300_v42, %s9264_s19 }
 0x190   :  { %8855 = vmatprep.mubr.msk.bf16.mxu0 %vm1387_vm3, %v8123_v60  ;;  %v2317_v62 = vpop.permute.xlu0 %2316  ;;  %v1897_v29 = vpop.permute.xlu1 %1896 }
 0x191   :  { %v1993_v22 = vsel %vm969_vm0, %v1961_v25, %v1897_v29  ;;  %v2443_v11 = vsel %vm903_vm14, %v10179_v20, %v2317_v62 }
 0x192   :  { %2426 = vrot.lane.b32.xlu0 %v10736_v5, %s9264_s19  ;;  %2432 = vrot.lane.b32.xlu1 %v2401_v23, %s9264_s19 }
 0x194   :  { %v1895_v21 = vpop.permute.xlu0 %1894  ;;  %v2323_v26 = vpop.permute.xlu1 %2322 }
 0x195   :  { %v1991_v55 = vsel %vm969_vm0, %v1959_v41, %v1895_v21  ;;  %v2449_v42 = vsel %vm903_vm14, %v10311_v32, %v2323_v26  ;;  %v2764_v21 = vsel %vm10839_vm12, 0, %v2763_v40 }
 0x196   :  { %v8124_v50 = vcombine.low %v1991_v55, %v1993_v22  ;;  %2430 = vrot.lane.b32.xlu0 %v2307_v48, %s9264_s19  ;;  %v2825_v22 = vld [vmem:[#allocation2 + $0x1c] sm:$0x1]  ;;  %2765 = vst [vmem:[#allocation2 + $0x18] sm:$0x1] %v2764_v21 }
 0x198   :  { %8856 = vmatmul.mubr.msk.bf16.gmra.mxu0 %vm1387_vm3, %v8124_v50  ;;  %v2321_v39 = vpop.permute.xlu0 %2320  ;;  %v2367_v5 = vpop.permute.xlu1 %2366 }
 0x199   :  { %v2477_v13 = vsel %vm936_vm15, %v2445_v52, %v2367_v5  ;;  %v2447_v17 = vsel %vm903_vm14, %v10320_v59, %v2321_v39  ;;  %v2826_v39 = vsel %vm10850_vm13, 0, %v2825_v22  ;;  %v2757_v5 = vld [vmem:[#allocation2 + $0x8] sm:$0x1] }
 0x19a   :  { %2827 = vst [vmem:[#allocation2 + $0x1c] sm:$0x1] %v2826_v39  ;;  %v2758_v52 = vsel %vm10839_vm12, 0, %v2757_v5 }
 0x19b   :  { %2759 = vst [vmem:[#allocation2 + $0x8] sm:$0x1] %v2758_v52 }
 0x19c   :  { %v2365_v56 = vpop.permute.xlu0 %2364  ;;  %v2371_v63 = vpop.permute.xlu1 %2370 }
 0x19d   :  { %v2475_v48 = vsel %vm936_vm15, %v2443_v11, %v2365_v56  ;;  %v2481_v54 = vsel %vm936_vm15, %v2449_v42, %v2371_v63  ;;  %v2819_v56 = vld [vmem:[#allocation2 + $0xc] sm:$0x1]  ;;  %v10858_v63 = vpop.f32.mrf.mxu1  ;;  %v2766_v11 = vld [vmem:[#allocation2 + $0x20] sm:$0x1] }
 0x19e   :  { %v2767_v42 = vsel %vm10839_vm12, 0, %v2766_v11 }
 0x19f   :  { %2768 = vst [vmem:[#allocation2 + $0x20] sm:$0x1] %v2767_v42 }
 0x1a0   :  { %v2369_v44 = vpop.permute.xlu0 %2368  ;;  %v2413_v30 = vpop.permute.xlu1 %2412 }
 0x1a1   :  { %v2509_v35 = vsel %vm969_vm0, %v2477_v13, %v2413_v30  ;;  %v2479_v20 = vsel %vm936_vm15, %v2447_v17, %v2369_v44  ;;  %v2820_v30 = vsel %vm10850_vm13, 0, %v2819_v56  ;;  %v10874_v17 = vpop.f32.mrf.mxu1 }
 0x1a2   :  { %2821 = vst [vmem:[#allocation2 + $0xc] sm:$0x1] %v2820_v30 }
 0x1a4   :  { %v2411_v24 = vpop.permute.xlu0 %2410  ;;  %v2417_v9 = vpop.permute.xlu1 %2416 }
 0x1a5   :  { %v2507_v58 = vsel %vm969_vm0, %v2475_v48, %v2411_v24  ;;  %v2513_v27 = vsel %vm969_vm0, %v2481_v54, %v2417_v9 }
 0x1a6   :  { %v8142_v15 = vcombine.low %v2507_v58, %v2509_v35  ;;  %v2828_v35 = vld [vmem:[#allocation2 + $0x24] sm:$0x1] }
 0x1a7   :  { %v2829_v58 = vsel %vm10850_vm13, 0, %v2828_v35 }
 0x1a8   :  { %8873 = vmatprep.mubr.msk.bf16.mxu1 %vm1387_vm3, %v8142_v15  ;;  %v2415_v47 = vpop.permute.xlu0 %2414  ;;  %v1807_v0 = vpop.permute.xlu1 %1806  ;;  %2830 = vst [vmem:[#allocation2 + $0x24] sm:$0x1] %v2829_v58 }
 0x1a9   :  { %v2511_v28 = vsel %vm969_vm0, %v2479_v20, %v2415_v47  ;;  %v1933_v49 = vsel %vm903_vm14, %v10384_v57, %v1807_v0  ;;  %v9265_v57 = vmov 0   ;;  %v2760_v20 = vld [vmem:[#allocation2 + $0x10] sm:$0x1]  ;;  %v2822_v47 = vld [vmem:[#allocation2 + $0x14] sm:$0x1] }
 0x1aa   :  { %v8143_v32 = vcombine.low %v2511_v28, %v2513_v27  ;;  %2741 = vst.msk [vmem:[#allocation2] sm:$0xf] %vm2740_vm8, %v9265_v57  ;;  %2744 = vst.msk [vmem:[#allocation2 + $0x50] sm:$0xf] %vm2740_vm8, %v9265_v57 }
 0x1ab   :  { %2743 = vst.msk [vmem:[#allocation2 + $0x4] sm:$0x1] %vm2742_vm9, %v9265_v57  ;;  %2745 = vst.msk [vmem:[#allocation2 + $0x54] sm:$0x1] %vm2742_vm9, %v9265_v57 }
 0x1ac   :  { %8874 = vmatmul.mubr.msk.bf16.gmra.mxu1 %vm1387_vm3, %v8143_v32  ;;  %v1805_v7 = vpop.permute.xlu0 %1804  ;;  %v1811_v34 = vpop.permute.xlu1 %1810  ;;  %2747 = vst.msk [vmem:[#allocation2 + $0x48] sm:$0xf] %vm2740_vm8, %v9265_v57  ;;  %2749 = vst.msk [vmem:[#allocation2 + $0x98] sm:$0xf] %vm2740_vm8, %v9265_v57 }
 0x1ad   :  { %v1931_v2 = vsel %vm903_vm14, %v10386_v61, %v1805_v7  ;;  %2748 = vst.msk [vmem:[#allocation2 + $0x4c] sm:$0x1] %vm2742_vm9, %v9265_v57  ;;  %2750 = vst.msk [vmem:[#allocation2 + $0x9c] sm:$0x1] %vm2742_vm9, %v9265_v57  ;;  %v1937_v26 = vsel %vm903_vm14, %v10405_v43, %v1811_v34  ;;  %v2761_v7 = vsel %vm10839_vm12, 0, %v2760_v20  ;;  %v2823_v34 = vsel %vm10850_vm13, 0, %v2822_v47 }
 0x1ae   :  { %2762 = vst [vmem:[#allocation2 + $0x10] sm:$0x1] %v2761_v7  ;;  %2824 = vst [vmem:[#allocation2 + $0x14] sm:$0x1] %v2823_v34 }
 0x1b0   :  { %v1809_v18 = vpop.permute.xlu0 %1808  ;;  %v1855_v6 = vpop.permute.xlu1 %1854 }
 0x1b1   :  { %v1965_v33 = vsel %vm936_vm15, %v1933_v49, %v1855_v6  ;;  %v1935_v43 = vsel %vm903_vm14, %v10432_v12, %v1809_v18  ;;  %v2754_v12 = vld [vmem:[#allocation2] sm:$0x1] }
 0x1b2   :  { %v2816_v15 = vld [vmem:[#allocation2 + $0x4] sm:$0x1]  ;;  %v2755_v28 = vsel %vm10839_vm12, 0, %v2754_v12 }
 0x1b3   :  { %v2817_v0 = vsel %vm10850_vm13, 0, %v2816_v15  ;;  %2756 = vst [vmem:[#allocation2] sm:$0x1] %v2755_v28 }
 0x1b4   :  { %v1853_v53 = vpop.permute.xlu0 %1852  ;;  %v1859_v36 = vpop.permute.xlu1 %1858  ;;  %2818 = vst [vmem:[#allocation2 + $0x4] sm:$0x1] %v2817_v0 }
 0x1b5   :  { %v1963_v23 = vsel %vm936_vm15, %v1931_v2, %v1853_v53  ;;  %v1969_v44 = vsel %vm936_vm15, %v1937_v26, %v1859_v36  ;;  %v2784_v53 = vld [vmem:[#allocation2 + $0x50] sm:$0x1]  ;;  %v2846_v36 = vld [vmem:[#allocation2 + $0x54] sm:$0x1] }
 0x1b8   :  { %v1857_v59 = vpop.permute.xlu0 %1856  ;;  %v1901_v51 = vpop.permute.xlu1 %1900 }
 0x1b9   :  { %v1997_v60 = vsel %vm969_vm0, %v1965_v33, %v1901_v51  ;;  %v1967_v48 = vsel %vm936_vm15, %v1935_v43, %v1857_v59  ;;  %v10891_v59 = vpop.f32.mrf.mxu1  ;;  %v2785_v51 = vsel %vm10839_vm12, 0, %v2784_v53  ;;  %v2847_v33 = vsel %vm10850_vm13, 0, %v2846_v36 }
 0x1ba   :  { %2786 = vst [vmem:[#allocation2 + $0x50] sm:$0x1] %v2785_v51  ;;  %2848 = vst [vmem:[#allocation2 + $0x54] sm:$0x1] %v2847_v33 }
 0x1bc   :  { %v1899_v62 = vpop.permute.xlu0 %1898  ;;  %v10828_v29 = vpop.permute.xlu1 %2326 }
 0x1bd   :  { %v1995_v45 = vsel %vm969_vm0, %v1963_v23, %v1899_v62  ;;  %v10899_v23 = vpop.f32.mrf.mxu1  ;;  %v2453_v22 = vsel %vm903_vm14, %v10468_v46, %v10828_v29 }
 0x1be   :  { %v8125_v25 = vcombine.low %v1995_v45, %v1997_v60  ;;  %v3175_v45 = vld [vmem:[#allocation2] sm:$0xf] }
 0x1bf   :  { %v8839_v39 = vpop.f32.mrf.mxu1 }
 0x1c0   :  { %8859 = vmatprep.mubr.msk.bf16.mxu0 %vm1387_vm3, %v8125_v25  ;;  %v10844_v41 = vpop.permute.xlu0 %2324  ;;  %v1905_v50 = vpop.permute.xlu1 %1904  ;;  %v3191_v25 = vld [vmem:[#allocation2 + $0x4] sm:$0x1] }
 0x1c1   :  { %v2001_v13 = vsel %vm969_vm0, %v1969_v44, %v1905_v50  ;;  %v10893_v49 = vpop.f32.mrf.mxu0  ;;  %v8173_v57 = vcombine.low %v3175_v45, %v3191_v25  ;;  %v3183_v44 = vld [vmem:[#allocation2 + $0x50] sm:$0xf]  ;;  %v3199_v52 = vld [vmem:[#allocation2 + $0x54] sm:$0x1]  ;;  %v2451_v30 = vsel %vm903_vm14, %v10495_v4, %v10844_v41 }
 0x1c2   :  { %v8181_v11 = vcombine.low %v3183_v44, %v3199_v52 }
 0x1c3   :  { %v10901_v62 = vpop.f32.mrf.mxu0  ;;  %v3320_v26 = vshrl.u32 %v8173_v57, 16  ;;  %v3322_v50 = vshll.u32 %v8173_v57, 16 }
 0x1c4   :  { %v1903_v24 = vpop.permute.xlu0 %1902  ;;  %v2331_v54 = vpop.permute.xlu1 %2330  ;;  %v3378_v58 = vshll.u32 %v8181_v11, 16  ;;  %v3376_v20 = vshrl.u32 %v8181_v11, 16 }
 0x1c5   :  { %v1999_v9 = vsel %vm969_vm0, %v1967_v48, %v1903_v24  ;;  %v10906_v5 = vpop.f32.mrf.mxu0  ;;  %v2457_v35 = vsel %vm903_vm14, %v10540_v31, %v2331_v54 }
 0x1c6   :  { %v8126_v27 = vcombine.low %v1999_v9, %v2001_v13  ;;  %v3324_v13 = vrot.slane %v3322_v50, 1  ;;  %v1629_v9 = vpop.f32.mrf.mxu1  ;;  %v3380_v31 = vrot.slane %v3378_v58, 1 }
 0x1c7   :  { %v10917_v12 = vpop.f32.mrf.mxu0 }
 0x1c8   :  { %8860 = vmatmul.mubr.msk.bf16.gmra.mxu0 %vm1387_vm3, %v8126_v27  ;;  %v2329_v18 = vpop.permute.xlu0 %2328  ;;  %v2375_v6 = vpop.permute.xlu1 %2374  ;;  %v3325_v42 = vor.u32 %v3324_v13, %v3320_v26 }
 0x1c9   :  { %v2485_v56 = vsel %vm936_vm15, %v2453_v22, %v2375_v6  ;;  %v2455_v15 = vsel %vm903_vm14, %v10557_v10, %v2329_v18  ;;  %v3381_v6 = vor.u32 %v3380_v31, %v3376_v20  ;;  %v8840_v53 = vpop.f32.mrf.mxu1 }
 0x1ca   :  { %3431 = vrot.lane.b32.xlu0 %v3325_v42, %s9263_s7 }
 0x1cb   :  { %v1632_v45 = vpop.f32.mrf.mxu1 }
 0x1cc   :  { %v2373_v2 = vpop.permute.xlu0 %2372  ;;  %v2379_v60 = vpop.permute.xlu1 %2378 }
 0x1cd   :  { %v2483_v46 = vsel %vm936_vm15, %v2451_v30, %v2373_v2  ;;  %v2489_v4 = vsel %vm936_vm15, %v2457_v35, %v2379_v60  ;;  %v10939_v44 = vpop.f32.mrf.mxu1 }
 0x1ce   :  { %3447 = vrot.lane.b32.xlu0 %v3381_v6, %s9263_s7 }
 0x1cf   :  { %v10947_v35 = vpop.f32.mrf.mxu1 }
 0x1d0   :  { %v2377_v40 = vpop.permute.xlu0 %2376  ;;  %v2421_v21 = vpop.permute.xlu1 %2420 }
 0x1d1   :  { %v2517_v43 = vsel %vm969_vm0, %v2485_v56, %v2421_v21  ;;  %v2487_v54 = vsel %vm936_vm15, %v2455_v15, %v2377_v40  ;;  %v10958_v15 = vpop.f32.mrf.mxu1 }
 0x1d4   :  { %v2419_v29 = vpop.permute.xlu0 %2418  ;;  %v2425_v24 = vpop.permute.xlu1 %2424 }
 0x1d5   :  { %v2515_v48 = vsel %vm969_vm0, %v2483_v46, %v2419_v29  ;;  %v2521_v27 = vsel %vm969_vm0, %v2489_v4, %v2425_v24  ;;  %v2837_v24 = vld [vmem:[#allocation2 + $0x3c] sm:$0x1] }
 0x1d6   :  { %v8144_v41 = vcombine.low %v2515_v48, %v2517_v43 }
 0x1d8   :  { %v8821_v47 = vpop.f32.mrf.mxu0  ;;  %8877 = vmatprep.mubr.msk.bf16.mxu1 %vm1387_vm3, %v8144_v41  ;;  %v2423_v28 = vpop.permute.xlu0 %2422 }
 0x1d9   :  { %v10926_v0 = vadd.f32 %v8839_v39, %v8821_v47  ;;  %v2519_v7 = vsel %vm969_vm0, %v2487_v54, %v2423_v28  ;;  %v1815_v34 = vpop.permute.xlu1 %1814  ;;  %v2769_v47 = vld [vmem:[#allocation2 + $0x28] sm:$0x1]  ;;  %v2831_v28 = vld [vmem:[#allocation2 + $0x2c] sm:$0x1] }
 0x1da   :  { %v8145_v10 = vcombine.low %v2519_v7, %v2521_v27  ;;  %v1462_v18 = vpop.f32.mrf.mxu0  ;;  %v1941_v39 = vsel %vm903_vm14, %v10622_v14, %v1815_v34  ;;  %v2775_v14 = vld [vmem:[#allocation2 + $0x38] sm:$0x1]  ;;  %v2770_v6 = vsel %vm10839_vm12, 0, %v2769_v47 }
 0x1db   :  { %v10929_v36 = vadd.f32 %v1629_v9, %v1462_v18  ;;  %v2838_v9 = vsel %vm10850_vm13, 0, %v2837_v24  ;;  %2771 = vst [vmem:[#allocation2 + $0x28] sm:$0x1] %v2770_v6 }
 0x1dc   :  { %v8822_v51 = vpop.f32.mrf.mxu0  ;;  %8878 = vmatmul.mubr.msk.bf16.gmra.mxu1 %vm1387_vm3, %v8145_v10  ;;  %v1813_v33 = vpop.permute.xlu0 %1812  ;;  %2839 = vst [vmem:[#allocation2 + $0x3c] sm:$0x1] %v2838_v9 }
 0x1dd   :  { %v10933_v2 = vadd.f32 %v8840_v53, %v8822_v51  ;;  %v1819_v60 = vpop.permute.xlu1 %1818  ;;  %v1939_v30 = vsel %vm903_vm14, %v10502_v16, %v1813_v33  ;;  %v2776_v16 = vsel %vm10839_vm12, 0, %v2775_v14  ;;  %v2832_v53 = vsel %vm10850_vm13, 0, %v2831_v28  ;;  %v2840_v51 = vld [vmem:[#allocation2 + $0x44] sm:$0x1]  ;;  %v1648_v33 = vpop.f32.mrf.mxu1 }
 0x1de   :  { %v1465_v25 = vpop.f32.mrf.mxu0  ;;  %v1945_v4 = vsel %vm903_vm14, %v10631_v8, %v1819_v60  ;;  %2777 = vst [vmem:[#allocation2 + $0x38] sm:$0x1] %v2776_v16  ;;  %2833 = vst [vmem:[#allocation2 + $0x2c] sm:$0x1] %v2832_v53 }
 0x1df   :  { %v10935_v57 = vadd.f32 %v1632_v45, %v1465_v25 }
 0x1e0   :  { %v1817_v40 = vpop.permute.xlu0 %1816 }
 0x1e1   :  { %v1863_v22 = vpop.permute.xlu1 %1862  ;;  %v1943_v31 = vsel %vm903_vm14, %v10650_v37, %v1817_v40  ;;  %v2778_v37 = vld [vmem:[#allocation2 + $0x40] sm:$0x1]  ;;  %v2841_v40 = vsel %vm10850_vm13, 0, %v2840_v51 }
 0x1e2   :  { %v1973_v52 = vsel %vm936_vm15, %v1941_v39, %v1863_v22  ;;  %v2779_v25 = vsel %vm10839_vm12, 0, %v2778_v37  ;;  %2842 = vst [vmem:[#allocation2 + $0x44] sm:$0x1] %v2841_v40 }
 0x1e3   :  { %2780 = vst [vmem:[#allocation2 + $0x40] sm:$0x1] %v2779_v25  ;;  %v2855_v25 = vld [vmem:[#allocation2 + $0x6c] sm:$0x1] }
 0x1e4   :  { %v1861_v21 = vpop.permute.xlu0 %1860 }
 0x1e5   :  { %v1867_v26 = vpop.permute.xlu1 %1866  ;;  %v1971_v13 = vsel %vm936_vm15, %v1939_v30, %v1861_v21  ;;  %v2772_v21 = vld [vmem:[#allocation2 + $0x30] sm:$0x1] }
 0x1e6   :  { %v1977_v27 = vsel %vm936_vm15, %v1945_v4, %v1867_v26  ;;  %v2834_v26 = vld [vmem:[#allocation2 + $0x34] sm:$0x1]  ;;  %v2773_v39 = vsel %vm10839_vm12, 0, %v2772_v21  ;;  %v2856_v21 = vsel %vm10850_vm13, 0, %v2855_v25 }
 0x1e7   :  { %2774 = vst [vmem:[#allocation2 + $0x30] sm:$0x1] %v2773_v39  ;;  %2857 = vst [vmem:[#allocation2 + $0x6c] sm:$0x1] %v2856_v21  ;;  %v3094_v21 = vld [vmem:[#allocation2 + $0x1c] sm:$0x1] }
 0x1e8   :  { %v1865_v50 = vpop.permute.xlu0 %1864 }
 0x1e9   :  { %v1909_v56 = vpop.permute.xlu1 %1908  ;;  %v1975_v7 = vsel %vm936_vm15, %v1943_v31, %v1865_v50 }
 0x1ea   :  { %v2005_v43 = vsel %vm969_vm0, %v1973_v52, %v1909_v56  ;;  %v2835_v56 = vsel %vm10850_vm13, 0, %v2834_v26  ;;  %v2787_v26 = vld [vmem:[#allocation2 + $0x58] sm:$0x1] }
 0x1eb   :  { %2836 = vst [vmem:[#allocation2 + $0x34] sm:$0x1] %v2835_v56  ;;  %v2788_v39 = vsel %vm10839_vm12, 0, %v2787_v26 }
 0x1ec   :  { %v1907_v11 = vpop.permute.xlu0 %1906  ;;  %2789 = vst [vmem:[#allocation2 + $0x58] sm:$0x1] %v2788_v39 }
 0x1ed   :  { %v2003_v46 = vsel %vm969_vm0, %v1971_v13, %v1907_v11  ;;  %v2335_v29 = vpop.permute.xlu1 %2334 }
 0x1ee   :  { %v8127_v48 = vcombine.low %v2003_v46, %v2005_v43  ;;  %v2461_v11 = vsel %vm903_vm14, %v10702_v19, %v2335_v29 }
 0x1f0   :  { %v10949_v42 = vpop.f32.mrf.mxu0  ;;  %8863 = vmatprep.mubr.msk.bf16.mxu0 %vm1387_vm3, %v8127_v48  ;;  %v2333_v58 = vpop.permute.xlu0 %2332 }
 0x1f1   :  { %v1913_v41 = vpop.permute.xlu1 %1912  ;;  %v2459_v14 = vsel %vm903_vm14, %v10614_v38, %v2333_v58 }
 0x1f2   :  { %v10961_v20 = vpop.f32.mrf.mxu0  ;;  %v2009_v54 = vsel %vm969_vm0, %v1977_v27, %v1913_v41 }
 0x1f4   :  { %v10967_v34 = vpop.f32.mrf.mxu0  ;;  %v1911_v8 = vpop.permute.xlu0 %1910 }
 0x1f5   :  { %v2007_v10 = vsel %vm969_vm0, %v1975_v7, %v1911_v8  ;;  %v2339_v18 = vpop.permute.xlu1 %2338 }
 0x1f6   :  { %v8128_v60 = vcombine.low %v2007_v10, %v2009_v54  ;;  %v1481_v45 = vpop.f32.mrf.mxu0  ;;  %v2465_v4 = vsel %vm903_vm14, %v10725_v1, %v2339_v18 }
 0x1f7   :  { %v10978_v22 = vadd.f32 %v1648_v33, %v1481_v45  ;;  %v2793_v45 = vld [vmem:[#allocation2 + $0x68] sm:$0x1] }
 0x1f8   :  { %8864 = vmatmul.mubr.msk.bf16.gmra.mxu0 %vm1387_vm3, %v8128_v60  ;;  %v2337_v50 = vpop.permute.xlu0 %2336  ;;  %v2794_v40 = vsel %vm10839_vm12, 0, %v2793_v45 }
 0x1f9   :  { %v2383_v52 = vpop.permute.xlu1 %2382  ;;  %v2463_v29 = vsel %vm903_vm14, %v10741_v3, %v2337_v50  ;;  %2795 = vst [vmem:[#allocation2 + $0x68] sm:$0x1] %v2794_v40  ;;  %v2849_v50 = vld [vmem:[#allocation2 + $0x5c] sm:$0x1]  ;;  %v3091_v40 = vld [vmem:[#allocation2 + $0x18] sm:$0xf] }
 0x1fa   :  { %v2493_v48 = vsel %vm936_vm15, %v2461_v11, %v2383_v52  ;;  %v2850_v56 = vsel %vm10850_vm13, 0, %v2849_v50  ;;  %v2796_v52 = vld [vmem:[#allocation2 + $0x70] sm:$0x1]  ;;  %v2790_v11 = vld [vmem:[#allocation2 + $0x60] sm:$0x1] }
 0x1fb   :  { %2851 = vst [vmem:[#allocation2 + $0x5c] sm:$0x1] %v2850_v56 }
 0x1fc   :  { %v2381_v30 = vpop.permute.xlu0 %2380 }
 0x1fd   :  { %v2387_v43 = vpop.permute.xlu1 %2386  ;;  %v2491_v16 = vsel %vm936_vm15, %v2459_v14, %v2381_v30  ;;  %v2858_v30 = vld [vmem:[#allocation2 + $0x74] sm:$0x1] }
 0x1fe   :  { %v2497_v31 = vsel %vm936_vm15, %v2465_v4, %v2387_v43  ;;  %v2797_v43 = vsel %vm10839_vm12, 0, %v2796_v52  ;;  %v1614_v4 = vadd.f32 %v10874_v17, %v10901_v62  ;;  %v3079_v52 = vld [vmem:[#allocation2 + $0x8] sm:$0xf] }
 0x1ff   :  { %2798 = vst [vmem:[#allocation2 + $0x70] sm:$0x1] %v2797_v43 }
 0x200   :  { %v2385_v13 = vpop.permute.xlu0 %2384 }
 0x201   :  { %v2429_v46 = vpop.permute.xlu1 %2428  ;;  %v2495_v38 = vsel %vm936_vm15, %v2463_v29, %v2385_v13  ;;  %v2859_v13 = vsel %vm10850_vm13, 0, %v2858_v30  ;;  %v3082_v30 = vld [vmem:[#allocation2 + $0xc] sm:$0x1] }
 0x202   :  { %v2525_v24 = vsel %vm969_vm0, %v2493_v48, %v2429_v46  ;;  %2860 = vst [vmem:[#allocation2 + $0x74] sm:$0x1] %v2859_v13  ;;  %v2852_v46 = vld [vmem:[#allocation2 + $0x64] sm:$0x1]  ;;  %v2791_v48 = vsel %vm10839_vm12, 0, %v2790_v11 }
 0x203   :  { %v2853_v14 = vsel %vm10850_vm13, 0, %v2852_v46  ;;  %2792 = vst [vmem:[#allocation2 + $0x60] sm:$0x1] %v2791_v48 }
 0x204   :  { %v2427_v9 = vpop.permute.xlu0 %2426  ;;  %2854 = vst [vmem:[#allocation2 + $0x64] sm:$0x1] %v2853_v14 }
 0x205   :  { %v2523_v41 = vsel %vm969_vm0, %v2491_v16, %v2427_v9  ;;  %v2433_v27 = vpop.permute.xlu1 %2432  ;;  %v1622_v9 = vadd.f32 %v10858_v63, %v10893_v49 }
 0x206   :  { %v8146_v19 = vcombine.low %v2523_v41, %v2525_v24  ;;  %v2529_v54 = vsel %vm969_vm0, %v2497_v31, %v2433_v27 }
 0x208   :  { %v8829_v58 = vpop.f32.mrf.mxu0  ;;  %8881 = vmatprep.mubr.msk.bf16.mxu1 %vm1387_vm3, %v8146_v19  ;;  %v2431_v47 = vpop.permute.xlu0 %2430  ;;  %v1625_v19 = vadd.f32 %v10891_v59, %v10906_v5 }
 0x209   :  { %v2527_v28 = vsel %vm969_vm0, %v2495_v38, %v2431_v47  ;;  %vm3815_vm0 = vcmask 195584  }
 0x20a   :  { %v8147_v1 = vcombine.low %v2527_v28, %v2529_v54  ;;  %v1494_v7 = vpop.f32.mrf.mxu0 }
 0x20c   :  { %v8847_v8 = vpop.f32.mrf.mxu1  ;;  %8882 = vmatmul.mubr.msk.bf16.gmra.mxu1 %vm1387_vm3, %v8147_v1  ;;  %v8830_v53 = vpop.f32.mrf.mxu0 }
 0x20d   :  { %v11003_v6 = vadd.f32 %v8847_v8, %v8829_v58 }
 0x20e   :  { %v1661_v10 = vpop.f32.mrf.mxu1  ;;  %v1497_v51 = vpop.f32.mrf.mxu0 }
 0x20f   :  { %v11005_v3 = vadd.f32 %v1661_v10, %v1494_v7  ;;  %v1617_v7 = vadd.f32 %v10899_v23, %v10917_v12 }
 0x210   :  { %v8848_v18 = vpop.f32.mrf.mxu1 }
 0x211   :  { %v11007_v37 = vadd.f32 %v8848_v18, %v8830_v53 }
 0x212   :  { %v1664_v33 = vpop.f32.mrf.mxu1 }
 0x213   :  { %v11009_v60 = vadd.f32 %v1664_v33, %v1497_v51 }
 0x228   :  { %v8853_v24 = vpop.f32.mrf.mxu0 }
 0x229   :  { %v2182_v41 = vadd.f32 %v8853_v24, %v1622_v9 }
 0x22a   :  { %v2117_v16 = vpop.f32.mrf.mxu0 }
 0x22b   :  { %v2180_v29 = vadd.f32 %v2117_v16, %v1614_v4 }
 0x22c   :  { %v8854_v27 = vpop.f32.mrf.mxu0 }
 0x22d   :  { %v2183_v58 = vadd.f32 %v8854_v27, %v1625_v19  ;;  %v3100_v27 = vld [vmem:[#allocation2 + $0x24] sm:$0x1] }
 0x22e   :  { %v2120_v47 = vpop.f32.mrf.mxu0 }
 0x22f   :  { %v2181_v62 = vadd.f32 %v2120_v47, %v1617_v7 }
 0x23c   :  { %v8871_v31 = vpop.f32.mrf.mxu1 }
 0x23d   :  { %v2702_v54 = vadd.f32 %v8871_v31, %v2182_v41  ;;  %v3097_v41 = vld [vmem:[#allocation2 + $0x20] sm:$0xf] }
 0x23e   :  { %v2637_v38 = vpop.f32.mrf.mxu1 }
 0x23f   :  { %v2718_v28 = vmax.f32 %v2702_v54, 0.0  ;;  %v2700_v1 = vadd.f32 %v2637_v38, %v2180_v29  ;;  %v3085_v38 = vld [vmem:[#allocation2 + $0x10] sm:$0xf] }
 0x240   :  { %v8872_v63 = vpop.f32.mrf.mxu1 }
 0x241   :  { %v8659_v49 = vpack.c.bf16 %v2718_v28, %v2718_v28  ;;  %v2716_v8 = vmax.f32 %v2700_v1, 0.0  ;;  %v2703_v17 = vadd.f32 %v8872_v63, %v2183_v58  ;;  %v3088_v58 = vld [vmem:[#allocation2 + $0x14] sm:$0x1]  ;;  %v2805_v63 = vld [vmem:[#allocation2 + $0x88] sm:$0x1] }
 0x242   :  { %v2640_v53 = vpop.f32.mrf.mxu1 }
 0x243   :  { %v2933_v10 = vshrl.u32 %v8659_v49, 16  ;;  %v8657_v18 = vpack.c.bf16 %v2716_v8, %v2716_v8  ;;  %v2719_v51 = vmax.f32 %v2703_v17, 0.0  ;;  %v2701_v59 = vadd.f32 %v2640_v53, %v2181_v62 }
 0x244   :  { %v2936_v33 = vshll.u32 %v8659_v49, 16  ;;  %v2867_v49 = vld [vmem:[#allocation2 + $0x8c] sm:$0x1]  ;;  %v2806_v62 = vsel %vm10839_vm12, 0, %v2805_v63 }
 0x245   :  { %v2935_v5 = vrot.slane %v2933_v10, 7  ;;  %v2917_v45 = vshrl.u32 %v8657_v18, 16  ;;  %v8660_v25 = vpack.c.bf16 %v2719_v51, %v2719_v51  ;;  %v2920_v26 = vshll.u32 %v8657_v18, 16  ;;  %2807 = vst [vmem:[#allocation2 + $0x88] sm:$0x1] %v2806_v62 }
 0x246   :  { %v2717_v50 = vmax.f32 %v2701_v59, 0.0  ;;  %v2868_v53 = vsel %vm10850_vm13, 0, %v2867_v49  ;;  %v4200_v59 = vld [vmem:[#allocation2 + $0x4] sm:$0x1] }
 0x247   :  { %v2938_v39 = vor.u32 %v2936_v33, %v2935_v5  ;;  %v2939_v23 = vrot.slane %v2935_v5, 4  ;;  %v2919_v12 = vrot.slane %v2917_v45, 7  ;;  %v2941_v56 = vshrl.u32 %v8660_v25, 16  ;;  %2869 = vst [vmem:[#allocation2 + $0x8c] sm:$0x1] %v2868_v53 }
 0x248   :  { %v8658_v43 = vpack.c.bf16 %v2717_v50, %v2717_v50  ;;  %v2944_v24 = vshll.u32 %v8660_v25, 16  ;;  %v4231_v5 = vld [vmem:[#allocation2] sm:$0xe]  ;;  %v2799_v50 = vld [vmem:[#allocation2 + $0x78] sm:$0x1] }
 0x249   :  { %v3092_v13 = vsel %vm10882_vm1, %v2938_v39, %v3091_v40  ;;  %v3095_v11 = vsel %vm10839_vm12, %v2939_v23, %v3094_v21  ;;  %v2922_v46 = vor.u32 %v2920_v26, %v2919_v12  ;;  %v2923_v48 = vrot.slane %v2919_v12, 4  ;;  %v2861_v12 = vld [vmem:[#allocation2 + $0x7c] sm:$0x1]  ;;  %v2864_v49 = vld [vmem:[#allocation2 + $0x84] sm:$0x1] }
 0x24a   :  { %3093 = vst [vmem:[#allocation2 + $0x18] sm:$0xf] %v3092_v13  ;;  %3096 = vst [vmem:[#allocation2 + $0x1c] sm:$0x1] %v3095_v11  ;;  %v2943_v14 = vrot.slane %v2941_v56, 7  ;;  %v2925_v16 = vshrl.u32 %v8658_v43, 16 }
 0x24b   :  { %v3080_v9 = vsel %vm10882_vm1, %v2922_v46, %v3079_v52  ;;  %v3083_v4 = vsel %vm10839_vm12, %v2923_v48, %v3082_v30  ;;  %v2928_v54 = vshll.u32 %v8658_v43, 16  ;;  %v2800_v23 = vsel %vm10839_vm12, 0, %v2799_v50  ;;  %v2808_v56 = vld [vmem:[#allocation2 + $0x90] sm:$0x1] }
 0x24c   :  { %3081 = vst [vmem:[#allocation2 + $0x8] sm:$0xf] %v3080_v9  ;;  %3084 = vst [vmem:[#allocation2 + $0xc] sm:$0x1] %v3083_v4  ;;  %v2946_v31 = vor.u32 %v2944_v24, %v2943_v14  ;;  %v2947_v19 = vrot.slane %v2943_v14, 4  ;;  %v2927_v29 = vrot.slane %v2925_v16, 7  ;;  %v8271_v48 = vcombine.low %v4231_v5, %v4200_v59 }
 0x24d   :  { %2801 = vst [vmem:[#allocation2 + $0x78] sm:$0x1] %v2800_v23  ;;  %v2862_v11 = vsel %vm10850_vm13, 0, %v2861_v12  ;;  %v2809_v14 = vsel %vm10839_vm12, 0, %v2808_v56 }
 0x24e   :  { %v3098_v47 = vsel %vm10882_vm1, %v2946_v31, %v3097_v41  ;;  %v3101_v28 = vsel %vm10839_vm12, %v2947_v19, %v3100_v27  ;;  %v2930_v1 = vor.u32 %v2928_v54, %v2927_v29  ;;  %v2931_v7 = vrot.slane %v2927_v29, 4  ;;  %2863 = vst [vmem:[#allocation2 + $0x7c] sm:$0x1] %v2862_v11  ;;  %2810 = vst [vmem:[#allocation2 + $0x90] sm:$0x1] %v2809_v14 }
 0x24f   :  { %3099 = vst [vmem:[#allocation2 + $0x20] sm:$0xf] %v3098_v47  ;;  %3102 = vst [vmem:[#allocation2 + $0x24] sm:$0x1] %v3101_v28  ;;  %v2802_v47 = vld [vmem:[#allocation2 + $0x80] sm:$0x1] }
 0x250   :  { %v3086_v8 = vsel %vm10882_vm1, %v2930_v1, %v3085_v38  ;;  %v3089_v17 = vsel %vm10839_vm12, %v2931_v7, %v3088_v58  ;;  %v4426_v38 = vshll.u32 %v8271_v48, 16  ;;  %v2870_v58 = vld [vmem:[#allocation2 + $0x94] sm:$0x1]  ;;  %v4424_v5 = vshrl.u32 %v8271_v48, 16 }
 0x251   :  { %3087 = vst [vmem:[#allocation2 + $0x10] sm:$0xf] %v3086_v8  ;;  %3090 = vst [vmem:[#allocation2 + $0x14] sm:$0x1] %v3089_v17  ;;  %v3178_v10 = vld [vmem:[#allocation2 + $0x18] sm:$0xf] }
 0x252   :  { %v3194_v18 = vld [vmem:[#allocation2 + $0x1c] sm:$0x1]  ;;  %v2871_v8 = vsel %vm10850_vm13, 0, %v2870_v58  ;;  %v2803_v17 = vsel %vm10839_vm12, 0, %v2802_v47 }
 0x253   :  { %v8176_v51 = vcombine.low %v3178_v10, %v3194_v18  ;;  %v3176_v33 = vld [vmem:[#allocation2 + $0x8] sm:$0xf]  ;;  %v3192_v45 = vld [vmem:[#allocation2 + $0xc] sm:$0x1]  ;;  %2872 = vst [vmem:[#allocation2 + $0x94] sm:$0x1] %v2871_v8 }
 0x254   :  { %v4202_v25 = vld [vmem:[#allocation2 + $0xc] sm:$0x1]  ;;  %v8174_v21 = vcombine.low %v3176_v33, %v3192_v45  ;;  %v4232_v26 = vld [vmem:[#allocation2 + $0x8] sm:$0xe]  ;;  %2804 = vst [vmem:[#allocation2 + $0x80] sm:$0x1] %v2803_v17 }
 0x255   :  { %v3343_v40 = vshll.u32 %v8176_v51, 16  ;;  %v8272_v39 = vcombine.low %v4232_v26, %v4202_v25  ;;  %v3341_v52 = vshrl.u32 %v8176_v51, 16  ;;  %v2865_v18 = vsel %vm10850_vm13, 0, %v2864_v49 }
 0x256   :  { %v3329_v43 = vshll.u32 %v8174_v21, 16  ;;  %v3179_v13 = vld [vmem:[#allocation2 + $0x20] sm:$0xf]  ;;  %v3195_v46 = vld [vmem:[#allocation2 + $0x24] sm:$0x1]  ;;  %v3327_v19 = vshrl.u32 %v8174_v21, 16 }
 0x257   :  { %v3345_v30 = vrot.slane %v3343_v40, 1  ;;  %v8177_v9 = vcombine.low %v3179_v13, %v3195_v46  ;;  %v4433_v4 = vshll.u32 %v8272_v39, 16  ;;  %v4431_v53 = vshrl.u32 %v8272_v39, 16  ;;  %2866 = vst [vmem:[#allocation2 + $0x84] sm:$0x1] %v2865_v18 }
 0x258   :  { %v3331_v16 = vrot.slane %v3329_v43, 1  ;;  %v3177_v41 = vld [vmem:[#allocation2 + $0x10] sm:$0xf]  ;;  %v3193_v27 = vld [vmem:[#allocation2 + $0x14] sm:$0x1]  ;;  %v4428_v33 = vrot.slane %v4426_v38, 1  ;;  %v8857_v25 = vpop.f32.mrf.mxu0 }
 0x259   :  { %v3346_v24 = vor.u32 %v3345_v30, %v3341_v52  ;;  %v8175_v31 = vcombine.low %v3177_v41, %v3193_v27  ;;  %v3350_v29 = vshll.u32 %v8177_v9, 16  ;;  %v3348_v1 = vshrl.u32 %v8177_v9, 16 }
 0x25a   :  { %v3332_v28 = vor.u32 %v3331_v16, %v3327_v19  ;;  %v4435_v63 = vrot.slane %v4433_v4, 1  ;;  %v4429_v40 = vor.u32 %v4428_v33, %v4424_v5  ;;  %v2133_v21 = vpop.f32.mrf.mxu0  ;;  %v2186_v26 = vadd.f32 %v8857_v25, %v10926_v0  ;;  %v3121_v5 = vld [vmem:[#allocation2 + $0x40] sm:$0xf]  ;;  %v3124_v33 = vld [vmem:[#allocation2 + $0x44] sm:$0x1] }
 0x25b   :  { %3437 = vrot.lane.b32.xlu1 %v3346_v24, %s9263_s7  ;;  %v3336_v54 = vshll.u32 %v8175_v31, 16  ;;  %v3352_v7 = vrot.slane %v3350_v29, 1  ;;  %v3334_v59 = vshrl.u32 %v8175_v31, 16  ;;  %v2184_v23 = vadd.f32 %v2133_v21, %v10929_v36  ;;  %v3115_v29 = vld [vmem:[#allocation2 + $0x38] sm:$0xf] }
 0x25c   :  { %v4436_v51 = vor.u32 %v4435_v63, %v4431_v53  ;;  %v8858_v50 = vpop.f32.mrf.mxu0  ;;  %v3106_v63 = vld [vmem:[#allocation2 + $0x2c] sm:$0x1] }
 0x25d   :  { %v3353_v62 = vor.u32 %v3352_v7, %v3348_v1  ;;  %v3338_v10 = vrot.slane %v3336_v54, 1  ;;  %v2187_v52 = vadd.f32 %v8858_v50, %v10933_v2  ;;  %v3118_v2 = vld [vmem:[#allocation2 + $0x3c] sm:$0x1]  ;;  %v3103_v7 = vld [vmem:[#allocation2 + $0x28] sm:$0xf] }
 0x25e   :  { %v2136_v30 = vpop.f32.mrf.mxu0  ;;  %v3112_v50 = vld [vmem:[#allocation2 + $0x34] sm:$0x1] }
 0x25f   :  { %3433 = vrot.lane.b32.xlu1 %v3332_v28, %s9263_s7  ;;  %3439 = vrot.lane.b32.xlu0 %v3353_v62, %s9263_s7  ;;  %v3339_v45 = vor.u32 %v3338_v10, %v3334_v59  ;;  %v2185_v24 = vadd.f32 %v2136_v30, %v10935_v57 }
 0x263   :  { %4537 = vrot.lane.b32.xlu1 %v4436_v51, %s9263_s7  ;;  %3435 = vrot.lane.b32.xlu0 %v3339_v45, %s9263_s7 }
 0x267   :  { %4535 = vrot.lane.b32.xlu0 %v4429_v40, %s9263_s7 }
 0x26c   :  { %v8875_v39 = vpop.f32.mrf.mxu1 }
 0x26d   :  { %v2706_v12 = vadd.f32 %v8875_v39, %v2186_v26  ;;  %v3109_v26 = vld [vmem:[#allocation2 + $0x30] sm:$0xf] }
 0x26e   :  { %v2653_v56 = vpop.f32.mrf.mxu1 }
 0x26f   :  { %v2722_v43 = vmax.f32 %v2706_v12, 0.0  ;;  %v2704_v13 = vadd.f32 %v2653_v56, %v2184_v23 }
 0x270   :  { %v8876_v11 = vpop.f32.mrf.mxu1 }
 0x271   :  { %v8663_v46 = vpack.c.bf16 %v2722_v43, %v2722_v43  ;;  %v2720_v48 = vmax.f32 %v2704_v13, 0.0  ;;  %v2707_v14 = vadd.f32 %v8876_v11, %v2187_v52 }
 0x272   :  { %v2656_v16 = vpop.f32.mrf.mxu1 }
 0x273   :  { %v2965_v9 = vshrl.u32 %v8663_v46, 16  ;;  %v8661_v0 = vpack.c.bf16 %v2720_v48, %v2720_v48  ;;  %v2723_v4 = vmax.f32 %v2707_v14, 0.0  ;;  %v2705_v41 = vadd.f32 %v2656_v16, %v2185_v24 }
 0x274   :  { %v2968_v36 = vshll.u32 %v8663_v46, 16 }
 0x275   :  { %v2967_v27 = vrot.slane %v2965_v9, 7  ;;  %v2949_v31 = vshrl.u32 %v8661_v0, 16  ;;  %v8664_v19 = vpack.c.bf16 %v2723_v4, %v2723_v4  ;;  %v2952_v54 = vshll.u32 %v8661_v0, 16 }
 0x276   :  { %v2721_v38 = vmax.f32 %v2705_v41, 0.0 }
 0x277   :  { %v2970_v58 = vor.u32 %v2968_v36, %v2967_v27  ;;  %v2971_v47 = vrot.slane %v2967_v27, 4  ;;  %v2951_v28 = vrot.slane %v2949_v31, 7  ;;  %v2973_v1 = vshrl.u32 %v8664_v19, 16 }
 0x278   :  { %v8662_v57 = vpack.c.bf16 %v2721_v38, %v2721_v38  ;;  %v2976_v10 = vshll.u32 %v8664_v19, 16 }
 0x279   :  { %v3116_v49 = vsel %vm10882_vm1, %v2970_v58, %v3115_v29  ;;  %v3119_v8 = vsel %vm10839_vm12, %v2971_v47, %v3118_v2  ;;  %v2954_v17 = vor.u32 %v2952_v54, %v2951_v28  ;;  %v2955_v62 = vrot.slane %v2951_v28, 4 }
 0x27a   :  { %3117 = vst [vmem:[#allocation2 + $0x38] sm:$0xf] %v3116_v49  ;;  %3120 = vst [vmem:[#allocation2 + $0x3c] sm:$0x1] %v3119_v8  ;;  %v2975_v53 = vrot.slane %v2973_v1, 7  ;;  %v2957_v18 = vshrl.u32 %v8662_v57, 16  ;;  %v1654_v1 = vadd.f32 %v10939_v44, %v10949_v42  ;;  %v1657_v8 = vadd.f32 %v10958_v15, %v10967_v34 }
 0x27b   :  { %v3104_v51 = vsel %vm10882_vm1, %v2954_v17, %v3103_v7  ;;  %v3107_v59 = vsel %vm10839_vm12, %v2955_v62, %v3106_v63  ;;  %v2960_v21 = vshll.u32 %v8662_v57, 16  ;;  %v1646_v7 = vadd.f32 %v10947_v35, %v10961_v20 }
 0x27c   :  { %3105 = vst [vmem:[#allocation2 + $0x28] sm:$0xf] %v3104_v51  ;;  %3108 = vst [vmem:[#allocation2 + $0x2c] sm:$0x1] %v3107_v59  ;;  %v2978_v45 = vor.u32 %v2976_v10, %v2975_v53  ;;  %v2979_v25 = vrot.slane %v2975_v53, 4  ;;  %v2959_v40 = vrot.slane %v2957_v18, 7 }
 0x27e   :  { %v3122_v39 = vsel %vm10882_vm1, %v2978_v45, %v3121_v5  ;;  %v3125_v23 = vsel %vm10839_vm12, %v2979_v25, %v3124_v33  ;;  %v2962_v12 = vor.u32 %v2960_v21, %v2959_v40  ;;  %v2963_v56 = vrot.slane %v2959_v40, 4 }
 0x27f   :  { %3123 = vst [vmem:[#allocation2 + $0x40] sm:$0xf] %v3122_v39  ;;  %3126 = vst [vmem:[#allocation2 + $0x44] sm:$0x1] %v3125_v23  ;;  %v3139_v39 = vld [vmem:[#allocation2 + $0x68] sm:$0xf] }
 0x280   :  { %v3110_v52 = vsel %vm10882_vm1, %v2962_v12, %v3109_v26  ;;  %v3113_v30 = vsel %vm10839_vm12, %v2963_v56, %v3112_v50  ;;  %v3142_v23 = vld [vmem:[#allocation2 + $0x6c] sm:$0x1] }
 0x281   :  { %3111 = vst [vmem:[#allocation2 + $0x30] sm:$0xf] %v3110_v52  ;;  %3114 = vst [vmem:[#allocation2 + $0x34] sm:$0x1] %v3113_v30  ;;  %v3182_v43 = vld [vmem:[#allocation2 + $0x38] sm:$0xf] }
 0x282   :  { %v3198_v13 = vld [vmem:[#allocation2 + $0x3c] sm:$0x1] }
 0x283   :  { %v8180_v11 = vcombine.low %v3182_v43, %v3198_v13  ;;  %v3180_v46 = vld [vmem:[#allocation2 + $0x28] sm:$0xf]  ;;  %v3196_v48 = vld [vmem:[#allocation2 + $0x2c] sm:$0x1] }
 0x284   :  { %v8178_v24 = vcombine.low %v3180_v46, %v3196_v48  ;;  %v3130_v46 = vld [vmem:[#allocation2 + $0x5c] sm:$0x1] }
 0x285   :  { %v3371_v14 = vshll.u32 %v8180_v11, 16  ;;  %v3369_v16 = vshrl.u32 %v8180_v11, 16  ;;  %v3127_v11 = vld [vmem:[#allocation2 + $0x58] sm:$0xf] }
 0x286   :  { %v3357_v0 = vshll.u32 %v8178_v24, 16  ;;  %v3355_v19 = vshrl.u32 %v8178_v24, 16 }
 0x287   :  { %v3373_v9 = vrot.slane %v3371_v14, 1 }
 0x288   :  { %v3359_v41 = vrot.slane %v3357_v0, 1  ;;  %v3181_v27 = vld [vmem:[#allocation2 + $0x30] sm:$0xf]  ;;  %v3197_v36 = vld [vmem:[#allocation2 + $0x34] sm:$0x1]  ;;  %v8861_v47 = vpop.f32.mrf.mxu0 }
 0x289   :  { %v3374_v4 = vor.u32 %v3373_v9, %v3369_v16  ;;  %v8179_v31 = vcombine.low %v3181_v27, %v3197_v36  ;;  %v2190_v63 = vadd.f32 %v8861_v47, %v1654_v1  ;;  %v3145_v36 = vld [vmem:[#allocation2 + $0x70] sm:$0xf] }
 0x28a   :  { %v3360_v2 = vor.u32 %v3359_v41, %v3355_v19  ;;  %v2149_v28 = vpop.f32.mrf.mxu0 }
 0x28b   :  { %3445 = vrot.lane.b32.xlu1 %v3374_v4, %s9263_s7  ;;  %v3364_v29 = vshll.u32 %v8179_v31, 16  ;;  %v3362_v54 = vshrl.u32 %v8179_v31, 16  ;;  %v2188_v17 = vadd.f32 %v2149_v28, %v1646_v7  ;;  %v3148_v31 = vld [vmem:[#allocation2 + $0x74] sm:$0x1] }
 0x28c   :  { %v8862_v57 = vpop.f32.mrf.mxu0 }
 0x28d   :  { %v3366_v38 = vrot.slane %v3364_v29, 1  ;;  %v2191_v10 = vadd.f32 %v8862_v57, %v1657_v8 }
 0x28e   :  { %v2152_v18 = vpop.f32.mrf.mxu0 }
 0x28f   :  { %3441 = vrot.lane.b32.xlu1 %v3360_v2, %s9263_s7  ;;  %v3367_v58 = vor.u32 %v3366_v38, %v3362_v54  ;;  %v2189_v42 = vadd.f32 %v2152_v18, %v10978_v22  ;;  %v3133_v38 = vld [vmem:[#allocation2 + $0x60] sm:$0xf] }
 0x291   :  { %3443 = vrot.lane.b32.xlu0 %v3367_v58, %s9263_s7  ;;  %v3136_v58 = vld [vmem:[#allocation2 + $0x64] sm:$0x1] }
 0x29c   :  { %v8879_v49 = vpop.f32.mrf.mxu1 }
 0x29d   :  { %v2710_v62 = vadd.f32 %v8879_v49, %v2190_v63 }
 0x29e   :  { %v2669_v53 = vpop.f32.mrf.mxu1 }
 0x29f   :  { %v2726_v51 = vmax.f32 %v2710_v62, 0.0  ;;  %v2708_v59 = vadd.f32 %v2669_v53, %v2188_v17 }
 0x2a0   :  { %v8880_v5 = vpop.f32.mrf.mxu1 }
 0x2a1   :  { %v8667_v33 = vpack.c.bf16 %v2726_v51, %v2726_v51  ;;  %v2724_v45 = vmax.f32 %v2708_v59, 0.0  ;;  %v2711_v44 = vadd.f32 %v8880_v5, %v2191_v10 }
 0x2a2   :  { %v2672_v35 = vpop.f32.mrf.mxu1 }
 0x2a3   :  { %v2997_v20 = vshrl.u32 %v8667_v33, 16  ;;  %v8665_v25 = vpack.c.bf16 %v2724_v45, %v2724_v45  ;;  %v2727_v40 = vmax.f32 %v2711_v44, 0.0  ;;  %v2709_v21 = vadd.f32 %v2672_v35, %v2189_v42  ;;  %v4204_v44 = vld [vmem:[#allocation2 + $0x14] sm:$0x1]  ;;  %v4233_v42 = vld [vmem:[#allocation2 + $0x10] sm:$0xe] }
 0x2a4   :  { %v3000_v15 = vshll.u32 %v8667_v33, 16 }
 0x2a5   :  { %v2999_v26 = vrot.slane %v2997_v20, 7  ;;  %v2981_v34 = vshrl.u32 %v8665_v25, 16  ;;  %v8668_v50 = vpack.c.bf16 %v2727_v40, %v2727_v40  ;;  %v2984_v12 = vshll.u32 %v8665_v25, 16 }
 0x2a6   :  { %v2725_v56 = vmax.f32 %v2709_v21, 0.0 }
 0x2a7   :  { %v3002_v52 = vor.u32 %v3000_v15, %v2999_v26  ;;  %v3003_v30 = vrot.slane %v2999_v26, 4  ;;  %v2983_v43 = vrot.slane %v2981_v34, 7  ;;  %v3005_v13 = vshrl.u32 %v8668_v50, 16 }
 0x2a8   :  { %v8666_v22 = vpack.c.bf16 %v2725_v56, %v2725_v56  ;;  %v3008_v0 = vshll.u32 %v8668_v50, 16  ;;  %v8273_v50 = vcombine.low %v4233_v42, %v4204_v44 }
 0x2a9   :  { %v3140_v48 = vsel %vm10882_vm1, %v3002_v52, %v3139_v39  ;;  %v3143_v14 = vsel %vm10839_vm12, %v3003_v30, %v3142_v23  ;;  %v2986_v24 = vor.u32 %v2984_v12, %v2983_v43  ;;  %v2987_v16 = vrot.slane %v2983_v43, 4 }
 0x2aa   :  { %3141 = vst [vmem:[#allocation2 + $0x68] sm:$0xf] %v3140_v48  ;;  %3144 = vst [vmem:[#allocation2 + $0x6c] sm:$0x1] %v3143_v14  ;;  %v3007_v9 = vrot.slane %v3005_v13, 7  ;;  %v2989_v4 = vshrl.u32 %v8666_v22, 16 }
 0x2ab   :  { %v3128_v41 = vsel %vm10882_vm1, %v2986_v24, %v3127_v11  ;;  %v3131_v27 = vsel %vm10839_vm12, %v2987_v16, %v3130_v46  ;;  %v2992_v54 = vshll.u32 %v8666_v22, 16  ;;  %v4440_v43 = vshll.u32 %v8273_v50, 16 }
 0x2ac   :  { %3129 = vst [vmem:[#allocation2 + $0x58] sm:$0xf] %v3128_v41  ;;  %3132 = vst [vmem:[#allocation2 + $0x5c] sm:$0x1] %v3131_v27  ;;  %v3010_v19 = vor.u32 %v3008_v0, %v3007_v9  ;;  %v3011_v29 = vrot.slane %v3007_v9, 4  ;;  %v2991_v2 = vrot.slane %v2989_v4, 7 }
 0x2ad   :  { %v4442_v46 = vrot.slane %v4440_v43, 1  ;;  %v4438_v48 = vshrl.u32 %v8273_v50, 16 }
 0x2ae   :  { %v3146_v47 = vsel %vm10882_vm1, %v3010_v19, %v3145_v36  ;;  %v3149_v28 = vsel %vm10839_vm12, %v3011_v29, %v3148_v31  ;;  %v2994_v1 = vor.u32 %v2992_v54, %v2991_v2  ;;  %v2995_v7 = vrot.slane %v2991_v2, 4 }
 0x2af   :  { %3147 = vst [vmem:[#allocation2 + $0x70] sm:$0xf] %v3146_v47  ;;  %3150 = vst [vmem:[#allocation2 + $0x74] sm:$0x1] %v3149_v28  ;;  %v4443_v14 = vor.u32 %v4442_v46, %v4438_v48  ;;  %v11144_v48 = vld [vmem:[#allocation2 + $0x1c] sm:$0x1] }
 0x2b0   :  { %v3134_v63 = vsel %vm10882_vm1, %v2994_v1, %v3133_v38  ;;  %v3137_v57 = vsel %vm10839_vm12, %v2995_v7, %v3136_v58 }
 0x2b1   :  { %3135 = vst [vmem:[#allocation2 + $0x60] sm:$0xf] %v3134_v63  ;;  %3138 = vst [vmem:[#allocation2 + $0x64] sm:$0x1] %v3137_v57  ;;  %v3186_v49 = vld [vmem:[#allocation2 + $0x68] sm:$0xf] }
 0x2b2   :  { %v3202_v8 = vld [vmem:[#allocation2 + $0x6c] sm:$0x1] }
 0x2b3   :  { %v8184_v17 = vcombine.low %v3186_v49, %v3202_v8  ;;  %v3184_v62 = vld [vmem:[#allocation2 + $0x58] sm:$0xf]  ;;  %v3200_v53 = vld [vmem:[#allocation2 + $0x5c] sm:$0x1] }
 0x2b4   :  { %v8182_v18 = vcombine.low %v3184_v62, %v3200_v53 }
 0x2b5   :  { %v3399_v10 = vshll.u32 %v8184_v17, 16  ;;  %v3397_v51 = vshrl.u32 %v8184_v17, 16  ;;  %v3163_v17 = vld [vmem:[#allocation2 + $0x88] sm:$0xf] }
 0x2b6   :  { %v3385_v5 = vshll.u32 %v8182_v18, 16  ;;  %v3187_v33 = vld [vmem:[#allocation2 + $0x70] sm:$0xf]  ;;  %v3203_v45 = vld [vmem:[#allocation2 + $0x74] sm:$0x1]  ;;  %v3383_v15 = vshrl.u32 %v8182_v18, 16 }
 0x2b7   :  { %v3401_v59 = vrot.slane %v3399_v10, 1  ;;  %v8185_v25 = vcombine.low %v3187_v33, %v3203_v45  ;;  %v3154_v33 = vld [vmem:[#allocation2 + $0x7c] sm:$0x1] }
 0x2b8   :  { %v3387_v20 = vrot.slane %v3385_v5, 1  ;;  %v3185_v40 = vld [vmem:[#allocation2 + $0x60] sm:$0xf]  ;;  %v3201_v21 = vld [vmem:[#allocation2 + $0x64] sm:$0x1]  ;;  %v8865_v22 = vpop.f32.mrf.mxu0 }
 0x2b9   :  { %v3402_v35 = vor.u32 %v3401_v59, %v3397_v51  ;;  %v8183_v26 = vcombine.low %v3185_v40, %v3201_v21  ;;  %v3406_v34 = vshll.u32 %v8185_v25, 16  ;;  %v3404_v12 = vshrl.u32 %v8185_v25, 16  ;;  %v3151_v5 = vld [vmem:[#allocation2 + $0x78] sm:$0xf] }
 0x2ba   :  { %v3388_v23 = vor.u32 %v3387_v20, %v3383_v15  ;;  %v2165_v24 = vpop.f32.mrf.mxu0  ;;  %v2194_v16 = vadd.f32 %v8865_v22, %v11003_v6  ;;  %v3169_v15 = vld [vmem:[#allocation2 + $0x90] sm:$0xf] }
 0x2bb   :  { %3453 = vrot.lane.b32.xlu1 %v3402_v35, %s9263_s7  ;;  %v3392_v39 = vshll.u32 %v8183_v26, 16  ;;  %v3408_v56 = vrot.slane %v3406_v34, 1  ;;  %v3390_v13 = vshrl.u32 %v8183_v26, 16  ;;  %v2192_v4 = vadd.f32 %v2165_v24, %v11005_v3  ;;  %v3172_v34 = vld [vmem:[#allocation2 + $0x94] sm:$0x1] }
 0x2bc   :  { %v8866_v9 = vpop.f32.mrf.mxu0 }
 0x2bd   :  { %v3409_v52 = vor.u32 %v3408_v56, %v3404_v12  ;;  %v3394_v30 = vrot.slane %v3392_v39, 1  ;;  %v2195_v36 = vadd.f32 %v8866_v9, %v11007_v37  ;;  %v3166_v37 = vld [vmem:[#allocation2 + $0x8c] sm:$0x1]  ;;  %v3157_v56 = vld [vmem:[#allocation2 + $0x80] sm:$0xf] }
 0x2be   :  { %v2168_v31 = vpop.f32.mrf.mxu0 }
 0x2bf   :  { %3449 = vrot.lane.b32.xlu1 %v3388_v23, %s9263_s7  ;;  %3455 = vrot.lane.b32.xlu0 %v3409_v52, %s9263_s7  ;;  %v3395_v11 = vor.u32 %v3394_v30, %v3390_v13  ;;  %v2193_v47 = vadd.f32 %v2168_v31, %v11009_v60  ;;  %v3160_v52 = vld [vmem:[#allocation2 + $0x84] sm:$0x1] }
 0x2c3   :  { %3451 = vrot.lane.b32.xlu0 %v3395_v11, %s9263_s7 }
 0x2c7   :  { %4539 = vrot.lane.b32.xlu0 %v4443_v14, %s9263_s7 }
 0x2cc   :  { %v8883_v0 = vpop.f32.mrf.mxu1 }
 0x2cd   :  { %v2714_v41 = vadd.f32 %v8883_v0, %v2194_v16  ;;  %v4234_v16 = vld [vmem:[#allocation2 + $0x18] sm:$0xe] }
 0x2ce   :  { %v2685_v27 = vpop.f32.mrf.mxu1 }
 0x2cf   :  { %v2730_v19 = vmax.f32 %v2714_v41, 0.0  ;;  %v2712_v29 = vadd.f32 %v2685_v27, %v2192_v4 }
 0x2d0   :  { %v8884_v2 = vpop.f32.mrf.mxu1 }
 0x2d1   :  { %v8671_v54 = vpack.c.bf16 %v2730_v19, %v2730_v19  ;;  %v2728_v38 = vmax.f32 %v2712_v29, 0.0  ;;  %v2715_v58 = vadd.f32 %v8884_v2, %v2195_v36  ;;  %v8274_v36 = vcombine.low %v4234_v16, %v11144_v48  ;;  %v4238_v16 = vld [vmem:[#allocation2 + $0x38] sm:$0xe] }
 0x2d2   :  { %v2688_v28 = vpop.f32.mrf.mxu1 }
 0x2d3   :  { %v3029_v1 = vshrl.u32 %v8671_v54, 16  ;;  %v8669_v6 = vpack.c.bf16 %v2728_v38, %v2728_v38  ;;  %v2731_v7 = vmax.f32 %v2715_v58, 0.0  ;;  %v2713_v63 = vadd.f32 %v2688_v28, %v2193_v47 }
 0x2d4   :  { %v3032_v3 = vshll.u32 %v8671_v54, 16  ;;  %v4447_v58 = vshll.u32 %v8274_v36, 16 }
 0x2d5   :  { %v3031_v57 = vrot.slane %v3029_v1, 7  ;;  %v3013_v49 = vshrl.u32 %v8669_v6, 16  ;;  %v8672_v8 = vpack.c.bf16 %v2731_v7, %v2731_v7  ;;  %v3016_v62 = vshll.u32 %v8669_v6, 16 }
 0x2d6   :  { %v2729_v53 = vmax.f32 %v2713_v63, 0.0  ;;  %v4449_v7 = vrot.slane %v4447_v58, 1  ;;  %v4248_v63 = vld [vmem:[#allocation2 + $0xc] sm:$0x1] }
 0x2d7   :  { %v3034_v10 = vor.u32 %v3032_v3, %v3031_v57  ;;  %v3035_v18 = vrot.slane %v3031_v57, 4  ;;  %v3015_v51 = vrot.slane %v3013_v49, 7  ;;  %v3037_v59 = vshrl.u32 %v8672_v8, 16  ;;  %v4279_v57 = vld [vmem:[#allocation2 + $0x8] sm:$0xe] }
 0x2d8   :  { %v8670_v60 = vpack.c.bf16 %v2729_v53, %v2729_v53  ;;  %v3040_v25 = vshll.u32 %v8672_v8, 16  ;;  %v4250_v8 = vld [vmem:[#allocation2 + $0x14] sm:$0x1]  ;;  %v8303_v53 = vcombine.low %v4279_v57, %v4248_v63 }
 0x2d9   :  { %v3164_v45 = vsel %vm10882_vm1, %v3034_v10, %v3163_v17  ;;  %v3167_v44 = vsel %vm10839_vm12, %v3035_v18, %v3166_v37  ;;  %v3018_v42 = vor.u32 %v3016_v62, %v3015_v51  ;;  %v3019_v35 = vrot.slane %v3015_v51, 4  ;;  %v4280_v17 = vld [vmem:[#allocation2 + $0x10] sm:$0xe]  ;;  %v4247_v18 = vld [vmem:[#allocation2 + $0x8] sm:$0xf] }
 0x2da   :  { %3165 = vst [vmem:[#allocation2 + $0x88] sm:$0xf] %v3164_v45  ;;  %3168 = vst [vmem:[#allocation2 + $0x8c] sm:$0x1] %v3167_v44  ;;  %v3039_v20 = vrot.slane %v3037_v59, 7  ;;  %v3021_v40 = vshrl.u32 %v8670_v60, 16  ;;  %v8304_v51 = vcombine.low %v4280_v17, %v4250_v8  ;;  %v8287_v44 = vcombine.low %v4247_v18, %v4248_v63 }
 0x2db   :  { %v3152_v21 = vsel %vm10882_vm1, %v3018_v42, %v3151_v5  ;;  %v3155_v26 = vsel %vm10839_vm12, %v3019_v35, %v3154_v33  ;;  %v3024_v12 = vshll.u32 %v8670_v60, 16  ;;  %v4445_v37 = vshrl.u32 %v8274_v36, 16  ;;  %v4252_v59 = vld [vmem:[#allocation2 + $0x1c] sm:$0x1]  ;;  %v4281_v5 = vld [vmem:[#allocation2 + $0x18] sm:$0xe] }
 0x2dc   :  { %3153 = vst [vmem:[#allocation2 + $0x78] sm:$0xf] %v3152_v21  ;;  %3156 = vst [vmem:[#allocation2 + $0x7c] sm:$0x1] %v3155_v26  ;;  %v3042_v50 = vor.u32 %v3040_v25, %v3039_v20  ;;  %v3043_v39 = vrot.slane %v3039_v20, 4  ;;  %v3023_v23 = vrot.slane %v3021_v40, 7  ;;  %v8305_v35 = vcombine.low %v4281_v5, %v4252_v59 }
 0x2dd   :  { %v4450_v10 = vor.u32 %v4449_v7, %v4445_v37  ;;  %v4249_v33 = vld [vmem:[#allocation2 + $0x10] sm:$0xf]  ;;  %v4254_v60 = vld [vmem:[#allocation2 + $0x24] sm:$0x1]  ;;  %v4282_v45 = vld [vmem:[#allocation2 + $0x20] sm:$0xe] }
 0x2de   :  { %v3170_v30 = vsel %vm10882_vm1, %v3042_v50, %v3169_v15  ;;  %v3173_v43 = vsel %vm10839_vm12, %v3043_v39, %v3172_v34  ;;  %v3026_v13 = vor.u32 %v3024_v12, %v3023_v23  ;;  %v3027_v11 = vrot.slane %v3023_v23, 4  ;;  %v4251_v42 = vld [vmem:[#allocation2 + $0x18] sm:$0xf]  ;;  %v4208_v26 = vld [vmem:[#allocation2 + $0x24] sm:$0x1] }
 0x2df   :  { %3171 = vst [vmem:[#allocation2 + $0x90] sm:$0xf] %v3170_v30  ;;  %3174 = vst [vmem:[#allocation2 + $0x94] sm:$0x1] %v3173_v43  ;;  %v4730_v20 = vshll.u32 %v8303_v53, 16  ;;  %v8288_v25 = vcombine.low %v4249_v33, %v4250_v8  ;;  %v8306_v40 = vcombine.low %v4282_v45, %v4254_v60  ;;  %v4737_v21 = vshll.u32 %v8304_v51, 16 }
 0x2e0   :  { %v3158_v46 = vsel %vm10882_vm1, %v3026_v13, %v3157_v56  ;;  %v3161_v22 = vsel %vm10839_vm12, %v3027_v11, %v3160_v52  ;;  %v4235_v15 = vld [vmem:[#allocation2 + $0x20] sm:$0xe]  ;;  %v4210_v50 = vld [vmem:[#allocation2 + $0x2c] sm:$0x1]  ;;  %v4236_v39 = vld [vmem:[#allocation2 + $0x28] sm:$0xe]  ;;  %v8289_v23 = vcombine.low %v4251_v42, %v4252_v59 }
 0x2e1   :  { %3159 = vst [vmem:[#allocation2 + $0x80] sm:$0xf] %v3158_v46  ;;  %3162 = vst [vmem:[#allocation2 + $0x84] sm:$0x1] %v3161_v22  ;;  %v3190_v14 = vld [vmem:[#allocation2 + $0x88] sm:$0xf]  ;;  %v8275_v52 = vcombine.low %v4235_v15, %v4208_v26  ;;  %v8276_v11 = vcombine.low %v4236_v39, %v4210_v50 }
 0x2e2   :  { %v3206_v24 = vld [vmem:[#allocation2 + $0x8c] sm:$0x1]  ;;  %v4253_v34 = vld [vmem:[#allocation2 + $0x20] sm:$0xf]  ;;  %v4732_v12 = vrot.slane %v4730_v20, 1  ;;  %v4744_v56 = vshll.u32 %v8305_v35, 16 }
 0x2e3   :  { %v8188_v9 = vcombine.low %v3190_v14, %v3206_v24  ;;  %v3188_v0 = vld [vmem:[#allocation2 + $0x78] sm:$0xf]  ;;  %v3204_v4 = vld [vmem:[#allocation2 + $0x7c] sm:$0x1]  ;;  %v8290_v30 = vcombine.low %v4253_v34, %v4254_v60  ;;  %v4739_v43 = vrot.slane %v4737_v21, 1  ;;  %v4751_v13 = vshll.u32 %v8306_v40, 16 }
 0x2e4   :  { %v8186_v27 = vcombine.low %v3188_v0, %v3204_v4  ;;  %v4212_v46 = vld [vmem:[#allocation2 + $0x34] sm:$0x1]  ;;  %v4237_v22 = vld [vmem:[#allocation2 + $0x30] sm:$0xe]  ;;  %v4728_v14 = vshrl.u32 %v8303_v53, 16  ;;  %v4746_v4 = vrot.slane %v4744_v56, 1 }
 0x2e5   :  { %v3427_v41 = vshll.u32 %v8188_v9, 16  ;;  %v3425_v31 = vshrl.u32 %v8188_v9, 16  ;;  %v4214_v24 = vld [vmem:[#allocation2 + $0x3c] sm:$0x1]  ;;  %v4735_v9 = vshrl.u32 %v8304_v51, 16  ;;  %v4459_v7 = vshrl.u32 %v8276_v11, 16 }
 0x2e6   :  { %v3413_v19 = vshll.u32 %v8186_v27, 16  ;;  %v3411_v28 = vshrl.u32 %v8186_v27, 16  ;;  %v4733_v0 = vor.u32 %v4732_v12, %v4728_v14  ;;  %v8277_v27 = vcombine.low %v4237_v22, %v4212_v46  ;;  %v9070_v17 = vld [vmem:[%s13040_s2 + $0x18] sm:$0xff]   ;;  %v4256_v18 = vld [vmem:[#allocation2 + $0x2c] sm:$0x1] }
 0x2e7   :  { %v3429_v32 = vrot.slane %v3427_v41, 1  ;;  %v4454_v41 = vshll.u32 %v8275_v52, 16  ;;  %v4740_v36 = vor.u32 %v4739_v43, %v4735_v9  ;;  %8905 = vmatprep.subr.bf16.mxu1 %v9070_v17  ;;  %v4283_v59 = vld [vmem:[#allocation2 + $0x28] sm:$0xe]  ;;  %v4257_v5 = vld [vmem:[#allocation2 + $0x30] sm:$0xf] }
 0x2e8   :  { %v3415_v2 = vrot.slane %v3413_v19, 1  ;;  %v3189_v54 = vld [vmem:[#allocation2 + $0x80] sm:$0xf]  ;;  %v3205_v38 = vld [vmem:[#allocation2 + $0x84] sm:$0x1]  ;;  %v8278_v19 = vcombine.low %v4238_v16, %v4214_v24  ;;  %v4468_v58 = vshll.u32 %v8277_v27, 16  ;;  %8906 = vmatpush3.bf16.msra.mxu1 %v9070_v17 }
 0x2e9   :  { %v3430_v29 = vor.u32 %v3429_v32, %v3425_v31  ;;  %v8187_v47 = vcombine.low %v3189_v54, %v3205_v38  ;;  %v4753_v31 = vrot.slane %v4751_v13, 1  ;;  %v4461_v32 = vshll.u32 %v8276_v11, 16  ;;  %v4258_v33 = vld [vmem:[#allocation2 + $0x34] sm:$0x1]  ;;  %v4284_v60 = vld [vmem:[#allocation2 + $0x30] sm:$0xe] }
 0x2ea   :  { %v3416_v6 = vor.u32 %v3415_v2, %v3411_v28  ;;  %v4749_v2 = vshrl.u32 %v8306_v40, 16  ;;  %v4456_v38 = vrot.slane %v4454_v41, 1  ;;  %v4470_v57 = vrot.slane %v4468_v58, 1  ;;  %v3207_v20 = vld [vmem:[#allocation2 + $0x8] sm:$0xf] }
 0x2eb   :  { %3461 = vrot.lane.b32.xlu1 %v3430_v29, %s9263_s7  ;;  %v3420_v1 = vshll.u32 %v8187_v47, 16  ;;  %v3418_v3 = vshrl.u32 %v8187_v47, 16  ;;  %v4742_v29 = vshrl.u32 %v8305_v35, 16  ;;  %v4463_v28 = vrot.slane %v4461_v32, 1  ;;  %v3223_v40 = vld [vmem:[#allocation2 + $0xc] sm:$0x1] }
 0x2ec   :  { %v4754_v47 = vor.u32 %v4753_v31, %v4749_v2  ;;  %v4466_v37 = vshrl.u32 %v8277_v27, 16  ;;  %v8292_v42 = vcombine.low %v4257_v5, %v4258_v33  ;;  %v8308_v35 = vcombine.low %v4284_v60, %v4258_v33  ;;  %v4259_v34 = vld [vmem:[#allocation2 + $0x38] sm:$0xf]  ;;  %v4260_v50 = vld [vmem:[#allocation2 + $0x3c] sm:$0x1] }
 0x2ed   :  { %v3422_v49 = vrot.slane %v3420_v1, 1  ;;  %v4747_v54 = vor.u32 %v4746_v4, %v4742_v29  ;;  %v4475_v1 = vshll.u32 %v8278_v19, 16  ;;  %v8189_v21 = vcombine.low %v3207_v20, %v3207_v20  ;;  %v4261_v12 = vld [vmem:[#allocation2 + $0x40] sm:$0xf]  ;;  %v4262_v56 = vld [vmem:[#allocation2 + $0x44] sm:$0x1] }
 0x2ee   :  { %v4471_v53 = vor.u32 %v4470_v57, %v4466_v37  ;;  %v4765_v39 = vshll.u32 %v8308_v35, 16  ;;  %v4285_v11 = vld [vmem:[#allocation2 + $0x38] sm:$0xe]  ;;  %v8294_v46 = vcombine.low %v4261_v12, %v4262_v56  ;;  %v4286_v14 = vld [vmem:[#allocation2 + $0x40] sm:$0xe]  ;;  %v4763_v16 = vshrl.u32 %v8308_v35, 16 }
 0x2ef   :  { %3457 = vrot.lane.b32.xlu1 %v3416_v6, %s9263_s7  ;;  %v3423_v62 = vor.u32 %v3422_v49, %v3418_v3  ;;  %v4452_v6 = vshrl.u32 %v8275_v52, 16  ;;  %v4473_v3 = vshrl.u32 %v8278_v19, 16  ;;  %v4464_v49 = vor.u32 %v4463_v28, %v4459_v7  ;;  %v3225_v31 = vld [vmem:[#allocation2 + $0x1c] sm:$0x1]  ;;  %v3210_v19 = vld [vmem:[#allocation2 + $0x20] sm:$0xf] }
 0x2f0   :  { %v4477_v8 = vrot.slane %v4475_v1, 1  ;;  %v8205_v52 = vcombine.low %v3207_v20, %v3223_v40  ;;  %v4767_v22 = vrot.slane %v4765_v39, 1  ;;  %v8309_v9 = vcombine.low %v4285_v11, %v4260_v50  ;;  %v3226_v29 = vld [vmem:[#allocation2 + $0x24] sm:$0x1]  ;;  %v4216_v2 = vld [vmem:[#allocation2 + $0x54] sm:$0x1] }
 0x2f1   :  { %3459 = vrot.lane.b32.xlu0 %v3423_v62, %s9263_s7  ;;  %v4457_v63 = vor.u32 %v4456_v38, %v4452_v6  ;;  %v9074_v62 = vld [vmem:[%s13040_s2 + $0x10] sm:$0xff]   ;;  %v8310_v41 = vcombine.low %v4286_v14, %v4262_v56  ;;  %v8192_v1 = vcombine.low %v3210_v19, %v3210_v19  ;;  %v8208_v6 = vcombine.low %v3210_v19, %v3226_v29  ;;  %v4220_v5 = vld [vmem:[#allocation2 + $0x64] sm:$0x1]  ;;  %v4241_v33 = vld [vmem:[#allocation2 + $0x60] sm:$0xe] }
 0x2f2   :  { %v4478_v51 = vor.u32 %v4477_v8, %v4473_v3  ;;  %8907 = vmatprep.subr.bf16.mxu1 %v9074_v62  ;;  %v3594_v4 = vshll.u32 %v8205_v52, 16  ;;  %v4768_v27 = vor.u32 %v4767_v22, %v4763_v16  ;;  %v4772_v28 = vshll.u32 %v8309_v9, 16  ;;  %v4240_v8 = vld [vmem:[#allocation2 + $0x58] sm:$0xe]  ;;  %v9094_v39 = vld [vmem:[%s13040_s2] sm:$0xff]  }
 0x2f3   :  { %4541 = vrot.lane.b32.xlu1 %v4450_v10, %s9263_s7  ;;  %v4255_v10 = vld [vmem:[#allocation2 + $0x28] sm:$0xf]  ;;  %8908 = vmatpush3.bf16.msra.mxu1 %v9074_v62  ;;  %v3592_v57 = vshrl.u32 %v8205_v52, 16  ;;  %v4770_v60 = vshrl.u32 %v8309_v9, 16  ;;  %v4777_v35 = vshrl.u32 %v8310_v41, 16  ;;  %v8281_v40 = vcombine.low %v4241_v33, %v4220_v5 }
 0x2f4   :  { %v8291_v45 = vcombine.low %v4255_v10, %v4256_v18  ;;  %v4774_v62 = vrot.slane %v4772_v28, 1  ;;  %v3613_v52 = vshrl.u32 %v8208_v6, 16  ;;  %v4265_v19 = vld [vmem:[#allocation2 + $0x60] sm:$0xf]  ;;  %v4266_v29 = vld [vmem:[#allocation2 + $0x64] sm:$0x1] }
 0x2f5   :  { %4647 = vrot.lane.b32.xlu0 %v8287_v44, %s9266_s0  ;;  %v8307_v44 = vcombine.low %v4283_v59, %v4256_v18 }
 0x2f6   :  { %v4775_v20 = vor.u32 %v4774_v62, %v4770_v60  ;;  %v4289_v60 = vld [vmem:[#allocation2 + $0x68] sm:$0xe] }
 0x2f7   :  { %4649 = vrot.lane.b32.xlu1 %v8288_v25, %s9266_s0  ;;  %v3208_v25 = vld [vmem:[#allocation2 + $0x10] sm:$0xf]  ;;  %v4758_v26 = vshll.u32 %v8307_v44, 16  ;;  %v4756_v24 = vshrl.u32 %v8307_v44, 16  ;;  %v4222_v44 = vld [vmem:[#allocation2 + $0x6c] sm:$0x1] }
 0x2f8   :  { %v8190_v15 = vcombine.low %v3208_v25, %v3208_v25 }
 0x2f9   :  { %4651 = vrot.lane.b32.xlu0 %v8289_v23, %s9266_s0  ;;  %v3224_v23 = vld [vmem:[#allocation2 + $0x14] sm:$0x1]  ;;  %v4760_v43 = vrot.slane %v4758_v26, 1 }
 0x2fa   :  { %v8206_v13 = vcombine.low %v3208_v25, %v3224_v23 }
 0x2fb   :  { %4653 = vrot.lane.b32.xlu1 %v8290_v30, %s9266_s0  ;;  %v8293_v30 = vcombine.low %v4259_v34, %v4260_v50 }
 0x2fc   :  { %v3601_v32 = vshll.u32 %v8206_v13, 16  ;;  %v3599_v17 = vshrl.u32 %v8206_v13, 16 }
 0x2fd   :  { %4839 = vrot.lane.b32.xlu0 %v4733_v0, %s9267_s15  ;;  %v4761_v0 = vor.u32 %v4760_v43, %v4756_v24  ;;  %v4496_v43 = vshll.u32 %v8281_v40, 16 }
 0x2fe   :  { %v3603_v7 = vrot.slane %v3601_v32, 1  ;;  %v4287_v32 = vld [vmem:[#allocation2 + $0x58] sm:$0xe] }
 0x2ff   :  { %4841 = vrot.lane.b32.xlu1 %v4740_v36, %s9267_s15  ;;  %v3209_v36 = vld [vmem:[#allocation2 + $0x18] sm:$0xf]  ;;  %v4498_v24 = vrot.slane %v4496_v43, 1  ;;  %v3230_v43 = vld [vmem:[#allocation2 + $0x44] sm:$0x1] }
 0x300   :  { %v8191_v38 = vcombine.low %v3209_v36, %v3209_v36  ;;  %v8207_v58 = vcombine.low %v3209_v36, %v3225_v31  ;;  %v3604_v10 = vor.u32 %v3603_v7, %v3599_v17  ;;  %v4263_v36 = vld [vmem:[#allocation2 + $0x58] sm:$0xf]  ;;  %v4264_v31 = vld [vmem:[#allocation2 + $0x5c] sm:$0x1]  ;;  %v3227_v7 = vld [vmem:[#allocation2 + $0x2c] sm:$0x1] }
 0x301   :  { %4843 = vrot.lane.b32.xlu0 %v4747_v54, %s9267_s15  ;;  %v4239_v54 = vld [vmem:[#allocation2 + $0x50] sm:$0xe]  ;;  %v4268_v17 = vld [vmem:[#allocation2 + $0x6c] sm:$0x1] }
 0x302   :  { %v8279_v3 = vcombine.low %v4239_v54, %v4216_v2  ;;  %v3606_v23 = vshrl.u32 %v8207_v58, 16  ;;  %v4288_v2 = vld [vmem:[#allocation2 + $0x60] sm:$0xe]  ;;  %v11195_v54 = vpop.permute.xlu0 %3431 }
 0x303   :  { %4845 = vrot.lane.b32.xlu1 %v4754_v47, %s9267_s15  ;;  %v3596_v47 = vrot.slane %v3594_v4, 1  ;;  %v8312_v28 = vcombine.low %v4288_v2, %v4266_v29 }
 0x304   :  { %v4480_v12 = vshrl.u32 %v8279_v3, 16 }
 0x305   :  { %4543 = vrot.lane.b32.xlu0 %v4457_v63, %s9263_s7  ;;  %v4779_v63 = vshll.u32 %v8310_v41, 16  ;;  %v3597_v37 = vor.u32 %v3596_v47, %v3592_v57  ;;  %v8296_v47 = vcombine.low %v4265_v19, %v4266_v29  ;;  %v4226_v19 = vld [vmem:[#allocation2 + $0x7c] sm:$0x1]  ;;  %v4244_v29 = vld [vmem:[#allocation2 + $0x78] sm:$0xe] }
 0x306   :  { %v11201_v62 = vpop.permute.xlu0 %3447 }
 0x307   :  { %4545 = vrot.lane.b32.xlu1 %v4464_v49, %s9263_s7  ;;  %v4218_v49 = vld [vmem:[#allocation2 + $0x5c] sm:$0x1]  ;;  %v4781_v18 = vrot.slane %v4779_v63, 1 }
 0x308   :  { %v8280_v59 = vcombine.low %v4240_v8, %v4218_v49  ;;  %v4267_v8 = vld [vmem:[#allocation2 + $0x68] sm:$0xf] }
 0x309   :  { %4547 = vrot.lane.b32.xlu0 %v4471_v53, %s9263_s7  ;;  %v3608_v53 = vshll.u32 %v8207_v58, 16  ;;  %v4782_v26 = vor.u32 %v4781_v18, %v4777_v35  ;;  %v8311_v58 = vcombine.low %v4287_v32, %v4264_v31  ;;  %v4270_v18 = vld [vmem:[#allocation2 + $0x74] sm:$0x1] }
 0x30a   :  { %v4489_v34 = vshll.u32 %v8280_v59, 16  ;;  %v4487_v14 = vshrl.u32 %v8280_v59, 16  ;;  %v8297_v59 = vcombine.low %v4267_v8, %v4268_v17  ;;  %v4245_v8 = vld [vmem:[#allocation2 + $0x80] sm:$0xe] }
 0x30b   :  { %4549 = vrot.lane.b32.xlu1 %v4478_v51, %s9263_s7  ;;  %v3615_v51 = vshll.u32 %v8208_v6, 16  ;;  %v3610_v25 = vrot.slane %v3608_v53, 1  ;;  %v3212_v6 = vld [vmem:[#allocation2 + $0x30] sm:$0xf]  ;;  %v4786_v57 = vshll.u32 %v8311_v58, 16  ;;  %v4784_v35 = vshrl.u32 %v8311_v58, 16 }
 0x30c   :  { %v4491_v11 = vrot.slane %v4489_v34, 1  ;;  %v8194_v49 = vcombine.low %v3212_v6, %v3212_v6  ;;  %v3228_v53 = vld [vmem:[#allocation2 + $0x34] sm:$0x1]  ;;  %v3229_v34 = vld [vmem:[#allocation2 + $0x3c] sm:$0x1] }
 0x30d   :  { %4655 = vrot.lane.b32.xlu0 %v8291_v45, %s9266_s0  ;;  %v4482_v45 = vshll.u32 %v8279_v3, 16  ;;  %v11199_v3 = vpop.permute.xlu1 %3437  ;;  %v4788_v5 = vrot.slane %v4786_v57, 1  ;;  %v8210_v33 = vcombine.low %v3212_v6, %v3228_v53  ;;  %v8284_v57 = vcombine.low %v4244_v29, %v4226_v19  ;;  %v4230_v53 = vld [vmem:[#allocation2 + $0x8c] sm:$0x1]  ;;  %v4271_v19 = vld [vmem:[#allocation2 + $0x78] sm:$0xf] }
 0x30e   :  { %v4492_v16 = vor.u32 %v4491_v11, %v4487_v14  ;;  %v4272_v29 = vld [vmem:[#allocation2 + $0x7c] sm:$0x1] }
 0x30f   :  { %4657 = vrot.lane.b32.xlu1 %v8292_v42, %s9266_s0  ;;  %v4242_v42 = vld [vmem:[#allocation2 + $0x68] sm:$0xe]  ;;  %v4484_v56 = vrot.slane %v4482_v45, 1  ;;  %v3627_v2 = vshrl.u32 %v8210_v33, 16 }
 0x310   :  { %v8282_v50 = vcombine.low %v4242_v42, %v4222_v44  ;;  %v4290_v42 = vld [vmem:[#allocation2 + $0x70] sm:$0xe] }
 0x311   :  { %3511 = vrot.lane.b32.xlu0 %v8189_v21, %s9266_s0  ;;  %v9093_v21 = vld [vmem:[%s13040_s2 + $0x8] sm:$0xff]   ;;  %v4485_v22 = vor.u32 %v4484_v56, %v4480_v12  ;;  %v3629_v12 = vshll.u32 %v8210_v33, 16 }
 0x312   :  { %8885 = vmatprep.subr.bf16.mxu0 %v9093_v21  ;;  %v4501_v4 = vshrl.u32 %v8282_v50, 16  ;;  %v2781_v56 = vld [vmem:[#allocation2 + $0x48] sm:$0x1] }
 0x313   :  { %3513 = vrot.lane.b32.xlu1 %v8190_v15, %s9266_s0  ;;  %v3617_v15 = vrot.slane %v3615_v51, 1  ;;  %8886 = vmatpush3.bf16.msra.mxu0 %v9093_v21  ;;  %v8313_v21 = vcombine.low %v4289_v60, %v4268_v17 }
 0x314   :  { %8887 = vmatprep.subr.bf16.mxu0 %v9094_v39 }
 0x315   :  { %4659 = vrot.lane.b32.xlu0 %v8293_v30, %s9266_s0  ;;  %v3611_v30 = vor.u32 %v3610_v25, %v3606_v23  ;;  %v3618_v13 = vor.u32 %v3617_v15, %v3613_v52  ;;  %v4791_v25 = vshrl.u32 %v8312_v28, 16  ;;  %v3213_v15 = vld [vmem:[#allocation2 + $0x38] sm:$0xf]  ;;  %v2843_v52 = vld [vmem:[#allocation2 + $0x4c] sm:$0x1] }
 0x316   :  { %v2844_v11 = vsel %vm10850_vm13, 0, %v2843_v52 }
 0x317   :  { %4661 = vrot.lane.b32.xlu1 %v8294_v46, %s9266_s0  ;;  %v4503_v46 = vshll.u32 %v8282_v50, 16  ;;  %8888 = vmatpush3.bf16.msra.mxu0 %v9094_v39  ;;  %v8314_v39 = vcombine.low %v4290_v42, %v4270_v18  ;;  %2845 = vst [vmem:[#allocation2 + $0x4c] sm:$0x1] %v2844_v11 }
 0x319   :  { %4847 = vrot.lane.b32.xlu0 %v4761_v0, %s9267_s15  ;;  %v4505_v9 = vrot.slane %v4503_v46, 1  ;;  %v4494_v0 = vshrl.u32 %v8281_v40, 16  ;;  %v11209_v40 = vpop.permute.xlu0 %3439  ;;  %v8195_v46 = vcombine.low %v3213_v15, %v3213_v15 }
 0x31b   :  { %4849 = vrot.lane.b32.xlu1 %v4768_v27, %s9267_s15  ;;  %v4499_v41 = vor.u32 %v4498_v24, %v4494_v0  ;;  %v4506_v27 = vor.u32 %v4505_v9, %v4501_v4  ;;  %v4800_v24 = vshll.u32 %v8313_v21, 16  ;;  %v3631_v4 = vrot.slane %v3629_v12, 1 }
 0x31d   :  { %3515 = vrot.lane.b32.xlu0 %v8191_v38, %s9266_s0  ;;  %v8295_v38 = vcombine.low %v4263_v36, %v4264_v31  ;;  %v4243_v36 = vld [vmem:[#allocation2 + $0x70] sm:$0xe]  ;;  %v11219_v31 = vpop.permute.xlu0 %3435  ;;  %v4802_v58 = vrot.slane %v4800_v24, 1  ;;  %v3632_v6 = vor.u32 %v3631_v4, %v3627_v2  ;;  %v6681_v4 = vld [vmem:[#allocation2 + $0x8] sm:$0xe] }
 0x31e   :  { %v4291_v2 = vld [vmem:[#allocation2 + $0x78] sm:$0xe] }
 0x31f   :  { %3517 = vrot.lane.b32.xlu1 %v8192_v1, %s9266_s0  ;;  %v3211_v1 = vld [vmem:[#allocation2 + $0x28] sm:$0xf] }
 0x320   :  { %v8193_v63 = vcombine.low %v3211_v1, %v3211_v1  ;;  %v8209_v51 = vcombine.low %v3211_v1, %v3227_v7 }
 0x321   :  { %3703 = vrot.lane.b32.xlu0 %v3597_v37, %s9267_s15  ;;  %v4793_v37 = vshll.u32 %v8312_v28, 16  ;;  %v11225_v17 = vpop.permute.xlu0 %4535 }
 0x322   :  { %v3622_v50 = vshll.u32 %v8209_v51, 16  ;;  %v3620_v32 = vshrl.u32 %v8209_v51, 16 }
 0x323   :  { %3705 = vrot.lane.b32.xlu1 %v3604_v10, %s9267_s15  ;;  %v4269_v10 = vld [vmem:[#allocation2 + $0x70] sm:$0xf]  ;;  %v4795_v44 = vrot.slane %v4793_v37, 1  ;;  %v4798_v37 = vshrl.u32 %v8313_v21, 16 }
 0x324   :  { %v8298_v45 = vcombine.low %v4269_v10, %v4270_v18  ;;  %v3624_v14 = vrot.slane %v3622_v50, 1  ;;  %v4246_v10 = vld [vmem:[#allocation2 + $0x88] sm:$0xe]  ;;  %v4805_v18 = vshrl.u32 %v8314_v39, 16 }
 0x325   :  { %4851 = vrot.lane.b32.xlu0 %v4775_v20, %s9267_s15  ;;  %v11206_v20 = vpop.permute.xlu1 %3433  ;;  %v4796_v23 = vor.u32 %v4795_v44, %v4791_v25  ;;  %v4803_v51 = vor.u32 %v4802_v58, %v4798_v37  ;;  %v4517_v44 = vshll.u32 %v8284_v57, 16  ;;  %v8286_v42 = vcombine.low %v4246_v10, %v4230_v53  ;;  %v4273_v58 = vld [vmem:[#allocation2 + $0x80] sm:$0xf]  ;;  %v3215_v37 = vld [vmem:[#allocation2 + $0x58] sm:$0xf] }
 0x326   :  { %v11259_v10 = vld [vmem:[#allocation2 + $0x8] sm:$0xf] }
 0x327   :  { %4853 = vrot.lane.b32.xlu1 %v4782_v26, %s9267_s15  ;;  %v4789_v26 = vor.u32 %v4788_v5, %v4784_v35  ;;  %v4531_v12 = vshll.u32 %v8286_v42, 16  ;;  %v4529_v24 = vshrl.u32 %v8286_v42, 16 }
 0x329   :  { %3707 = vrot.lane.b32.xlu0 %v3611_v30, %s9267_s15  ;;  %v3214_v30 = vld [vmem:[#allocation2 + $0x40] sm:$0xf] }
 0x32a   :  { %v8196_v9 = vcombine.low %v3214_v30, %v3214_v30  ;;  %v8212_v0 = vcombine.low %v3214_v30, %v3230_v43  ;;  %v4515_v30 = vshrl.u32 %v8284_v57, 16 }
 0x32b   :  { %3709 = vrot.lane.b32.xlu1 %v3618_v13, %s9267_s15  ;;  %v2782_v13 = vsel %vm10839_vm12, 0, %v2781_v56 }
 0x32c   :  { %2783 = vst [vmem:[#allocation2 + $0x48] sm:$0x1] %v2782_v13  ;;  %v3641_v21 = vshrl.u32 %v8212_v0, 16 }
 0x32d   :  { %4551 = vrot.lane.b32.xlu0 %v4485_v22, %s9263_s7  ;;  %v8211_v22 = vcombine.low %v3213_v15, %v3229_v34 }
 0x32f   :  { %4553 = vrot.lane.b32.xlu1 %v4492_v16, %s9263_s7  ;;  %v11217_v16 = vpop.permute.xlu1 %4537  ;;  %v3634_v35 = vshrl.u32 %v8211_v22, 16 }
 0x331   :  { %4555 = vrot.lane.b32.xlu0 %v4499_v41, %s9263_s7  ;;  %v4807_v41 = vshll.u32 %v8314_v39, 16 }
 0x333   :  { %4557 = vrot.lane.b32.xlu1 %v4506_v27, %s9263_s7  ;;  %v4224_v27 = vld [vmem:[#allocation2 + $0x74] sm:$0x1]  ;;  %v11223_v1 = vpop.permute.xlu1 %3445  ;;  %v4809_v7 = vrot.slane %v4807_v41, 1 }
 0x334   :  { %v8283_v28 = vcombine.low %v4243_v36, %v4224_v27  ;;  %v6652_v41 = vld [vmem:[#allocation2 + $0x14] sm:$0x1]  ;;  %v6682_v27 = vld [vmem:[#allocation2 + $0x10] sm:$0xe] }
 0x335   :  { %4663 = vrot.lane.b32.xlu0 %v8295_v38, %s9266_s0  ;;  %v3625_v38 = vor.u32 %v3624_v14, %v3620_v32  ;;  %v4810_v60 = vor.u32 %v4809_v7, %v4805_v18  ;;  %v11249_v7 = vcombine.low %v4291_v2, %v4272_v29  ;;  %v11257_v53 = vcombine.low %v6682_v27, %v6652_v41  ;;  %v11261_v18 = vld [vmem:[#allocation2 + $0x10] sm:$0xf]  ;;  %v11286_v41 = vld [vmem:[#allocation2 + $0x14] sm:$0x1] }
 0x336   :  { %v4510_v5 = vshll.u32 %v8283_v28, 16  ;;  %v4508_v56 = vshrl.u32 %v8283_v28, 16  ;;  %v4292_v28 = vld [vmem:[#allocation2 + $0x80] sm:$0xe]  ;;  %v11296_v2 = vld [vmem:[#allocation2 + $0x70] sm:$0xf] }
 0x337   :  { %4665 = vrot.lane.b32.xlu1 %v8296_v47, %s9266_s0  ;;  %v3636_v47 = vshll.u32 %v8211_v22, 16  ;;  %v11230_v25 = vpop.permute.xlu1 %3441  ;;  %v4533_v22 = vrot.slane %v4531_v12, 1  ;;  %v4275_v12 = vld [vmem:[#allocation2 + $0x88] sm:$0xf]  ;;  %v6729_v27 = vld [vmem:[#allocation2 + $0x10] sm:$0xe] }
 0x338   :  { %v4512_v34 = vrot.slane %v4510_v5, 1  ;;  %v6683_v5 = vld [vmem:[#allocation2 + $0x18] sm:$0xe] }
 0x339   :  { %3519 = vrot.lane.b32.xlu0 %v8193_v63, %s9266_s0  ;;  %v3643_v63 = vshll.u32 %v8212_v0, 16  ;;  %v4534_v32 = vor.u32 %v4533_v22, %v4529_v24  ;;  %v4277_v22 = vld [vmem:[#allocation2 + $0x90] sm:$0xf] }
 0x33a   :  { %v4513_v13 = vor.u32 %v4512_v34, %v4508_v56  ;;  %v3233_v34 = vld [vmem:[#allocation2 + $0x6c] sm:$0x1] }
 0x33b   :  { %3521 = vrot.lane.b32.xlu1 %v8194_v49, %s9266_s0  ;;  %v4228_v49 = vld [vmem:[#allocation2 + $0x84] sm:$0x1]  ;;  %v11236_v52 = vpop.permute.xlu1 %3453  ;;  %v4276_v56 = vld [vmem:[#allocation2 + $0x8c] sm:$0x1] }
 0x33c   :  { %v8285_v33 = vcombine.low %v4245_v8, %v4228_v49 }
 0x33d   :  { %4667 = vrot.lane.b32.xlu0 %v8297_v59, %s9266_s0  ;;  %v3638_v59 = vrot.slane %v3636_v47, 1  ;;  %v4274_v47 = vld [vmem:[#allocation2 + $0x84] sm:$0x1] }
 0x33e   :  { %v4524_v50 = vshll.u32 %v8285_v33, 16  ;;  %v4522_v14 = vshrl.u32 %v8285_v33, 16  ;;  %v8300_v49 = vcombine.low %v4273_v58, %v4274_v47  ;;  %v11255_v8 = vcombine.low %v4292_v28, %v4274_v47  ;;  %v3231_v33 = vld [vmem:[#allocation2 + $0x5c] sm:$0x1]  ;;  %v3234_v58 = vld [vmem:[#allocation2 + $0x74] sm:$0x1] }
 0x33f   :  { %4669 = vrot.lane.b32.xlu1 %v8298_v45, %s9266_s0  ;;  %v3645_v45 = vrot.slane %v3643_v63, 1  ;;  %v3639_v15 = vor.u32 %v3638_v59, %v3634_v35  ;;  %v11243_v36 = vpop.permute.xlu1 %3449  ;;  %v6654_v59 = vld [vmem:[#allocation2 + $0x1c] sm:$0x1]  ;;  %v8197_v35 = vcombine.low %v3215_v37, %v3215_v37  ;;  %v8301_v28 = vcombine.low %v4275_v12, %v4276_v56 }
 0x340   :  { %v4526_v11 = vrot.slane %v4524_v50, 1 }
 0x341   :  { %4855 = vrot.lane.b32.xlu0 %v4789_v26, %s9267_s15  ;;  %v11233_v26 = vpop.permute.xlu0 %3443  ;;  %v3646_v39 = vor.u32 %v3645_v45, %v3641_v21  ;;  %v6656_v45 = vld [vmem:[#allocation2 + $0x24] sm:$0x1]  ;;  %v4814_v21 = vshll.u32 %v11249_v7, 16 }
 0x342   :  { %v4527_v0 = vor.u32 %v4526_v11, %v4522_v14  ;;  %v11275_v11 = vcombine.low %v6683_v5, %v6654_v59  ;;  %v4278_v14 = vld [vmem:[#allocation2 + $0x94] sm:$0x1] }
 0x343   :  { %4857 = vrot.lane.b32.xlu1 %v4796_v23, %s9267_s15  ;;  %v4519_v23 = vrot.slane %v4517_v44, 1  ;;  %v6684_v44 = vld [vmem:[#allocation2 + $0x20] sm:$0xe]  ;;  %v8302_v59 = vcombine.low %v4277_v22, %v4278_v14 }
 0x345   :  { %3523 = vrot.lane.b32.xlu0 %v8195_v46, %s9266_s0  ;;  %v11239_v43 = vpop.permute.xlu0 %3455  ;;  %v4520_v46 = vor.u32 %v4519_v23, %v4515_v30  ;;  %v4821_v30 = vshll.u32 %v11255_v8, 16 }
 0x346   :  { %13123 = vst [vmem:[#allocation28_spill] sm:$0xff] %v11239_v43 }
 0x347   :  { %3525 = vrot.lane.b32.xlu1 %v8196_v9, %s9266_s0  ;;  %v6650_v9 = vld [vmem:[#allocation2 + $0xc] sm:$0x1]  ;;  %v4823_v5 = vrot.slane %v4821_v30, 1 }
 0x348   :  { %v11251_v63 = vcombine.low %v6681_v4, %v6650_v9  ;;  %v6881_v9 = vshrl.u32 %v11257_v53, 16  ;;  %v9201_v4 = vld [vmem:[#allocation2 + $0x4] sm:$0x1] }
 0x349   :  { %3711 = vrot.lane.b32.xlu0 %v3625_v38, %s9267_s15  ;;  %v11245_v38 = vpop.permute.xlu0 %3451 }
 0x34a   :  { %v6876_v50 = vshll.u32 %v11251_v63, 16  ;;  %v6874_v24 = vshrl.u32 %v11251_v63, 16  ;;  %v4816_v63 = vrot.slane %v4814_v21, 1  ;;  %v11312_v21 = vcombine.low %v11296_v2, %v3234_v58 }
 0x34b   :  { %3713 = vrot.lane.b32.xlu1 %v3632_v6, %s9267_s15  ;;  %v8299_v6 = vcombine.low %v4271_v19, %v4272_v29  ;;  %v4293_v19 = vld [vmem:[#allocation2 + $0x88] sm:$0xe] }
 0x34d   :  { %4859 = vrot.lane.b32.xlu0 %v4803_v51, %s9267_s15  ;;  %v3216_v51 = vld [vmem:[#allocation2 + $0x60] sm:$0xf]  ;;  %v11265_v42 = vpop.permute.xlu0 %4539 }
 0x34e   :  { %v8198_v23 = vcombine.low %v3216_v51, %v3216_v51 }
 0x34f   :  { %4861 = vrot.lane.b32.xlu1 %v4810_v60, %s9267_s15  ;;  %v3232_v60 = vld [vmem:[#allocation2 + $0x64] sm:$0x1] }
 0x351   :  { %3715 = vrot.lane.b32.xlu0 %v3639_v15, %s9267_s15  ;;  %v11268_v15 = vld [vmem:[#allocation2 + $0x68] sm:$0xf] }
 0x352   :  { %v11294_v29 = vcombine.low %v11268_v15, %v3233_v34  ;;  %v4812_v34 = vshrl.u32 %v11249_v7, 16 }
 0x353   :  { %3717 = vrot.lane.b32.xlu1 %v3646_v39, %s9267_s15 }
 0x354   :  { %v3664_v12 = vshll.u32 %v11294_v29, 16 }
 0x355   :  { %4559 = vrot.lane.b32.xlu0 %v4513_v13, %s9263_s7  ;;  %v6883_v13 = vshll.u32 %v11257_v53, 16  ;;  %v11302_v53 = vld [vmem:[#allocation2 + $0x18] sm:$0xf] }
 0x357   :  { %4561 = vrot.lane.b32.xlu1 %v4520_v46, %s9263_s7  ;;  %v11277_v46 = vcombine.low %v3215_v37, %v3231_v33  ;;  %v11300_v37 = vcombine.low %v6684_v44, %v6656_v45  ;;  %v6885_v33 = vrot.slane %v6883_v13, 1  ;;  %v4817_v13 = vor.u32 %v4816_v63, %v4812_v34 }
 0x358   :  { %v3671_v34 = vshll.u32 %v11312_v21, 16 }
 0x359   :  { %4563 = vrot.lane.b32.xlu0 %v4527_v0, %s9263_s7  ;;  %v11282_v0 = vld [vmem:[#allocation2 + $0xc] sm:$0x1]  ;;  %v3650_v45 = vshll.u32 %v11277_v46, 16 }
 0x35b   :  { %4565 = vrot.lane.b32.xlu1 %v4534_v32, %s9263_s7  ;;  %v11290_v32 = vcombine.low %v3216_v51, %v3232_v60  ;;  %v6890_v60 = vshll.u32 %v11275_v11, 16  ;;  %v3652_v30 = vrot.slane %v3650_v45, 1  ;;  %v3648_v45 = vshrl.u32 %v11277_v46, 16 }
 0x35d   :  { %v11253_v57 = vpop.permute.xlu1 %3461  ;;  %4671 = vrot.lane.b32.xlu0 %v8299_v6, %s9266_s0  ;;  %v4294_v6 = vld [vmem:[#allocation2 + $0x90] sm:$0xe] }
 0x35e   :  { %13124 = vst [vmem:[#allocation20_spill] sm:$0xff] %v11253_v57  ;;  %v11315_v44 = vcombine.low %v4294_v6, %v4278_v14  ;;  %v11327_v6 = vor.u32 %v6885_v33, %v6881_v9 }
 0x35f   :  { %4673 = vrot.lane.b32.xlu1 %v8300_v49, %s9266_s0  ;;  %v6878_v49 = vrot.slane %v6876_v50, 1  ;;  %v4819_v50 = vshrl.u32 %v11255_v8, 16  ;;  %v11329_v8 = vrot.slane %v6890_v60, 1  ;;  %v8199_v60 = vcombine.low %v11268_v15, %v11268_v15 }
 0x360   :  { %v4835_v9 = vshll.u32 %v11315_v44, 16  ;;  %v3653_v15 = vor.u32 %v3652_v30, %v3648_v45 }
 0x361   :  { %v11271_v39 = vpop.permute.xlu1 %3457  ;;  %3527 = vrot.lane.b32.xlu0 %v8197_v35, %s9266_s0  ;;  %v11307_v35 = vcombine.low %v4293_v19, %v4276_v56  ;;  %v4199_v56 = vld [vmem:[#allocation2] sm:$0xf]  ;;  %v6897_v19 = vshll.u32 %v11300_v37, 16  ;;  %v4824_v58 = vor.u32 %v4823_v5, %v4819_v50 }
 0x362   :  { %13125 = vst [vmem:[#allocation3_spill] sm:$0xff] %v11271_v39  ;;  %v8255_v5 = vcombine.low %v4199_v56, %v9201_v4  ;;  %v8200_v4 = vcombine.low %v11296_v2, %v11296_v2  ;;  %v3662_v56 = vshrl.u32 %v11294_v29, 16  ;;  %v4837_v57 = vrot.slane %v4835_v9, 1 }
 0x363   :  { %3529 = vrot.lane.b32.xlu1 %v8198_v23, %s9266_s0  ;;  %v11298_v47 = vpop.permute.xlu0 %3459  ;;  %v3657_v23 = vshll.u32 %v11290_v32, 16  ;;  %v4828_v63 = vshll.u32 %v11307_v35, 16  ;;  %v11342_v50 = vrot.slane %v6897_v19, 1  ;;  %v3673_v19 = vrot.slane %v3671_v34, 1 }
 0x364   :  { %13126 = vst [vmem:[#allocation8_spill] sm:$0xff] %v11298_v47 }
 0x365   :  { %v11304_v51 = vpop.permute.xlu1 %4541  ;;  %4675 = vrot.lane.b32.xlu0 %v8301_v28, %s9266_s0  ;;  %v11325_v28 = vor.u32 %v6878_v49, %v6874_v24  ;;  %v3659_v24 = vrot.slane %v3657_v23, 1  ;;  %v3666_v49 = vrot.slane %v3664_v12, 1  ;;  %v3655_v23 = vshrl.u32 %v11290_v32, 16 }
 0x366   :  { %v3669_v12 = vshrl.u32 %v11312_v21, 16  ;;  %v4830_v46 = vrot.slane %v4828_v63, 1  ;;  %v13127_v32 = vcombine.low %v11259_v10, %v11282_v0  ;;  %v4826_v63 = vshrl.u32 %v11307_v35, 16 }
 0x367   :  { %4677 = vrot.lane.b32.xlu1 %v8302_v59, %s9266_s0  ;;  %v4648_v7 = vpop.permute.xlu0 %4647  ;;  %v11331_v59 = vld [vmem:[#allocation2 + $0x14] sm:$0x1]  ;;  %v3667_v2 = vor.u32 %v3666_v49, %v3662_v56  ;;  %v13128_v0 = vcombine.low %v11261_v18, %v11286_v41 }
 0x368   :  { %v4876_v29 = vsel %vm936_vm15, %v13127_v32, %v11217_v16  ;;  %v4831_v16 = vor.u32 %v4830_v46, %v4826_v63 }
 0x369   :  { %v4650_v14 = vpop.permute.xlu1 %4649  ;;  %4863 = vrot.lane.b32.xlu0 %v4817_v13, %s9267_s15  ;;  %v11345_v13 = vcombine.low %v6729_v27, %v11331_v59  ;;  %v4873_v27 = vsel %vm936_vm15, %v8255_v5, %v11225_v17  ;;  %v4879_v35 = vsel %vm936_vm15, %v13128_v0, %v11265_v42  ;;  %v6730_v0 = vld [vmem:[#allocation2 + $0x18] sm:$0xe] }
 0x36a   :  { %v4920_v21 = vsel %vm1387_vm3, %v4873_v27, %v4648_v7  ;;  %v4922_v34 = vsel %vm1387_vm3, %v4876_v29, %v4650_v14 }
 0x36b   :  { %4865 = vrot.lane.b32.xlu1 %v4824_v58, %s9267_s15  ;;  %v4652_v33 = vpop.permute.xlu0 %4651  ;;  %v3660_v58 = vor.u32 %v3659_v24, %v3655_v23  ;;  %v4833_v24 = vshrl.u32 %v11315_v44, 16  ;;  %v13129_v44 = vcombine.low %v11302_v53, %v11144_v48 }
 0x36d   :  { %v4654_v22 = vpop.permute.xlu1 %4653  ;;  %3531 = vrot.lane.b32.xlu0 %v8199_v60, %s9266_s0  ;;  %v4838_v60 = vor.u32 %v4837_v57, %v4833_v24  ;;  %v4882_v45 = vsel %vm936_vm15, %v13129_v44, %v11304_v51 }
 0x36e   :  { %v4926_v18 = vsel %vm1387_vm3, %v4882_v45, %v4654_v22 }
 0x36f   :  { %3533 = vrot.lane.b32.xlu1 %v8200_v4, %s9266_s0  ;;  %v4840_v30 = vpop.permute.xlu0 %4839  ;;  %v4924_v4 = vsel %vm1387_vm3, %v4879_v35, %v4652_v33  ;;  %v11397_v35 = vld [vmem:[#allocation2 + $0x24] sm:$0x1] }
 0x370   :  { %v4952_v17 = vsel %vm3815_vm0, %v4920_v21, %v4840_v30 }
 0x371   :  { %v4842_v5 = vpop.permute.xlu1 %4841  ;;  %v8319_v9 = vcombine.low %v4952_v17, %v4952_v17  ;;  %v8320_v49 = vcombine.high %v4952_v17, %v4952_v17  ;;  %3719 = vrot.lane.b32.xlu0 %v3653_v15, %s9267_s15 }
 0x372   :  { %v4954_v10 = vsel %vm3815_vm0, %v4922_v34, %v4842_v5 }
 0x373   :  { %v8321_v7 = vcombine.low %v4954_v10, %v4954_v10  ;;  %v8322_v14 = vcombine.high %v4954_v10, %v4954_v10  ;;  %3721 = vrot.lane.b32.xlu1 %v3660_v58, %s9267_s15  ;;  %v5067_v23 = vshrl.u32 %v8319_v9, 16  ;;  %v5070_v56 = vshll.u32 %v8319_v9, 16  ;;  %v4844_v15 = vpop.permute.xlu0 %4843 }
 0x374   :  { %v4956_v46 = vsel %vm3815_vm0, %v4924_v4, %v4844_v15  ;;  %v5076_v32 = vshll.u32 %v8320_v49, 16  ;;  %v3674_v10 = vor.u32 %v3673_v19, %v3669_v12  ;;  %v11400_v4 = vld [vmem:[#allocation2 + $0x2c] sm:$0x1]  ;;  %v6732_v12 = vld [vmem:[#allocation2 + $0x28] sm:$0xe] }
 0x375   :  { %v5081_v41 = vshrl.u32 %v8321_v7, 16  ;;  %v5084_v42 = vshll.u32 %v8321_v7, 16  ;;  %v4846_v27 = vpop.permute.xlu1 %4845  ;;  %v5069_v58 = vrot.slane %v5067_v23, 4  ;;  %v5072_v57 = vrot.slane %v5070_v56, 5  ;;  %4867 = vrot.lane.b32.xlu0 %v4831_v16, %s9267_s15  ;;  %v11395_v16 = vld [vmem:[#allocation2 + $0x1c] sm:$0x1] }
 0x376   :  { %v8323_v29 = vcombine.low %v4956_v46, %v4956_v46  ;;  %v5090_v51 = vshll.u32 %v8322_v14, 16  ;;  %v8324_v33 = vcombine.high %v4956_v46, %v4956_v46  ;;  %v4958_v63 = vsel %vm3815_vm0, %v4926_v18, %v4846_v27  ;;  %v6731_v7 = vld [vmem:[#allocation2 + $0x20] sm:$0xe] }
 0x377   :  { %v5083_v48 = vrot.slane %v5081_v41, 4  ;;  %v5086_v53 = vrot.slane %v5084_v42, 5  ;;  %4869 = vrot.lane.b32.xlu1 %v4838_v60, %s9267_s15  ;;  %v5073_v21 = vor.u32 %v5072_v57, %v5069_v58  ;;  %v11385_v34 = vpop.permute.xlu0 %4543  ;;  %v8325_v24 = vcombine.low %v4958_v63, %v4958_v63 }
 0x378   :  { %v5095_v30 = vshrl.u32 %v8323_v29, 16  ;;  %v5098_v22 = vshll.u32 %v8323_v29, 16  ;;  %v8326_v9 = vcombine.high %v4958_v63, %v4958_v63  ;;  %v5078_v60 = vrot.slane %v5076_v32, 5  ;;  %v6658_v63 = vld [vmem:[#allocation2 + $0x2c] sm:$0x1] }
 0x379   :  { %v5087_v5 = vor.u32 %v5086_v53, %v5083_v48  ;;  %v11393_v49 = vpop.permute.xlu1 %4545  ;;  %v5074_v14 = vrot.slane %v5073_v21, 4  ;;  %3723 = vrot.lane.b32.xlu0 %v3667_v2, %s9267_s15  ;;  %v5092_v56 = vrot.slane %v5090_v51, 5  ;;  %v5109_v15 = vshrl.u32 %v8325_v24, 16 }
 0x37a   :  { %v5097_v44 = vrot.slane %v5095_v30, 4  ;;  %v5100_v45 = vrot.slane %v5098_v22, 5  ;;  %v5112_v18 = vshll.u32 %v8325_v24, 16  ;;  %v5104_v42 = vshll.u32 %v8324_v33, 16  ;;  %v11422_v30 = vld [vmem:[#allocation2 + $0x20] sm:$0xf] }
 0x37b   :  { %v5088_v23 = vrot.slane %v5087_v5, 4  ;;  %3725 = vrot.lane.b32.xlu1 %v3674_v10, %s9267_s15  ;;  %v5079_v19 = vsel %vm11389_vm5, %v5074_v14, %v5078_v60  ;;  %v11405_v46 = vpop.permute.xlu0 %4547  ;;  %v5111_v27 = vrot.slane %v5109_v15, 4  ;;  %v5118_v57 = vshll.u32 %v8326_v9, 16  ;;  %v6697_v22 = vld [vmem:[#allocation2 + $0x10] sm:$0xf] }
 0x37c   :  { %v5101_v41 = vor.u32 %v5100_v45, %v5097_v44  ;;  %v5114_v58 = vrot.slane %v5112_v18, 5  ;;  %v11414_v48 = vcombine.low %v6730_v0, %v11395_v16  ;;  %v11417_v53 = vcombine.low %v6731_v7, %v11397_v35  ;;  %v6685_v5 = vld [vmem:[#allocation2 + $0x28] sm:$0xe]  ;;  %v9202_v24 = vld [vmem:[#allocation2] sm:$0xf] }
 0x37d   :  { %v5093_v2 = vsel %vm11389_vm5, %v5088_v23, %v5092_v56  ;;  %v11409_v32 = vpop.permute.xlu1 %4549  ;;  %6985 = vrot.lane.b32.xlu0 %v11325_v28, %s9263_s7  ;;  %v11420_v51 = vcombine.low %v6732_v12, %v11400_v4  ;;  %v7180_v28 = vshll.u32 %v11345_v13, 16  ;;  %v11429_v9 = vsel %vm936_vm15, %v9202_v24, %v11195_v54  ;;  %v6699_v14 = vld [vmem:[#allocation2 + $0x18] sm:$0xf]  ;;  %v6660_v60 = vld [vmem:[#allocation2 + $0x34] sm:$0x1] }
 0x37e   :  { %v8355_v29 = vcombine.low %v5079_v19, %v5093_v2  ;;  %v5102_v33 = vrot.slane %v5101_v41, 4  ;;  %v5115_v21 = vor.u32 %v5114_v58, %v5111_v27  ;;  %v13132_v0 = vshrl.u32 %v11275_v11, 16  ;;  %v6686_v44 = vld [vmem:[#allocation2 + $0x30] sm:$0xe]  ;;  %v5625_v45 = vld [vmem:[#allocation2 + $0x8] sm:$0xf] }
 0x37f   :  { %6987 = vrot.lane.b32.xlu1 %v11327_v6, %s9263_s7  ;;  %v11431_v10 = vpop.permute.xlu0 %4655  ;;  %v11437_v6 = vld [vmem:[#allocation2 + $0x20] sm:$0xf]  ;;  %v5641_v23 = vld [vmem:[#allocation2 + $0xc] sm:$0x1]  ;;  %v5106_v56 = vrot.slane %v5104_v42, 5  ;;  %v5120_v18 = vrot.slane %v5118_v57, 5  ;;  %v11448_v27 = vcombine.low %v6685_v5, %v6658_v63  ;;  %v11455_v57 = vcombine.low %v6686_v44, %v6660_v60 }
 0x380   :  { %8909 = vmatprep.mubr.msk.bf16.mxu1 %vm3904_vm6, %v8355_v29  ;;  %v6893_v7 = vor.u32 %v11329_v8, %v13132_v0  ;;  %v5116_v15 = vrot.slane %v5115_v21, 4  ;;  %v13133_v12 = vshrl.u32 %v11300_v37, 16  ;;  %v5626_v41 = vld [vmem:[#allocation2 + $0x10] sm:$0xf]  ;;  %v7187_v11 = vshll.u32 %v11414_v48, 16 }
 0x381   :  { %v11439_v54 = vpop.permute.xlu1 %4657  ;;  %v7194_v8 = vshll.u32 %v11417_v53, 16  ;;  %v7201_v2 = vshll.u32 %v11420_v51, 16  ;;  %v5642_v42 = vld [vmem:[#allocation2 + $0x14] sm:$0x1]  ;;  %v5107_v58 = vsel %vm11389_vm5, %v5102_v33, %v5106_v56  ;;  %v9203_v21 = vld [vmem:[#allocation2 + $0x24] sm:$0x1]  ;;  %v8539_v5 = vcombine.low %v6697_v22, %v11331_v59 }
 0x382   :  { %v6900_v19 = vor.u32 %v11342_v50, %v13133_v12  ;;  %6989 = vrot.lane.b32.xlu0 %v6893_v7, %s9263_s7  ;;  %v5121_v37 = vsel %vm11389_vm5, %v5116_v15, %v5120_v18  ;;  %v7182_v50 = vrot.slane %v7180_v28, 1  ;;  %v8259_v24 = vcombine.low %v11422_v30, %v9203_v21  ;;  %v4209_v0 = vld [vmem:[#allocation2 + $0x28] sm:$0xf]  ;;  %v11458_v7 = vld [vmem:[#allocation2 + $0x30] sm:$0xf] }
 0x383   :  { %v8356_v29 = vcombine.low %v5107_v58, %v5121_v37  ;;  %v11460_v63 = vpop.permute.xlu0 %3511  ;;  %v7178_v33 = vshrl.u32 %v11345_v13, 16  ;;  %v11464_v56 = vld [vmem:[#allocation2 + $0x38] sm:$0xf]  ;;  %v8540_v28 = vcombine.low %v6699_v14, %v11395_v16  ;;  %v8541_v44 = vcombine.low %v11437_v6, %v11397_v35  ;;  %v11471_v30 = vld [vmem:[#allocation2 + $0x28] sm:$0xf] }
 0x384   :  { %6991 = vrot.lane.b32.xlu1 %v6900_v19, %s9263_s7  ;;  %v3219_v60 = vld [vmem:[#allocation2 + $0x78] sm:$0xf]  ;;  %v11473_v18 = vcombine.low %v5625_v45, %v5641_v23  ;;  %v11475_v12 = vcombine.low %v5626_v41, %v5642_v42  ;;  %v3220_v59 = vld [vmem:[#allocation2 + $0x80] sm:$0xf]  ;;  %v7189_v13 = vrot.slane %v7187_v11, 1  ;;  %v7196_v22 = vrot.slane %v7194_v8, 1 }
 0x385   :  { %v11466_v15 = vpop.permute.xlu1 %3513  ;;  %8910 = vmatmul.mubr.msk.bf16.vlgmr.msra.gmra.mxu1 %vm3904_vm6, %v8356_v29  ;;  %v7203_v19 = vrot.slane %v7201_v2, 1  ;;  %v6904_v16 = vshll.u32 %v11448_v27, 16  ;;  %v9204_v14 = vld [vmem:[#allocation2 + $0x2c] sm:$0x1]  ;;  %v11480_v37 = vld [vmem:[#allocation2 + $0x34] sm:$0x1]  ;;  %v11485_v6 = vor.u32 %v7182_v50, %v7178_v33  ;;  %v8201_v41 = vcombine.low %v3219_v60, %v3219_v60 }
 0x386   :  { %7097 = vrot.lane.b32.xlu0 %v8539_v5, %s9266_s0  ;;  %v8260_v58 = vcombine.low %v4209_v0, %v9204_v14  ;;  %v6911_v45 = vshll.u32 %v11455_v57, 16  ;;  %v7185_v11 = vshrl.u32 %v11414_v48, 16  ;;  %v7192_v8 = vshrl.u32 %v11417_v53, 16  ;;  %v11493_v42 = vld [vmem:[#allocation2 + $0x3c] sm:$0x1] }
 0x387   :  { %v11488_v23 = vpop.permute.xlu0 %4659  ;;  %v7199_v2 = vshrl.u32 %v11420_v51, 16  ;;  %v3235_v50 = vld [vmem:[#allocation2 + $0x7c] sm:$0x1]  ;;  %v3236_v0 = vld [vmem:[#allocation2 + $0x84] sm:$0x1]  ;;  %v8202_v5 = vcombine.low %v3220_v59, %v3220_v59  ;;  %v8542_v33 = vcombine.low %v11471_v30, %v11400_v4  ;;  %v11507_v14 = vrot.slane %v6904_v16, 1 }
 0x388   :  { %7099 = vrot.lane.b32.xlu1 %v8540_v28, %s9266_s0  ;;  %v7190_v48 = vor.u32 %v7189_v13, %v7185_v11  ;;  %v11503_v53 = vor.u32 %v7196_v22, %v7192_v8  ;;  %v9207_v29 = vld [vmem:[#allocation2 + $0x18] sm:$0xf]  ;;  %v4885_v47 = vsel %vm936_vm15, %v8259_v24, %v11385_v34  ;;  %v11516_v4 = vld [vmem:[#allocation2 + $0x88] sm:$0xf]  ;;  %v3237_v30 = vld [vmem:[#allocation2 + $0x8c] sm:$0x1] }
 0x389   :  { %v11497_v21 = vpop.permute.xlu1 %4661  ;;  %v11505_v51 = vor.u32 %v7203_v19, %v7199_v2  ;;  %v11511_v35 = vsel %vm936_vm15, %v9207_v29, %v11199_v3  ;;  %v11518_v13 = vrot.slane %v6911_v45, 1  ;;  %v4888_v19 = vsel %vm936_vm15, %v8260_v58, %v11393_v49  ;;  %v3222_v24 = vld [vmem:[#allocation2 + $0x90] sm:$0xf]  ;;  %v9208_v11 = vld [vmem:[#allocation2 + $0x8] sm:$0xf] }
 0x38a   :  { %3535 = vrot.lane.b32.xlu0 %v8201_v41, %s9266_s0  ;;  %v4928_v16 = vsel %vm1387_vm3, %v4885_v47, %v11431_v10  ;;  %v11525_v3 = vcombine.low %v3219_v60, %v3235_v50  ;;  %v11527_v41 = vcombine.low %v3220_v59, %v3236_v0  ;;  %v3740_v8 = vsel %vm936_vm15, %v9208_v11, %v11206_v20  ;;  %v9209_v45 = vld [vmem:[#allocation2 + $0x10] sm:$0xf]  ;;  %v3238_v29 = vld [vmem:[#allocation2 + $0x94] sm:$0x1] }
 0x38b   :  { %v4848_v34 = vpop.permute.xlu0 %4847  ;;  %v11533_v2 = vsel %vm936_vm15, %v9209_v45, %v11219_v31  ;;  %v4930_v49 = vsel %vm1387_vm3, %v4888_v19, %v11439_v54  ;;  %v8203_v58 = vcombine.low %v11516_v4, %v11516_v4  ;;  %v11543_v20 = vcombine.low %v11516_v4, %v3237_v30 }
 0x38c   :  { %3537 = vrot.lane.b32.xlu1 %v8202_v5, %s9266_s0  ;;  %v4960_v47 = vsel %vm3815_vm0, %v4928_v16, %v4848_v34  ;;  %v8204_v54 = vcombine.low %v3222_v24, %v3222_v24  ;;  %v3678_v34 = vshll.u32 %v11525_v3, 16  ;;  %v11550_v4 = vcombine.low %v3222_v24, %v3238_v29 }
 0x38d   :  { %v4850_v10 = vpop.permute.xlu1 %4849  ;;  %v8327_v60 = vcombine.low %v4960_v47, %v4960_v47  ;;  %v8328_v31 = vcombine.high %v4960_v47, %v4960_v47  ;;  %v3676_v30 = vshrl.u32 %v11525_v3, 16  ;;  %v3692_v3 = vshll.u32 %v11543_v20, 16 }
 0x38e   :  { %v4962_v59 = vsel %vm3815_vm0, %v4930_v49, %v4850_v10  ;;  %7101 = vrot.lane.b32.xlu0 %v8541_v44, %s9266_s0  ;;  %v3685_v44 = vshll.u32 %v11527_v41, 16  ;;  %v3680_v29 = vrot.slane %v3678_v34, 1  ;;  %v6902_v61 = vshrl.u32 %v11448_v27, 16 }
 0x38f   :  { %v8329_v50 = vcombine.low %v4962_v59, %v4962_v59  ;;  %v8330_v0 = vcombine.high %v4962_v59, %v4962_v59  ;;  %v5123_v5 = vshrl.u32 %v8327_v60, 16  ;;  %v5126_v19 = vshll.u32 %v8327_v60, 16  ;;  %v3516_v16 = vpop.permute.xlu0 %3515 }
 0x390   :  { %7103 = vrot.lane.b32.xlu1 %v8542_v33, %s9266_s0  ;;  %v3683_v33 = vshrl.u32 %v11527_v41, 16  ;;  %v3690_v60 = vshrl.u32 %v11543_v20, 16  ;;  %v5132_v59 = vshll.u32 %v8328_v31, 16  ;;  %v3687_v43 = vrot.slane %v3685_v44, 1 }
 0x391   :  { %v5137_v11 = vshrl.u32 %v8329_v50, 16  ;;  %v5140_v45 = vshll.u32 %v8329_v50, 16  ;;  %v11548_v49 = vpop.permute.xlu1 %3517  ;;  %v5125_v47 = vrot.slane %v5123_v5, 4  ;;  %v5128_v10 = vrot.slane %v5126_v19, 5 }
 0x392   :  { %7289 = vrot.lane.b32.xlu0 %v11485_v6, %s9267_s15  ;;  %v5146_v39 = vshll.u32 %v8330_v0, 16  ;;  %v3784_v6 = vsel %vm1387_vm3, %v11429_v9, %v11460_v63  ;;  %v3786_v41 = vsel %vm1387_vm3, %v3740_v8, %v11466_v15  ;;  %v3699_v19 = vshll.u32 %v11550_v4, 16 }
 0x393   :  { %v5139_v22 = vrot.slane %v5137_v11, 4  ;;  %v5142_v28 = vrot.slane %v5140_v45, 5  ;;  %v5129_v50 = vor.u32 %v5128_v10, %v5125_v47  ;;  %v3704_v24 = vpop.permute.xlu0 %3703  ;;  %v5134_v9 = vrot.slane %v5132_v59, 5  ;;  %v6662_v59 = vld [vmem:[#allocation2 + $0x3c] sm:$0x1] }
 0x394   :  { %7291 = vrot.lane.b32.xlu1 %v7190_v48, %s9267_s15  ;;  %v13134_v48 = vcombine.low %v11458_v7, %v11480_v37  ;;  %v3817_v44 = vsel %vm3815_vm0, %v3784_v6, %v3704_v24  ;;  %v5148_v15 = vrot.slane %v5146_v39, 5  ;;  %v3681_v8 = vor.u32 %v3680_v29, %v3676_v30 }
 0x395   :  { %v5143_v5 = vor.u32 %v5142_v28, %v5139_v22  ;;  %v3706_v31 = vpop.permute.xlu1 %3705  ;;  %v5130_v34 = vrot.slane %v5129_v50, 4  ;;  %v13135_v22 = vcombine.low %v11464_v56, %v11493_v42  ;;  %v3688_v45 = vor.u32 %v3687_v43, %v3683_v33 }
 0x396   :  { %v4891_v0 = vsel %vm936_vm15, %v13134_v48, %v11405_v46  ;;  %v3819_v11 = vsel %vm3815_vm0, %v3786_v41, %v3706_v31  ;;  %3539 = vrot.lane.b32.xlu0 %v8203_v58, %s9266_s0  ;;  %v3694_v10 = vrot.slane %v3692_v3, 1  ;;  %v3697_v33 = vshrl.u32 %v11550_v4, 16  ;;  %v6664_v4 = vld [vmem:[#allocation2 + $0x44] sm:$0x1] }
 0x397   :  { %v5144_v63 = vrot.slane %v5143_v5, 4  ;;  %v8221_v28 = vcombine.low %v3817_v44, %v3819_v11  ;;  %v4894_v7 = vsel %vm936_vm15, %v13135_v22, %v11409_v32  ;;  %v4932_v46 = vsel %vm1387_vm3, %v4891_v0, %v11488_v23  ;;  %v4852_v37 = vpop.permute.xlu0 %4851  ;;  %v6687_v5 = vld [vmem:[#allocation2 + $0x38] sm:$0xe] }
 0x398   :  { %3541 = vrot.lane.b32.xlu1 %v8204_v54, %s9266_s0  ;;  %v4934_v58 = vsel %vm1387_vm3, %v4894_v7, %v11497_v21  ;;  %v5135_v39 = vsel %vm11389_vm5, %v5130_v34, %v5134_v9  ;;  %v4964_v47 = vsel %vm3815_vm0, %v4932_v46, %v4852_v37  ;;  %v3788_v50 = vsel %vm1387_vm3, %v11533_v2, %v3516_v16  ;;  %v5627_v9 = vld [vmem:[#allocation2 + $0x18] sm:$0xf] }
 0x399   :  { %v5149_v54 = vsel %vm11389_vm5, %v5144_v63, %v5148_v15  ;;  %v4854_v56 = vpop.permute.xlu1 %4853  ;;  %8889 = vmatprep.mubr.msk.bf16.mxu0 %vm3904_vm6, %v8221_v28  ;;  %v8331_v32 = vcombine.low %v4964_v47, %v4964_v47  ;;  %v8332_v42 = vcombine.high %v4964_v47, %v4964_v47  ;;  %v3701_v41 = vrot.slane %v3699_v19, 1  ;;  %v6688_v19 = vld [vmem:[#allocation2 + $0x40] sm:$0xe]  ;;  %v2811_v7 = vld [vmem:[#allocation2 + $0x98] sm:$0x1] }
 0x39a   :  { %v4966_v23 = vsel %vm3815_vm0, %v4934_v58, %v4854_v56  ;;  %3727 = vrot.lane.b32.xlu0 %v3681_v8, %s9267_s15  ;;  %v8357_v43 = vcombine.low %v5135_v39, %v5149_v54  ;;  %v3790_v31 = vsel %vm1387_vm3, %v11511_v35, %v11548_v49  ;;  %v9168_v35 = vld [vmem:[%s13040_s2 + $0x38] sm:$0xff]   ;;  %v9174_v49 = vld [vmem:[%s13040_s2 + $0x30] sm:$0xff]   ;;  %v3695_v37 = vor.u32 %v3694_v10, %v3690_v60 }
 0x39b   :  { %v8333_v30 = vcombine.low %v4966_v23, %v4966_v23  ;;  %v8334_v21 = vcombine.high %v4966_v23, %v4966_v23  ;;  %v5151_v24 = vshrl.u32 %v8331_v32, 16  ;;  %v5154_v29 = vshll.u32 %v8331_v32, 16  ;;  %v3708_v6 = vpop.permute.xlu0 %3707  ;;  %8945 = vmatprep.subr.bf16.mxu1 %v9168_v35  ;;  %v2873_v39 = vld [vmem:[#allocation2 + $0x9c] sm:$0x1] }
 0x39c   :  { %3729 = vrot.lane.b32.xlu1 %v3688_v45, %s9267_s15  ;;  %8913 = vmatprep.mubr.msk.bf16.mxu1 %vm3904_vm6, %v8357_v43  ;;  %v5160_v48 = vshll.u32 %v8332_v42, 16  ;;  %v3821_v2 = vsel %vm3815_vm0, %v3788_v50, %v3708_v6  ;;  %v11615_v8 = vcombine.low %v6687_v5, %v6662_v59  ;;  %v5643_v45 = vld [vmem:[#allocation2 + $0x1c] sm:$0x1]  ;;  %v2812_v58 = vsel %vm10839_vm12, 0, %v2811_v7  ;;  %v5628_v59 = vld [vmem:[#allocation2 + $0x20] sm:$0xf] }
 0x39d   :  { %v5165_v0 = vshrl.u32 %v8333_v30, 16  ;;  %v5168_v3 = vshll.u32 %v8333_v30, 16  ;;  %v3710_v34 = vpop.permute.xlu1 %3709  ;;  %v5153_v44 = vrot.slane %v5151_v24, 4  ;;  %v5156_v11 = vrot.slane %v5154_v29, 5  ;;  %8946 = vmatpush3.bf16.msra.mxu1 %v9168_v35  ;;  %2813 = vst [vmem:[#allocation2 + $0x98] sm:$0x1] %v2812_v58 }
 0x39e   :  { %v3823_v16 = vsel %vm3815_vm0, %v3790_v31, %v3710_v34  ;;  %7293 = vrot.lane.b32.xlu0 %v11503_v53, %s9267_s15  ;;  %v5174_v28 = vshll.u32 %v8334_v21, 16  ;;  %v11622_v56 = vcombine.low %v6688_v19, %v6664_v4  ;;  %v2874_v20 = vsel %vm10850_vm13, 0, %v2873_v39  ;;  %8947 = vmatprep.subr.bf16.mxu1 %v9174_v49  ;;  %v5644_v50 = vld [vmem:[#allocation2 + $0x24] sm:$0x1]  ;;  %v6706_v19 = vld [vmem:[#allocation2 + $0x34] sm:$0x1] }
 0x39f   :  { %v5167_v63 = vrot.slane %v5165_v0, 4  ;;  %v5170_v15 = vrot.slane %v5168_v3, 5  ;;  %v8222_v22 = vcombine.low %v3821_v2, %v3823_v16  ;;  %v5157_v46 = vor.u32 %v5156_v11, %v5153_v44  ;;  %v11611_v53 = vpop.permute.xlu0 %4551  ;;  %2875 = vst [vmem:[#allocation2 + $0x9c] sm:$0x1] %v2874_v20  ;;  %v11657_v44 = vld [vmem:[#allocation2 + $0x10] sm:$0xf] }
 0x3a0   :  { %7295 = vrot.lane.b32.xlu1 %v11505_v51, %s9267_s15  ;;  %v3702_v51 = vor.u32 %v3701_v41, %v3697_v33  ;;  %v6909_v32 = vshrl.u32 %v11455_v57, 16  ;;  %v5162_v42 = vrot.slane %v5160_v48, 5  ;;  %v5176_v43 = vrot.slane %v5174_v28, 5  ;;  %v5674_v35 = vld [vmem:[#allocation2 + $0x14] sm:$0x1] }
 0x3a1   :  { %v5171_v54 = vor.u32 %v5170_v15, %v5167_v63  ;;  %v11619_v47 = vpop.permute.xlu1 %4553  ;;  %8890 = vmatmul.mubr.msk.bf16.vlgmr.msra.gmra.mxu0 %vm3904_vm6, %v8222_v22  ;;  %v5158_v60 = vrot.slane %v5157_v46, 4  ;;  %v11630_v30 = vcombine.low %v5627_v9, %v5643_v45  ;;  %v6907_v55 = vor.u32 %v11507_v14, %v6902_v61  ;;  %8948 = vmatpush3.bf16.msra.mxu1 %v9174_v49  ;;  %v6708_v63 = vld [vmem:[#allocation2 + $0x3c] sm:$0x1]  ;;  %v6734_v15 = vld [vmem:[#allocation2 + $0x38] sm:$0xe] }
 0x3a2   :  { %3731 = vrot.lane.b32.xlu0 %v3695_v37, %s9267_s15  ;;  %v6914_v10 = vor.u32 %v11518_v13, %v6909_v32  ;;  %v13136_v33 = vshll.u32 %v11473_v18, 16  ;;  %v6918_v57 = vshll.u32 %v11615_v8, 16  ;;  %v13137_v41 = vshll.u32 %v11475_v12, 16  ;;  %v5675_v7 = vld [vmem:[#allocation2 + $0x1c] sm:$0x1] }
 0x3a3   :  { %v5172_v23 = vrot.slane %v5171_v54, 4  ;;  %v11632_v21 = vpop.permute.xlu0 %4555  ;;  %v5163_v24 = vsel %vm11389_vm5, %v5158_v60, %v5162_v42  ;;  %v6925_v13 = vshll.u32 %v11622_v56, 16  ;;  %v5771_v31 = vshrl.u32 %v11473_v18, 16  ;;  %v6733_v18 = vld [vmem:[#allocation2 + $0x30] sm:$0xe] }
 0x3a4   :  { %3733 = vrot.lane.b32.xlu1 %v3702_v51, %s9267_s15  ;;  %v5775_v27 = vrot.slane %v13136_v33, 1  ;;  %v5782_v14 = vrot.slane %v13137_v41, 1  ;;  %v5778_v48 = vshrl.u32 %v11475_v12, 16  ;;  %v11652_v0 = vcombine.low %v5628_v59, %v5644_v50  ;;  %v11662_v12 = vld [vmem:[#allocation2 + $0x18] sm:$0xf] }
 0x3a5   :  { %v5177_v29 = vsel %vm11389_vm5, %v5172_v23, %v5176_v43  ;;  %v11643_v6 = vpop.permute.xlu1 %4557  ;;  %v6920_v4 = vrot.slane %v6918_v57, 1  ;;  %v6927_v16 = vrot.slane %v6925_v13, 1  ;;  %v5787_v9 = vshll.u32 %v11630_v30, 16  ;;  %v11669_v46 = vld [vmem:[#allocation2 + $0x20] sm:$0xf] }
 0x3a6   :  { %6993 = vrot.lane.b32.xlu0 %v6907_v55, %s9263_s7  ;;  %v8358_v5 = vcombine.low %v5163_v24, %v5177_v29  ;;  %v5776_v34 = vor.u32 %v5775_v27, %v5771_v31  ;;  %v5783_v2 = vor.u32 %v5782_v14, %v5778_v48  ;;  %v6916_v49 = vshrl.u32 %v11615_v8, 16  ;;  %v4215_v37 = vld [vmem:[#allocation2 + $0x50] sm:$0xf]  ;;  %v5676_v51 = vld [vmem:[#allocation2 + $0x24] sm:$0x1] }
 0x3a7   :  { %v11654_v3 = vpop.permute.xlu0 %4663  ;;  %v6923_v28 = vshrl.u32 %v11622_v56, 16  ;;  %v5794_v22 = vshll.u32 %v11652_v0, 16  ;;  %v6705_v39 = vld [vmem:[#allocation2 + $0x30] sm:$0xf]  ;;  %v11673_v54 = vcombine.low %v6733_v18, %v6706_v19  ;;  %v6707_v60 = vld [vmem:[#allocation2 + $0x38] sm:$0xf]  ;;  %v11677_v61 = vcombine.low %v6734_v15, %v6708_v63 }
 0x3a8   :  { %6995 = vrot.lane.b32.xlu1 %v6914_v10, %s9263_s7  ;;  %8914 = vmatmul.mubr.msk.bf16.gmra.mxu1 %vm3904_vm6, %v8358_v5  ;;  %v6921_v58 = vor.u32 %v6920_v4, %v6916_v49  ;;  %v5789_v56 = vrot.slane %v5787_v9, 1  ;;  %v8421_v32 = vcombine.low %v11657_v44, %v11657_v44  ;;  %v11681_v42 = vld [vmem:[#allocation2 + $0x40] sm:$0xf]  ;;  %v11685_v23 = vcombine.low %v11657_v44, %v5674_v35  ;;  %v11692_v10 = vld [vmem:[#allocation2 + $0x44] sm:$0x1] }
 0x3a9   :  { %v11659_v11 = vpop.permute.xlu1 %4665  ;;  %v6928_v20 = vor.u32 %v6927_v16, %v6923_v28  ;;  %v8422_v43 = vcombine.low %v11662_v12, %v11662_v12  ;;  %v11690_v55 = vcombine.low %v11662_v12, %v5675_v7  ;;  %v6735_v33 = vld [vmem:[#allocation2 + $0x40] sm:$0xe]  ;;  %v8423_v27 = vcombine.low %v11669_v46, %v11669_v46  ;;  %v11696_v57 = vld [vmem:[#allocation2 + $0x28] sm:$0xf]  ;;  %v9210_v59 = vld [vmem:[#allocation2 + $0x54] sm:$0x1] }
 0x3aa   :  { %5882 = vrot.lane.b32.xlu0 %v5776_v34, %s9263_s7  ;;  %v8263_v50 = vcombine.low %v4215_v37, %v9210_v59  ;;  %v4217_v24 = vld [vmem:[#allocation2 + $0x58] sm:$0xf]  ;;  %v5785_v29 = vshrl.u32 %v11630_v30, 16  ;;  %v5796_v41 = vrot.slane %v5794_v22, 1  ;;  %v11701_v14 = vcombine.low %v11669_v46, %v5676_v51  ;;  %v5677_v13 = vld [vmem:[#allocation2 + $0x2c] sm:$0x1] }
 0x3ab   :  { %v11671_v45 = vpop.permute.xlu0 %3519  ;;  %v11703_v5 = vld [vmem:[#allocation2 + $0x60] sm:$0xf]  ;;  %v8543_v48 = vcombine.low %v6705_v39, %v6706_v19  ;;  %v8544_v34 = vcombine.low %v6707_v60, %v6708_v63  ;;  %v5792_v4 = vshrl.u32 %v11652_v0, 16  ;;  %v11709_v16 = vld [vmem:[#allocation2 + $0x68] sm:$0xf]  ;;  %v8545_v9 = vcombine.low %v11681_v42, %v11692_v10 }
 0x3ac   :  { %5884 = vrot.lane.b32.xlu1 %v5783_v2, %s9263_s7  ;;  %v7208_v2 = vshll.u32 %v11673_v54, 16  ;;  %v5790_v30 = vor.u32 %v5789_v56, %v5785_v29  ;;  %v11716_v35 = vcombine.low %v6735_v33, %v11692_v10  ;;  %v7215_v49 = vshll.u32 %v11677_v61, 16  ;;  %v9211_v15 = vld [vmem:[#allocation2 + $0x5c] sm:$0x1]  ;;  %v11728_v7 = vld [vmem:[#allocation2 + $0x64] sm:$0x1] }
 0x3ad   :  { %v11675_v8 = vpop.permute.xlu1 %3521  ;;  %v8264_v19 = vcombine.low %v4217_v24, %v9211_v15  ;;  %v8424_v0 = vcombine.low %v11696_v57, %v11696_v57  ;;  %v11723_v63 = vcombine.low %v11696_v57, %v5677_v13  ;;  %v6045_v28 = vshll.u32 %v11685_v23, 16 }
 0x3ae   :  { %6997 = vrot.lane.b32.xlu0 %v6921_v58, %s9263_s7  ;;  %v4897_v22 = vsel %vm936_vm15, %v8263_v50, %v11611_v53  ;;  %v8265_v37 = vcombine.low %v11703_v5, %v11728_v7  ;;  %v5797_v58 = vor.u32 %v5796_v41, %v5792_v4  ;;  %v7206_v39 = vshrl.u32 %v11673_v54, 16  ;;  %v6712_v4 = vld [vmem:[#allocation2 + $0x4c] sm:$0x1] }
 0x3af   :  { %v11705_v31 = vpop.permute.xlu0 %4667  ;;  %v4900_v51 = vsel %vm936_vm15, %v8264_v19, %v11619_v47  ;;  %v4936_v53 = vsel %vm1387_vm3, %v4897_v22, %v11654_v3  ;;  %v7210_v33 = vrot.slane %v7208_v2, 1  ;;  %v7213_v54 = vshrl.u32 %v11677_v61, 16 }
 0x3b0   :  { %6999 = vrot.lane.b32.xlu1 %v6928_v20, %s9263_s7  ;;  %v11736_v20 = vld [vmem:[#allocation2 + $0x6c] sm:$0x1]  ;;  %v4938_v59 = vsel %vm1387_vm3, %v4900_v51, %v11659_v11  ;;  %v7217_v29 = vrot.slane %v7215_v49, 1  ;;  %v6043_v13 = vshrl.u32 %v11685_v23, 16  ;;  %v6047_v5 = vrot.slane %v6045_v28, 1 }
 0x3b1   :  { %v11711_v18 = vpop.permute.xlu1 %4669  ;;  %v8266_v60 = vcombine.low %v11709_v16, %v11736_v20  ;;  %v6711_v11 = vld [vmem:[#allocation2 + $0x48] sm:$0xf]  ;;  %v6050_v2 = vshrl.u32 %v11690_v55, 16  ;;  %v7211_v19 = vor.u32 %v7210_v33, %v7206_v39  ;;  %v6052_v22 = vshll.u32 %v11690_v55, 16 }
 0x3b2   :  { %7105 = vrot.lane.b32.xlu0 %v8543_v48, %s9266_s0  ;;  %v6736_v28 = vld [vmem:[#allocation2 + $0x48] sm:$0xe]  ;;  %v7218_v51 = vor.u32 %v7217_v29, %v7213_v54  ;;  %v9214_v54 = vld [vmem:[#allocation2 + $0x20] sm:$0xf]  ;;  %v6059_v46 = vshll.u32 %v11701_v14, 16 }
 0x3b3   :  { %v4856_v56 = vpop.permute.xlu0 %4855  ;;  %v3749_v29 = vsel %vm936_vm15, %v9214_v54, %v11209_v40  ;;  %v4903_v40 = vsel %vm936_vm15, %v8265_v37, %v11632_v21  ;;  %v4906_v37 = vsel %vm936_vm15, %v8266_v60, %v11643_v6 }
 0x3b4   :  { %7107 = vrot.lane.b32.xlu1 %v8544_v34, %s9266_s0  ;;  %v4968_v50 = vsel %vm3815_vm0, %v4936_v53, %v4856_v56  ;;  %v7222_v53 = vshll.u32 %v11716_v35, 16  ;;  %v4940_v42 = vsel %vm1387_vm3, %v4903_v40, %v11705_v31  ;;  %v6690_v40 = vld [vmem:[#allocation2 + $0x60] sm:$0xe] }
 0x3b5   :  { %v4858_v24 = vpop.permute.xlu1 %4857  ;;  %v8335_v47 = vcombine.low %v4968_v50, %v4968_v50  ;;  %v8336_v3 = vcombine.high %v4968_v50, %v4968_v50  ;;  %v11761_v50 = vor.u32 %v6047_v5, %v6043_v13  ;;  %v11771_v5 = vcombine.low %v6736_v28, %v6712_v4 }
 0x3b6   :  { %v4970_v41 = vsel %vm3815_vm0, %v4938_v59, %v4858_v24  ;;  %5886 = vrot.lane.b32.xlu0 %v5790_v30, %s9263_s7  ;;  %v8546_v59 = vcombine.low %v6711_v11, %v6712_v4 }
 0x3b7   :  { %v8337_v48 = vcombine.low %v4970_v41, %v4970_v41  ;;  %v8338_v34 = vcombine.high %v4970_v41, %v4970_v41  ;;  %v5179_v15 = vshrl.u32 %v8335_v47, 16  ;;  %v5182_v61 = vshll.u32 %v8335_v47, 16  ;;  %v11751_v49 = vpop.permute.xlu0 %3523  ;;  %v9215_v41 = vld [vmem:[#allocation2 + $0x28] sm:$0xf] }
 0x3b8   :  { %5888 = vrot.lane.b32.xlu1 %v5797_v58, %s9263_s7  ;;  %v5188_v39 = vshll.u32 %v8336_v3, 16  ;;  %v3752_v44 = vsel %vm936_vm15, %v9215_v41, %v11230_v25  ;;  %v3792_v3 = vsel %vm1387_vm3, %v3749_v29, %v11671_v45  ;;  %v6666_v29 = vld [vmem:[#allocation2 + $0x5c] sm:$0x1] }
 0x3b9   :  { %v5193_v30 = vshrl.u32 %v8337_v48, 16  ;;  %v5196_v7 = vshll.u32 %v8337_v48, 16  ;;  %v11754_v23 = vpop.permute.xlu1 %3525  ;;  %v5181_v58 = vrot.slane %v5179_v15, 4  ;;  %v5184_v56 = vrot.slane %v5182_v61, 5 }
 0x3ba   :  { %5962 = vrot.lane.b32.xlu0 %v8421_v32, %s9266_s0  ;;  %v5202_v47 = vshll.u32 %v8338_v34, 16  ;;  %v3794_v48 = vsel %vm1387_vm3, %v3752_v44, %v11675_v8  ;;  %v11777_v34 = vrot.slane %v6052_v22, 1  ;;  %v5190_v45 = vrot.slane %v5188_v39, 5  ;;  %v9216_v22 = vld [vmem:[#allocation2 + $0x38] sm:$0xf] }
 0x3bb   :  { %v5195_v33 = vrot.slane %v5193_v30, 4  ;;  %v5198_v24 = vrot.slane %v5196_v7, 5  ;;  %v5185_v32 = vor.u32 %v5184_v56, %v5181_v58  ;;  %v3712_v13 = vpop.permute.xlu0 %3711  ;;  %v3758_v21 = vsel %vm936_vm15, %v9216_v22, %v11223_v1  ;;  %v9217_v58 = vld [vmem:[#allocation2 + $0x30] sm:$0xf] }
 0x3bc   :  { %5964 = vrot.lane.b32.xlu1 %v8422_v43, %s9266_s0  ;;  %v3825_v25 = vsel %vm3815_vm0, %v3792_v3, %v3712_v13  ;;  %v5204_v8 = vrot.slane %v5202_v47, 5  ;;  %v4942_v30 = vsel %vm1387_vm3, %v4906_v37, %v11711_v18  ;;  %v3755_v18 = vsel %vm936_vm15, %v9217_v58, %v11233_v26  ;;  %v5629_v3 = vld [vmem:[#allocation2 + $0x28] sm:$0xf] }
 0x3bd   :  { %v5199_v12 = vor.u32 %v5198_v24, %v5195_v33  ;;  %v3714_v43 = vpop.permute.xlu1 %3713  ;;  %v5186_v11 = vrot.slane %v5185_v32, 4  ;;  %v7227_v39 = vshrl.u32 %v11771_v5, 16  ;;  %v3796_v33 = vsel %vm1387_vm3, %v3755_v18, %v11751_v49 }
 0x3be   :  { %v3827_v15 = vsel %vm3815_vm0, %v3794_v48, %v3714_v43  ;;  %7109 = vrot.lane.b32.xlu0 %v8545_v9, %s9266_s0  ;;  %v7229_v9 = vshll.u32 %v11771_v5, 16  ;;  %v3798_v41 = vsel %vm1387_vm3, %v3758_v21, %v11754_v23  ;;  %v6668_v43 = vld [vmem:[#allocation2 + $0x64] sm:$0x1]  ;;  %v6055_v57 = vor.u32 %v11777_v34, %v6050_v2 }
 0x3bf   :  { %v5200_v4 = vrot.slane %v5199_v12, 4  ;;  %v8223_v61 = vcombine.low %v3825_v25, %v3827_v15  ;;  %v4860_v10 = vpop.permute.xlu0 %4859  ;;  %v5191_v7 = vsel %vm11389_vm5, %v5186_v11, %v5190_v45  ;;  %v5645_v45 = vld [vmem:[#allocation2 + $0x2c] sm:$0x1]  ;;  %v11841_v37 = vcombine.low %v6690_v40, %v6668_v43  ;;  %v11886_v40 = vld [vmem:[#allocation2 + $0x60] sm:$0xf] }
 0x3c0   :  { %7111 = vrot.lane.b32.xlu1 %v8546_v59, %s9266_s0  ;;  %v4972_v28 = vsel %vm3815_vm0, %v4940_v42, %v4860_v10  ;;  %v5630_v42 = vld [vmem:[#allocation2 + $0x30] sm:$0xf]  ;;  %v5646_v10 = vld [vmem:[#allocation2 + $0x34] sm:$0x1] }
 0x3c1   :  { %v5205_v1 = vsel %vm11389_vm5, %v5200_v4, %v5204_v8  ;;  %v4862_v16 = vpop.permute.xlu1 %4861  ;;  %8893 = vmatprep.mubr.msk.bf16.mxu0 %vm3904_vm6, %v8223_v61  ;;  %v8339_v6 = vcombine.low %v4972_v28, %v4972_v28  ;;  %v8340_v20 = vcombine.high %v4972_v28, %v4972_v28  ;;  %v7224_v61 = vrot.slane %v7222_v53, 1 }
 0x3c2   :  { %v4974_v31 = vsel %vm3815_vm0, %v4942_v30, %v4862_v16  ;;  %7297 = vrot.lane.b32.xlu0 %v7211_v19, %s9267_s15  ;;  %v8359_v60 = vcombine.low %v5191_v7, %v5205_v1  ;;  %v7231_v19 = vrot.slane %v7229_v9, 1  ;;  %v7220_v9 = vshrl.u32 %v11716_v35, 16  ;;  %v9193_v35 = vld [vmem:[%s13040_s2 + $0x28] sm:$0xff]  }
 0x3c3   :  { %v8341_v56 = vcombine.low %v4974_v31, %v4974_v31  ;;  %v8342_v59 = vcombine.high %v4974_v31, %v4974_v31  ;;  %v5207_v24 = vshrl.u32 %v8339_v6, 16  ;;  %v5210_v47 = vshll.u32 %v8339_v6, 16  ;;  %v3716_v54 = vpop.permute.xlu0 %3715  ;;  %v6670_v31 = vld [vmem:[#allocation2 + $0x6c] sm:$0x1]  ;;  %8925 = vmatprep.subr.bf16.mxu0 %v9193_v35 }
 0x3c4   :  { %7299 = vrot.lane.b32.xlu1 %v7218_v51, %s9267_s15  ;;  %8917 = vmatprep.mubr.msk.bf16.mxu1 %vm3904_vm6, %v8359_v60  ;;  %v5216_v26 = vshll.u32 %v8340_v20, 16  ;;  %v6689_v51 = vld [vmem:[#allocation2 + $0x58] sm:$0xe]  ;;  %v3829_v49 = vsel %vm3815_vm0, %v3796_v33, %v3716_v54  ;;  %v11846_v30 = vcombine.low %v5629_v3, %v5645_v45  ;;  %v7232_v55 = vor.u32 %v7231_v19, %v7227_v39  ;;  %v9198_v39 = vld [vmem:[%s13040_s2 + $0x20] sm:$0xff]   ;;  %v6692_v54 = vld [vmem:[#allocation2 + $0x70] sm:$0xe] }
 0x3c5   :  { %v5221_v44 = vshrl.u32 %v8341_v56, 16  ;;  %v5224_v32 = vshll.u32 %v8341_v56, 16  ;;  %v3718_v13 = vpop.permute.xlu1 %3717  ;;  %v5209_v5 = vrot.slane %v5207_v24, 4  ;;  %v5212_v48 = vrot.slane %v5210_v47, 5  ;;  %v6672_v47 = vld [vmem:[#allocation2 + $0x74] sm:$0x1]  ;;  %8926 = vmatpush3.bf16.msra.mxu0 %v9193_v35 }
 0x3c6   :  { %v3831_v12 = vsel %vm3815_vm0, %v3798_v41, %v3718_v13  ;;  %5966 = vrot.lane.b32.xlu0 %v8423_v27, %s9266_s0  ;;  %v5230_v25 = vshll.u32 %v8342_v59, 16  ;;  %v11832_v27 = vcombine.low %v6689_v51, %v6666_v29  ;;  %v5218_v7 = vrot.slane %v5216_v26, 5  ;;  %v6691_v59 = vld [vmem:[#allocation2 + $0x68] sm:$0xe]  ;;  %8927 = vmatprep.subr.bf16.mxu0 %v9198_v39  ;;  %v5678_v35 = vld [vmem:[#allocation2 + $0x34] sm:$0x1] }
 0x3c7   :  { %v5223_v23 = vrot.slane %v5221_v44, 4  ;;  %v5226_v11 = vrot.slane %v5224_v32, 5  ;;  %v8224_v15 = vcombine.low %v3829_v49, %v3831_v12  ;;  %v5213_v4 = vor.u32 %v5212_v48, %v5209_v5  ;;  %v11827_v8 = vpop.permute.xlu0 %4559  ;;  %v5631_v48 = vld [vmem:[#allocation2 + $0x38] sm:$0xf]  ;;  %v5647_v49 = vld [vmem:[#allocation2 + $0x3c] sm:$0x1] }
 0x3c8   :  { %5968 = vrot.lane.b32.xlu1 %v8424_v0, %s9266_s0  ;;  %v6066_v0 = vshll.u32 %v11723_v63, 16  ;;  %v5232_v28 = vrot.slane %v5230_v25, 5  ;;  %v7225_v34 = vor.u32 %v7224_v61, %v7220_v9  ;;  %v6061_v16 = vrot.slane %v6059_v46, 1  ;;  %v4223_v12 = vld [vmem:[#allocation2 + $0x70] sm:$0xf] }
 0x3c9   :  { %v5227_v22 = vor.u32 %v5226_v11, %v5223_v23  ;;  %v11834_v21 = vpop.permute.xlu1 %4561  ;;  %8894 = vmatmul.mubr.msk.bf16.gmra.mxu0 %vm3904_vm6, %v8224_v15  ;;  %v5214_v53 = vrot.slane %v5213_v4, 4  ;;  %v6932_v6 = vshll.u32 %v11832_v27, 16  ;;  %v11852_v20 = vcombine.low %v5630_v42, %v5646_v10  ;;  %v5632_v23 = vld [vmem:[#allocation2 + $0x40] sm:$0xf]  ;;  %v5648_v11 = vld [vmem:[#allocation2 + $0x44] sm:$0x1] }
 0x3ca   :  { %6154 = vrot.lane.b32.xlu0 %v11761_v50, %s9267_s15  ;;  %v6068_v18 = vrot.slane %v6066_v0, 1  ;;  %v6939_v56 = vshll.u32 %v11841_v37, 16  ;;  %v6057_v24 = vshrl.u32 %v11701_v14, 16  ;;  %v6064_v19 = vshrl.u32 %v11723_v63, 16  ;;  %8928 = vmatpush3.bf16.msra.mxu0 %v9198_v39  ;;  %v11891_v61 = vld [vmem:[#allocation2 + $0x64] sm:$0x1] }
 0x3cb   :  { %v5228_v1 = vrot.slane %v5227_v22, 4  ;;  %v11849_v2 = vpop.permute.xlu0 %4563  ;;  %v5219_v50 = vsel %vm11389_vm5, %v5214_v53, %v5218_v7  ;;  %v6934_v26 = vrot.slane %v6932_v6, 1  ;;  %v5801_v44 = vshll.u32 %v11846_v30, 16  ;;  %v6737_v46 = vld [vmem:[#allocation2 + $0x60] sm:$0xe] }
 0x3cc   :  { %6156 = vrot.lane.b32.xlu1 %v6055_v57, %s9267_s15  ;;  %v6062_v41 = vor.u32 %v6061_v16, %v6057_v24  ;;  %v11875_v32 = vcombine.low %v6691_v59, %v6670_v31  ;;  %v6069_v13 = vor.u32 %v6068_v18, %v6064_v19  ;;  %v6941_v51 = vrot.slane %v6939_v56, 1  ;;  %v11898_v42 = vld [vmem:[#allocation2 + $0x6c] sm:$0x1]  ;;  %v9218_v10 = vld [vmem:[#allocation2 + $0x50] sm:$0xf] }
 0x3cd   :  { %v5233_v60 = vsel %vm11389_vm5, %v5228_v1, %v5232_v28  ;;  %v11861_v58 = vpop.permute.xlu1 %4565  ;;  %v5808_v3 = vshll.u32 %v11852_v20, 16  ;;  %v11880_v5 = vcombine.low %v6692_v54, %v6672_v47  ;;  %v6930_v63 = vshrl.u32 %v11832_v27, 16  ;;  %v6738_v7 = vld [vmem:[#allocation2 + $0x68] sm:$0xe]  ;;  %v11908_v28 = vld [vmem:[#allocation2 + $0x30] sm:$0xf] }
 0x3ce   :  { %7301 = vrot.lane.b32.xlu0 %v7225_v34, %s9267_s15  ;;  %v8360_v33 = vcombine.low %v5219_v50, %v5233_v60  ;;  %v6937_v43 = vshrl.u32 %v11841_v37, 16  ;;  %v5803_v45 = vrot.slane %v5801_v44, 1  ;;  %v6946_v4 = vshll.u32 %v11875_v32, 16  ;;  %v11896_v37 = vld [vmem:[#allocation2 + $0x68] sm:$0xf] }
 0x3cf   :  { %v11871_v29 = vpop.permute.xlu0 %4671  ;;  %v6935_v15 = vor.u32 %v6934_v26, %v6930_v63  ;;  %v5810_v57 = vrot.slane %v5808_v3, 1  ;;  %v6953_v0 = vshll.u32 %v11880_v5, 16  ;;  %v11902_v53 = vsel %vm936_vm15, %v9218_v10, %v11201_v62  ;;  %v4225_v16 = vld [vmem:[#allocation2 + $0x78] sm:$0xf]  ;;  %v5679_v39 = vld [vmem:[#allocation2 + $0x3c] sm:$0x1] }
 0x3d0   :  { %7303 = vrot.lane.b32.xlu1 %v7232_v55, %s9267_s15  ;;  %8918 = vmatmul.mubr.msk.bf16.gmra.mxu1 %vm3904_vm6, %v8360_v33  ;;  %v6942_v22 = vor.u32 %v6941_v51, %v6937_v43  ;;  %v5799_v9 = vshrl.u32 %v11846_v30, 16  ;;  %v11906_v1 = vcombine.low %v5631_v48, %v5647_v49  ;;  %v9219_v55 = vld [vmem:[#allocation2 + $0x74] sm:$0x1]  ;;  %v5806_v6 = vshrl.u32 %v11852_v20, 16  ;;  %v11923_v59 = vld [vmem:[#allocation2 + $0x38] sm:$0xf] }
 0x3d1   :  { %v11877_v14 = vpop.permute.xlu1 %4673  ;;  %v8267_v34 = vcombine.low %v4223_v12, %v9219_v55  ;;  %v8547_v62 = vcombine.low %v11886_v40, %v11891_v61  ;;  %v11915_v31 = vcombine.low %v6737_v46, %v11891_v61  ;;  %v6948_v60 = vrot.slane %v6946_v4, 1  ;;  %v9220_v19 = vld [vmem:[#allocation2 + $0x7c] sm:$0x1]  ;;  %v11932_v26 = vld [vmem:[#allocation2 + $0x80] sm:$0xf] }
 0x3d2   :  { %6158 = vrot.lane.b32.xlu0 %v6062_v41, %s9267_s15  ;;  %v5804_v50 = vor.u32 %v5803_v45, %v5799_v9  ;;  %v8548_v18 = vcombine.low %v11896_v37, %v11898_v42  ;;  %v11921_v56 = vcombine.low %v5632_v23, %v5648_v11  ;;  %v5811_v33 = vor.u32 %v5810_v57, %v5806_v6  ;;  %v11942_v63 = vld [vmem:[#allocation2 + $0x88] sm:$0xf]  ;;  %v11960_v57 = vld [vmem:[#allocation2 + $0x70] sm:$0xf]  ;;  %v11967_v55 = vld [vmem:[#allocation2 + $0x78] sm:$0xf] }
 0x3d3   :  { %v11888_v25 = vpop.permute.xlu0 %3527  ;;  %v6955_v24 = vrot.slane %v6953_v0, 1  ;;  %v11928_v47 = vcombine.low %v6738_v7, %v11898_v42  ;;  %v8425_v54 = vcombine.low %v11908_v28, %v11908_v28  ;;  %v8268_v41 = vcombine.low %v4225_v16, %v9220_v19  ;;  %v9222_v0 = vld [vmem:[#allocation2 + $0x8c] sm:$0x1] }
 0x3d4   :  { %6160 = vrot.lane.b32.xlu1 %v6069_v13, %s9267_s15  ;;  %v6944_v44 = vshrl.u32 %v11875_v32, 16  ;;  %v5815_v13 = vshll.u32 %v11906_v1, 16  ;;  %v11938_v51 = vcombine.low %v11908_v28, %v5678_v35  ;;  %v4909_v3 = vsel %vm936_vm15, %v8267_v34, %v11827_v8 }
 0x3d5   :  { %v11893_v27 = vpop.permute.xlu1 %3529  ;;  %v6951_v48 = vshrl.u32 %v11880_v5, 16  ;;  %v8426_v49 = vcombine.low %v11923_v59, %v11923_v59  ;;  %v11949_v12 = vcombine.low %v11923_v59, %v5679_v39  ;;  %v4912_v32 = vsel %vm936_vm15, %v8268_v41, %v11834_v21  ;;  %v11962_v21 = vld [vmem:[#allocation2 + $0x74] sm:$0x1] }
 0x3d6   :  { %7001 = vrot.lane.b32.xlu0 %v6935_v15, %s9263_s7  ;;  %v4944_v43 = vsel %vm1387_vm3, %v4909_v3, %v11871_v29  ;;  %v6949_v8 = vor.u32 %v6948_v60, %v6944_v44  ;;  %v5822_v11 = vshll.u32 %v11921_v56, 16  ;;  %v9221_v15 = vld [vmem:[#allocation2 + $0x84] sm:$0x1]  ;;  %v4946_v5 = vsel %vm1387_vm3, %v4912_v32, %v11877_v14  ;;  %v11969_v14 = vld [vmem:[#allocation2 + $0x7c] sm:$0x1] }
 0x3d7   :  { %v11917_v30 = vpop.permute.xlu0 %4675  ;;  %v8269_v45 = vcombine.low %v11932_v26, %v9221_v15  ;;  %v8270_v29 = vcombine.low %v11942_v63, %v9222_v0  ;;  %v5817_v7 = vrot.slane %v5815_v13, 1  ;;  %v5813_v35 = vshrl.u32 %v11906_v1, 16 }
 0x3d8   :  { %7003 = vrot.lane.b32.xlu1 %v6942_v22, %s9263_s7  ;;  %v6956_v22 = vor.u32 %v6955_v24, %v6951_v48  ;;  %v5824_v24 = vrot.slane %v5822_v11, 1  ;;  %v8549_v44 = vcombine.low %v11960_v57, %v11962_v21  ;;  %v8550_v13 = vcombine.low %v11967_v55, %v11969_v14 }
 0x3d9   :  { %v11925_v20 = vpop.permute.xlu1 %4677  ;;  %v5818_v1 = vor.u32 %v5817_v7, %v5813_v35  ;;  %v7236_v61 = vshll.u32 %v11915_v31, 16  ;;  %v7243_v37 = vshll.u32 %v11928_v47, 16  ;;  %v4915_v42 = vsel %vm936_vm15, %v8269_v45, %v11849_v2 }
 0x3da   :  { %5890 = vrot.lane.b32.xlu0 %v5804_v50, %s9263_s7  ;;  %v4948_v7 = vsel %vm1387_vm3, %v4915_v42, %v11917_v30 }
 0x3db   :  { %v4864_v23 = vpop.permute.xlu0 %4863  ;;  %v7238_v45 = vrot.slane %v7236_v61, 1 }
 0x3dc   :  { %5892 = vrot.lane.b32.xlu1 %v5811_v33, %s9263_s7  ;;  %v4976_v4 = vsel %vm3815_vm0, %v4944_v43, %v4864_v23  ;;  %v5820_v33 = vshrl.u32 %v11921_v56, 16  ;;  %v7234_v56 = vshrl.u32 %v11915_v31, 16 }
 0x3dd   :  { %v4866_v46 = vpop.permute.xlu1 %4865  ;;  %v8343_v10 = vcombine.low %v4976_v4, %v4976_v4  ;;  %v8344_v34 = vcombine.high %v4976_v4, %v4976_v4 }
 0x3de   :  { %v4978_v9 = vsel %vm3815_vm0, %v4946_v5, %v4866_v46  ;;  %7005 = vrot.lane.b32.xlu0 %v6949_v8, %s9263_s7  ;;  %v9223_v8 = vld [vmem:[#allocation2 + $0x58] sm:$0xf]  ;;  %v5825_v40 = vor.u32 %v5824_v24, %v5820_v33  ;;  %v7239_v57 = vor.u32 %v7238_v45, %v7234_v56 }
 0x3df   :  { %v8345_v16 = vcombine.low %v4978_v9, %v4978_v9  ;;  %v8346_v6 = vcombine.high %v4978_v9, %v4978_v9  ;;  %v5235_v50 = vshrl.u32 %v8343_v10, 16  ;;  %v5238_v60 = vshll.u32 %v8343_v10, 16  ;;  %v11973_v39 = vpop.permute.xlu0 %3531 }
 0x3e0   :  { %7007 = vrot.lane.b32.xlu1 %v6956_v22, %s9263_s7  ;;  %v5244_v48 = vshll.u32 %v8344_v34, 16  ;;  %v3764_v11 = vsel %vm936_vm15, %v9223_v8, %v11243_v36  ;;  %v7241_v34 = vshrl.u32 %v11928_v47, 16  ;;  %v9224_v47 = vld [vmem:[#allocation2 + $0x60] sm:$0xf] }
 0x3e1   :  { %v5249_v19 = vshrl.u32 %v8345_v16, 16  ;;  %v5252_v41 = vshll.u32 %v8345_v16, 16  ;;  %v11976_v26 = vpop.permute.xlu1 %3533  ;;  %v5237_v3 = vrot.slane %v5235_v50, 4  ;;  %v5240_v63 = vrot.slane %v5238_v60, 5 }
 0x3e2   :  { %7113 = vrot.lane.b32.xlu0 %v8547_v62, %s9266_s0  ;;  %v5258_v23 = vshll.u32 %v8346_v6, 16  ;;  %v3800_v62 = vsel %vm1387_vm3, %v11902_v53, %v11888_v25  ;;  %v3802_v4 = vsel %vm1387_vm3, %v3764_v11, %v11893_v27  ;;  %v5246_v10 = vrot.slane %v5244_v48, 5 }
 0x3e3   :  { %v5251_v32 = vrot.slane %v5249_v19, 4  ;;  %v5254_v43 = vrot.slane %v5252_v41, 5  ;;  %v5241_v15 = vor.u32 %v5240_v63, %v5237_v3  ;;  %v3720_v5 = vpop.permute.xlu0 %3719  ;;  %v4918_v27 = vsel %vm936_vm15, %v8270_v29, %v11861_v58  ;;  %v9225_v3 = vld [vmem:[#allocation2 + $0x68] sm:$0xf] }
 0x3e4   :  { %7115 = vrot.lane.b32.xlu1 %v8548_v18, %s9266_s0  ;;  %v3833_v18 = vsel %vm3815_vm0, %v3800_v62, %v3720_v5  ;;  %v5260_v25 = vrot.slane %v5258_v23, 5  ;;  %v4950_v16 = vsel %vm1387_vm3, %v4918_v27, %v11925_v20  ;;  %v3767_v33 = vsel %vm936_vm15, %v9224_v47, %v11245_v38  ;;  %v6739_v23 = vld [vmem:[#allocation2 + $0x70] sm:$0xe]  ;;  %v5665_v62 = vld [vmem:[#allocation2 + $0x48] sm:$0xf] }
 0x3e5   :  { %v5255_v46 = vor.u32 %v5254_v43, %v5251_v32  ;;  %v3722_v22 = vpop.permute.xlu1 %3721  ;;  %v5242_v36 = vrot.slane %v5241_v15, 4  ;;  %v7245_v41 = vrot.slane %v7243_v37, 1  ;;  %v3770_v63 = vsel %vm936_vm15, %v9225_v3, %v11236_v52  ;;  %v5651_v47 = vld [vmem:[#allocation2 + $0x6c] sm:$0x1] }
 0x3e6   :  { %v3835_v0 = vsel %vm3815_vm0, %v3802_v4, %v3722_v22  ;;  %5894 = vrot.lane.b32.xlu0 %v5818_v1, %s9263_s7  ;;  %v3804_v28 = vsel %vm1387_vm3, %v3767_v33, %v11973_v39  ;;  %v3806_v38 = vsel %vm1387_vm3, %v3770_v63, %v11976_v26  ;;  %v6740_v39 = vld [vmem:[#allocation2 + $0x78] sm:$0xe]  ;;  %v6073_v37 = vshll.u32 %v11938_v51, 16 }
 0x3e7   :  { %v5256_v9 = vrot.slane %v5255_v46, 4  ;;  %v8225_v53 = vcombine.low %v3833_v18, %v3835_v0  ;;  %v4868_v2 = vpop.permute.xlu0 %4867  ;;  %v5247_v6 = vsel %vm11389_vm5, %v5242_v36, %v5246_v10  ;;  %v12048_v46 = vcombine.low %v6739_v23, %v11962_v21  ;;  %v5680_v21 = vld [vmem:[#allocation2 + $0x44] sm:$0x1] }
 0x3e8   :  { %5896 = vrot.lane.b32.xlu1 %v5825_v40, %s9263_s7  ;;  %v4980_v50 = vsel %vm3815_vm0, %v4948_v7, %v4868_v2  ;;  %v12056_v36 = vcombine.low %v6740_v39, %v11969_v14  ;;  %v7246_v55 = vor.u32 %v7245_v41, %v7241_v34  ;;  %v6080_v0 = vshll.u32 %v11949_v12, 16  ;;  %v5633_v34 = vld [vmem:[#allocation2 + $0x58] sm:$0xf]  ;;  %v6694_v41 = vld [vmem:[#allocation2 + $0x80] sm:$0xe] }
 0x3e9   :  { %v5261_v35 = vsel %vm11389_vm5, %v5256_v9, %v5260_v25  ;;  %v4870_v60 = vpop.permute.xlu1 %4869  ;;  %8897 = vmatprep.mubr.msk.bf16.mxu0 %vm3904_vm6, %v8225_v53  ;;  %v8347_v58 = vcombine.low %v4980_v50, %v4980_v50  ;;  %v8348_v30 = vcombine.high %v4980_v50, %v4980_v50  ;;  %v8428_v31 = vcombine.low %v5665_v62, %v5665_v62 }
 0x3ea   :  { %v4982_v29 = vsel %vm3815_vm0, %v4950_v16, %v4870_v60  ;;  %5970 = vrot.lane.b32.xlu0 %v8425_v54, %s9266_s0  ;;  %v8361_v20 = vcombine.low %v5247_v6, %v5261_v35  ;;  %v6075_v2 = vrot.slane %v6073_v37, 1  ;;  %v7250_v45 = vshll.u32 %v12048_v46, 16  ;;  %v5649_v16 = vld [vmem:[#allocation2 + $0x5c] sm:$0x1] }
 0x3eb   :  { %v8349_v24 = vcombine.low %v4982_v29, %v4982_v29  ;;  %v8350_v19 = vcombine.high %v4982_v29, %v4982_v29  ;;  %v5263_v54 = vshrl.u32 %v8347_v58, 16  ;;  %v5266_v1 = vshll.u32 %v8347_v58, 16  ;;  %v3724_v48 = vpop.permute.xlu0 %3723  ;;  %v6693_v29 = vld [vmem:[#allocation2 + $0x78] sm:$0xe] }
 0x3ec   :  { %5972 = vrot.lane.b32.xlu1 %v8426_v49, %s9266_s0  ;;  %8921 = vmatprep.mubr.msk.bf16.mxu1 %vm3904_vm6, %v8361_v20  ;;  %v5272_v32 = vshll.u32 %v8348_v30, 16  ;;  %v3837_v52 = vsel %vm3815_vm0, %v3804_v28, %v3724_v48  ;;  %v6082_v60 = vrot.slane %v6080_v0, 1  ;;  %v7257_v58 = vshll.u32 %v12056_v36, 16  ;;  %v6674_v30 = vld [vmem:[#allocation2 + $0x7c] sm:$0x1] }
 0x3ed   :  { %v5277_v43 = vshrl.u32 %v8349_v24, 16  ;;  %v5280_v59 = vshll.u32 %v8349_v24, 16  ;;  %v3726_v49 = vpop.permute.xlu1 %3725  ;;  %v5265_v8 = vrot.slane %v5263_v54, 4  ;;  %v5268_v11 = vrot.slane %v5266_v1, 5  ;;  %v5635_v20 = vld [vmem:[#allocation2 + $0x68] sm:$0xf] }
 0x3ee   :  { %v3839_v15 = vsel %vm3815_vm0, %v3806_v38, %v3726_v49  ;;  %7117 = vrot.lane.b32.xlu0 %v8549_v44, %s9266_s0  ;;  %v5286_v26 = vshll.u32 %v8350_v19, 16  ;;  %v5681_v44 = vld [vmem:[#allocation2 + $0x4c] sm:$0x1]  ;;  %v5274_v56 = vrot.slane %v5272_v32, 5  ;;  %v6071_v24 = vshrl.u32 %v11938_v51, 16 }
 0x3ef   :  { %v5279_v5 = vrot.slane %v5277_v43, 4  ;;  %v5282_v40 = vrot.slane %v5280_v59, 5  ;;  %v8226_v61 = vcombine.low %v3837_v52, %v3839_v15  ;;  %v5269_v4 = vor.u32 %v5268_v11, %v5265_v8  ;;  %v12050_v22 = vpop.permute.xlu0 %6985  ;;  %v6676_v19 = vld [vmem:[#allocation2 + $0x84] sm:$0x1]  ;;  %v5634_v28 = vld [vmem:[#allocation2 + $0x60] sm:$0xf] }
 0x3f0   :  { %7119 = vrot.lane.b32.xlu1 %v8550_v13, %s9266_s0  ;;  %v5664_v13 = vld [vmem:[#allocation2 + $0x40] sm:$0xf]  ;;  %v5288_v25 = vrot.slane %v5286_v26, 5  ;;  %v12064_v14 = vcombine.low %v5665_v62, %v5681_v44  ;;  %v6078_v3 = vshrl.u32 %v11949_v12, 16  ;;  %v5650_v54 = vld [vmem:[#allocation2 + $0x64] sm:$0x1]  ;;  %v6076_v48 = vor.u32 %v6075_v2, %v6071_v24 }
 0x3f1   :  { %v5283_v42 = vor.u32 %v5282_v40, %v5279_v5  ;;  %v12058_v18 = vpop.permute.xlu1 %6987  ;;  %8898 = vmatmul.mubr.msk.bf16.gmra.mxu0 %vm3904_vm6, %v8226_v61  ;;  %v5270_v10 = vrot.slane %v5269_v4, 4  ;;  %v8427_v27 = vcombine.low %v5664_v13, %v5664_v13  ;;  %v12068_v7 = vcombine.low %v5664_v13, %v5680_v21  ;;  %v5636_v51 = vld [vmem:[#allocation2 + $0x70] sm:$0xf]  ;;  %v5652_v59 = vld [vmem:[#allocation2 + $0x74] sm:$0x1] }
 0x3f2   :  { %7305 = vrot.lane.b32.xlu0 %v7239_v57, %s9267_s15  ;;  %v6094_v63 = vshll.u32 %v12064_v14, 16  ;;  %v7252_v38 = vrot.slane %v7250_v45, 1  ;;  %v12087_v43 = vcombine.low %v6693_v29, %v6674_v30  ;;  %v6083_v23 = vor.u32 %v6082_v60, %v6078_v3  ;;  %v6649_v52 = vld [vmem:[#allocation2 + $0x8] sm:$0xf]  ;;  %v6651_v15 = vld [vmem:[#allocation2 + $0x10] sm:$0xf] }
 0x3f3   :  { %v5284_v9 = vrot.slane %v5283_v42, 4  ;;  %v5275_v6 = vsel %vm11389_vm5, %v5270_v10, %v5274_v56  ;;  %v6087_v32 = vshll.u32 %v12068_v7, 16  ;;  %v7259_v12 = vrot.slane %v7257_v58, 1  ;;  %v12101_v26 = vld [vmem:[#allocation2 + $0x18] sm:$0xf] }
 0x3f4   :  { %7307 = vrot.lane.b32.xlu1 %v7246_v55, %s9267_s15  ;;  %v12066_v53 = vpop.permute.xlu0 %6989  ;;  %v12091_v8 = vcombine.low %v6694_v41, %v6676_v19  ;;  %v12093_v11 = vcombine.low %v5633_v34, %v5649_v16  ;;  %v7248_v39 = vshrl.u32 %v12048_v46, 16  ;;  %v12097_v5 = vcombine.low %v5634_v28, %v5650_v54  ;;  %v12108_v44 = vld [vmem:[#allocation2 + $0x20] sm:$0xf]  ;;  %v9226_v13 = vld [vmem:[#allocation2 + $0xc] sm:$0x1] }
 0x3f5   :  { %v5289_v35 = vsel %vm11389_vm5, %v5284_v9, %v5288_v25  ;;  %v12099_v40 = vcombine.low %v5635_v20, %v5651_v47  ;;  %v7255_v61 = vshrl.u32 %v12056_v36, 16  ;;  %v6092_v62 = vshrl.u32 %v12064_v14, 16  ;;  %v6678_v56 = vld [vmem:[#allocation2 + $0x8c] sm:$0x1]  ;;  %v6695_v9 = vld [vmem:[#allocation2 + $0x88] sm:$0xe] }
 0x3f6   :  { %v12075_v50 = vpop.permute.xlu1 %6991  ;;  %5974 = vrot.lane.b32.xlu0 %v8427_v27, %s9266_s0  ;;  %v8362_v33 = vcombine.low %v5275_v6, %v5289_v35  ;;  %v6096_v4 = vrot.slane %v6094_v63, 1  ;;  %v12106_v57 = vcombine.low %v5636_v51, %v5652_v59  ;;  %v7253_v46 = vor.u32 %v7252_v38, %v7248_v39  ;;  %v9227_v25 = vld [vmem:[#allocation2 + $0x14] sm:$0x1]  ;;  %v12117_v27 = vld [vmem:[#allocation2 + $0x1c] sm:$0x1] }
 0x3f7   :  { %v6089_v42 = vrot.slane %v6087_v32, 1  ;;  %v6960_v55 = vshll.u32 %v12087_v43, 16  ;;  %v8507_v21 = vcombine.low %v6649_v52, %v9226_v13  ;;  %v7260_v10 = vor.u32 %v7259_v12, %v7255_v61  ;;  %v6680_v16 = vld [vmem:[#allocation2 + $0x94] sm:$0x1]  ;;  %v6696_v6 = vld [vmem:[#allocation2 + $0x90] sm:$0xe] }
 0x3f8   :  { %5976 = vrot.lane.b32.xlu1 %v8428_v31, %s9266_s0  ;;  %v12083_v1 = vpop.permute.xlu0 %7097  ;;  %8922 = vmatmul.mubr.msk.bf16.gmra.mxu1 %vm3904_vm6, %v8362_v33  ;;  %v6967_v36 = vshll.u32 %v12091_v8, 16  ;;  %v5829_v31 = vshll.u32 %v12093_v11, 16  ;;  %v8508_v14 = vcombine.low %v6651_v15, %v9227_v25  ;;  %v8509_v2 = vcombine.low %v12101_v26, %v12117_v27  ;;  %v12124_v35 = vld [vmem:[#allocation2 + $0x24] sm:$0x1] }
 0x3f9   :  { %v6085_v45 = vshrl.u32 %v12068_v7, 16  ;;  %v5836_v34 = vshll.u32 %v12097_v5, 16  ;;  %v8510_v60 = vcombine.low %v12108_v44, %v12124_v35  ;;  %v6097_v58 = vor.u32 %v6096_v4, %v6092_v62 }
 0x3fa   :  { %v12089_v49 = vpop.permute.xlu1 %7099  ;;  %6162 = vrot.lane.b32.xlu0 %v6076_v48, %s9267_s15  ;;  %v5843_v30 = vshll.u32 %v12099_v40, 16  ;;  %v5850_v29 = vshll.u32 %v12106_v57, 16  ;;  %v6962_v7 = vrot.slane %v6960_v55, 1  ;;  %v5827_v33 = vshrl.u32 %v12093_v11, 16 }
 0x3fb   :  { %v6090_v47 = vor.u32 %v6089_v42, %v6085_v45  ;;  %v12134_v24 = vcombine.low %v6695_v9, %v6678_v56  ;;  %v6969_v41 = vrot.slane %v6967_v36, 1  ;;  %v5831_v3 = vrot.slane %v5829_v31, 1 }
 0x3fc   :  { %6164 = vrot.lane.b32.xlu1 %v6083_v23, %s9267_s15  ;;  %v12110_v37 = vpop.permute.xlu0 %3535  ;;  %v5834_v63 = vshrl.u32 %v12097_v5, 16  ;;  %v12139_v28 = vcombine.low %v6696_v6, %v6680_v16  ;;  %v6958_v54 = vshrl.u32 %v12087_v43, 16  ;;  %v5838_v48 = vrot.slane %v5836_v34, 1 }
 0x3fd   :  { %v5841_v38 = vshrl.u32 %v12099_v40, 16  ;;  %v5848_v32 = vshrl.u32 %v12106_v57, 16  ;;  %v7323_v51 = vsel %vm936_vm15, %v8507_v21, %v12050_v22  ;;  %v6965_v59 = vshrl.u32 %v12091_v8, 16  ;;  %v12160_v57 = vld [vmem:[#allocation2 + $0x88] sm:$0xf] }
 0x3fe   :  { %v12113_v0 = vpop.permute.xlu1 %3537  ;;  %7309 = vrot.lane.b32.xlu0 %v7253_v46, %s9267_s15  ;;  %v5845_v23 = vrot.slane %v5843_v30, 1  ;;  %v5852_v12 = vrot.slane %v5850_v29, 1  ;;  %v7326_v11 = vsel %vm936_vm15, %v8508_v14, %v12058_v18  ;;  %v7370_v43 = vsel %vm1387_vm3, %v7323_v51, %v12083_v1  ;;  %v12162_v46 = vld [vmem:[#allocation2 + $0x8c] sm:$0x1] }
 0x3ff   :  { %v6963_v15 = vor.u32 %v6962_v7, %v6958_v54  ;;  %v6974_v39 = vshll.u32 %v12134_v24, 16  ;;  %v7372_v5 = vsel %vm1387_vm3, %v7326_v11, %v12089_v49  ;;  %v6970_v61 = vor.u32 %v6969_v41, %v6965_v59  ;;  %v9230_v41 = vld [vmem:[#allocation2 + $0x70] sm:$0xf]  ;;  %v9231_v54 = vld [vmem:[#allocation2 + $0x78] sm:$0xf] }
 0x400   :  { %7311 = vrot.lane.b32.xlu1 %v7260_v10, %s9267_s15  ;;  %v12131_v20 = vpop.permute.xlu0 %7101  ;;  %v6981_v8 = vshll.u32 %v12139_v28, 16  ;;  %v5832_v18 = vor.u32 %v5831_v3, %v5827_v33  ;;  %v5839_v1 = vor.u32 %v5838_v48, %v5834_v63  ;;  %v12165_v13 = vor.u32 %v5845_v23, %v5841_v38  ;;  %v13138_v3 = vld [vmem:[#allocation28_spill] sm:$0xff]  ;;  %v13139_v48 = vld [vmem:[#allocation3_spill] sm:$0xff] }
 0x401   :  { %v6976_v31 = vrot.slane %v6974_v39, 1  ;;  %v12169_v56 = vor.u32 %v5852_v12, %v5848_v32  ;;  %v8552_v34 = vcombine.low %v12160_v57, %v12162_v46  ;;  %v6979_v30 = vshrl.u32 %v12139_v28, 16 }
 0x402   :  { %v12136_v19 = vpop.permute.xlu1 %7103  ;;  %6166 = vrot.lane.b32.xlu0 %v6090_v47, %s9267_s15  ;;  %v6983_v45 = vrot.slane %v6981_v8, 1  ;;  %v3773_v63 = vsel %vm936_vm15, %v9230_v41, %v13138_v3  ;;  %v3776_v38 = vsel %vm936_vm15, %v9231_v54, %v13139_v48  ;;  %v7329_v39 = vsel %vm936_vm15, %v8509_v2, %v12066_v53  ;;  %v6741_v2 = vld [vmem:[#allocation2 + $0x80] sm:$0xe] }
 0x403   :  { %v3810_v28 = vsel %vm1387_vm3, %v3776_v38, %v12113_v0  ;;  %v7332_v26 = vsel %vm936_vm15, %v8510_v60, %v12075_v50  ;;  %v7374_v53 = vsel %vm1387_vm3, %v7329_v39, %v12131_v20  ;;  %v6726_v39 = vld [vmem:[#allocation2 + $0x94] sm:$0x1] }
 0x404   :  { %6168 = vrot.lane.b32.xlu1 %v6097_v58, %s9267_s15  ;;  %v7290_v52 = vpop.permute.xlu0 %7289  ;;  %v6972_v58 = vshrl.u32 %v12134_v24, 16  ;;  %v3808_v24 = vsel %vm1387_vm3, %v3773_v63, %v12110_v37  ;;  %v6984_v11 = vor.u32 %v6983_v45, %v6979_v30 }
 0x405   :  { %v7402_v22 = vsel %vm3815_vm0, %v7370_v43, %v7290_v52  ;;  %v6721_v43 = vld [vmem:[#allocation2 + $0x80] sm:$0xf]  ;;  %v6722_v52 = vld [vmem:[#allocation2 + $0x84] sm:$0x1] }
 0x406   :  { %v7292_v40 = vpop.permute.xlu1 %7291  ;;  %v8571_v62 = vcombine.low %v7402_v22, %v7402_v22  ;;  %7009 = vrot.lane.b32.xlu0 %v6963_v15, %s9263_s7  ;;  %v8572_v42 = vcombine.high %v7402_v22, %v7402_v22  ;;  %v6977_v59 = vor.u32 %v6976_v31, %v6972_v58  ;;  %v6742_v15 = vld [vmem:[#allocation2 + $0x88] sm:$0xe] }
 0x407   :  { %v7404_v4 = vsel %vm3815_vm0, %v7372_v5, %v7292_v40  ;;  %v9233_v31 = vld [vmem:[#allocation2 + $0x88] sm:$0xf] }
 0x408   :  { %v8573_v55 = vcombine.low %v7404_v4, %v7404_v4  ;;  %v8574_v49 = vcombine.high %v7404_v4, %v7404_v4  ;;  %7011 = vrot.lane.b32.xlu1 %v6970_v61, %s9263_s7  ;;  %v7514_v21 = vshrl.u32 %v8571_v62, 16  ;;  %v7517_v10 = vshll.u32 %v8571_v62, 16  ;;  %v12167_v36 = vpop.permute.xlu0 %3539 }
 0x409   :  { %v7523_v29 = vshll.u32 %v8572_v42, 16  ;;  %v8551_v62 = vcombine.low %v6721_v43, %v6722_v52  ;;  %v12204_v4 = vcombine.low %v6742_v15, %v12162_v46  ;;  %v9232_v42 = vld [vmem:[#allocation2 + $0x80] sm:$0xf]  ;;  %v6725_v15 = vld [vmem:[#allocation2 + $0x90] sm:$0xf] }
 0x40a   :  { %v7528_v9 = vshrl.u32 %v8573_v55, 16  ;;  %v7531_v25 = vshll.u32 %v8573_v55, 16  ;;  %v12171_v14 = vpop.permute.xlu1 %3541  ;;  %v7516_v16 = vrot.slane %v7514_v21, 4  ;;  %v7519_v6 = vrot.slane %v7517_v10, 5  ;;  %5898 = vrot.lane.b32.xlu0 %v5832_v18, %s9263_s7 }
 0x40b   :  { %v7537_v33 = vshll.u32 %v8574_v49, 16  ;;  %v7525_v0 = vrot.slane %v7523_v29, 5  ;;  %v7376_v18 = vsel %vm1387_vm3, %v7332_v26, %v12136_v19  ;;  %v13140_v19 = vld [vmem:[#allocation8_spill] sm:$0xff]  ;;  %v12218_v10 = vcombine.low %v6741_v2, %v6722_v52 }
 0x40c   :  { %v7530_v47 = vrot.slane %v7528_v9, 4  ;;  %v7533_v7 = vrot.slane %v7531_v25, 5  ;;  %5900 = vrot.lane.b32.xlu1 %v5839_v1, %s9263_s7  ;;  %v7520_v32 = vor.u32 %v7519_v6, %v7516_v16  ;;  %v3728_v51 = vpop.permute.xlu0 %3727  ;;  %v3779_v55 = vsel %vm936_vm15, %v9232_v42, %v13140_v19  ;;  %v13141_v9 = vld [vmem:[#allocation20_spill] sm:$0xff] }
 0x40d   :  { %v3841_v22 = vsel %vm3815_vm0, %v3808_v24, %v3728_v51  ;;  %v7539_v61 = vrot.slane %v7537_v33, 5  ;;  %v3782_v25 = vsel %vm936_vm15, %v9233_v31, %v13141_v9  ;;  %v3812_v45 = vsel %vm1387_vm3, %v3779_v55, %v12167_v36  ;;  %v5667_v36 = vld [vmem:[#allocation2 + $0x68] sm:$0xf] }
 0x40e   :  { %v7534_v23 = vor.u32 %v7533_v7, %v7530_v47  ;;  %v3730_v12 = vpop.permute.xlu1 %3729  ;;  %v7521_v5 = vrot.slane %v7520_v32, 4  ;;  %7013 = vrot.lane.b32.xlu0 %v6977_v59, %s9263_s7  ;;  %v3814_v30 = vsel %vm1387_vm3, %v3782_v25, %v12171_v14  ;;  %v5682_v14 = vld [vmem:[#allocation2 + $0x64] sm:$0x1] }
 0x40f   :  { %v3843_v37 = vsel %vm3815_vm0, %v3810_v28, %v3730_v12  ;;  %v6728_v12 = vld [vmem:[#allocation2 + $0x9c] sm:$0x1] }
 0x410   :  { %v7535_v40 = vrot.slane %v7534_v23, 4  ;;  %v8227_v8 = vcombine.low %v3841_v22, %v3843_v37  ;;  %7015 = vrot.lane.b32.xlu1 %v6984_v11, %s9263_s7  ;;  %v7294_v27 = vpop.permute.xlu0 %7293  ;;  %v7526_v1 = vsel %vm11389_vm5, %v7521_v5, %v7525_v0  ;;  %v6727_v23 = vld [vmem:[#allocation2 + $0x98] sm:$0xf]  ;;  %v7264_v11 = vshll.u32 %v12218_v10, 16  ;;  %v5683_v22 = vld [vmem:[#allocation2 + $0x6c] sm:$0x1] }
 0x411   :  { %v7406_v50 = vsel %vm3815_vm0, %v7374_v53, %v7294_v27  ;;  %v7271_v5 = vshll.u32 %v12204_v4, 16  ;;  %v8553_v53 = vcombine.low %v6725_v15, %v6726_v39  ;;  %v6744_v27 = vld [vmem:[#allocation2 + $0x98] sm:$0xe] }
 0x412   :  { %v7540_v44 = vsel %vm11389_vm5, %v7535_v40, %v7539_v61  ;;  %v7296_v35 = vpop.permute.xlu1 %7295  ;;  %8901 = vmatprep.mubr.msk.bf16.mxu0 %vm3904_vm6, %v8227_v8  ;;  %v8575_v60 = vcombine.low %v7406_v50, %v7406_v50  ;;  %v8576_v20 = vcombine.high %v7406_v50, %v7406_v50  ;;  %7121 = vrot.lane.b32.xlu0 %v8551_v62, %s9266_s0  ;;  %v7266_v2 = vrot.slane %v7264_v11, 1  ;;  %v6743_v50 = vld [vmem:[#allocation2 + $0x90] sm:$0xe] }
 0x413   :  { %v7408_v57 = vsel %vm3815_vm0, %v7376_v18, %v7296_v35  ;;  %v8607_v46 = vcombine.low %v7526_v1, %v7540_v44  ;;  %v8554_v61 = vcombine.low %v6727_v23, %v6728_v12  ;;  %v8446_v1 = vcombine.low %v5667_v36, %v5683_v22 }
 0x414   :  { %v8577_v49 = vcombine.low %v7408_v57, %v7408_v57  ;;  %v8578_v21 = vcombine.high %v7408_v57, %v7408_v57  ;;  %7123 = vrot.lane.b32.xlu1 %v8552_v34, %s9266_s0  ;;  %v7542_v16 = vshrl.u32 %v8575_v60, 16  ;;  %v7545_v6 = vshll.u32 %v8575_v60, 16  ;;  %v3732_v58 = vpop.permute.xlu0 %3731  ;;  %v5666_v34 = vld [vmem:[#allocation2 + $0x60] sm:$0xf] }
 0x415   :  { %8949 = vmatprep.mubr.msk.bf16.mxu1 %vm3904_vm6, %v8607_v46  ;;  %v7551_v29 = vshll.u32 %v8576_v20, 16  ;;  %v3845_v63 = vsel %vm3815_vm0, %v3812_v45, %v3732_v58  ;;  %v8429_v28 = vcombine.low %v5666_v34, %v5666_v34  ;;  %v8445_v8 = vcombine.low %v5666_v34, %v5682_v14  ;;  %v5669_v45 = vld [vmem:[#allocation2 + $0x78] sm:$0xf]  ;;  %v5653_v58 = vld [vmem:[#allocation2 + $0x7c] sm:$0x1] }
 0x416   :  { %v7556_v47 = vshrl.u32 %v8577_v49, 16  ;;  %v7559_v7 = vshll.u32 %v8577_v49, 16  ;;  %v3734_v33 = vpop.permute.xlu1 %3733  ;;  %v7544_v41 = vrot.slane %v7542_v16, 4  ;;  %v7547_v3 = vrot.slane %v7545_v6, 5  ;;  %5902 = vrot.lane.b32.xlu0 %v12165_v13, %s9263_s7  ;;  %v5668_v49 = vld [vmem:[#allocation2 + $0x70] sm:$0xf] }
 0x417   :  { %v3847_v54 = vsel %vm3815_vm0, %v3814_v30, %v3734_v33  ;;  %v7565_v32 = vshll.u32 %v8578_v21, 16  ;;  %v8430_v13 = vcombine.low %v5667_v36, %v5667_v36  ;;  %v7553_v37 = vrot.slane %v7551_v29, 5  ;;  %v5684_v21 = vld [vmem:[#allocation2 + $0x74] sm:$0x1]  ;;  %v5685_v16 = vld [vmem:[#allocation2 + $0x7c] sm:$0x1] }
 0x418   :  { %v7558_v48 = vrot.slane %v7556_v47, 4  ;;  %v7561_v38 = vrot.slane %v7559_v7, 5  ;;  %v8228_v51 = vcombine.low %v3845_v63, %v3847_v54  ;;  %5904 = vrot.lane.b32.xlu1 %v12169_v56, %s9263_s7  ;;  %v7548_v59 = vor.u32 %v7547_v3, %v7544_v41  ;;  %v12234_v24 = vpop.permute.xlu0 %6993  ;;  %v5637_v6 = vld [vmem:[#allocation2 + $0x78] sm:$0xf]  ;;  %v5638_v29 = vld [vmem:[#allocation2 + $0x80] sm:$0xf] }
 0x419   :  { %v7567_v40 = vrot.slane %v7565_v32, 5  ;;  %v7273_v35 = vrot.slane %v7271_v5, 1  ;;  %v7262_v20 = vshrl.u32 %v12218_v10, 16  ;;  %v8570_v57 = vcombine.low %v6744_v27, %v6728_v12  ;;  %v5654_v47 = vld [vmem:[#allocation2 + $0x84] sm:$0x1] }
 0x41a   :  { %v7562_v43 = vor.u32 %v7561_v38, %v7558_v48  ;;  %v12237_v52 = vpop.permute.xlu1 %6995  ;;  %8902 = vmatmul.mubr.msk.bf16.gmra.mxu0 %vm3904_vm6, %v8228_v51  ;;  %v7549_v56 = vrot.slane %v7548_v59, 4  ;;  %5978 = vrot.lane.b32.xlu0 %v8429_v28, %s9266_s0  ;;  %v7269_v46 = vshrl.u32 %v12204_v4, 16  ;;  %v8569_v42 = vcombine.low %v6743_v50, %v6726_v39  ;;  %v5639_v63 = vld [vmem:[#allocation2 + $0x88] sm:$0xf]  ;;  %v5655_v54 = vld [vmem:[#allocation2 + $0x8c] sm:$0x1] }
 0x41b   :  { %v7267_v55 = vor.u32 %v7266_v2, %v7262_v20  ;;  %v6101_v31 = vshll.u32 %v8445_v8, 16  ;;  %v6108_v10 = vshll.u32 %v8446_v1, 16  ;;  %v8431_v4 = vcombine.low %v5668_v49, %v5668_v49  ;;  %v6659_v27 = vld [vmem:[#allocation2 + $0x30] sm:$0xf]  ;;  %v12289_v2 = vld [vmem:[#allocation2 + $0x40] sm:$0xf] }
 0x41c   :  { %v7563_v0 = vrot.slane %v7562_v43, 4  ;;  %5980 = vrot.lane.b32.xlu1 %v8430_v13, %s9266_s0  ;;  %v12243_v26 = vpop.permute.xlu0 %5882  ;;  %v7554_v62 = vsel %vm11389_vm5, %v7549_v56, %v7553_v37  ;;  %v7274_v25 = vor.u32 %v7273_v35, %v7269_v46  ;;  %v7285_v30 = vshll.u32 %v8570_v57, 16  ;;  %v5640_v37 = vld [vmem:[#allocation2 + $0x90] sm:$0xf]  ;;  %v5686_v46 = vld [vmem:[#allocation2 + $0x84] sm:$0x1] }
 0x41d   :  { %v12264_v33 = vcombine.low %v5668_v49, %v5684_v21  ;;  %v12266_v34 = vcombine.low %v5669_v45, %v5685_v16  ;;  %v6103_v41 = vrot.slane %v6101_v31, 1  ;;  %v7278_v3 = vshll.u32 %v8569_v42, 16  ;;  %v12302_v16 = vld [vmem:[#allocation2 + $0x3c] sm:$0x1] }
 0x41e   :  { %v7568_v18 = vsel %vm11389_vm5, %v7563_v0, %v7567_v40  ;;  %v12249_v44 = vpop.permute.xlu1 %5884  ;;  %7125 = vrot.lane.b32.xlu0 %v8553_v53, %s9266_s0  ;;  %v8432_v48 = vcombine.low %v5669_v45, %v5669_v45  ;;  %v6110_v38 = vrot.slane %v6108_v10, 1  ;;  %v12270_v32 = vcombine.low %v5637_v6, %v5653_v58  ;;  %v5656_v0 = vld [vmem:[#allocation2 + $0x94] sm:$0x1]  ;;  %v6657_v40 = vld [vmem:[#allocation2 + $0x28] sm:$0xf] }
 0x41f   :  { %v8608_v60 = vcombine.low %v7554_v62, %v7568_v18  ;;  %v6099_v51 = vshrl.u32 %v8445_v8, 16  ;;  %v12273_v14 = vcombine.low %v5638_v29, %v5654_v47  ;;  %v6106_v59 = vshrl.u32 %v8446_v1, 16  ;;  %v12310_v29 = vld [vmem:[#allocation2 + $0x44] sm:$0x1] }
 0x420   :  { %7127 = vrot.lane.b32.xlu1 %v8554_v61, %s9266_s0  ;;  %v12255_v19 = vpop.permute.xlu0 %6997  ;;  %v7283_v28 = vshrl.u32 %v8570_v57, 16  ;;  %v7287_v23 = vrot.slane %v7285_v30, 1  ;;  %v12276_v12 = vcombine.low %v5639_v63, %v5655_v54  ;;  %v7280_v13 = vrot.slane %v7278_v3, 1  ;;  %v12285_v61 = vld [vmem:[#allocation2 + $0x38] sm:$0xf] }
 0x421   :  { %8950 = vmatmul.mubr.msk.bf16.vlgmr.msra.gmra.mxu1 %vm3904_vm6, %v8608_v60  ;;  %v6104_v43 = vor.u32 %v6103_v41, %v6099_v51  ;;  %v6115_v15 = vshll.u32 %v12264_v33, 16  ;;  %v6122_v39 = vshll.u32 %v12266_v34, 16  ;;  %v6111_v56 = vor.u32 %v6110_v38, %v6106_v59  ;;  %v12297_v57 = vld [vmem:[#allocation2 + $0x80] sm:$0xf]  ;;  %v5687_v30 = vld [vmem:[#allocation2 + $0x8c] sm:$0x1] }
 0x422   :  { %v12258_v9 = vpop.permute.xlu1 %6999  ;;  %7313 = vrot.lane.b32.xlu0 %v7267_v55, %s9267_s15  ;;  %v5857_v22 = vshll.u32 %v12270_v32, 16  ;;  %v7276_v8 = vshrl.u32 %v8569_v42, 16  ;;  %v5864_v53 = vshll.u32 %v12273_v14, 16  ;;  %v7288_v62 = vor.u32 %v7287_v23, %v7283_v28  ;;  %v9234_v42 = vld [vmem:[#allocation2 + $0x2c] sm:$0x1] }
 0x423   :  { %v5871_v18 = vshll.u32 %v12276_v12, 16  ;;  %v6117_v35 = vrot.slane %v6115_v15, 1  ;;  %v6124_v60 = vrot.slane %v6122_v39, 1  ;;  %v12295_v20 = vcombine.low %v5640_v37, %v5656_v0  ;;  %v12319_v63 = vld [vmem:[#allocation2 + $0x90] sm:$0xf] }
 0x424   :  { %7315 = vrot.lane.b32.xlu1 %v7274_v25, %s9267_s15  ;;  %v12262_v7 = vpop.permute.xlu0 %7105  ;;  %v7281_v50 = vor.u32 %v7280_v13, %v7276_v8  ;;  %v8511_v55 = vcombine.low %v6657_v40, %v9234_v42  ;;  %v6113_v21 = vshrl.u32 %v12264_v33, 16  ;;  %v5859_v31 = vrot.slane %v5857_v22, 1  ;;  %v9235_v25 = vld [vmem:[#allocation2 + $0x34] sm:$0x1]  ;;  %v5689_v22 = vld [vmem:[#allocation2 + $0x9c] sm:$0x1] }
 0x425   :  { %v8512_v45 = vcombine.low %v6659_v27, %v9235_v25  ;;  %v8513_v10 = vcombine.low %v12285_v61, %v12302_v16  ;;  %v6120_v6 = vshrl.u32 %v12266_v34, 16  ;;  %v5866_v58 = vrot.slane %v5864_v53, 1  ;;  %v5688_v34 = vld [vmem:[#allocation2 + $0x94] sm:$0x1] }
 0x426   :  { %v12268_v36 = vpop.permute.xlu1 %7107  ;;  %5982 = vrot.lane.b32.xlu0 %v8431_v4, %s9266_s0  ;;  %v12308_v4 = vld [vmem:[#allocation2 + $0x88] sm:$0xf]  ;;  %v8514_v47 = vcombine.low %v12289_v2, %v12310_v29  ;;  %v5855_v33 = vshrl.u32 %v12270_v32, 16  ;;  %v5873_v41 = vrot.slane %v5871_v18, 1  ;;  %v12317_v3 = vcombine.low %v12297_v57, %v5686_v46  ;;  %v12350_v18 = vld [vmem:[#allocation2 + $0x98] sm:$0xf] }
 0x427   :  { %v6125_v38 = vor.u32 %v6124_v60, %v6120_v6  ;;  %v5862_v51 = vshrl.u32 %v12273_v14, 16  ;;  %v5878_v59 = vshll.u32 %v12295_v20, 16  ;;  %v5869_v32 = vshrl.u32 %v12276_v12, 16 }
 0x428   :  { %5984 = vrot.lane.b32.xlu1 %v8432_v48, %s9266_s0  ;;  %v12278_v11 = vpop.permute.xlu0 %5886  ;;  %v6118_v48 = vor.u32 %v6117_v35, %v6113_v21  ;;  %v5860_v23 = vor.u32 %v5859_v31, %v5855_v33  ;;  %v12331_v13 = vcombine.low %v12308_v4, %v5687_v30  ;;  %v5876_v39 = vshrl.u32 %v12295_v20, 16 }
 0x429   :  { %v5867_v15 = vor.u32 %v5866_v58, %v5862_v51  ;;  %v8434_v14 = vcombine.low %v12308_v4, %v12308_v4  ;;  %v7335_v12 = vsel %vm936_vm15, %v8511_v55, %v12234_v24  ;;  %v5874_v37 = vor.u32 %v5873_v41, %v5869_v32 }
 0x42a   :  { %v12282_v5 = vpop.permute.xlu1 %5888  ;;  %6170 = vrot.lane.b32.xlu0 %v6104_v43, %s9267_s15  ;;  %v8433_v43 = vcombine.low %v12297_v57, %v12297_v57  ;;  %v8435_v0 = vcombine.low %v12319_v63, %v12319_v63  ;;  %v6127_v40 = vshrl.u32 %v12317_v3, 16  ;;  %v7338_v8 = vsel %vm936_vm15, %v8512_v45, %v12237_v52 }
 0x42b   :  { %v7378_v53 = vsel %vm1387_vm3, %v7335_v12, %v12262_v7  ;;  %v6129_v24 = vshll.u32 %v12317_v3, 16  ;;  %v12357_v20 = vcombine.low %v12350_v18, %v5689_v22  ;;  %v6136_v52 = vshll.u32 %v12331_v13, 16  ;;  %v9238_v12 = vld [vmem:[#allocation2 + $0x8] sm:$0xf] }
 0x42c   :  { %6172 = vrot.lane.b32.xlu1 %v6111_v56, %s9267_s15  ;;  %v12293_v1 = vpop.permute.xlu0 %5962  ;;  %v12338_v56 = vcombine.low %v12319_v63, %v5688_v34  ;;  %v6134_v42 = vshrl.u32 %v12331_v13, 16  ;;  %v8436_v32 = vcombine.low %v12350_v18, %v12350_v18  ;;  %v9241_v63 = vld [vmem:[#allocation2 + $0x18] sm:$0xf] }
 0x42d   :  { %v6131_v33 = vrot.slane %v6129_v24, 1  ;;  %v6150_v51 = vshll.u32 %v12357_v20, 16  ;;  %v6148_v24 = vshrl.u32 %v12357_v20, 16 }
 0x42e   :  { %v12299_v49 = vpop.permute.xlu1 %5964  ;;  %7317 = vrot.lane.b32.xlu0 %v7281_v50, %s9267_s15  ;;  %v7380_v50 = vsel %vm1387_vm3, %v7338_v8, %v12268_v36  ;;  %v6143_v55 = vshll.u32 %v12338_v56, 16  ;;  %v6141_v25 = vshrl.u32 %v12338_v56, 16  ;;  %v6188_v8 = vsel %vm936_vm15, %v9238_v12, %v12243_v26 }
 0x42f   :  { %v6235_v18 = vsel %vm1387_vm3, %v6188_v8, %v12293_v1  ;;  %v7341_v26 = vsel %vm936_vm15, %v8513_v10, %v12255_v19  ;;  %v7344_v19 = vsel %vm936_vm15, %v8514_v47, %v12258_v9  ;;  %v6132_v16 = vor.u32 %v6131_v33, %v6127_v40 }
 0x430   :  { %7319 = vrot.lane.b32.xlu1 %v7288_v62, %s9267_s15  ;;  %v12321_v54 = vpop.permute.xlu0 %7109  ;;  %v5880_v62 = vrot.slane %v5878_v59, 1  ;;  %v6145_v13 = vrot.slane %v6143_v55, 1 }
 0x431   :  { %v7382_v61 = vsel %vm1387_vm3, %v7341_v26, %v12321_v54 }
 0x432   :  { %v12325_v28 = vpop.permute.xlu1 %7111  ;;  %6174 = vrot.lane.b32.xlu0 %v6118_v48, %s9267_s15  ;;  %v5881_v30 = vor.u32 %v5880_v62, %v5876_v39  ;;  %v6146_v54 = vor.u32 %v6145_v13, %v6141_v25 }
 0x434   :  { %6176 = vrot.lane.b32.xlu1 %v6125_v38, %s9267_s15  ;;  %v7298_v27 = vpop.permute.xlu0 %7297  ;;  %v6138_v38 = vrot.slane %v6136_v52, 1  ;;  %v6152_v52 = vrot.slane %v6150_v51, 1 }
 0x435   :  { %v7410_v35 = vsel %vm3815_vm0, %v7378_v53, %v7298_v27  ;;  %v9239_v53 = vld [vmem:[#allocation2 + $0x10] sm:$0xf] }
 0x436   :  { %v7300_v60 = vpop.permute.xlu1 %7299  ;;  %v8579_v46 = vcombine.low %v7410_v35, %v7410_v35  ;;  %5906 = vrot.lane.b32.xlu0 %v5860_v23, %s9263_s7  ;;  %v8580_v21 = vcombine.high %v7410_v35, %v7410_v35  ;;  %v6191_v27 = vsel %vm936_vm15, %v9239_v53, %v12249_v44  ;;  %v6139_v10 = vor.u32 %v6138_v38, %v6134_v42 }
 0x437   :  { %v7412_v7 = vsel %vm3815_vm0, %v7380_v50, %v7300_v60  ;;  %v6237_v50 = vsel %vm1387_vm3, %v6191_v27, %v12299_v49  ;;  %v6153_v42 = vor.u32 %v6152_v52, %v6148_v24 }
 0x438   :  { %v8581_v31 = vcombine.low %v7412_v7, %v7412_v7  ;;  %v8582_v36 = vcombine.high %v7412_v7, %v7412_v7  ;;  %5908 = vrot.lane.b32.xlu1 %v5867_v15, %s9263_s7  ;;  %v7570_v45 = vshrl.u32 %v8579_v46, 16  ;;  %v7573_v6 = vshll.u32 %v8579_v46, 16  ;;  %v12366_v58 = vpop.permute.xlu0 %5966 }
 0x439   :  { %v7579_v15 = vshll.u32 %v8580_v21, 16  ;;  %v9240_v21 = vld [vmem:[#allocation2 + $0x20] sm:$0xf] }
 0x43a   :  { %v7584_v41 = vshrl.u32 %v8581_v31, 16  ;;  %v7587_v34 = vshll.u32 %v8581_v31, 16  ;;  %v12368_v48 = vpop.permute.xlu1 %5968  ;;  %v7572_v59 = vrot.slane %v7570_v45, 4  ;;  %v7575_v23 = vrot.slane %v7573_v6, 5  ;;  %5910 = vrot.lane.b32.xlu0 %v5874_v37, %s9263_s7 }
 0x43b   :  { %v7593_v39 = vshll.u32 %v8582_v36, 16  ;;  %v7581_v1 = vrot.slane %v7579_v15, 5  ;;  %v6197_v31 = vsel %vm936_vm15, %v9240_v21, %v12282_v5 }
 0x43c   :  { %v7586_v56 = vrot.slane %v7584_v41, 4  ;;  %v7589_v22 = vrot.slane %v7587_v34, 5  ;;  %5912 = vrot.lane.b32.xlu1 %v5881_v30, %s9263_s7  ;;  %v7576_v62 = vor.u32 %v7575_v23, %v7572_v59  ;;  %v6155_v37 = vpop.permute.xlu0 %6154  ;;  %v6241_v25 = vsel %vm1387_vm3, %v6197_v31, %v12368_v48 }
 0x43d   :  { %v6267_v46 = vsel %vm3815_vm0, %v6235_v18, %v6155_v37  ;;  %v7595_v7 = vrot.slane %v7593_v39, 5 }
 0x43e   :  { %v7590_v35 = vor.u32 %v7589_v22, %v7586_v56  ;;  %v6157_v60 = vpop.permute.xlu1 %6156  ;;  %v7577_v44 = vrot.slane %v7576_v62, 4  ;;  %5986 = vrot.lane.b32.xlu0 %v8433_v43, %s9266_s0  ;;  %v7384_v43 = vsel %vm1387_vm3, %v7344_v19, %v12325_v28 }
 0x43f   :  { %v6269_v20 = vsel %vm3815_vm0, %v6237_v50, %v6157_v60 }
 0x440   :  { %v7591_v49 = vrot.slane %v7590_v35, 4  ;;  %v8457_v55 = vcombine.low %v6267_v46, %v6269_v20  ;;  %5988 = vrot.lane.b32.xlu1 %v8434_v14, %s9266_s0  ;;  %v7302_v57 = vpop.permute.xlu0 %7301  ;;  %v7582_v4 = vsel %vm11389_vm5, %v7577_v44, %v7581_v1 }
 0x441   :  { %v7414_v2 = vsel %vm3815_vm0, %v7382_v61, %v7302_v57 }
 0x442   :  { %v7596_v14 = vsel %vm11389_vm5, %v7591_v49, %v7595_v7  ;;  %v7304_v9 = vpop.permute.xlu1 %7303  ;;  %8929 = vmatprep.mubr.msk.bf16.mxu0 %vm3904_vm6, %v8457_v55  ;;  %v8583_v29 = vcombine.low %v7414_v2, %v7414_v2  ;;  %5990 = vrot.lane.b32.xlu0 %v8435_v0, %s9266_s0  ;;  %v8584_v36 = vcombine.high %v7414_v2, %v7414_v2 }
 0x443   :  { %v7416_v47 = vsel %vm3815_vm0, %v7384_v43, %v7304_v9  ;;  %v8609_v3 = vcombine.low %v7582_v4, %v7596_v14  ;;  %v6194_v0 = vsel %vm936_vm15, %v9241_v63, %v12278_v11 }
 0x444   :  { %v8585_v28 = vcombine.low %v7416_v47, %v7416_v47  ;;  %v8586_v40 = vcombine.high %v7416_v47, %v7416_v47  ;;  %5992 = vrot.lane.b32.xlu1 %v8436_v32, %s9266_s0  ;;  %v7598_v45 = vshrl.u32 %v8583_v29, 16  ;;  %v7601_v6 = vshll.u32 %v8583_v29, 16  ;;  %v6159_v30 = vpop.permute.xlu0 %6158 }
 0x445   :  { %8953 = vmatprep.mubr.msk.bf16.mxu1 %vm3904_vm6, %v8609_v3  ;;  %v6239_v38 = vsel %vm1387_vm3, %v6194_v0, %v12366_v58  ;;  %v8911_v59 = vpop.f32.mrf.mxu1  ;;  %v7607_v56 = vshll.u32 %v8584_v36, 16  ;;  %v6669_v0 = vld [vmem:[#allocation2 + $0x68] sm:$0xf] }
 0x446   :  { %v7612_v33 = vshrl.u32 %v8585_v28, 16  ;;  %v7615_v41 = vshll.u32 %v8585_v28, 16  ;;  %v6161_v34 = vpop.permute.xlu1 %6160  ;;  %v7600_v5 = vrot.slane %v7598_v45, 4  ;;  %v7603_v51 = vrot.slane %v7601_v6, 5  ;;  %6178 = vrot.lane.b32.xlu0 %v6132_v16, %s9267_s15  ;;  %v6665_v6 = vld [vmem:[#allocation2 + $0x58] sm:$0xf] }
 0x447   :  { %v6273_v23 = vsel %vm3815_vm0, %v6241_v25, %v6161_v34  ;;  %v7621_v15 = vshll.u32 %v8586_v40, 16  ;;  %v6271_v11 = vsel %vm3815_vm0, %v6239_v38, %v6159_v30  ;;  %v8691_v22 = vpack.c.bf16 %v8911_v59, %v8911_v59  ;;  %v5389_v12 = vpop.f32.mrf.mxu1  ;;  %v6667_v30 = vld [vmem:[#allocation2 + $0x60] sm:$0xf]  ;;  %v9243_v38 = vld [vmem:[#allocation2 + $0x64] sm:$0x1] }
 0x448   :  { %v7614_v32 = vrot.slane %v7612_v33, 4  ;;  %v7617_v13 = vrot.slane %v7615_v41, 5  ;;  %6180 = vrot.lane.b32.xlu1 %v6139_v10, %s9267_s15  ;;  %v7604_v48 = vor.u32 %v7603_v51, %v7600_v5  ;;  %v8458_v39 = vcombine.low %v6271_v11, %v6273_v23  ;;  %v12435_v58 = vpop.permute.xlu0 %7001  ;;  %v6671_v33 = vld [vmem:[#allocation2 + $0x70] sm:$0xf]  ;;  %v9242_v41 = vld [vmem:[#allocation2 + $0x5c] sm:$0x1] }
 0x449   :  { %v8689_v53 = vpack.c.bf16 %v5389_v12, %v5389_v12  ;;  %8391 = vst.msk [vmem:[%s13041_s3 + $0x48] sm:$0xf] %vm4182_vm7, %v8691_v22  ;;  %v8912_v37 = vpop.f32.mrf.mxu1  ;;  %v7623_v18 = vrot.slane %v7621_v15, 5  ;;  %v5490_v50 = vmul.f32 %v5389_v12, %v5389_v12  ;;  %v7609_v35 = vrot.slane %v7607_v56, 5  ;;  %v9244_v51 = vld [vmem:[#allocation2 + $0x6c] sm:$0x1] }
 0x44a   :  { %v7618_v8 = vor.u32 %v7617_v13, %v7614_v32  ;;  %v7004_v27 = vpop.permute.xlu1 %7003  ;;  %v7605_v62 = vrot.slane %v7604_v48, 4  ;;  %6182 = vrot.lane.b32.xlu0 %v6146_v54, %s9267_s15  ;;  %8930 = vmatmul.mubr.msk.bf16.vlgmr.msra.gmra.mxu0 %vm3904_vm6, %v8458_v39  ;;  %v5492_v60 = vmul.f32 %v8911_v59, %v8911_v59  ;;  %v8692_v52 = vpack.c.bf16 %v8912_v37, %v8912_v37  ;;  %v9245_v15 = vld [vmem:[#allocation2 + $0x74] sm:$0x1]  ;;  %v9246_v22 = vld [vmem:[#allocation2 + $0x28] sm:$0xf] }
 0x44b   :  { %8389 = vst.msk [vmem:[%s13041_s3 + $0x40] sm:$0xf] %vm4182_vm7, %v8689_v53  ;;  %v5392_v26 = vpop.f32.mrf.mxu1  ;;  %v5452_v20 = vsel %vm903_vm14, %v5389_v12, 0.0  ;;  %v5455_v19 = vsel %vm903_vm14, %v8911_v59, 0.0  ;;  %v5506_v16 = vsel %vm903_vm14, %v5490_v50, 0.0  ;;  %v5493_v10 = vmul.f32 %v8912_v37, %v8912_v37 }
 0x44c   :  { %v7619_v24 = vrot.slane %v7618_v8, 4  ;;  %6184 = vrot.lane.b32.xlu1 %v6153_v42, %s9267_s15  ;;  %v5891_v44 = vpop.permute.xlu0 %5890  ;;  %v5453_v1 = vsel %vm903_vm14, %v5392_v26, 0.0  ;;  %v5491_v49 = vmul.f32 %v5392_v26, %v5392_v26  ;;  %v7610_v55 = vsel %vm11389_vm5, %v7605_v62, %v7609_v35  ;;  %8392 = vst.msk [vmem:[%s13041_s3 + $0x4c] sm:$0xf] %vm4182_vm7, %v8692_v52  ;;  %v9247_v12 = vld [vmem:[#allocation2 + $0x30] sm:$0xf] }
 0x44d   :  { %v5454_v61 = vadd.f32 %v5453_v1, %v5452_v20  ;;  %v8690_v57 = vpack.c.bf16 %v5392_v26, %v5392_v26  ;;  %v5509_v29 = vsel %vm903_vm14, %v5492_v60, 0.0  ;;  %v5457_v47 = vsel %vm903_vm14, %v8912_v37, 0.0  ;;  %v9248_v50 = vld [vmem:[#allocation2 + $0x38] sm:$0xf]  ;;  %v9249_v60 = vld [vmem:[#allocation2 + $0x40] sm:$0xf] }
 0x44e   :  { %v7624_v46 = vsel %vm11389_vm5, %v7619_v24, %v7623_v18  ;;  %v5893_v7 = vpop.permute.xlu1 %5892  ;;  %v5507_v43 = vsel %vm903_vm14, %v5491_v49, 0.0  ;;  %v5511_v40 = vsel %vm903_vm14, %v5493_v10, 0.0  ;;  %v8515_v34 = vcombine.low %v6665_v6, %v9242_v41 }
 0x44f   :  { %v8610_v4 = vcombine.low %v7610_v55, %v7624_v46  ;;  %v5456_v14 = vadd.f32 %v5455_v19, %v5454_v61  ;;  %v5508_v2 = vadd.f32 %v5507_v43, %v5506_v16  ;;  %8390 = vst.msk [vmem:[%s13041_s3 + $0x44] sm:$0xf] %vm4182_vm7, %v8690_v57  ;;  %v8516_v5 = vcombine.low %v6667_v30, %v9243_v38 }
 0x450   :  { %v7006_v9 = vpop.permute.xlu0 %7005  ;;  %v8517_v59 = vcombine.low %v6669_v0, %v9244_v51  ;;  %v7347_v32 = vsel %vm936_vm15, %v8515_v34, %v12435_v58  ;;  %v8518_v11 = vcombine.low %v6671_v33, %v9245_v15  ;;  %v6200_v39 = vsel %vm936_vm15, %v9246_v22, %v5891_v44 }
 0x451   :  { %8954 = vmatmul.mubr.msk.bf16.gmra.mxu1 %vm3904_vm6, %v8610_v4  ;;  %v5510_v54 = vadd.f32 %v5509_v29, %v5508_v2  ;;  %v12468_v28 = vadd.f32 %v5457_v47, %v5456_v14  ;;  %v7350_v13 = vsel %vm936_vm15, %v8516_v5, %v7004_v27  ;;  %v6203_v8 = vsel %vm936_vm15, %v9247_v12, %v5893_v7 }
 0x452   :  { %v7008_v3 = vpop.permute.xlu1 %7007  ;;  %v7353_v53 = vsel %vm936_vm15, %v8517_v59, %v7006_v9 }
 0x453   :  { %v12471_v21 = vadd.f32 %v5511_v40, %v5510_v54  ;;  %v7356_v37 = vsel %vm936_vm15, %v8518_v11, %v7008_v3 }
 0x454   :  { %v7114_v42 = vpop.permute.xlu0 %7113 }
 0x455   :  { %v7386_v24 = vsel %vm1387_vm3, %v7347_v32, %v7114_v42 }
 0x456   :  { %v7116_v31 = vpop.permute.xlu1 %7115 }
 0x457   :  { %v7388_v58 = vsel %vm1387_vm3, %v7350_v13, %v7116_v31 }
 0x458   :  { %v5895_v36 = vpop.permute.xlu0 %5894 }
 0x459   :  { %v6206_v35 = vsel %vm936_vm15, %v9248_v50, %v5895_v36 }
 0x45a   :  { %v5897_v45 = vpop.permute.xlu1 %5896 }
 0x45b   :  { %v12484_v52 = vsel %vm936_vm15, %v9249_v60, %v5897_v45 }
 0x45c   :  { %v5971_v63 = vpop.permute.xlu0 %5970 }
 0x45d   :  { %v12487_v26 = vsel %vm1387_vm3, %v6200_v39, %v5971_v63 }
 0x45e   :  { %v5973_v25 = vpop.permute.xlu1 %5972 }
 0x45f   :  { %v12494_v20 = vsel %vm1387_vm3, %v6203_v8, %v5973_v25 }
 0x460   :  { %v7118_v23 = vpop.permute.xlu0 %7117 }
 0x461   :  { %v8891_v56 = vpop.f32.mrf.mxu0  ;;  %v12497_v1 = vsel %vm1387_vm3, %v7353_v53, %v7118_v23 }
 0x462   :  { %v7120_v48 = vpop.permute.xlu1 %7119  ;;  %v8675_v62 = vpack.c.bf16 %v8891_v56, %v8891_v56  ;;  %v4066_v27 = vmul.f32 %v8891_v56, %v8891_v56  ;;  %v4029_v61 = vsel %vm903_vm14, %v8891_v56, 0.0 }
 0x463   :  { %v3963_v18 = vpop.f32.mrf.mxu0  ;;  %v12500_v49 = vsel %vm1387_vm3, %v7356_v37, %v7120_v48 }
 0x464   :  { %4185 = vst.msk [vmem:[%s13041_s3 + $0x8] sm:$0xf] %vm4182_vm7, %v8675_v62  ;;  %v8673_v44 = vpack.c.bf16 %v3963_v18, %v3963_v18  ;;  %v7306_v46 = vpop.permute.xlu0 %7305  ;;  %v4083_v43 = vsel %vm903_vm14, %v4066_v27, 0.0  ;;  %v4064_v4 = vmul.f32 %v3963_v18, %v3963_v18  ;;  %v4026_v31 = vsel %vm903_vm14, %v3963_v18, 0.0 }
 0x465   :  { %v7418_v7 = vsel %vm3815_vm0, %v7386_v24, %v7306_v46  ;;  %v8892_v19 = vpop.f32.mrf.mxu0 }
 0x466   :  { %v7308_v55 = vpop.permute.xlu1 %7307  ;;  %4183 = vst.msk [vmem:[%s13041_s3] sm:$0xf] %vm4182_vm7, %v8673_v44  ;;  %v8587_v57 = vcombine.low %v7418_v7, %v7418_v7  ;;  %v8588_v16 = vcombine.high %v7418_v7, %v7418_v7  ;;  %v4067_v3 = vmul.f32 %v8892_v19, %v8892_v19  ;;  %v8676_v54 = vpack.c.bf16 %v8892_v19, %v8892_v19 }
 0x467   :  { %v7420_v10 = vsel %vm3815_vm0, %v7388_v58, %v7308_v55  ;;  %v3966_v9 = vpop.f32.mrf.mxu0  ;;  %v4080_v34 = vsel %vm903_vm14, %v4064_v4, 0.0  ;;  %v12520_v59 = vsel %vm903_vm14, %v8892_v19, 0.0 }
 0x468   :  { %v8589_v14 = vcombine.low %v7420_v10, %v7420_v10  ;;  %v8590_v2 = vcombine.high %v7420_v10, %v7420_v10  ;;  %v7626_v29 = vshrl.u32 %v8587_v57, 16  ;;  %v7629_v47 = vshll.u32 %v8587_v57, 16  ;;  %v5975_v40 = vpop.permute.xlu0 %5974  ;;  %v8915_v42 = vpop.f32.mrf.mxu1  ;;  %4186 = vst.msk [vmem:[%s13041_s3 + $0xc] sm:$0xf] %vm4182_vm7, %v8676_v54 }
 0x469   :  { %v12511_v36 = vshll.u32 %v8588_v16, 16  ;;  %v4027_v33 = vsel %vm903_vm14, %v3966_v9, 0.0  ;;  %v12523_v23 = vsel %vm903_vm14, %v4067_v3, 0.0  ;;  %v4065_v32 = vmul.f32 %v3966_v9, %v3966_v9 }
 0x46a   :  { %v7640_v45 = vshrl.u32 %v8589_v14, 16  ;;  %v7643_v6 = vshll.u32 %v8589_v14, 16  ;;  %v5977_v30 = vpop.permute.xlu1 %5976  ;;  %v7628_v63 = vrot.slane %v7626_v29, 4  ;;  %v7631_v0 = vrot.slane %v7629_v47, 5  ;;  %v5405_v41 = vpop.f32.mrf.mxu1 }
 0x46b   :  { %v7649_v25 = vshll.u32 %v8590_v2, 16  ;;  %v4028_v51 = vadd.f32 %v4027_v33, %v4026_v31  ;;  %v8674_v13 = vpack.c.bf16 %v3966_v9, %v3966_v9  ;;  %v5496_v39 = vmul.f32 %v8915_v42, %v8915_v42 }
 0x46c   :  { %v7642_v38 = vrot.slane %v7640_v45, 4  ;;  %v7645_v5 = vrot.slane %v7643_v6, 5  ;;  %v6163_v15 = vpop.permute.xlu0 %6162  ;;  %v12525_v11 = vpop.f32.mrf.mxu1  ;;  %v7632_v48 = vor.u32 %v7631_v0, %v7628_v63  ;;  %v7637_v8 = vrot.slane %v12511_v36, 5 }
 0x46d   :  { %v12527_v22 = vadd.f32 %v4029_v61, %v4028_v51  ;;  %v7651_v53 = vrot.slane %v7649_v25, 5  ;;  %v4081_v62 = vsel %vm903_vm14, %v4065_v32, 0.0  ;;  %4184 = vst.msk [vmem:[%s13041_s3 + $0x4] sm:$0xf] %vm4182_vm7, %v8674_v13  ;;  %v8695_v37 = vpack.c.bf16 %v8915_v42, %v8915_v42 }
 0x46e   :  { %v7646_v56 = vor.u32 %v7645_v5, %v7642_v38  ;;  %v6165_v12 = vpop.permute.xlu1 %6164  ;;  %v4082_v24 = vadd.f32 %v4081_v62, %v4080_v34  ;;  %v6247_v58 = vsel %vm1387_vm3, %v6206_v35, %v5975_v40  ;;  %v5463_v27 = vsel %vm903_vm14, %v8915_v42, 0.0  ;;  %v5408_v7 = vpop.f32.mrf.mxu1 }
 0x46f   :  { %v5459_v18 = vsel %vm903_vm14, %v5405_v41, 0.0  ;;  %8395 = vst.msk [vmem:[%s13041_s3 + $0x58] sm:$0xf] %vm4182_vm7, %v8695_v37  ;;  %v5494_v44 = vmul.f32 %v5405_v41, %v5405_v41  ;;  %v8693_v46 = vpack.c.bf16 %v5405_v41, %v5405_v41  ;;  %v7633_v19 = vrot.slane %v7632_v48, 4 }
 0x470   :  { %v7647_v50 = vrot.slane %v7646_v56, 4  ;;  %v5460_v60 = vadd.f32 %v5459_v18, %v12468_v28  ;;  %v7310_v55 = vpop.permute.xlu0 %7309  ;;  %v4084_v61 = vadd.f32 %v4083_v43, %v4082_v24  ;;  %v5517_v35 = vsel %vm903_vm14, %v5496_v39, 0.0 }
 0x471   :  { %v6249_v57 = vsel %vm1387_vm3, %v12484_v52, %v5977_v30  ;;  %v5513_v10 = vsel %vm903_vm14, %v5494_v44, 0.0  ;;  %8393 = vst.msk [vmem:[%s13041_s3 + $0x50] sm:$0xf] %vm4182_vm7, %v8693_v46  ;;  %v6275_v28 = vsel %vm3815_vm0, %v12487_v26, %v6163_v15  ;;  %v8696_v4 = vpack.c.bf16 %v12525_v11, %v12525_v11 }
 0x472   :  { %v7312_v16 = vpop.permute.xlu1 %7311  ;;  %v6277_v43 = vsel %vm3815_vm0, %v12494_v20, %v6165_v12  ;;  %v5514_v14 = vadd.f32 %v5513_v10, %v12471_v21  ;;  %v5461_v2 = vsel %vm903_vm14, %v5408_v7, 0.0  ;;  %v5495_v9 = vmul.f32 %v5408_v7, %v5408_v7  ;;  %v6675_v10 = vld [vmem:[#allocation2 + $0x80] sm:$0xf] }
 0x473   :  { %v8459_v52 = vcombine.low %v6275_v28, %v6277_v43  ;;  %v7652_v29 = vsel %vm11389_vm5, %v7647_v50, %v7651_v53  ;;  %8396 = vst.msk [vmem:[%s13041_s3 + $0x5c] sm:$0xf] %vm4182_vm7, %v8696_v4  ;;  %v5462_v26 = vadd.f32 %v5461_v2, %v5460_v60  ;;  %v8694_v47 = vpack.c.bf16 %v5408_v7, %v5408_v7  ;;  %v6677_v4 = vld [vmem:[#allocation2 + $0x88] sm:$0xf] }
 0x474   :  { %v7422_v3 = vsel %vm3815_vm0, %v12497_v1, %v7310_v55  ;;  %v6167_v20 = vpop.permute.xlu0 %6166  ;;  %v5515_v21 = vsel %vm903_vm14, %v5495_v9, 0.0  ;;  %v7424_v42 = vsel %vm3815_vm0, %v12500_v49, %v7312_v16  ;;  %v7638_v30 = vsel %vm11389_vm5, %v7633_v19, %v7637_v8  ;;  %v6673_v16 = vld [vmem:[#allocation2 + $0x78] sm:$0xf]  ;;  %v9250_v9 = vld [vmem:[#allocation2 + $0x7c] sm:$0x1] }
 0x475   :  { %v8591_v54 = vcombine.low %v7422_v3, %v7422_v3  ;;  %v8592_v40 = vcombine.high %v7422_v3, %v7422_v3  ;;  %8933 = vmatprep.mubr.msk.bf16.mxu0 %vm3904_vm6, %v8459_v52  ;;  %v5464_v36 = vadd.f32 %v5463_v27, %v5462_v26  ;;  %v5516_v45 = vadd.f32 %v5515_v21, %v5514_v14  ;;  %v6679_v52 = vld [vmem:[#allocation2 + $0x90] sm:$0xf]  ;;  %v9251_v26 = vld [vmem:[#allocation2 + $0x84] sm:$0x1] }
 0x476   :  { %v6169_v31 = vpop.permute.xlu1 %6168  ;;  %8394 = vst.msk [vmem:[%s13041_s3 + $0x54] sm:$0xf] %vm4182_vm7, %v8694_v47  ;;  %v8593_v6 = vcombine.low %v7424_v42, %v7424_v42  ;;  %v8594_v1 = vcombine.high %v7424_v42, %v7424_v42  ;;  %v5497_v63 = vmul.f32 %v12525_v11, %v12525_v11  ;;  %v6279_v32 = vsel %vm3815_vm0, %v6247_v58, %v6167_v20  ;;  %v9252_v20 = vld [vmem:[#allocation2 + $0x8c] sm:$0x1] }
 0x477   :  { %v7654_v0 = vshrl.u32 %v8591_v54, 16  ;;  %v7657_v49 = vshll.u32 %v8591_v54, 16  ;;  %v5518_v25 = vadd.f32 %v5517_v35, %v5516_v45  ;;  %v7663_v33 = vshll.u32 %v8592_v40, 16 }
 0x478   :  { %v7668_v41 = vshrl.u32 %v8593_v6, 16  ;;  %v7671_v34 = vshll.u32 %v8593_v6, 16  ;;  %v7010_v38 = vpop.permute.xlu0 %7009  ;;  %v8611_v13 = vcombine.low %v7638_v30, %v7652_v29  ;;  %v7677_v39 = vshll.u32 %v8594_v1, 16  ;;  %v9253_v6 = vld [vmem:[#allocation2 + $0x94] sm:$0x1] }
 0x479   :  { %v7656_v5 = vrot.slane %v7654_v0, 4  ;;  %v7659_v51 = vrot.slane %v7657_v49, 5  ;;  %v6281_v12 = vsel %vm3815_vm0, %v6249_v57, %v6169_v31  ;;  %v5465_v8 = vsel %vm903_vm14, %v12525_v11, 0.0  ;;  %v9254_v49 = vld [vmem:[#allocation2 + $0x58] sm:$0xf] }
 0x47a   :  { %v7012_v15 = vpop.permute.xlu1 %7011  ;;  %v7670_v48 = vrot.slane %v7668_v41, 4  ;;  %v7673_v56 = vrot.slane %v7671_v34, 5  ;;  %v5519_v53 = vsel %vm903_vm14, %v5497_v63, 0.0  ;;  %8957 = vmatprep.mubr.msk.bf16.mxu1 %vm3904_vm6, %v8611_v13  ;;  %v8460_v37 = vcombine.low %v6279_v32, %v6281_v12 }
 0x47b   :  { %v7660_v62 = vor.u32 %v7659_v51, %v7656_v5  ;;  %v4032_v58 = vadd.f32 %v12520_v59, %v12527_v22  ;;  %v4086_v18 = vadd.f32 %v12523_v23, %v4084_v61  ;;  %v12588_v50 = vadd.f32 %v5465_v8, %v5464_v36 }
 0x47c   :  { %v7674_v24 = vor.u32 %v7673_v56, %v7670_v48  ;;  %v5899_v27 = vpop.permute.xlu0 %5898  ;;  %8934 = vmatmul.mubr.msk.bf16.gmra.mxu0 %vm3904_vm6, %v8460_v37  ;;  %v12591_v11 = vadd.f32 %v5519_v53, %v5518_v25  ;;  %v7665_v46 = vrot.slane %v7663_v33, 5  ;;  %v7679_v55 = vrot.slane %v7677_v39, 5  ;;  %v9255_v33 = vld [vmem:[#allocation2 + $0x60] sm:$0xf] }
 0x47d   :  { %v7661_v60 = vrot.slane %v7660_v62, 4  ;;  %v8519_v29 = vcombine.low %v6673_v16, %v9250_v9  ;;  %v8520_v47 = vcombine.low %v6675_v10, %v9251_v26  ;;  %v8521_v21 = vcombine.low %v6677_v4, %v9252_v20 }
 0x47e   :  { %v5901_v44 = vpop.permute.xlu1 %5900  ;;  %v7675_v7 = vrot.slane %v7674_v24, 4  ;;  %v8522_v1 = vcombine.low %v6679_v52, %v9253_v6  ;;  %v6212_v25 = vsel %vm936_vm15, %v9254_v49, %v5899_v27 }
 0x47f   :  { %v7666_v19 = vsel %vm11389_vm5, %v7661_v60, %v7665_v46  ;;  %v7359_v36 = vsel %vm936_vm15, %v8519_v29, %v7010_v38  ;;  %v7362_v45 = vsel %vm936_vm15, %v8520_v47, %v7012_v15  ;;  %v6215_v41 = vsel %vm936_vm15, %v9255_v33, %v5901_v44 }
 0x480   :  { %v7680_v35 = vsel %vm11389_vm5, %v7675_v7, %v7679_v55  ;;  %v7014_v59 = vpop.permute.xlu0 %7013 }
 0x481   :  { %v8612_v22 = vcombine.low %v7666_v19, %v7680_v35  ;;  %v12617_v38 = vsel %vm936_vm15, %v8521_v21, %v7014_v59 }
 0x482   :  { %v7016_v23 = vpop.permute.xlu1 %7015 }
 0x483   :  { %8958 = vmatmul.mubr.msk.bf16.gmra.mxu1 %vm3904_vm6, %v8612_v22  ;;  %v12620_v51 = vsel %vm936_vm15, %v8522_v1, %v7016_v23 }
 0x484   :  { %v7122_v61 = vpop.permute.xlu0 %7121 }
 0x485   :  { %v7394_v48 = vsel %vm1387_vm3, %v7359_v36, %v7122_v61 }
 0x486   :  { %v7124_v57 = vpop.permute.xlu1 %7123 }
 0x487   :  { %v7396_v62 = vsel %vm1387_vm3, %v7362_v45, %v7124_v57 }
 0x488   :  { %v12598_v28 = vpop.permute.xlu0 %5902 }
 0x489   :  { %v8895_v14 = vpop.f32.mrf.mxu0 }
 0x48a   :  { %v12600_v43 = vpop.permute.xlu1 %5904  ;;  %v8679_v2 = vpack.c.bf16 %v8895_v14, %v8895_v14  ;;  %v4070_v34 = vmul.f32 %v8895_v14, %v8895_v14  ;;  %v4037_v37 = vsel %vm903_vm14, %v8895_v14, 0.0 }
 0x48b   :  { %v3979_v3 = vpop.f32.mrf.mxu0 }
 0x48c   :  { %4189 = vst.msk [vmem:[%s13041_s3 + $0x18] sm:$0xf] %vm4182_vm7, %v8679_v2  ;;  %v4033_v54 = vsel %vm903_vm14, %v3979_v3, 0.0  ;;  %v4068_v40 = vmul.f32 %v3979_v3, %v3979_v3  ;;  %v8677_v42 = vpack.c.bf16 %v3979_v3, %v3979_v3  ;;  %v5979_v31 = vpop.permute.xlu0 %5978 }
 0x48d   :  { %v4034_v30 = vadd.f32 %v4033_v54, %v4032_v58  ;;  %v8896_v0 = vpop.f32.mrf.mxu0  ;;  %v6251_v60 = vsel %vm1387_vm3, %v6212_v25, %v5979_v31 }
 0x48e   :  { %v5981_v63 = vpop.permute.xlu1 %5980  ;;  %v4087_v5 = vsel %vm903_vm14, %v4068_v40, 0.0  ;;  %4187 = vst.msk [vmem:[%s13041_s3 + $0x10] sm:$0xf] %vm4182_vm7, %v8677_v42  ;;  %v8680_v13 = vpack.c.bf16 %v8896_v0, %v8896_v0  ;;  %v4071_v24 = vmul.f32 %v8896_v0, %v8896_v0  ;;  %v4039_v22 = vsel %vm903_vm14, %v8896_v0, 0.0 }
 0x48f   :  { %v4088_v32 = vadd.f32 %v4087_v5, %v4086_v18  ;;  %v3982_v15 = vpop.f32.mrf.mxu0  ;;  %v4091_v18 = vsel %vm903_vm14, %v4070_v34, 0.0  ;;  %v6253_v55 = vsel %vm1387_vm3, %v6215_v41, %v5981_v63 }
 0x490   :  { %v4035_v56 = vsel %vm903_vm14, %v3982_v15, 0.0  ;;  %v4069_v39 = vmul.f32 %v3982_v15, %v3982_v15  ;;  %v8678_v12 = vpack.c.bf16 %v3982_v15, %v3982_v15  ;;  %v12624_v8 = vpop.permute.xlu0 %7125  ;;  %v8919_v53 = vpop.f32.mrf.mxu1  ;;  %4190 = vst.msk [vmem:[%s13041_s3 + $0x1c] sm:$0xf] %vm4182_vm7, %v8680_v13  ;;  %v4093_v4 = vsel %vm903_vm14, %v4071_v24, 0.0 }
 0x491   :  { %v4036_v27 = vadd.f32 %v4035_v56, %v4034_v30  ;;  %v8699_v46 = vpack.c.bf16 %v8919_v53, %v8919_v53  ;;  %v5471_v52 = vsel %vm903_vm14, %v8919_v53, 0.0  ;;  %v5500_v29 = vmul.f32 %v8919_v53, %v8919_v53 }
 0x492   :  { %v12632_v58 = vpop.permute.xlu1 %7127  ;;  %v4089_v44 = vsel %vm903_vm14, %v4069_v39, 0.0  ;;  %4188 = vst.msk [vmem:[%s13041_s3 + $0x14] sm:$0xf] %vm4182_vm7, %v8678_v12  ;;  %v5421_v7 = vpop.f32.mrf.mxu1 }
 0x493   :  { %v4038_v19 = vadd.f32 %v4037_v37, %v4036_v27  ;;  %v4090_v35 = vadd.f32 %v4089_v44, %v4088_v32  ;;  %v5467_v59 = vsel %vm903_vm14, %v5421_v7, 0.0  ;;  %8399 = vst.msk [vmem:[%s13041_s3 + $0x68] sm:$0xf] %vm4182_vm7, %v8699_v46  ;;  %v5498_v61 = vmul.f32 %v5421_v7, %v5421_v7 }
 0x494   :  { %v5468_v23 = vadd.f32 %v5467_v59, %v12588_v50  ;;  %v8697_v57 = vpack.c.bf16 %v5421_v7, %v5421_v7  ;;  %v7314_v16 = vpop.permute.xlu0 %7313  ;;  %v8920_v10 = vpop.f32.mrf.mxu1  ;;  %v5525_v49 = vsel %vm903_vm14, %v5500_v29, 0.0 }
 0x495   :  { %v4092_v14 = vadd.f32 %v4091_v18, %v4090_v35  ;;  %v7426_v2 = vsel %vm3815_vm0, %v7394_v48, %v7314_v16  ;;  %v5521_v26 = vsel %vm903_vm14, %v5498_v61, 0.0  ;;  %v8700_v47 = vpack.c.bf16 %v8920_v10, %v8920_v10 }
 0x496   :  { %v7316_v9 = vpop.permute.xlu1 %7315  ;;  %8397 = vst.msk [vmem:[%s13041_s3 + $0x60] sm:$0xf] %vm4182_vm7, %v8697_v57  ;;  %v8595_v50 = vcombine.low %v7426_v2, %v7426_v2  ;;  %v5424_v3 = vpop.f32.mrf.mxu1  ;;  %v5522_v20 = vadd.f32 %v5521_v26, %v12591_v11  ;;  %v5501_v21 = vmul.f32 %v8920_v10, %v8920_v10  ;;  %v8596_v42 = vcombine.high %v7426_v2, %v7426_v2  ;;  %v9256_v57 = vld [vmem:[#allocation2 + $0x68] sm:$0xf] }
 0x497   :  { %v7428_v54 = vsel %vm3815_vm0, %v7396_v62, %v7316_v9  ;;  %v5469_v40 = vsel %vm903_vm14, %v5424_v3, 0.0  ;;  %8400 = vst.msk [vmem:[%s13041_s3 + $0x6c] sm:$0xf] %vm4182_vm7, %v8700_v47  ;;  %v5499_v63 = vmul.f32 %v5424_v3, %v5424_v3  ;;  %v8698_v0 = vpack.c.bf16 %v5424_v3, %v5424_v3 }
 0x498   :  { %v7682_v31 = vshrl.u32 %v8595_v50, 16  ;;  %v7685_v36 = vshll.u32 %v8595_v50, 16  ;;  %v8597_v45 = vcombine.low %v7428_v54, %v7428_v54  ;;  %v5983_v6 = vpop.permute.xlu0 %5982  ;;  %v8598_v1 = vcombine.high %v7428_v54, %v7428_v54 }
 0x499   :  { %v5470_v30 = vadd.f32 %v5469_v40, %v5468_v23  ;;  %v5473_v34 = vsel %vm903_vm14, %v8920_v10, 0.0  ;;  %v5523_v13 = vsel %vm903_vm14, %v5499_v63, 0.0  ;;  %8398 = vst.msk [vmem:[%s13041_s3 + $0x64] sm:$0xf] %vm4182_vm7, %v8698_v0  ;;  %v5527_v48 = vsel %vm903_vm14, %v5501_v21, 0.0 }
 0x49a   :  { %v5985_v11 = vpop.permute.xlu1 %5984  ;;  %v7684_v25 = vrot.slane %v7682_v31, 4  ;;  %v7687_v33 = vrot.slane %v7685_v36, 5  ;;  %v7696_v41 = vshrl.u32 %v8597_v45, 16  ;;  %v7699_v5 = vshll.u32 %v8597_v45, 16 }
 0x49b   :  { %v5472_v32 = vadd.f32 %v5471_v52, %v5470_v30  ;;  %v5524_v39 = vadd.f32 %v5523_v13, %v5522_v20  ;;  %v7691_v53 = vshll.u32 %v8596_v42, 16  ;;  %v7705_v37 = vshll.u32 %v8598_v1, 16 }
 0x49c   :  { %v7688_v15 = vor.u32 %v7687_v33, %v7684_v25  ;;  %v7698_v56 = vrot.slane %v7696_v41, 4  ;;  %v6171_v12 = vpop.permute.xlu0 %6170  ;;  %v7701_v62 = vrot.slane %v7699_v5, 5  ;;  %v12674_v7 = vadd.f32 %v4039_v22, %v4038_v19 }
 0x49d   :  { %v6283_v24 = vsel %vm3815_vm0, %v6251_v60, %v6171_v12  ;;  %v5526_v44 = vadd.f32 %v5525_v49, %v5524_v39  ;;  %v12676_v23 = vadd.f32 %v4093_v4, %v4092_v14  ;;  %v12678_v61 = vadd.f32 %v5473_v34, %v5472_v32 }
 0x49e   :  { %v6173_v27 = vpop.permute.xlu1 %6172  ;;  %v7689_v18 = vrot.slane %v7688_v15, 4  ;;  %v7702_v35 = vor.u32 %v7701_v62, %v7698_v56  ;;  %v6218_v16 = vsel %vm936_vm15, %v9256_v57, %v12598_v28  ;;  %v7398_v60 = vsel %vm1387_vm3, %v12617_v38, %v12624_v8  ;;  %v9257_v28 = vld [vmem:[#allocation2 + $0x70] sm:$0xf] }
 0x49f   :  { %v6285_v46 = vsel %vm3815_vm0, %v6253_v55, %v6173_v27  ;;  %v7400_v55 = vsel %vm1387_vm3, %v12620_v51, %v12632_v58  ;;  %v12688_v22 = vadd.f32 %v5527_v48, %v5526_v44  ;;  %v7693_v10 = vrot.slane %v7691_v53, 5 }
 0x4a0   :  { %v8461_v59 = vcombine.low %v6283_v24, %v6285_v46  ;;  %v7318_v19 = vpop.permute.xlu0 %7317  ;;  %v7703_v4 = vrot.slane %v7702_v35, 4  ;;  %v7707_v14 = vrot.slane %v7705_v37, 5  ;;  %v6221_v9 = vsel %vm936_vm15, %v9257_v28, %v12600_v43  ;;  %v9261_v28 = vld [vmem:[#allocation2 + $0x90] sm:$0xf] }
 0x4a1   :  { %v7430_v52 = vsel %vm3815_vm0, %v7398_v60, %v7318_v19  ;;  %v7694_v51 = vsel %vm11389_vm5, %v7689_v18, %v7693_v10  ;;  %v6255_v47 = vsel %vm1387_vm3, %v6218_v16, %v5983_v6  ;;  %v6257_v43 = vsel %vm1387_vm3, %v6221_v9, %v5985_v11  ;;  %v9259_v10 = vld [vmem:[#allocation2 + $0x80] sm:$0xf] }
 0x4a2   :  { %v7320_v2 = vpop.permute.xlu1 %7319  ;;  %8937 = vmatprep.mubr.msk.bf16.mxu0 %vm3904_vm6, %v8461_v59  ;;  %v8599_v38 = vcombine.low %v7430_v52, %v7430_v52  ;;  %v8600_v8 = vcombine.high %v7430_v52, %v7430_v52  ;;  %v7708_v58 = vsel %vm11389_vm5, %v7703_v4, %v7707_v14  ;;  %v9260_v14 = vld [vmem:[#allocation2 + $0x88] sm:$0xf] }
 0x4a3   :  { %v7432_v29 = vsel %vm3815_vm0, %v7400_v55, %v7320_v2  ;;  %v8613_v54 = vcombine.low %v7694_v51, %v7708_v58  ;;  %v9258_v55 = vld [vmem:[#allocation2 + $0x78] sm:$0xf] }
 0x4a4   :  { %v8601_v26 = vcombine.low %v7432_v29, %v7432_v29  ;;  %v8602_v50 = vcombine.high %v7432_v29, %v7432_v29  ;;  %v7710_v3 = vshrl.u32 %v8599_v38, 16  ;;  %v7713_v20 = vshll.u32 %v8599_v38, 16  ;;  %v6175_v21 = vpop.permute.xlu0 %6174 }
 0x4a5   :  { %v7719_v40 = vshll.u32 %v8600_v8, 16  ;;  %v6287_v30 = vsel %vm3815_vm0, %v6255_v47, %v6175_v21  ;;  %8961 = vmatprep.mubr.msk.bf16.mxu1 %vm3904_vm6, %v8613_v54 }
 0x4a6   :  { %v7724_v42 = vshrl.u32 %v8601_v26, 16  ;;  %v7727_v31 = vshll.u32 %v8601_v26, 16  ;;  %v6177_v36 = vpop.permute.xlu1 %6176  ;;  %v7712_v45 = vrot.slane %v7710_v3, 4  ;;  %v7715_v1 = vrot.slane %v7713_v20, 5 }
 0x4a7   :  { %v6289_v63 = vsel %vm3815_vm0, %v6257_v43, %v6177_v36  ;;  %v7733_v49 = vshll.u32 %v8602_v50, 16  ;;  %v7721_v32 = vrot.slane %v7719_v40, 5 }
 0x4a8   :  { %v7726_v0 = vrot.slane %v7724_v42, 4  ;;  %v7729_v6 = vrot.slane %v7727_v31, 5  ;;  %v8462_v25 = vcombine.low %v6287_v30, %v6289_v63  ;;  %v7716_v33 = vor.u32 %v7715_v1, %v7712_v45  ;;  %v5907_v41 = vpop.permute.xlu0 %5906 }
 0x4a9   :  { %v7735_v15 = vrot.slane %v7733_v49, 5  ;;  %v6224_v19 = vsel %vm936_vm15, %v9258_v55, %v5907_v41 }
 0x4aa   :  { %v7730_v34 = vor.u32 %v7729_v6, %v7726_v0  ;;  %v5909_v11 = vpop.permute.xlu1 %5908  ;;  %8938 = vmatmul.mubr.msk.bf16.gmra.mxu0 %vm3904_vm6, %v8462_v25  ;;  %v7717_v5 = vrot.slane %v7716_v33, 4 }
 0x4ab   :  { %v6227_v4 = vsel %vm936_vm15, %v9259_v10, %v5909_v11 }
 0x4ac   :  { %v7731_v13 = vrot.slane %v7730_v34, 4  ;;  %v5911_v48 = vpop.permute.xlu0 %5910  ;;  %v7722_v56 = vsel %vm11389_vm5, %v7717_v5, %v7721_v32 }
 0x4ad   :  { %v6230_v52 = vsel %vm936_vm15, %v9260_v14, %v5911_v48 }
 0x4ae   :  { %v7736_v39 = vsel %vm11389_vm5, %v7731_v13, %v7735_v15  ;;  %v5913_v12 = vpop.permute.xlu1 %5912 }
 0x4af   :  { %v8614_v53 = vcombine.low %v7722_v56, %v7736_v39 }
 0x4b0   :  { %v5987_v62 = vpop.permute.xlu0 %5986 }
 0x4b1   :  { %8962 = vmatmul.mubr.msk.bf16.gmra.mxu1 %vm3904_vm6, %v8614_v53  ;;  %v8899_v24 = vpop.f32.mrf.mxu0  ;;  %v6259_v9 = vsel %vm1387_vm3, %v6224_v19, %v5987_v62 }
 0x4b2   :  { %v5989_v37 = vpop.permute.xlu1 %5988  ;;  %v8683_v27 = vpack.c.bf16 %v8899_v24, %v8899_v24  ;;  %v4074_v59 = vmul.f32 %v8899_v24, %v8899_v24  ;;  %v4045_v20 = vsel %vm903_vm14, %v8899_v24, 0.0 }
 0x4b3   :  { %v3995_v18 = vpop.f32.mrf.mxu0  ;;  %v6261_v51 = vsel %vm1387_vm3, %v6227_v4, %v5989_v37 }
 0x4b4   :  { %4193 = vst.msk [vmem:[%s13041_s3 + $0x28] sm:$0xf] %vm4182_vm7, %v8683_v27  ;;  %v4041_v44 = vsel %vm903_vm14, %v3995_v18, 0.0  ;;  %v4072_v46 = vmul.f32 %v3995_v18, %v3995_v18  ;;  %v8681_v35 = vpack.c.bf16 %v3995_v18, %v3995_v18  ;;  %v5991_v17 = vpop.permute.xlu0 %5990  ;;  %v4099_v21 = vsel %vm903_vm14, %v4074_v59, 0.0 }
 0x4b5   :  { %v4042_v57 = vadd.f32 %v4041_v44, %v12674_v7  ;;  %v8900_v60 = vpop.f32.mrf.mxu0  ;;  %v6233_v7 = vsel %vm936_vm15, %v9261_v28, %v5913_v12  ;;  %v6263_v54 = vsel %vm1387_vm3, %v6230_v52, %v5991_v17 }
 0x4b6   :  { %v5993_v16 = vpop.permute.xlu1 %5992  ;;  %v4095_v2 = vsel %vm903_vm14, %v4072_v46, 0.0  ;;  %4191 = vst.msk [vmem:[%s13041_s3 + $0x20] sm:$0xf] %vm4182_vm7, %v8681_v35  ;;  %v8684_v8 = vpack.c.bf16 %v8900_v60, %v8900_v60  ;;  %v4075_v6 = vmul.f32 %v8900_v60, %v8900_v60  ;;  %v4047_v11 = vsel %vm903_vm14, %v8900_v60, 0.0 }
 0x4b7   :  { %v4096_v38 = vadd.f32 %v4095_v2, %v12676_v23  ;;  %v3998_v29 = vpop.f32.mrf.mxu0  ;;  %v6265_v1 = vsel %vm1387_vm3, %v6233_v7, %v5993_v16 }
 0x4b8   :  { %v4043_v58 = vsel %vm903_vm14, %v3998_v29, 0.0  ;;  %v4073_v26 = vmul.f32 %v3998_v29, %v3998_v29  ;;  %v8682_v50 = vpack.c.bf16 %v3998_v29, %v3998_v29  ;;  %v6179_v47 = vpop.permute.xlu0 %6178  ;;  %v8923_v3 = vpop.f32.mrf.mxu1  ;;  %4194 = vst.msk [vmem:[%s13041_s3 + $0x2c] sm:$0xf] %vm4182_vm7, %v8684_v8  ;;  %v4101_v27 = vsel %vm903_vm14, %v4075_v6, 0.0 }
 0x4b9   :  { %v4044_v23 = vadd.f32 %v4043_v58, %v4042_v57  ;;  %v6291_v42 = vsel %vm3815_vm0, %v6259_v9, %v6179_v47  ;;  %v8703_v31 = vpack.c.bf16 %v8923_v3, %v8923_v3  ;;  %v5504_v32 = vmul.f32 %v8923_v3, %v8923_v3 }
 0x4ba   :  { %v6181_v43 = vpop.permute.xlu1 %6180  ;;  %v4097_v40 = vsel %vm903_vm14, %v4073_v26, 0.0  ;;  %4192 = vst.msk [vmem:[%s13041_s3 + $0x24] sm:$0xf] %vm4182_vm7, %v8682_v50  ;;  %v5437_v45 = vpop.f32.mrf.mxu1  ;;  %v5479_v35 = vsel %vm903_vm14, %v8923_v3, 0.0 }
 0x4bb   :  { %v6293_v36 = vsel %vm3815_vm0, %v6261_v51, %v6181_v43  ;;  %v4046_v30 = vadd.f32 %v4045_v20, %v4044_v23  ;;  %v4098_v63 = vadd.f32 %v4097_v40, %v4096_v38  ;;  %8403 = vst.msk [vmem:[%s13041_s3 + $0x78] sm:$0xf] %vm4182_vm7, %v8703_v31  ;;  %v5475_v49 = vsel %vm903_vm14, %v5437_v45, 0.0 }
 0x4bc   :  { %v8463_v0 = vcombine.low %v6291_v42, %v6293_v36  ;;  %v5502_v25 = vmul.f32 %v5437_v45, %v5437_v45  ;;  %v8701_v33 = vpack.c.bf16 %v5437_v45, %v5437_v45  ;;  %v6183_v41 = vpop.permute.xlu0 %6182  ;;  %v8924_v34 = vpop.f32.mrf.mxu1  ;;  %v5476_v13 = vadd.f32 %v5475_v49, %v12678_v61 }
 0x4bd   :  { %v4100_v5 = vadd.f32 %v4099_v21, %v4098_v63  ;;  %v6295_v56 = vsel %vm3815_vm0, %v6263_v54, %v6183_v41  ;;  %v8704_v39 = vpack.c.bf16 %v8924_v34, %v8924_v34  ;;  %v4048_v46 = vadd.f32 %v4047_v11, %v4046_v30 }
 0x4be   :  { %v6185_v15 = vpop.permute.xlu1 %6184  ;;  %8941 = vmatprep.mubr.msk.bf16.mxu0 %vm3904_vm6, %v8463_v0  ;;  %v5529_v48 = vsel %vm903_vm14, %v5502_v25, 0.0  ;;  %8401 = vst.msk [vmem:[%s13041_s3 + $0x70] sm:$0xf] %vm4182_vm7, %v8701_v33  ;;  %v5440_v53 = vpop.f32.mrf.mxu1  ;;  %v5505_v17 = vmul.f32 %v8924_v34, %v8924_v34  ;;  %v5533_v60 = vsel %vm903_vm14, %v5504_v32, 0.0  ;;  %v5481_v55 = vsel %vm903_vm14, %v8924_v34, 0.0 }
 0x4bf   :  { %v6297_v12 = vsel %vm3815_vm0, %v6265_v1, %v6185_v15  ;;  %v5530_v62 = vadd.f32 %v5529_v48, %v12688_v22  ;;  %v5477_v61 = vsel %vm903_vm14, %v5440_v53, 0.0  ;;  %v5503_v24 = vmul.f32 %v5440_v53, %v5440_v53  ;;  %8404 = vst.msk [vmem:[%s13041_s3 + $0x7c] sm:$0xf] %vm4182_vm7, %v8704_v39 }
 0x4c0   :  { %v8464_v37 = vcombine.low %v6295_v56, %v6297_v12  ;;  %v5478_v18 = vadd.f32 %v5477_v61, %v5476_v13  ;;  %v8702_v44 = vpack.c.bf16 %v5440_v53, %v5440_v53  ;;  %v4102_v22 = vadd.f32 %v4101_v27, %v4100_v5 }
 0x4c1   :  { %v5531_v59 = vsel %vm903_vm14, %v5503_v24, 0.0  ;;  %v5535_v4 = vsel %vm903_vm14, %v5505_v17, 0.0 }
 0x4c2   :  { %8942 = vmatmul.mubr.msk.bf16.gmra.mxu0 %vm3904_vm6, %v8464_v37  ;;  %v5480_v57 = vadd.f32 %v5479_v35, %v5478_v18  ;;  %v5532_v16 = vadd.f32 %v5531_v59, %v5530_v62  ;;  %8402 = vst.msk [vmem:[%s13041_s3 + $0x74] sm:$0xf] %vm4182_vm7, %v8702_v44 }
 0x4c4   :  { %v5482_v19 = vadd.f32 %v5481_v55, %v5480_v57  ;;  %v5534_v10 = vadd.f32 %v5533_v60, %v5532_v16 }
 0x4c6   :  { %v5536_v14 = vadd.f32 %v5535_v4, %v5534_v10  ;;  %v5483_v2 = vrot.slane %v5482_v19, 4 }
 0x4c8   :  { %v5537_v29 = vrot.slane %v5536_v14, 4  ;;  %v5484_v26 = vadd.f32 %v5483_v2, %v5482_v19 }
 0x4ca   :  { %v5538_v42 = vadd.f32 %v5537_v29, %v5536_v14  ;;  %v5485_v45 = vrot.slane %v5484_v26, 2 }
 0x4cc   :  { %v5539_v11 = vrot.slane %v5538_v42, 2  ;;  %v5486_v13 = vadd.f32 %v5485_v45, %v5484_v26 }
 0x4ce   :  { %v5540_v44 = vadd.f32 %v5539_v11, %v5538_v42 }
 0x4da   :  { %v8903_v52 = vpop.f32.mrf.mxu0 }
 0x4db   :  { %v8687_v28 = vpack.c.bf16 %v8903_v52, %v8903_v52  ;;  %v4078_v21 = vmul.f32 %v8903_v52, %v8903_v52  ;;  %v4053_v1 = vsel %vm903_vm14, %v8903_v52, 0.0  ;;  %v5487_v52 = vrot.slane %v5486_v13, 1 }
 0x4dc   :  { %v4011_v7 = vpop.f32.mrf.mxu0 }
 0x4dd   :  { %4197 = vst.msk [vmem:[%s13041_s3 + $0x38] sm:$0xf] %vm4182_vm7, %v8687_v28  ;;  %v4049_v9 = vsel %vm903_vm14, %v4011_v7, 0.0  ;;  %v4076_v38 = vmul.f32 %v4011_v7, %v4011_v7  ;;  %v8685_v8 = vpack.c.bf16 %v4011_v7, %v4011_v7  ;;  %v4107_v25 = vsel %vm903_vm14, %v4078_v21, 0.0 }
 0x4de   :  { %v4050_v51 = vadd.f32 %v4049_v9, %v4048_v46  ;;  %v8904_v58 = vpop.f32.mrf.mxu0 }
 0x4df   :  { %v4103_v50 = vsel %vm903_vm14, %v4076_v38, 0.0  ;;  %4195 = vst.msk [vmem:[%s13041_s3 + $0x30] sm:$0xf] %vm4182_vm7, %v8685_v8  ;;  %v8688_v47 = vpack.c.bf16 %v8904_v58, %v8904_v58  ;;  %v4079_v30 = vmul.f32 %v8904_v58, %v8904_v58  ;;  %v4055_v33 = vsel %vm903_vm14, %v8904_v58, 0.0 }
 0x4e0   :  { %v4104_v3 = vadd.f32 %v4103_v50, %v4102_v22  ;;  %v4014_v20 = vpop.f32.mrf.mxu0  ;;  %v5541_v38 = vrot.slane %v5540_v44, 1  ;;  %v5488_v58 = vadd.f32 %v5487_v52, %v5486_v13 }
 0x4e1   :  { %4198 = vst.msk [vmem:[%s13041_s3 + $0x3c] sm:$0xf] %vm4182_vm7, %v8688_v47  ;;  %v4051_v54 = vsel %vm903_vm14, %v4014_v20, 0.0  ;;  %v4077_v23 = vmul.f32 %v4014_v20, %v4014_v20  ;;  %v8686_v43 = vpack.c.bf16 %v4014_v20, %v4014_v20  ;;  %v8951_v40 = vpop.f32.mrf.mxu1  ;;  %v4109_v15 = vsel %vm903_vm14, %v4079_v30, 0.0 }
 0x4e2   :  { %v4052_v31 = vadd.f32 %v4051_v54, %v4050_v51  ;;  %v8723_v36 = vpack.c.bf16 %v8951_v40, %v8951_v40  ;;  %v7939_v61 = vmul.f32 %v8951_v40, %v8951_v40  ;;  %v7902_v17 = vsel %vm903_vm14, %v8951_v40, 0.0 }
 0x4e3   :  { %v4105_v63 = vsel %vm903_vm14, %v4077_v23, 0.0  ;;  %4196 = vst.msk [vmem:[%s13041_s3 + $0x34] sm:$0xf] %vm4182_vm7, %v8686_v43  ;;  %v7836_v0 = vpop.f32.mrf.mxu1  ;;  %v5542_v47 = vadd.f32 %v5541_v38, %v5540_v44 }
 0x4e4   :  { %v4054_v6 = vadd.f32 %v4053_v1, %v4052_v31  ;;  %v4106_v49 = vadd.f32 %v4105_v63, %v4104_v3  ;;  %8643 = vst.msk [vmem:[%s13041_s3 + $0xc8] sm:$0xf] %vm4182_vm7, %v8723_v36  ;;  %v8721_v41 = vpack.c.bf16 %v7836_v0, %v7836_v0  ;;  %v7937_v48 = vmul.f32 %v7836_v0, %v7836_v0 }
 0x4e5   :  { %v8952_v34 = vpop.f32.mrf.mxu1  ;;  %v7899_v62 = vsel %vm903_vm14, %v7836_v0, 0.0  ;;  %v7956_v4 = vsel %vm903_vm14, %v7939_v61, 0.0 }
 0x4e6   :  { %v4056_v5 = vadd.f32 %v4055_v33, %v4054_v6  ;;  %v4108_v32 = vadd.f32 %v4107_v25, %v4106_v49  ;;  %8641 = vst.msk [vmem:[%s13041_s3 + $0xc0] sm:$0xf] %vm4182_vm7, %v8721_v41  ;;  %v8724_v56 = vpack.c.bf16 %v8952_v34, %v8952_v34  ;;  %v7953_v59 = vsel %vm903_vm14, %v7937_v48, 0.0 }
 0x4e7   :  { %v7839_v39 = vpop.f32.mrf.mxu1  ;;  %v7940_v22 = vmul.f32 %v8952_v34, %v8952_v34  ;;  %v7904_v19 = vsel %vm903_vm14, %v8952_v34, 0.0 }
 0x4e8   :  { %v4057_v12 = vrot.slane %v4056_v5, 4  ;;  %v4110_v53 = vadd.f32 %v4109_v15, %v4108_v32  ;;  %v7900_v37 = vsel %vm903_vm14, %v7839_v39, 0.0  ;;  %8644 = vst.msk [vmem:[%s13041_s3 + $0xcc] sm:$0xf] %vm4182_vm7, %v8724_v56  ;;  %v7938_v27 = vmul.f32 %v7839_v39, %v7839_v39 }
 0x4e9   :  { %v7901_v24 = vadd.f32 %v7900_v37, %v7899_v62  ;;  %v8722_v18 = vpack.c.bf16 %v7839_v39, %v7839_v39  ;;  %v7958_v9 = vsel %vm903_vm14, %v7940_v22, 0.0 }
 0x4ea   :  { %v4058_v46 = vadd.f32 %v4057_v12, %v4056_v5  ;;  %v4111_v35 = vrot.slane %v4110_v53, 4  ;;  %v7954_v16 = vsel %vm903_vm14, %v7938_v27, 0.0 }
 0x4eb   :  { %v7903_v57 = vadd.f32 %v7902_v17, %v7901_v24  ;;  %8642 = vst.msk [vmem:[%s13041_s3 + $0xc4] sm:$0xf] %vm4182_vm7, %v8722_v18  ;;  %v7955_v10 = vadd.f32 %v7954_v16, %v7953_v59 }
 0x4ec   :  { %v4059_v60 = vrot.slane %v4058_v46, 2  ;;  %v4112_v55 = vadd.f32 %v4111_v35, %v4110_v53 }
 0x4ed   :  { %v7905_v14 = vadd.f32 %v7904_v19, %v7903_v57  ;;  %v7957_v7 = vadd.f32 %v7956_v4, %v7955_v10 }
 0x4ee   :  { %v4060_v2 = vadd.f32 %v4059_v60, %v4058_v46  ;;  %v4113_v28 = vrot.slane %v4112_v55, 2 }
 0x4ef   :  { %v7959_v51 = vadd.f32 %v7958_v9, %v7957_v7 }
 0x4f0   :  { %v4061_v8 = vrot.slane %v4060_v2, 1  ;;  %v4114_v29 = vadd.f32 %v4113_v28, %v4112_v55 }
 0x4f2   :  { %v4062_v26 = vadd.f32 %v4061_v8, %v4060_v2  ;;  %v4115_v50 = vrot.slane %v4114_v29, 1 }
 0x4f4   :  { %v4116_v3 = vadd.f32 %v4115_v50, %v4114_v29  ;;  %v12824_v20 = vadd.f32 %v5488_v58, %v4062_v26 }
 0x4f6   :  { %v12826_v21 = vadd.f32 %v5542_v47, %v4116_v3 }
 0x50a   :  { %v8931_v54 = vpop.f32.mrf.mxu0 }
 0x50b   :  { %v8707_v23 = vpack.c.bf16 %v8931_v54, %v8931_v54  ;;  %v6516_v45 = vmul.f32 %v8931_v54, %v8931_v54  ;;  %v6479_v41 = vsel %vm903_vm14, %v8931_v54, 0.0 }
 0x50c   :  { %v6413_v43 = vpop.f32.mrf.mxu0 }
 0x50d   :  { %8493 = vst.msk [vmem:[%s13041_s3 + $0x88] sm:$0xf] %vm4182_vm7, %v8707_v23  ;;  %v8705_v40 = vpack.c.bf16 %v6413_v43, %v6413_v43  ;;  %v6514_v31 = vmul.f32 %v6413_v43, %v6413_v43  ;;  %v6476_v30 = vsel %vm903_vm14, %v6413_v43, 0.0  ;;  %v6533_v56 = vsel %vm903_vm14, %v6516_v45, 0.0 }
 0x50e   :  { %v8932_v42 = vpop.f32.mrf.mxu0 }
 0x50f   :  { %8491 = vst.msk [vmem:[%s13041_s3 + $0x80] sm:$0xf] %vm4182_vm7, %v8705_v40  ;;  %v8708_v36 = vpack.c.bf16 %v8932_v42, %v8932_v42  ;;  %v6530_v34 = vsel %vm903_vm14, %v6514_v31, 0.0  ;;  %v6517_v11 = vmul.f32 %v8932_v42, %v8932_v42  ;;  %v6481_v37 = vsel %vm903_vm14, %v8932_v42, 0.0 }
 0x510   :  { %v6416_v1 = vpop.f32.mrf.mxu0 }
 0x511   :  { %8494 = vst.msk [vmem:[%s13041_s3 + $0x8c] sm:$0xf] %vm4182_vm7, %v8708_v36  ;;  %v6477_v63 = vsel %vm903_vm14, %v6416_v1, 0.0  ;;  %v6515_v0 = vmul.f32 %v6416_v1, %v6416_v1  ;;  %v8706_v6 = vpack.c.bf16 %v6416_v1, %v6416_v1  ;;  %v8955_v49 = vpop.f32.mrf.mxu1  ;;  %v6535_v27 = vsel %vm903_vm14, %v6517_v11, 0.0 }
 0x512   :  { %v6478_v25 = vadd.f32 %v6477_v63, %v6476_v30  ;;  %v8727_v33 = vpack.c.bf16 %v8955_v49, %v8955_v49  ;;  %v7943_v35 = vmul.f32 %v8955_v49, %v8955_v49  ;;  %v7910_v55 = vsel %vm903_vm14, %v8955_v49, 0.0 }
 0x513   :  { %v6531_v5 = vsel %vm903_vm14, %v6515_v0, 0.0  ;;  %8492 = vst.msk [vmem:[%s13041_s3 + $0x84] sm:$0xf] %vm4182_vm7, %v8706_v6  ;;  %v7852_v32 = vpop.f32.mrf.mxu1 }
 0x514   :  { %v6480_v13 = vadd.f32 %v6479_v41, %v6478_v25  ;;  %v6532_v15 = vadd.f32 %v6531_v5, %v6530_v34  ;;  %8647 = vst.msk [vmem:[%s13041_s3 + $0xd8] sm:$0xf] %vm4182_vm7, %v8727_v33  ;;  %v7906_v48 = vsel %vm903_vm14, %v7852_v32, 0.0  ;;  %v7941_v12 = vmul.f32 %v7852_v32, %v7852_v32 }
 0x515   :  { %v7907_v39 = vadd.f32 %v7906_v48, %v7905_v14  ;;  %v8725_v53 = vpack.c.bf16 %v7852_v32, %v7852_v32  ;;  %v8956_v62 = vpop.f32.mrf.mxu1  ;;  %v7964_v52 = vsel %vm903_vm14, %v7943_v35, 0.0 }
 0x516   :  { %v6534_v61 = vadd.f32 %v6533_v56, %v6532_v15  ;;  %v8728_v24 = vpack.c.bf16 %v8956_v62, %v8956_v62  ;;  %v7960_v18 = vsel %vm903_vm14, %v7941_v12, 0.0  ;;  %v12862_v46 = vadd.f32 %v6481_v37, %v6480_v13 }
 0x517   :  { %8645 = vst.msk [vmem:[%s13041_s3 + $0xd0] sm:$0xf] %vm4182_vm7, %v8725_v53  ;;  %v7855_v44 = vpop.f32.mrf.mxu1  ;;  %v7961_v17 = vadd.f32 %v7960_v18, %v7959_v51  ;;  %v7944_v19 = vmul.f32 %v8956_v62, %v8956_v62  ;;  %v7912_v2 = vsel %vm903_vm14, %v8956_v62, 0.0 }
 0x518   :  { %8648 = vst.msk [vmem:[%s13041_s3 + $0xdc] sm:$0xf] %vm4182_vm7, %v8728_v24  ;;  %v7908_v59 = vsel %vm903_vm14, %v7855_v44, 0.0  ;;  %v7942_v22 = vmul.f32 %v7855_v44, %v7855_v44  ;;  %v8726_v16 = vpack.c.bf16 %v7855_v44, %v7855_v44  ;;  %v12869_v60 = vadd.f32 %v6535_v27, %v6534_v61 }
 0x519   :  { %v7909_v57 = vadd.f32 %v7908_v59, %v7907_v39  ;;  %v7966_v9 = vsel %vm903_vm14, %v7944_v19, 0.0 }
 0x51a   :  { %v7962_v10 = vsel %vm903_vm14, %v7942_v22, 0.0  ;;  %8646 = vst.msk [vmem:[%s13041_s3 + $0xd4] sm:$0xf] %vm4182_vm7, %v8726_v16 }
 0x51b   :  { %v7911_v4 = vadd.f32 %v7910_v55, %v7909_v57  ;;  %v7963_v14 = vadd.f32 %v7962_v10, %v7961_v17 }
 0x51d   :  { %v7965_v28 = vadd.f32 %v7964_v52, %v7963_v14  ;;  %v7913_v7 = vadd.f32 %v7912_v2, %v7911_v4 }
 0x51f   :  { %v7967_v38 = vadd.f32 %v7966_v9, %v7965_v28 }
 0x53c   :  { %v12880_v8 = vpop.f32.mrf.mxu0 }
 0x53d   :  { %v8711_v29 = vpack.c.bf16 %v12880_v8, %v12880_v8  ;;  %v6520_v16 = vmul.f32 %v12880_v8, %v12880_v8  ;;  %v6487_v2 = vsel %vm903_vm14, %v12880_v8, 0.0 }
 0x53e   :  { %v6429_v51 = vpop.f32.mrf.mxu0 }
 0x53f   :  { %8497 = vst.msk [vmem:[%s13041_s3 + $0x98] sm:$0xf] %vm4182_vm7, %v8711_v29  ;;  %v8709_v58 = vpack.c.bf16 %v6429_v51, %v6429_v51  ;;  %v6518_v39 = vmul.f32 %v6429_v51, %v6429_v51  ;;  %v6483_v62 = vsel %vm903_vm14, %v6429_v51, 0.0 }
 0x540   :  { %v12888_v26 = vpop.f32.mrf.mxu0  ;;  %v6484_v35 = vadd.f32 %v6483_v62, %v12862_v46 }
 0x541   :  { %8495 = vst.msk [vmem:[%s13041_s3 + $0x90] sm:$0xf] %vm4182_vm7, %v8709_v58  ;;  %v8712_v50 = vpack.c.bf16 %v12888_v26, %v12888_v26  ;;  %v6537_v27 = vsel %vm903_vm14, %v6518_v39, 0.0  ;;  %v6489_v9 = vsel %vm903_vm14, %v12888_v26, 0.0 }
 0x542   :  { %v6432_v47 = vpop.f32.mrf.mxu0  ;;  %v6538_v55 = vadd.f32 %v6537_v27, %v12869_v60 }
 0x543   :  { %v8959_v3 = vpop.f32.mrf.mxu1  ;;  %8498 = vst.msk [vmem:[%s13041_s3 + $0x9c] sm:$0xf] %vm4182_vm7, %v8712_v50  ;;  %v8710_v54 = vpack.c.bf16 %v6432_v47, %v6432_v47  ;;  %v6519_v37 = vmul.f32 %v6432_v47, %v6432_v47  ;;  %v6485_v18 = vsel %vm903_vm14, %v6432_v47, 0.0 }
 0x544   :  { %v8731_v23 = vpack.c.bf16 %v8959_v3, %v8959_v3  ;;  %v7947_v0 = vmul.f32 %v8959_v3, %v8959_v3  ;;  %v7918_v34 = vsel %vm903_vm14, %v8959_v3, 0.0  ;;  %v6486_v19 = vadd.f32 %v6485_v18, %v6484_v35 }
 0x545   :  { %v7868_v43 = vpop.f32.mrf.mxu1  ;;  %8496 = vst.msk [vmem:[%s13041_s3 + $0x94] sm:$0xf] %vm4182_vm7, %v8710_v54  ;;  %v6539_v22 = vsel %vm903_vm14, %v6519_v37, 0.0 }
 0x546   :  { %v7914_v40 = vsel %vm903_vm14, %v7868_v43, 0.0  ;;  %v7945_v42 = vmul.f32 %v7868_v43, %v7868_v43  ;;  %v8729_v31 = vpack.c.bf16 %v7868_v43, %v7868_v43  ;;  %8651 = vst.msk [vmem:[%s13041_s3 + $0xe8] sm:$0xf] %vm4182_vm7, %v8731_v23  ;;  %v7972_v13 = vsel %vm903_vm14, %v7947_v0, 0.0 }
 0x547   :  { %v8960_v36 = vpop.f32.mrf.mxu1  ;;  %v7915_v30 = vadd.f32 %v7914_v40, %v7913_v7  ;;  %v6540_v10 = vadd.f32 %v6539_v22, %v6538_v55  ;;  %v6541_v7 = vsel %vm903_vm14, %v6520_v16, 0.0  ;;  %v6488_v29 = vadd.f32 %v6487_v2, %v6486_v19 }
 0x548   :  { %v7968_v45 = vsel %vm903_vm14, %v7945_v42, 0.0  ;;  %8649 = vst.msk [vmem:[%s13041_s3 + $0xe0] sm:$0xf] %vm4182_vm7, %v8729_v31  ;;  %v8732_v1 = vpack.c.bf16 %v8960_v36, %v8960_v36  ;;  %v7948_v4 = vmul.f32 %v8960_v36, %v8960_v36  ;;  %v7920_v58 = vsel %vm903_vm14, %v8960_v36, 0.0 }
 0x549   :  { %v7871_v63 = vpop.f32.mrf.mxu1  ;;  %v7969_v33 = vadd.f32 %v7968_v45, %v7967_v38  ;;  %v6521_v38 = vmul.f32 %v12888_v26, %v12888_v26  ;;  %v6542_v3 = vadd.f32 %v6541_v7, %v6540_v10  ;;  %v6490_v36 = vadd.f32 %v6489_v9, %v6488_v29 }
 0x54a   :  { %8652 = vst.msk [vmem:[%s13041_s3 + $0xec] sm:$0xf] %vm4182_vm7, %v8732_v1  ;;  %v7916_v6 = vsel %vm903_vm14, %v7871_v63, 0.0  ;;  %v7946_v49 = vmul.f32 %v7871_v63, %v7871_v63  ;;  %v8730_v25 = vpack.c.bf16 %v7871_v63, %v7871_v63  ;;  %v7974_v26 = vsel %vm903_vm14, %v7948_v4, 0.0 }
 0x54b   :  { %v7917_v41 = vadd.f32 %v7916_v6, %v7915_v30  ;;  %v6543_v30 = vsel %vm903_vm14, %v6521_v38, 0.0 }
 0x54c   :  { %v7970_v11 = vsel %vm903_vm14, %v7946_v49, 0.0  ;;  %8650 = vst.msk [vmem:[%s13041_s3 + $0xe4] sm:$0xf] %vm4182_vm7, %v8730_v25  ;;  %v6544_v25 = vadd.f32 %v6543_v30, %v6542_v3 }
 0x54d   :  { %v7919_v5 = vadd.f32 %v7918_v34, %v7917_v41  ;;  %v7971_v32 = vadd.f32 %v7970_v11, %v7969_v33 }
 0x54f   :  { %v7973_v15 = vadd.f32 %v7972_v13, %v7971_v32  ;;  %v7921_v54 = vadd.f32 %v7920_v58, %v7919_v5 }
 0x551   :  { %v7975_v1 = vadd.f32 %v7974_v26, %v7973_v15 }
 0x56a   :  { %v12926_v48 = vpop.f32.mrf.mxu0 }
 0x56b   :  { %v8715_v56 = vpack.c.bf16 %v12926_v48, %v12926_v48  ;;  %v6524_v15 = vmul.f32 %v12926_v48, %v12926_v48 }
 0x56c   :  { %v6445_v12 = vpop.f32.mrf.mxu0 }
 0x56d   :  { %8501 = vst.msk [vmem:[%s13041_s3 + $0xa8] sm:$0xf] %vm4182_vm7, %v8715_v56  ;;  %v8713_v53 = vpack.c.bf16 %v6445_v12, %v6445_v12  ;;  %v6522_v8 = vmul.f32 %v6445_v12, %v6445_v12  ;;  %v6491_v43 = vsel %vm903_vm14, %v6445_v12, 0.0 }
 0x56e   :  { %v12935_v61 = vpop.f32.mrf.mxu0  ;;  %v6492_v49 = vadd.f32 %v6491_v43, %v6490_v36 }
 0x56f   :  { %8499 = vst.msk [vmem:[%s13041_s3 + $0xa0] sm:$0xf] %vm4182_vm7, %v8713_v53  ;;  %v8716_v24 = vpack.c.bf16 %v12935_v61, %v12935_v61  ;;  %v6545_v63 = vsel %vm903_vm14, %v6522_v8, 0.0  ;;  %v6495_v53 = vsel %vm903_vm14, %v12926_v48, 0.0  ;;  %v6525_v35 = vmul.f32 %v12935_v61, %v12935_v61 }
 0x570   :  { %v6448_v44 = vpop.f32.mrf.mxu0  ;;  %v6546_v5 = vadd.f32 %v6545_v63, %v6544_v25 }
 0x571   :  { %8502 = vst.msk [vmem:[%s13041_s3 + $0xac] sm:$0xf] %vm4182_vm7, %v8716_v24  ;;  %v8714_v17 = vpack.c.bf16 %v6448_v44, %v6448_v44  ;;  %v8963_v59 = vpop.f32.mrf.mxu1  ;;  %v6523_v40 = vmul.f32 %v6448_v44, %v6448_v44  ;;  %v6493_v0 = vsel %vm903_vm14, %v6448_v44, 0.0  ;;  %v6549_v44 = vsel %vm903_vm14, %v6524_v15, 0.0 }
 0x572   :  { %v8735_v57 = vpack.c.bf16 %v8963_v59, %v8963_v59  ;;  %v7951_v11 = vmul.f32 %v8963_v59, %v8963_v59  ;;  %v6494_v32 = vadd.f32 %v6493_v0, %v6492_v49  ;;  %v7926_v56 = vsel %vm903_vm14, %v8963_v59, 0.0 }
 0x573   :  { %8500 = vst.msk [vmem:[%s13041_s3 + $0xa4] sm:$0xf] %vm4182_vm7, %v8714_v17  ;;  %v7884_v46 = vpop.f32.mrf.mxu1  ;;  %v6547_v34 = vsel %vm903_vm14, %v6523_v40, 0.0  ;;  %v6551_v2 = vsel %vm903_vm14, %v6525_v35, 0.0 }
 0x574   :  { %8655 = vst.msk [vmem:[%s13041_s3 + $0xf8] sm:$0xf] %vm4182_vm7, %v8735_v57  ;;  %v8733_v14 = vpack.c.bf16 %v7884_v46, %v7884_v46  ;;  %v7949_v60 = vmul.f32 %v7884_v46, %v7884_v46  ;;  %v7922_v50 = vsel %vm903_vm14, %v7884_v46, 0.0  ;;  %v6548_v39 = vadd.f32 %v6547_v34, %v6546_v5 }
 0x575   :  { %v8964_v52 = vpop.f32.mrf.mxu1  ;;  %v7923_v45 = vadd.f32 %v7922_v50, %v7921_v54  ;;  %v7980_v62 = vsel %vm903_vm14, %v7951_v11, 0.0  ;;  %v6496_v27 = vadd.f32 %v6495_v53, %v6494_v32  ;;  %v6497_v57 = vsel %vm903_vm14, %v12935_v61, 0.0 }
 0x576   :  { %v8736_v28 = vpack.c.bf16 %v8964_v52, %v8964_v52  ;;  %8653 = vst.msk [vmem:[%s13041_s3 + $0xf0] sm:$0xf] %vm4182_vm7, %v8733_v14  ;;  %v7976_v42 = vsel %vm903_vm14, %v7949_v60, 0.0  ;;  %v7952_v37 = vmul.f32 %v8964_v52, %v8964_v52  ;;  %v7928_v17 = vsel %vm903_vm14, %v8964_v52, 0.0 }
 0x577   :  { %v7887_v51 = vpop.f32.mrf.mxu1  ;;  %v7977_v33 = vadd.f32 %v7976_v42, %v7975_v1  ;;  %v6550_v16 = vadd.f32 %v6549_v44, %v6548_v39  ;;  %v6498_v52 = vadd.f32 %v6497_v57, %v6496_v27 }
 0x578   :  { %8656 = vst.msk [vmem:[%s13041_s3 + $0xfc] sm:$0xf] %vm4182_vm7, %v8736_v28  ;;  %v7950_v47 = vmul.f32 %v7887_v51, %v7887_v51  ;;  %v8734_v23 = vpack.c.bf16 %v7887_v51, %v7887_v51  ;;  %v7924_v31 = vsel %vm903_vm14, %v7887_v51, 0.0  ;;  %v7982_v55 = vsel %vm903_vm14, %v7952_v37, 0.0 }
 0x579   :  { %v7925_v41 = vadd.f32 %v7924_v31, %v7923_v45  ;;  %v6552_v38 = vadd.f32 %v6551_v2, %v6550_v16 }
 0x57a   :  { %8654 = vst.msk [vmem:[%s13041_s3 + $0xf4] sm:$0xf] %vm4182_vm7, %v8734_v23  ;;  %v7978_v6 = vsel %vm903_vm14, %v7950_v47, 0.0 }
 0x57b   :  { %v7979_v13 = vadd.f32 %v7978_v6, %v7977_v33  ;;  %v7927_v12 = vadd.f32 %v7926_v56, %v7925_v41 }
 0x57d   :  { %v7981_v18 = vadd.f32 %v7980_v62, %v7979_v13  ;;  %v7929_v48 = vadd.f32 %v7928_v17, %v7927_v12 }
 0x57f   :  { %v7983_v14 = vadd.f32 %v7982_v55, %v7981_v18  ;;  %v7930_v7 = vrot.slane %v7929_v48, 4 }
 0x581   :  { %v7984_v50 = vrot.slane %v7983_v14, 4  ;;  %v7931_v43 = vadd.f32 %v7930_v7, %v7929_v48 }
 0x582   :  { %v8943_v24 = vpop.f32.mrf.mxu0 }
 0x583   :  { %v8719_v22 = vpack.c.bf16 %v8943_v24, %v8943_v24  ;;  %v6528_v29 = vmul.f32 %v8943_v24, %v8943_v24  ;;  %v6503_v26 = vsel %vm903_vm14, %v8943_v24, 0.0  ;;  %v7985_v45 = vadd.f32 %v7984_v50, %v7983_v14 }
 0x584   :  { %v6461_v59 = vpop.f32.mrf.mxu0  ;;  %v7932_v0 = vrot.slane %v7931_v43, 2 }
 0x585   :  { %8505 = vst.msk [vmem:[%s13041_s3 + $0xb8] sm:$0xf] %vm4182_vm7, %v8719_v22  ;;  %v6499_v19 = vsel %vm903_vm14, %v6461_v59, 0.0  ;;  %v6526_v46 = vmul.f32 %v6461_v59, %v6461_v59  ;;  %v8717_v10 = vpack.c.bf16 %v6461_v59, %v6461_v59  ;;  %v6557_v31 = vsel %vm903_vm14, %v6528_v29, 0.0 }
 0x586   :  { %v8944_v4 = vpop.f32.mrf.mxu0  ;;  %v6500_v9 = vadd.f32 %v6499_v19, %v6498_v52  ;;  %v7986_v25 = vrot.slane %v7985_v45, 2  ;;  %v7933_v34 = vadd.f32 %v7932_v0, %v7931_v43 }
 0x587   :  { %v6553_v61 = vsel %vm903_vm14, %v6526_v46, 0.0  ;;  %8503 = vst.msk [vmem:[%s13041_s3 + $0xb0] sm:$0xf] %vm4182_vm7, %v8717_v10  ;;  %v8720_v60 = vpack.c.bf16 %v8944_v4, %v8944_v4  ;;  %v6529_v54 = vmul.f32 %v8944_v4, %v8944_v4  ;;  %v6505_v36 = vsel %vm903_vm14, %v8944_v4, 0.0 }
 0x588   :  { %v6464_v28 = vpop.f32.mrf.mxu0  ;;  %v6554_v47 = vadd.f32 %v6553_v61, %v6552_v38  ;;  %v7987_v32 = vadd.f32 %v7986_v25, %v7985_v45  ;;  %v7934_v56 = vrot.slane %v7933_v34, 1 }
 0x589   :  { %8506 = vst.msk [vmem:[%s13041_s3 + $0xbc] sm:$0xf] %vm4182_vm7, %v8720_v60  ;;  %v6501_v51 = vsel %vm903_vm14, %v6464_v28, 0.0  ;;  %v6527_v58 = vmul.f32 %v6464_v28, %v6464_v28  ;;  %v8718_v8 = vpack.c.bf16 %v6464_v28, %v6464_v28  ;;  %v6559_v63 = vsel %vm903_vm14, %v6529_v54, 0.0 }
 0x58a   :  { %v6502_v3 = vadd.f32 %v6501_v51, %v6500_v9  ;;  %v7988_v53 = vrot.slane %v7987_v32, 1  ;;  %v7935_v24 = vadd.f32 %v7934_v56, %v7933_v34 }
 0x58b   :  { %v6555_v23 = vsel %vm903_vm14, %v6527_v58, 0.0  ;;  %8504 = vst.msk [vmem:[%s13041_s3 + $0xb4] sm:$0xf] %vm4182_vm7, %v8718_v8  ;;  %vm8072_vm14 = vcmask 24576  }
 0x58c   :  { %v6504_v40 = vadd.f32 %v6503_v26, %v6502_v3  ;;  %v6556_v42 = vadd.f32 %v6555_v23, %v6554_v47  ;;  %v7989_v44 = vadd.f32 %v7988_v53, %v7987_v32 }
 0x58e   :  { %v6506_v1 = vadd.f32 %v6505_v36, %v6504_v40  ;;  %v6558_v30 = vadd.f32 %v6557_v31, %v6556_v42 }
 0x590   :  { %v6507_v6 = vrot.slane %v6506_v1, 4  ;;  %v6560_v49 = vadd.f32 %v6559_v63, %v6558_v30 }
 0x592   :  { %v6508_v33 = vadd.f32 %v6507_v6, %v6506_v1  ;;  %v6561_v41 = vrot.slane %v6560_v49, 4 }
 0x594   :  { %v6509_v11 = vrot.slane %v6508_v33, 2  ;;  %v6562_v5 = vadd.f32 %v6561_v41, %v6560_v49 }
 0x596   :  { %v6510_v13 = vadd.f32 %v6509_v11, %v6508_v33  ;;  %v6563_v15 = vrot.slane %v6562_v5, 2 }
 0x598   :  { %v6511_v39 = vrot.slane %v6510_v13, 1  ;;  %v6564_v12 = vadd.f32 %v6563_v15, %v6562_v5 }
 0x59a   :  { %v6512_v62 = vadd.f32 %v6511_v39, %v6510_v13  ;;  %v6565_v37 = vrot.slane %v6564_v12, 1 }
 0x59c   :  { %v6513_v27 = vadd.f32 %v6512_v62, %v12824_v20  ;;  %v6566_v18 = vadd.f32 %v6565_v37, %v6564_v12 }
 0x59e   :  { %v6567_v35 = vadd.f32 %v6566_v18, %v12826_v21  ;;  %v7936_v17 = vadd.f32 %v7935_v24, %v6513_v27 }
 0x5a0   :  { %v7990_v22 = vadd.f32 %v7989_v44, %v6567_v35  ;;  %8073 = vst.msk [vmem:[%s13042_s4] sm:$0x1] %vm8072_vm14, %v7936_v17 }
 0x5a2   :  { %8074 = vst.msk [vmem:[%s13042_s4 + $0x1] sm:$0x1] %vm8072_vm14, %v7990_v22 }

</bundles_post_ra>
